<compile_context>
chip_gen: v6e
topology: v6e:2x2x1
jax: 0.10.0
libtpu: 0.0.40
codegen_flags: <defaults>
</compile_context>

<pallas_src>
import functools

import jax
import jax.numpy as jnp
import numpy as np
from jax import lax
from jax.experimental import pallas as pl
from jax.experimental.pallas import tpu as pltpu

EPS = 1e-5
LANES = 128  # channel padding target (lane width)


def _round_up(x, m):
    return (x + m - 1) // m * m


# ------------------------------ Pallas kernels ------------------------------ #

def conv1_stats_kernel(x_ref, w_ref, b_ref, conv_ref, st_ref, *, H, W):
    """3x3 conv (9 accumulated 128-wide matmuls) + per-tile BN partial stats.

    x_ref:    (1, H+2, W+2, CI) f32  fc-added input, zero halo + lane padding
    w_ref:    (9, CI, CO)       f32  3x3 weights, tap-major (dy, dx)
    b_ref:    (1, CO)           f32
    conv_ref: (1, H*W, CO)      f32  raw conv output (pre-BN)
    st_ref:   (1, 8, CO)        f32  row0 = sum, row1 = sum of squares
    """
    HW = H * W
    CI = x_ref.shape[-1]
    CO = w_ref.shape[-1]
    acc = jnp.zeros((HW, CO), jnp.float32)
    for dy in range(3):
        for dx in range(3):
            tap = x_ref[0, dy:dy + H, dx:dx + W, :].reshape(HW, CI)
            acc += jnp.dot(tap, w_ref[3 * dy + dx],
                           preferred_element_type=jnp.float32)
    conv = acc + b_ref[...]
    conv_ref[0] = conv
    st_ref[0] = jnp.concatenate(
        [jnp.sum(conv, axis=0, keepdims=True),
         jnp.sum(conv * conv, axis=0, keepdims=True),
         jnp.zeros((6, CO), jnp.float32)], axis=0)


def bn1_conv2_stats_kernel(conv1_ref, s1_ref, t1_ref, w_ref, b_ref,
                           conv2_ref, st_ref, hpad_ref, *, H, W):
    """Apply fused BN1 affine + ReLU, then conv2 (+ BN2 partial stats).

    The ReLU'd activation never touches HBM: it is written zero-padded into a
    VMEM scratch so the 9 conv2 taps can be sliced from it directly.  The halo
    of the scratch only needs zeroing once (it is never overwritten).
    """
    HW = H * W
    CO = conv1_ref.shape[-1]

    @pl.when(pl.program_id(0) == 0)
    def _():
        hpad_ref[...] = jnp.zeros_like(hpad_ref)

    h = jnp.maximum(conv1_ref[0] * s1_ref[...] + t1_ref[...], 0.0)   # f32
    hpad_ref[1:H + 1, 1:W + 1, :] = h.reshape(H, W, CO)
    acc = jnp.zeros((HW, CO), jnp.float32)
    for dy in range(3):
        for dx in range(3):
            tap = hpad_ref[dy:dy + H, dx:dx + W, :].reshape(HW, CO)
            acc += jnp.dot(tap, w_ref[3 * dy + dx],
                           preferred_element_type=jnp.float32)
    conv = acc + b_ref[...]
    conv2_ref[0] = conv
    st_ref[0] = jnp.concatenate(
        [jnp.sum(conv, axis=0, keepdims=True),
         jnp.sum(conv * conv, axis=0, keepdims=True),
         jnp.zeros((6, CO), jnp.float32)], axis=0)


def bn2_shortcut_kernel(conv2_ref, s2_ref, t2_ref, x_ref, ws_ref, bs_ref,
                        y_ref, *, H, W):
    """Apply fused BN2 affine + ReLU, 1x1-conv shortcut, residual add."""
    HW = H * W
    CI = x_ref.shape[-1]
    h2 = jnp.maximum(conv2_ref[0] * s2_ref[...] + t2_ref[...], 0.0)
    xin = x_ref[0, 1:H + 1, 1:W + 1, :].reshape(HW, CI)
    res = jnp.dot(xin, ws_ref[...],
                  preferred_element_type=jnp.float32) + bs_ref[...]
    y_ref[0] = h2 + res


def bn2_identity_kernel(conv2_ref, s2_ref, t2_ref, x_ref, y_ref, *, H, W):
    """Same as above but shortcut is None (Cin == Cout): plain residual add."""
    HW = H * W
    CI = x_ref.shape[-1]
    h2 = jnp.maximum(conv2_ref[0] * s2_ref[...] + t2_ref[...], 0.0)
    xin = x_ref[0, 1:H + 1, 1:W + 1, :].reshape(HW, CI)
    y_ref[0] = h2 + xin


# -------------------------------- forward ---------------------------------- #

def middle_layer_forward(x_nchw, temb, p):
    N, Cin, H, W = x_nchw.shape
    Cout = p["w1"].shape[-1]
    CI = _round_up(Cin, LANES)
    CO = _round_up(Cout, LANES)
    HW = H * W
    M = N * HW
    f32 = jnp.float32

    # ---- input prep: one fused layout pass (glue, no Pallas needed) ------- #
    # fc(temb) is tiny (N x Cin); folding it into the single NCHW->NHWC +
    # halo-pad + lane-pad write avoids a separate kernel and an extra HBM
    # round trip of the activation. The zero halo must NOT contain proj,
    # which is why the add happens before padding.
    proj = temb @ p["fc_w"] + p["fc_b"][0]                         # (N, Cin)
    x_nhwc = jnp.transpose(x_nchw, (0, 2, 3, 1)) + proj[:, None, None, :]
    xq = jnp.pad(x_nhwc, ((0, 0), (1, 1), (1, 1), (0, CI - Cin))).astype(f32)

    def pad2(a, r, c):
        return jnp.pad(a, ((0, r - a.shape[0]), (0, c - a.shape[1])))

    # TODO(synk): on real v5e/v6e/v7x cast conv/shortcut matmul operands to
    # bf16 (f32 accumulation) for 2x MXU throughput; kept f32 here because the
    # execution backend rejects bf16xbf16=f32 dots.
    w1 = jnp.pad(p["w1"].reshape(9, Cin, Cout),
                 ((0, 0), (0, CI - Cin), (0, CO - Cout))).astype(f32)
    w2 = jnp.pad(p["w2"].reshape(9, Cout, Cout),
                 ((0, 0), (0, CO - Cout), (0, CO - Cout))).astype(f32)
    b1, b2 = pad2(p["b1"], 1, CO), pad2(p["b2"], 1, CO)
    g1, be1 = pad2(p["g1"], 1, CO), pad2(p["be1"], 1, CO)
    g2, be2 = pad2(p["g2"], 1, CO), pad2(p["be2"], 1, CO)

    parallel = pltpu.CompilerParams(dimension_semantics=("parallel",))
    full = lambda shape: pl.BlockSpec(tuple(shape),
                                      lambda n, _k=len(shape): (0,) * _k)
    per_n = lambda shape: pl.BlockSpec((1,) + tuple(shape),
                                       lambda n, _k=len(shape): (n,) + (0,) * _k)

    # ---- pass 1: conv1 + per-tile BN1 partial stats ------------------------ #
    conv1, st1 = pl.pallas_call(
        functools.partial(conv1_stats_kernel, H=H, W=W),
        grid=(N,),
        in_specs=[per_n((H + 2, W + 2, CI)), full((9, CI, CO)), full((1, CO))],
        out_specs=(per_n((HW, CO)), per_n((8, CO))),
        out_shape=(jax.ShapeDtypeStruct((N, HW, CO), f32),
                   jax.ShapeDtypeStruct((N, 8, CO), f32)),
        compiler_params=parallel,
    )(xq, w1, b1)

    def bn_scale_shift(st, g, be):
        # Combine per-tile partial sums -> batch mean / biased var -> fused
        # per-channel affine (s, t). Tiny (N x 2 x 128) reduction: plain JAX.
        ssum = jnp.sum(st[:, 0, :], axis=0)
        ssq = jnp.sum(st[:, 1, :], axis=0)
        mean = ssum / M
        var = jnp.maximum(ssq / M - mean * mean, 0.0)
        inv = lax.rsqrt(var + EPS)
        s = g[0] * inv
        t = be[0] - mean * s
        return s[None, :].astype(f32), t[None, :].astype(f32)

    s1, t1 = bn_scale_shift(st1, g1, be1)

    # ---- pass 2: BN1 affine + ReLU, conv2 + per-tile BN2 partial stats ----- #
    conv2, st2 = pl.pallas_call(
        functools.partial(bn1_conv2_stats_kernel, H=H, W=W),
        grid=(N,),
        in_specs=[per_n((HW, CO)), full((1, CO)), full((1, CO)),
                  full((9, CO, CO)), full((1, CO))],
        out_specs=(per_n((HW, CO)), per_n((8, CO))),
        out_shape=(jax.ShapeDtypeStruct((N, HW, CO), f32),
                   jax.ShapeDtypeStruct((N, 8, CO), f32)),
        scratch_shapes=[pltpu.VMEM((H + 2, W + 2, CO), f32)],
        compiler_params=parallel,
    )(conv1, s1, t1, w2, b2)

    s2, t2 = bn_scale_shift(st2, g2, be2)

    # ---- pass 3: BN2 affine + ReLU, shortcut, residual add ----------------- #
    if Cin != Cout:
        ws = pad2(p["ws"], CI, CO).astype(f32)
        bs = pad2(p["bs"], 1, CO)
        y = pl.pallas_call(
            functools.partial(bn2_shortcut_kernel, H=H, W=W),
            grid=(N,),
            in_specs=[per_n((HW, CO)), full((1, CO)), full((1, CO)),
                      per_n((H + 2, W + 2, CI)), full((CI, CO)), full((1, CO))],
            out_specs=per_n((HW, CO)),
            out_shape=jax.ShapeDtypeStruct((N, HW, CO), f32),
            compiler_params=parallel,
        )(conv2, s2, t2, xq, ws, bs)
    else:
        # shortcut is None in PyTorch -> plain add (no eye-matrix matmul)
        y = pl.pallas_call(
            functools.partial(bn2_identity_kernel, H=H, W=W),
            grid=(N,),
            in_specs=[per_n((HW, CO)), full((1, CO)), full((1, CO)),
                      per_n((H + 2, W + 2, CI))],
            out_specs=per_n((HW, CO)),
            out_shape=jax.ShapeDtypeStruct((N, HW, CO), f32),
            compiler_params=parallel,
        )(conv2, s2, t2, xq)

    # TODO(synk): for very large H*W a per-image tile would exceed VMEM; split
    # rows with a halo'd manual DMA (pl.ANY + make_async_copy) in that regime.
    y = y.reshape(N, H, W, CO)[:, :, :, :Cout]
    return jnp.transpose(y, (0, 3, 1, 2))                            # NCHW


# ------------------------- pure-JAX reference check ------------------------- #

def reference_forward(x_nchw, temb, p):
    """Pure-f32 reference (same precision as the kernels)."""
    f32 = jnp.float32
    proj = temb @ p["fc_w"] + p["fc_b"][0]
    xp = x_nchw + proj[:, :, None, None]        # in-place `x +=` aliases res

    def conv3(z, w_hwio, b):
        y = lax.conv_general_dilated(
            z, w_hwio, (1, 1), "SAME",
            dimension_numbers=("NCHW", "HWIO", "NCHW"),
            preferred_element_type=f32)
        return y + b[0][None, :, None, None]

    def bn(z, g, bt):
        mean = jnp.mean(z, axis=(0, 2, 3), keepdims=True)
        var = jnp.var(z, axis=(0, 2, 3), keepdims=True)   # biased (training)
        return ((z - mean) * lax.rsqrt(var + EPS) * g[0][None, :, None, None]
                + bt[0][None, :, None, None])

    h = jax.nn.relu(bn(conv3(xp, p["w1"], p["b1"]), p["g1"], p["be1"]))
    h = jax.nn.relu(bn(conv3(h, p["w2"], p["b2"]), p["g2"], p["be2"]))
    if "ws" in p:
        res = jnp.einsum("nchw,co->nohw", xp, p["ws"],
                         preferred_element_type=f32)
        res = res + p["bs"][0][None, :, None, None]
    else:
        res = xp
    return h + res


# ----------------------------------- main ----------------------------------- #

if __name__ == "__main__":
    # TODO(synk): training-mode BatchNorm running-stat buffer updates (stateful
    # side effect that does not affect the returned tensor) are not replicated.
    key = jax.random.PRNGKey(0)
    N, Cin, Cout, H, W, T = 2, 4, 8, 16, 16, 16
    ks = jax.random.split(key, 16)

    x = jax.random.normal(ks[0], (N, Cin, H, W), jnp.float32)
    temb = jax.random.normal(ks[1], (N, T), jnp.float32)

    params = dict(
        fc_w=0.20 * jax.random.normal(ks[2], (T, Cin), jnp.float32),
        fc_b=0.10 * jax.random.normal(ks[3], (1, Cin), jnp.float32),
        w1=0.15 * jax.random.normal(ks[4], (3, 3, Cin, Cout), jnp.float32),
        b1=0.05 * jax.random.normal(ks[5], (1, Cout), jnp.float32),
        g1=1.0 + 0.10 * jax.random.normal(ks[6], (1, Cout), jnp.float32),
        be1=0.10 * jax.random.normal(ks[7], (1, Cout), jnp.float32),
        w2=0.15 * jax.random.normal(ks[8], (3, 3, Cout, Cout), jnp.float32),
        b2=0.05 * jax.random.normal(ks[9], (1, Cout), jnp.float32),
        g2=1.0 + 0.10 * jax.random.normal(ks[10], (1, Cout), jnp.float32),
        be2=0.10 * jax.random.normal(ks[11], (1, Cout), jnp.float32),
        ws=0.30 * jax.random.normal(ks[12], (Cin, Cout), jnp.float32),
        bs=0.05 * jax.random.normal(ks[13], (1, Cout), jnp.float32),
    )

    fwd = jax.jit(middle_layer_forward)
    out = jax.block_until_ready(fwd(x, temb, params))
    ref = jax.block_until_ready(reference_forward(x, temb, params))

    assert out.shape == (N, Cout, H, W)
    # Both sides are pure f32; residual difference is only f32 accumulation
    # order in the convs / BN reductions.
    np.testing.assert_allclose(np.asarray(out), np.asarray(ref),
                               rtol=1e-3, atol=1e-3)
    print("KERNEL_OK")
</pallas_src>

<mosaic_0001>
module attributes {stable_mosaic.version = 11 : i64} {
  func.func @conv1_stats_kernel(%arg0: i32, %arg1: memref<1x18x18x128xf32, #tpu.memory_space<vmem>>, %arg2: memref<9x128x128xf32, #tpu.memory_space<vmem>>, %arg3: memref<1x128xf32, #tpu.memory_space<vmem>>, %arg4: memref<1x256x128xf32, #tpu.memory_space<vmem>>, %arg5: memref<1x8x128xf32, #tpu.memory_space<vmem>>) attributes {dimension_semantics = [#tpu.dimension_semantics<parallel>], iteration_bounds = array<i64: 2>, scalar_prefetch = 0 : i64, scratch_operands = 0 : i64, tpu.core_type = #tpu.core_type<tc>, window_params = [{transform_indices = @transform_0, window_bounds = array<i64: 1, 18, 18, 128>}, {pipeline_mode = #tpu.pipeline_mode<synchronous>, transform_indices = @transform_1, window_bounds = array<i64: 9, 128, 128>}, {pipeline_mode = #tpu.pipeline_mode<synchronous>, transform_indices = @transform_2, window_bounds = array<i64: 1, 128>}, {transform_indices = @transform_3, window_bounds = array<i64: 1, 256, 128>}, {transform_indices = @transform_4, window_bounds = array<i64: 1, 8, 128>}]} {
    %cst = arith.constant 0.000000e+00 : f32
    %0 = vector.broadcast %cst : f32 to vector<256x128xf32>
    %c0 = arith.constant 0 : index
    %c0_0 = arith.constant 0 : index
    %c0_1 = arith.constant 0 : index
    %c0_2 = arith.constant 0 : index
    %1 = vector.load %arg1[%c0, %c0_0, %c0_1, %c0_2] : memref<1x18x18x128xf32, #tpu.memory_space<vmem>>, vector<1x16x16x128xf32>
    %2 = vector.shape_cast %1 : vector<1x16x16x128xf32> to vector<16x16x128xf32>
    %3 = vector.shape_cast %2 : vector<16x16x128xf32> to vector<256x128xf32>
    %c0_3 = arith.constant 0 : index
    %c0_4 = arith.constant 0 : index
    %c0_5 = arith.constant 0 : index
    %4 = vector.load %arg2[%c0_3, %c0_4, %c0_5] : memref<9x128x128xf32, #tpu.memory_space<vmem>>, vector<1x128x128xf32>
    %5 = vector.shape_cast %4 : vector<1x128x128xf32> to vector<128x128xf32>
    %cst_6 = arith.constant dense<0.000000e+00> : vector<256x128xf32>
    %6 = tpu.matmul %3, %5, %cst_6 {dimension_numbers = #tpu.dot_dimension_numbers<[1], [0], [0], [1], [0, 0, 1, 1], [], []>} : vector<256x128xf32>, vector<128x128xf32>, vector<256x128xf32> -> vector<256x128xf32>
    %7 = arith.addf %0, %6 : vector<256x128xf32>
    %c0_7 = arith.constant 0 : index
    %c0_8 = arith.constant 0 : index
    %c1 = arith.constant 1 : index
    %c0_9 = arith.constant 0 : index
    %8 = vector.load %arg1[%c0_7, %c0_8, %c1, %c0_9] : memref<1x18x18x128xf32, #tpu.memory_space<vmem>>, vector<1x16x16x128xf32>
    %9 = vector.shape_cast %8 : vector<1x16x16x128xf32> to vector<16x16x128xf32>
    %10 = vector.shape_cast %9 : vector<16x16x128xf32> to vector<256x128xf32>
    %c1_10 = arith.constant 1 : index
    %c0_11 = arith.constant 0 : index
    %c0_12 = arith.constant 0 : index
    %11 = vector.load %arg2[%c1_10, %c0_11, %c0_12] : memref<9x128x128xf32, #tpu.memory_space<vmem>>, vector<1x128x128xf32>
    %12 = vector.shape_cast %11 : vector<1x128x128xf32> to vector<128x128xf32>
    %cst_13 = arith.constant dense<0.000000e+00> : vector<256x128xf32>
    %13 = tpu.matmul %10, %12, %cst_13 {dimension_numbers = #tpu.dot_dimension_numbers<[1], [0], [0], [1], [0, 0, 1, 1], [], []>} : vector<256x128xf32>, vector<128x128xf32>, vector<256x128xf32> -> vector<256x128xf32>
    %14 = arith.addf %7, %13 : vector<256x128xf32>
    %c0_14 = arith.constant 0 : index
    %c0_15 = arith.constant 0 : index
    %c2 = arith.constant 2 : index
    %c0_16 = arith.constant 0 : index
    %15 = vector.load %arg1[%c0_14, %c0_15, %c2, %c0_16] : memref<1x18x18x128xf32, #tpu.memory_space<vmem>>, vector<1x16x16x128xf32>
    %16 = vector.shape_cast %15 : vector<1x16x16x128xf32> to vector<16x16x128xf32>
    %17 = vector.shape_cast %16 : vector<16x16x128xf32> to vector<256x128xf32>
    %c2_17 = arith.constant 2 : index
    %c0_18 = arith.constant 0 : index
    %c0_19 = arith.constant 0 : index
    %18 = vector.load %arg2[%c2_17, %c0_18, %c0_19] : memref<9x128x128xf32, #tpu.memory_space<vmem>>, vector<1x128x128xf32>
    %19 = vector.shape_cast %18 : vector<1x128x128xf32> to vector<128x128xf32>
    %cst_20 = arith.constant dense<0.000000e+00> : vector<256x128xf32>
    %20 = tpu.matmul %17, %19, %cst_20 {dimension_numbers = #tpu.dot_dimension_numbers<[1], [0], [0], [1], [0, 0, 1, 1], [], []>} : vector<256x128xf32>, vector<128x128xf32>, vector<256x128xf32> -> vector<256x128xf32>
    %21 = arith.addf %14, %20 : vector<256x128xf32>
    %c0_21 = arith.constant 0 : index
    %c1_22 = arith.constant 1 : index
    %c0_23 = arith.constant 0 : index
    %c0_24 = arith.constant 0 : index
    %22 = vector.load %arg1[%c0_21, %c1_22, %c0_23, %c0_24] : memref<1x18x18x128xf32, #tpu.memory_space<vmem>>, vector<1x16x16x128xf32>
    %23 = vector.shape_cast %22 : vector<1x16x16x128xf32> to vector<16x16x128xf32>
    %24 = vector.shape_cast %23 : vector<16x16x128xf32> to vector<256x128xf32>
    %c3 = arith.constant 3 : index
    %c0_25 = arith.constant 0 : index
    %c0_26 = arith.constant 0 : index
    %25 = vector.load %arg2[%c3, %c0_25, %c0_26] : memref<9x128x128xf32, #tpu.memory_space<vmem>>, vector<1x128x128xf32>
    %26 = vector.shape_cast %25 : vector<1x128x128xf32> to vector<128x128xf32>
    %cst_27 = arith.constant dense<0.000000e+00> : vector<256x128xf32>
    %27 = tpu.matmul %24, %26, %cst_27 {dimension_numbers = #tpu.dot_dimension_numbers<[1], [0], [0], [1], [0, 0, 1, 1], [], []>} : vector<256x128xf32>, vector<128x128xf32>, vector<256x128xf32> -> vector<256x128xf32>
    %28 = arith.addf %21, %27 : vector<256x128xf32>
    %c0_28 = arith.constant 0 : index
    %c1_29 = arith.constant 1 : index
    %c1_30 = arith.constant 1 : index
    %c0_31 = arith.constant 0 : index
    %29 = vector.load %arg1[%c0_28, %c1_29, %c1_30, %c0_31] : memref<1x18x18x128xf32, #tpu.memory_space<vmem>>, vector<1x16x16x128xf32>
    %30 = vector.shape_cast %29 : vector<1x16x16x128xf32> to vector<16x16x128xf32>
    %31 = vector.shape_cast %30 : vector<16x16x128xf32> to vector<256x128xf32>
    %c4 = arith.constant 4 : index
    %c0_32 = arith.constant 0 : index
    %c0_33 = arith.constant 0 : index
    %32 = vector.load %arg2[%c4, %c0_32, %c0_33] : memref<9x128x128xf32, #tpu.memory_space<vmem>>, vector<1x128x128xf32>
    %33 = vector.shape_cast %32 : vector<1x128x128xf32> to vector<128x128xf32>
    %cst_34 = arith.constant dense<0.000000e+00> : vector<256x128xf32>
    %34 = tpu.matmul %31, %33, %cst_34 {dimension_numbers = #tpu.dot_dimension_numbers<[1], [0], [0], [1], [0, 0, 1, 1], [], []>} : vector<256x128xf32>, vector<128x128xf32>, vector<256x128xf32> -> vector<256x128xf32>
    %35 = arith.addf %28, %34 : vector<256x128xf32>
    %c0_35 = arith.constant 0 : index
    %c1_36 = arith.constant 1 : index
    %c2_37 = arith.constant 2 : index
    %c0_38 = arith.constant 0 : index
    %36 = vector.load %arg1[%c0_35, %c1_36, %c2_37, %c0_38] : memref<1x18x18x128xf32, #tpu.memory_space<vmem>>, vector<1x16x16x128xf32>
    %37 = vector.shape_cast %36 : vector<1x16x16x128xf32> to vector<16x16x128xf32>
    %38 = vector.shape_cast %37 : vector<16x16x128xf32> to vector<256x128xf32>
    %c5 = arith.constant 5 : index
    %c0_39 = arith.constant 0 : index
    %c0_40 = arith.constant 0 : index
    %39 = vector.load %arg2[%c5, %c0_39, %c0_40] : memref<9x128x128xf32, #tpu.memory_space<vmem>>, vector<1x128x128xf32>
    %40 = vector.shape_cast %39 : vector<1x128x128xf32> to vector<128x128xf32>
    %cst_41 = arith.constant dense<0.000000e+00> : vector<256x128xf32>
    %41 = tpu.matmul %38, %40, %cst_41 {dimension_numbers = #tpu.dot_dimension_numbers<[1], [0], [0], [1], [0, 0, 1, 1], [], []>} : vector<256x128xf32>, vector<128x128xf32>, vector<256x128xf32> -> vector<256x128xf32>
    %42 = arith.addf %35, %41 : vector<256x128xf32>
    %c0_42 = arith.constant 0 : index
    %c2_43 = arith.constant 2 : index
    %c0_44 = arith.constant 0 : index
    %c0_45 = arith.constant 0 : index
    %43 = vector.load %arg1[%c0_42, %c2_43, %c0_44, %c0_45] : memref<1x18x18x128xf32, #tpu.memory_space<vmem>>, vector<1x16x16x128xf32>
    %44 = vector.shape_cast %43 : vector<1x16x16x128xf32> to vector<16x16x128xf32>
    %45 = vector.shape_cast %44 : vector<16x16x128xf32> to vector<256x128xf32>
    %c6 = arith.constant 6 : index
    %c0_46 = arith.constant 0 : index
    %c0_47 = arith.constant 0 : index
    %46 = vector.load %arg2[%c6, %c0_46, %c0_47] : memref<9x128x128xf32, #tpu.memory_space<vmem>>, vector<1x128x128xf32>
    %47 = vector.shape_cast %46 : vector<1x128x128xf32> to vector<128x128xf32>
    %cst_48 = arith.constant dense<0.000000e+00> : vector<256x128xf32>
    %48 = tpu.matmul %45, %47, %cst_48 {dimension_numbers = #tpu.dot_dimension_numbers<[1], [0], [0], [1], [0, 0, 1, 1], [], []>} : vector<256x128xf32>, vector<128x128xf32>, vector<256x128xf32> -> vector<256x128xf32>
    %49 = arith.addf %42, %48 : vector<256x128xf32>
    %c0_49 = arith.constant 0 : index
    %c2_50 = arith.constant 2 : index
    %c1_51 = arith.constant 1 : index
    %c0_52 = arith.constant 0 : index
    %50 = vector.load %arg1[%c0_49, %c2_50, %c1_51, %c0_52] : memref<1x18x18x128xf32, #tpu.memory_space<vmem>>, vector<1x16x16x128xf32>
    %51 = vector.shape_cast %50 : vector<1x16x16x128xf32> to vector<16x16x128xf32>
    %52 = vector.shape_cast %51 : vector<16x16x128xf32> to vector<256x128xf32>
    %c7 = arith.constant 7 : index
    %c0_53 = arith.constant 0 : index
    %c0_54 = arith.constant 0 : index
    %53 = vector.load %arg2[%c7, %c0_53, %c0_54] : memref<9x128x128xf32, #tpu.memory_space<vmem>>, vector<1x128x128xf32>
    %54 = vector.shape_cast %53 : vector<1x128x128xf32> to vector<128x128xf32>
    %cst_55 = arith.constant dense<0.000000e+00> : vector<256x128xf32>
    %55 = tpu.matmul %52, %54, %cst_55 {dimension_numbers = #tpu.dot_dimension_numbers<[1], [0], [0], [1], [0, 0, 1, 1], [], []>} : vector<256x128xf32>, vector<128x128xf32>, vector<256x128xf32> -> vector<256x128xf32>
    %56 = arith.addf %49, %55 : vector<256x128xf32>
    %c0_56 = arith.constant 0 : index
    %c2_57 = arith.constant 2 : index
    %c2_58 = arith.constant 2 : index
    %c0_59 = arith.constant 0 : index
    %57 = vector.load %arg1[%c0_56, %c2_57, %c2_58, %c0_59] : memref<1x18x18x128xf32, #tpu.memory_space<vmem>>, vector<1x16x16x128xf32>
    %58 = vector.shape_cast %57 : vector<1x16x16x128xf32> to vector<16x16x128xf32>
    %59 = vector.shape_cast %58 : vector<16x16x128xf32> to vector<256x128xf32>
    %c8 = arith.constant 8 : index
    %c0_60 = arith.constant 0 : index
    %c0_61 = arith.constant 0 : index
    %60 = vector.load %arg2[%c8, %c0_60, %c0_61] : memref<9x128x128xf32, #tpu.memory_space<vmem>>, vector<1x128x128xf32>
    %61 = vector.shape_cast %60 : vector<1x128x128xf32> to vector<128x128xf32>
    %cst_62 = arith.constant dense<0.000000e+00> : vector<256x128xf32>
    %62 = tpu.matmul %59, %61, %cst_62 {dimension_numbers = #tpu.dot_dimension_numbers<[1], [0], [0], [1], [0, 0, 1, 1], [], []>} : vector<256x128xf32>, vector<128x128xf32>, vector<256x128xf32> -> vector<256x128xf32>
    %63 = arith.addf %56, %62 : vector<256x128xf32>
    %c0_63 = arith.constant 0 : index
    %c0_64 = arith.constant 0 : index
    %64 = vector.load %arg3[%c0_63, %c0_64] : memref<1x128xf32, #tpu.memory_space<vmem>>, vector<1x128xf32>
    %65 = vector.broadcast %64 : vector<1x128xf32> to vector<256x128xf32>
    %66 = arith.addf %63, %65 : vector<256x128xf32>
    %c0_65 = arith.constant 0 : index
    %c0_66 = arith.constant 0 : index
    %c0_67 = arith.constant 0 : index
    %67 = vector.load %arg4[%c0_65, %c0_66, %c0_67] : memref<1x256x128xf32, #tpu.memory_space<vmem>>, vector<1x256x128xf32>
    %68 = vector.shape_cast %67 : vector<1x256x128xf32> to vector<256x128xf32>
    %69 = vector.shape_cast %66 : vector<256x128xf32> to vector<1x256x128xf32>
    tpu.vector_store %arg4[%c0_65, %c0_66, %c0_67], %69 {strides = array<i32>} : memref<1x256x128xf32, #tpu.memory_space<vmem>>, vector<1x256x128xf32>,
    %cst_68 = arith.constant dense<0.000000e+00> : vector<128xf32>
    %70 = vector.multi_reduction <add>, %66, %cst_68 [0] : vector<256x128xf32> to vector<128xf32>
    %71 = vector.shape_cast %70 : vector<128xf32> to vector<1x128xf32>
    %72 = arith.mulf %66, %66 : vector<256x128xf32>
    %cst_69 = arith.constant dense<0.000000e+00> : vector<128xf32>
    %73 = vector.multi_reduction <add>, %72, %cst_69 [0] : vector<256x128xf32> to vector<128xf32>
    %74 = vector.shape_cast %73 : vector<128xf32> to vector<1x128xf32>
    %cst_70 = arith.constant 0.000000e+00 : f32
    %75 = vector.broadcast %cst_70 : f32 to vector<6x128xf32>
    %76 = tpu.concatenate %71, %74, %75 in 0 : vector<1x128xf32>, vector<1x128xf32>, vector<6x128xf32> -> vector<8x128xf32>
    %c0_71 = arith.constant 0 : index
    %c0_72 = arith.constant 0 : index
    %c0_73 = arith.constant 0 : index
    %77 = vector.load %arg5[%c0_71, %c0_72, %c0_73] : memref<1x8x128xf32, #tpu.memory_space<vmem>>, vector<1x8x128xf32>
    %78 = vector.shape_cast %77 : vector<1x8x128xf32> to vector<8x128xf32>
    %79 = vector.shape_cast %76 : vector<8x128xf32> to vector<1x8x128xf32>
    tpu.vector_store %arg5[%c0_71, %c0_72, %c0_73], %79 {strides = array<i32>} : memref<1x8x128xf32, #tpu.memory_space<vmem>>, vector<1x8x128xf32>,
    return
  }
  func.func @transform_0(%arg0: i32) -> (i32, i32, i32, i32) {
    %c0_i32 = arith.constant 0 : i32
    %c0_i32_0 = arith.constant 0 : i32
    %c0_i32_1 = arith.constant 0 : i32
    %c0_i32_2 = arith.constant 0 : i32
    return %arg0, %c0_i32, %c0_i32_0, %c0_i32_1 : i32, i32, i32, i32
  }
  func.func @transform_1(%arg0: i32) -> (i32, i32, i32) {
    %c0_i32 = arith.constant 0 : i32
    %c0_i32_0 = arith.constant 0 : i32
    %c0_i32_1 = arith.constant 0 : i32
    %c0_i32_2 = arith.constant 0 : i32
    return %c0_i32, %c0_i32_0, %c0_i32_1 : i32, i32, i32
  }
  func.func @transform_2(%arg0: i32) -> (i32, i32) {
    %c0_i32 = arith.constant 0 : i32
    %c0_i32_0 = arith.constant 0 : i32
    %c0_i32_1 = arith.constant 0 : i32
    return %c0_i32, %c0_i32_0 : i32, i32
  }
  func.func @transform_3(%arg0: i32) -> (i32, i32, i32) {
    %c0_i32 = arith.constant 0 : i32
    %c0_i32_0 = arith.constant 0 : i32
    %c0_i32_1 = arith.constant 0 : i32
    return %arg0, %c0_i32, %c0_i32_0 : i32, i32, i32
  }
  func.func @transform_4(%arg0: i32) -> (i32, i32, i32) {
    %c0_i32 = arith.constant 0 : i32
    %c0_i32_0 = arith.constant 0 : i32
    %c0_i32_1 = arith.constant 0 : i32
    return %arg0, %c0_i32, %c0_i32_0 : i32, i32, i32
  }
}

module attributes {stable_mosaic.version = 11 : i64} {
  func.func @bn1_conv2_stats_kernel(%arg0: i32, %arg1: memref<1x256x128xf32, #tpu.memory_space<vmem>>, %arg2: memref<1x128xf32, #tpu.memory_space<vmem>>, %arg3: memref<1x128xf32, #tpu.memory_space<vmem>>, %arg4: memref<9x128x128xf32, #tpu.memory_space<vmem>>, %arg5: memref<1x128xf32, #tpu.memory_space<vmem>>, %arg6: memref<1x256x128xf32, #tpu.memory_space<vmem>>, %arg7: memref<1x8x128xf32, #tpu.memory_space<vmem>>, %arg8: memref<18x18x128xf32, #tpu.memory_space<vmem>>) attributes {dimension_semantics = [#tpu.dimension_semantics<parallel>], iteration_bounds = array<i64: 2>, scalar_prefetch = 0 : i64, scratch_operands = 1 : i64, tpu.core_type = #tpu.core_type<tc>, window_params = [{transform_indices = @transform_0, window_bounds = array<i64: 1, 256, 128>}, {pipeline_mode = #tpu.pipeline_mode<synchronous>, transform_indices = @transform_1, window_bounds = array<i64: 1, 128>}, {pipeline_mode = #tpu.pipeline_mode<synchronous>, transform_indices = @transform_2, window_bounds = array<i64: 1, 128>}, {pipeline_mode = #tpu.pipeline_mode<synchronous>, transform_indices = @transform_3, window_bounds = array<i64: 9, 128, 128>}, {pipeline_mode = #tpu.pipeline_mode<synchronous>, transform_indices = @transform_4, window_bounds = array<i64: 1, 128>}, {transform_indices = @transform_5, window_bounds = array<i64: 1, 256, 128>}, {transform_indices = @transform_6, window_bounds = array<i64: 1, 8, 128>}]} {
    %c0_i32 = arith.constant 0 : i32
    %0 = arith.cmpi eq, %arg0, %c0_i32 : i32
    %1 = arith.extui %0 : i1 to i32
    %c0_i32_0 = arith.constant 0 : i32
    %2 = arith.cmpi ne, %1, %c0_i32_0 : i32
    scf.if %2 {
      %cst_77 = arith.constant 0.000000e+00 : f32
      %86 = vector.broadcast %cst_77 : f32 to vector<18x18x128xf32>
      %c0_78 = arith.constant 0 : index
      %c0_79 = arith.constant 0 : index
      %c0_80 = arith.constant 0 : index
      %87 = vector.load %arg8[%c0_78, %c0_79, %c0_80] : memref<18x18x128xf32, #tpu.memory_space<vmem>>, vector<18x18x128xf32>
      tpu.vector_store %arg8[%c0_78, %c0_79, %c0_80], %86 {strides = array<i32>} : memref<18x18x128xf32, #tpu.memory_space<vmem>>, vector<18x18x128xf32>,
    } else {
    }
    %c0 = arith.constant 0 : index
    %c0_1 = arith.constant 0 : index
    %c0_2 = arith.constant 0 : index
    %3 = vector.load %arg1[%c0, %c0_1, %c0_2] : memref<1x256x128xf32, #tpu.memory_space<vmem>>, vector<1x256x128xf32>
    %4 = vector.shape_cast %3 : vector<1x256x128xf32> to vector<256x128xf32>
    %c0_3 = arith.constant 0 : index
    %c0_4 = arith.constant 0 : index
    %5 = vector.load %arg2[%c0_3, %c0_4] : memref<1x128xf32, #tpu.memory_space<vmem>>, vector<1x128xf32>
    %6 = vector.broadcast %5 : vector<1x128xf32> to vector<256x128xf32>
    %7 = arith.mulf %4, %6 : vector<256x128xf32>
    %c0_5 = arith.constant 0 : index
    %c0_6 = arith.constant 0 : index
    %8 = vector.load %arg3[%c0_5, %c0_6] : memref<1x128xf32, #tpu.memory_space<vmem>>, vector<1x128xf32>
    %9 = vector.broadcast %8 : vector<1x128xf32> to vector<256x128xf32>
    %10 = arith.addf %7, %9 : vector<256x128xf32>
    %cst = arith.constant 0.000000e+00 : f32
    %11 = vector.broadcast %cst : f32 to vector<256x128xf32>
    %12 = arith.maximumf %10, %11 : vector<256x128xf32>
    %13 = vector.shape_cast %12 : vector<256x128xf32> to vector<16x16x128xf32>
    %c1 = arith.constant 1 : index
    %c1_7 = arith.constant 1 : index
    %c0_8 = arith.constant 0 : index
    %14 = vector.load %arg8[%c1, %c1_7, %c0_8] : memref<18x18x128xf32, #tpu.memory_space<vmem>>, vector<16x16x128xf32>
    tpu.vector_store %arg8[%c1, %c1_7, %c0_8], %13 {strides = array<i32>} : memref<18x18x128xf32, #tpu.memory_space<vmem>>, vector<16x16x128xf32>,
    %cst_9 = arith.constant 0.000000e+00 : f32
    %15 = vector.broadcast %cst_9 : f32 to vector<256x128xf32>
    %c0_10 = arith.constant 0 : index
    %c0_11 = arith.constant 0 : index
    %c0_12 = arith.constant 0 : index
    %16 = vector.load %arg8[%c0_10, %c0_11, %c0_12] : memref<18x18x128xf32, #tpu.memory_space<vmem>>, vector<16x16x128xf32>
    %17 = vector.shape_cast %16 : vector<16x16x128xf32> to vector<256x128xf32>
    %c0_13 = arith.constant 0 : index
    %c0_14 = arith.constant 0 : index
    %c0_15 = arith.constant 0 : index
    %18 = vector.load %arg4[%c0_13, %c0_14, %c0_15] : memref<9x128x128xf32, #tpu.memory_space<vmem>>, vector<1x128x128xf32>
    %19 = vector.shape_cast %18 : vector<1x128x128xf32> to vector<128x128xf32>
    %cst_16 = arith.constant dense<0.000000e+00> : vector<256x128xf32>
    %20 = tpu.matmul %17, %19, %cst_16 {dimension_numbers = #tpu.dot_dimension_numbers<[1], [0], [0], [1], [0, 0, 1, 1], [], []>} : vector<256x128xf32>, vector<128x128xf32>, vector<256x128xf32> -> vector<256x128xf32>
    %21 = arith.addf %15, %20 : vector<256x128xf32>
    %c0_17 = arith.constant 0 : index
    %c1_18 = arith.constant 1 : index
    %c0_19 = arith.constant 0 : index
    %22 = vector.load %arg8[%c0_17, %c1_18, %c0_19] : memref<18x18x128xf32, #tpu.memory_space<vmem>>, vector<16x16x128xf32>
    %23 = vector.shape_cast %22 : vector<16x16x128xf32> to vector<256x128xf32>
    %c1_20 = arith.constant 1 : index
    %c0_21 = arith.constant 0 : index
    %c0_22 = arith.constant 0 : index
    %24 = vector.load %arg4[%c1_20, %c0_21, %c0_22] : memref<9x128x128xf32, #tpu.memory_space<vmem>>, vector<1x128x128xf32>
    %25 = vector.shape_cast %24 : vector<1x128x128xf32> to vector<128x128xf32>
    %cst_23 = arith.constant dense<0.000000e+00> : vector<256x128xf32>
    %26 = tpu.matmul %23, %25, %cst_23 {dimension_numbers = #tpu.dot_dimension_numbers<[1], [0], [0], [1], [0, 0, 1, 1], [], []>} : vector<256x128xf32>, vector<128x128xf32>, vector<256x128xf32> -> vector<256x128xf32>
    %27 = arith.addf %21, %26 : vector<256x128xf32>
    %c0_24 = arith.constant 0 : index
    %c2 = arith.constant 2 : index
    %c0_25 = arith.constant 0 : index
    %28 = vector.load %arg8[%c0_24, %c2, %c0_25] : memref<18x18x128xf32, #tpu.memory_space<vmem>>, vector<16x16x128xf32>
    %29 = vector.shape_cast %28 : vector<16x16x128xf32> to vector<256x128xf32>
    %c2_26 = arith.constant 2 : index
    %c0_27 = arith.constant 0 : index
    %c0_28 = arith.constant 0 : index
    %30 = vector.load %arg4[%c2_26, %c0_27, %c0_28] : memref<9x128x128xf32, #tpu.memory_space<vmem>>, vector<1x128x128xf32>
    %31 = vector.shape_cast %30 : vector<1x128x128xf32> to vector<128x128xf32>
    %cst_29 = arith.constant dense<0.000000e+00> : vector<256x128xf32>
    %32 = tpu.matmul %29, %31, %cst_29 {dimension_numbers = #tpu.dot_dimension_numbers<[1], [0], [0], [1], [0, 0, 1, 1], [], []>} : vector<256x128xf32>, vector<128x128xf32>, vector<256x128xf32> -> vector<256x128xf32>
    %33 = arith.addf %27, %32 : vector<256x128xf32>
    %c1_30 = arith.constant 1 : index
    %c0_31 = arith.constant 0 : index
    %c0_32 = arith.constant 0 : index
    %34 = vector.load %arg8[%c1_30, %c0_31, %c0_32] : memref<18x18x128xf32, #tpu.memory_space<vmem>>, vector<16x16x128xf32>
    %35 = vector.shape_cast %34 : vector<16x16x128xf32> to vector<256x128xf32>
    %c3 = arith.constant 3 : index
    %c0_33 = arith.constant 0 : index
    %c0_34 = arith.constant 0 : index
    %36 = vector.load %arg4[%c3, %c0_33, %c0_34] : memref<9x128x128xf32, #tpu.memory_space<vmem>>, vector<1x128x128xf32>
    %37 = vector.shape_cast %36 : vector<1x128x128xf32> to vector<128x128xf32>
    %cst_35 = arith.constant dense<0.000000e+00> : vector<256x128xf32>
    %38 = tpu.matmul %35, %37, %cst_35 {dimension_numbers = #tpu.dot_dimension_numbers<[1], [0], [0], [1], [0, 0, 1, 1], [], []>} : vector<256x128xf32>, vector<128x128xf32>, vector<256x128xf32> -> vector<256x128xf32>
    %39 = arith.addf %33, %38 : vector<256x128xf32>
    %c1_36 = arith.constant 1 : index
    %c1_37 = arith.constant 1 : index
    %c0_38 = arith.constant 0 : index
    %40 = vector.load %arg8[%c1_36, %c1_37, %c0_38] : memref<18x18x128xf32, #tpu.memory_space<vmem>>, vector<16x16x128xf32>
    %41 = vector.shape_cast %40 : vector<16x16x128xf32> to vector<256x128xf32>
    %c4 = arith.constant 4 : index
    %c0_39 = arith.constant 0 : index
    %c0_40 = arith.constant 0 : index
    %42 = vector.load %arg4[%c4, %c0_39, %c0_40] : memref<9x128x128xf32, #tpu.memory_space<vmem>>, vector<1x128x128xf32>
    %43 = vector.shape_cast %42 : vector<1x128x128xf32> to vector<128x128xf32>
    %cst_41 = arith.constant dense<0.000000e+00> : vector<256x128xf32>
    %44 = tpu.matmul %41, %43, %cst_41 {dimension_numbers = #tpu.dot_dimension_numbers<[1], [0], [0], [1], [0, 0, 1, 1], [], []>} : vector<256x128xf32>, vector<128x128xf32>, vector<256x128xf32> -> vector<256x128xf32>
    %45 = arith.addf %39, %44 : vector<256x128xf32>
    %c1_42 = arith.constant 1 : index
    %c2_43 = arith.constant 2 : index
    %c0_44 = arith.constant 0 : index
    %46 = vector.load %arg8[%c1_42, %c2_43, %c0_44] : memref<18x18x128xf32, #tpu.memory_space<vmem>>, vector<16x16x128xf32>
    %47 = vector.shape_cast %46 : vector<16x16x128xf32> to vector<256x128xf32>
    %c5 = arith.constant 5 : index
    %c0_45 = arith.constant 0 : index
    %c0_46 = arith.constant 0 : index
    %48 = vector.load %arg4[%c5, %c0_45, %c0_46] : memref<9x128x128xf32, #tpu.memory_space<vmem>>, vector<1x128x128xf32>
    %49 = vector.shape_cast %48 : vector<1x128x128xf32> to vector<128x128xf32>
    %cst_47 = arith.constant dense<0.000000e+00> : vector<256x128xf32>
    %50 = tpu.matmul %47, %49, %cst_47 {dimension_numbers = #tpu.dot_dimension_numbers<[1], [0], [0], [1], [0, 0, 1, 1], [], []>} : vector<256x128xf32>, vector<128x128xf32>, vector<256x128xf32> -> vector<256x128xf32>
    %51 = arith.addf %45, %50 : vector<256x128xf32>
    %c2_48 = arith.constant 2 : index
    %c0_49 = arith.constant 0 : index
    %c0_50 = arith.constant 0 : index
    %52 = vector.load %arg8[%c2_48, %c0_49, %c0_50] : memref<18x18x128xf32, #tpu.memory_space<vmem>>, vector<16x16x128xf32>
    %53 = vector.shape_cast %52 : vector<16x16x128xf32> to vector<256x128xf32>
    %c6 = arith.constant 6 : index
    %c0_51 = arith.constant 0 : index
    %c0_52 = arith.constant 0 : index
    %54 = vector.load %arg4[%c6, %c0_51, %c0_52] : memref<9x128x128xf32, #tpu.memory_space<vmem>>, vector<1x128x128xf32>
    %55 = vector.shape_cast %54 : vector<1x128x128xf32> to vector<128x128xf32>
    %cst_53 = arith.constant dense<0.000000e+00> : vector<256x128xf32>
    %56 = tpu.matmul %53, %55, %cst_53 {dimension_numbers = #tpu.dot_dimension_numbers<[1], [0], [0], [1], [0, 0, 1, 1], [], []>} : vector<256x128xf32>, vector<128x128xf32>, vector<256x128xf32> -> vector<256x128xf32>
    %57 = arith.addf %51, %56 : vector<256x128xf32>
    %c2_54 = arith.constant 2 : index
    %c1_55 = arith.constant 1 : index
    %c0_56 = arith.constant 0 : index
    %58 = vector.load %arg8[%c2_54, %c1_55, %c0_56] : memref<18x18x128xf32, #tpu.memory_space<vmem>>, vector<16x16x128xf32>
    %59 = vector.shape_cast %58 : vector<16x16x128xf32> to vector<256x128xf32>
    %c7 = arith.constant 7 : index
    %c0_57 = arith.constant 0 : index
    %c0_58 = arith.constant 0 : index
    %60 = vector.load %arg4[%c7, %c0_57, %c0_58] : memref<9x128x128xf32, #tpu.memory_space<vmem>>, vector<1x128x128xf32>
    %61 = vector.shape_cast %60 : vector<1x128x128xf32> to vector<128x128xf32>
    %cst_59 = arith.constant dense<0.000000e+00> : vector<256x128xf32>
    %62 = tpu.matmul %59, %61, %cst_59 {dimension_numbers = #tpu.dot_dimension_numbers<[1], [0], [0], [1], [0, 0, 1, 1], [], []>} : vector<256x128xf32>, vector<128x128xf32>, vector<256x128xf32> -> vector<256x128xf32>
    %63 = arith.addf %57, %62 : vector<256x128xf32>
    %c2_60 = arith.constant 2 : index
    %c2_61 = arith.constant 2 : index
    %c0_62 = arith.constant 0 : index
    %64 = vector.load %arg8[%c2_60, %c2_61, %c0_62] : memref<18x18x128xf32, #tpu.memory_space<vmem>>, vector<16x16x128xf32>
    %65 = vector.shape_cast %64 : vector<16x16x128xf32> to vector<256x128xf32>
    %c8 = arith.constant 8 : index
    %c0_63 = arith.constant 0 : index
    %c0_64 = arith.constant 0 : index
    %66 = vector.load %arg4[%c8, %c0_63, %c0_64] : memref<9x128x128xf32, #tpu.memory_space<vmem>>, vector<1x128x128xf32>
    %67 = vector.shape_cast %66 : vector<1x128x128xf32> to vector<128x128xf32>
    %cst_65 = arith.constant dense<0.000000e+00> : vector<256x128xf32>
    %68 = tpu.matmul %65, %67, %cst_65 {dimension_numbers = #tpu.dot_dimension_numbers<[1], [0], [0], [1], [0, 0, 1, 1], [], []>} : vector<256x128xf32>, vector<128x128xf32>, vector<256x128xf32> -> vector<256x128xf32>
    %69 = arith.addf %63, %68 : vector<256x128xf32>
    %c0_66 = arith.constant 0 : index
    %c0_67 = arith.constant 0 : index
    %70 = vector.load %arg5[%c0_66, %c0_67] : memref<1x128xf32, #tpu.memory_space<vmem>>, vector<1x128xf32>
    %71 = vector.broadcast %70 : vector<1x128xf32> to vector<256x128xf32>
    %72 = arith.addf %69, %71 : vector<256x128xf32>
    %c0_68 = arith.constant 0 : index
    %c0_69 = arith.constant 0 : index
    %c0_70 = arith.constant 0 : index
    %73 = vector.load %arg6[%c0_68, %c0_69, %c0_70] : memref<1x256x128xf32, #tpu.memory_space<vmem>>, vector<1x256x128xf32>
    %74 = vector.shape_cast %73 : vector<1x256x128xf32> to vector<256x128xf32>
    %75 = vector.shape_cast %72 : vector<256x128xf32> to vector<1x256x128xf32>
    tpu.vector_store %arg6[%c0_68, %c0_69, %c0_70], %75 {strides = array<i32>} : memref<1x256x128xf32, #tpu.memory_space<vmem>>, vector<1x256x128xf32>,
    %cst_71 = arith.constant dense<0.000000e+00> : vector<128xf32>
    %76 = vector.multi_reduction <add>, %72, %cst_71 [0] : vector<256x128xf32> to vector<128xf32>
    %77 = vector.shape_cast %76 : vector<128xf32> to vector<1x128xf32>
    %78 = arith.mulf %72, %72 : vector<256x128xf32>
    %cst_72 = arith.constant dense<0.000000e+00> : vector<128xf32>
    %79 = vector.multi_reduction <add>, %78, %cst_72 [0] : vector<256x128xf32> to vector<128xf32>
    %80 = vector.shape_cast %79 : vector<128xf32> to vector<1x128xf32>
    %cst_73 = arith.constant 0.000000e+00 : f32
    %81 = vector.broadcast %cst_73 : f32 to vector<6x128xf32>
    %82 = tpu.concatenate %77, %80, %81 in 0 : vector<1x128xf32>, vector<1x128xf32>, vector<6x128xf32> -> vector<8x128xf32>
    %c0_74 = arith.constant 0 : index
    %c0_75 = arith.constant 0 : index
    %c0_76 = arith.constant 0 : index
    %83 = vector.load %arg7[%c0_74, %c0_75, %c0_76] : memref<1x8x128xf32, #tpu.memory_space<vmem>>, vector<1x8x128xf32>
    %84 = vector.shape_cast %83 : vector<1x8x128xf32> to vector<8x128xf32>
    %85 = vector.shape_cast %82 : vector<8x128xf32> to vector<1x8x128xf32>
    tpu.vector_store %arg7[%c0_74, %c0_75, %c0_76], %85 {strides = array<i32>} : memref<1x8x128xf32, #tpu.memory_space<vmem>>, vector<1x8x128xf32>,
    return
  }
  func.func @transform_0(%arg0: i32) -> (i32, i32, i32) {
    %c0_i32 = arith.constant 0 : i32
    %c0_i32_0 = arith.constant 0 : i32
    %c0_i32_1 = arith.constant 0 : i32
    return %arg0, %c0_i32, %c0_i32_0 : i32, i32, i32
  }
  func.func @transform_1(%arg0: i32) -> (i32, i32) {
    %c0_i32 = arith.constant 0 : i32
    %c0_i32_0 = arith.constant 0 : i32
    %c0_i32_1 = arith.constant 0 : i32
    return %c0_i32, %c0_i32_0 : i32, i32
  }
  func.func @transform_2(%arg0: i32) -> (i32, i32) {
    %c0_i32 = arith.constant 0 : i32
    %c0_i32_0 = arith.constant 0 : i32
    %c0_i32_1 = arith.constant 0 : i32
    return %c0_i32, %c0_i32_0 : i32, i32
  }
  func.func @transform_3(%arg0: i32) -> (i32, i32, i32) {
    %c0_i32 = arith.constant 0 : i32
    %c0_i32_0 = arith.constant 0 : i32
    %c0_i32_1 = arith.constant 0 : i32
    %c0_i32_2 = arith.constant 0 : i32
    return %c0_i32, %c0_i32_0, %c0_i32_1 : i32, i32, i32
  }
  func.func @transform_4(%arg0: i32) -> (i32, i32) {
    %c0_i32 = arith.constant 0 : i32
    %c0_i32_0 = arith.constant 0 : i32
    %c0_i32_1 = arith.constant 0 : i32
    return %c0_i32, %c0_i32_0 : i32, i32
  }
  func.func @transform_5(%arg0: i32) -> (i32, i32, i32) {
    %c0_i32 = arith.constant 0 : i32
    %c0_i32_0 = arith.constant 0 : i32
    %c0_i32_1 = arith.constant 0 : i32
    return %arg0, %c0_i32, %c0_i32_0 : i32, i32, i32
  }
  func.func @transform_6(%arg0: i32) -> (i32, i32, i32) {
    %c0_i32 = arith.constant 0 : i32
    %c0_i32_0 = arith.constant 0 : i32
    %c0_i32_1 = arith.constant 0 : i32
    return %arg0, %c0_i32, %c0_i32_0 : i32, i32, i32
  }
}

module attributes {stable_mosaic.version = 11 : i64} {
  func.func @bn2_shortcut_kernel(%arg0: i32, %arg1: memref<1x256x128xf32, #tpu.memory_space<vmem>>, %arg2: memref<1x128xf32, #tpu.memory_space<vmem>>, %arg3: memref<1x128xf32, #tpu.memory_space<vmem>>, %arg4: memref<1x18x18x128xf32, #tpu.memory_space<vmem>>, %arg5: memref<128x128xf32, #tpu.memory_space<vmem>>, %arg6: memref<1x128xf32, #tpu.memory_space<vmem>>, %arg7: memref<1x256x128xf32, #tpu.memory_space<vmem>>) attributes {dimension_semantics = [#tpu.dimension_semantics<parallel>], iteration_bounds = array<i64: 2>, scalar_prefetch = 0 : i64, scratch_operands = 0 : i64, tpu.core_type = #tpu.core_type<tc>, window_params = [{transform_indices = @transform_0, window_bounds = array<i64: 1, 256, 128>}, {pipeline_mode = #tpu.pipeline_mode<synchronous>, transform_indices = @transform_1, window_bounds = array<i64: 1, 128>}, {pipeline_mode = #tpu.pipeline_mode<synchronous>, transform_indices = @transform_2, window_bounds = array<i64: 1, 128>}, {transform_indices = @transform_3, window_bounds = array<i64: 1, 18, 18, 128>}, {pipeline_mode = #tpu.pipeline_mode<synchronous>, transform_indices = @transform_4, window_bounds = array<i64: 128, 128>}, {pipeline_mode = #tpu.pipeline_mode<synchronous>, transform_indices = @transform_5, window_bounds = array<i64: 1, 128>}, {transform_indices = @transform_6, window_bounds = array<i64: 1, 256, 128>}]} {
    %c0 = arith.constant 0 : index
    %c0_0 = arith.constant 0 : index
    %c0_1 = arith.constant 0 : index
    %0 = vector.load %arg1[%c0, %c0_0, %c0_1] : memref<1x256x128xf32, #tpu.memory_space<vmem>>, vector<1x256x128xf32>
    %1 = vector.shape_cast %0 : vector<1x256x128xf32> to vector<256x128xf32>
    %c0_2 = arith.constant 0 : index
    %c0_3 = arith.constant 0 : index
    %2 = vector.load %arg2[%c0_2, %c0_3] : memref<1x128xf32, #tpu.memory_space<vmem>>, vector<1x128xf32>
    %3 = vector.broadcast %2 : vector<1x128xf32> to vector<256x128xf32>
    %4 = arith.mulf %1, %3 : vector<256x128xf32>
    %c0_4 = arith.constant 0 : index
    %c0_5 = arith.constant 0 : index
    %5 = vector.load %arg3[%c0_4, %c0_5] : memref<1x128xf32, #tpu.memory_space<vmem>>, vector<1x128xf32>
    %6 = vector.broadcast %5 : vector<1x128xf32> to vector<256x128xf32>
    %7 = arith.addf %4, %6 : vector<256x128xf32>
    %cst = arith.constant 0.000000e+00 : f32
    %8 = vector.broadcast %cst : f32 to vector<256x128xf32>
    %9 = arith.maximumf %7, %8 : vector<256x128xf32>
    %c0_6 = arith.constant 0 : index
    %c1 = arith.constant 1 : index
    %c1_7 = arith.constant 1 : index
    %c0_8 = arith.constant 0 : index
    %10 = vector.load %arg4[%c0_6, %c1, %c1_7, %c0_8] : memref<1x18x18x128xf32, #tpu.memory_space<vmem>>, vector<1x16x16x128xf32>
    %11 = vector.shape_cast %10 : vector<1x16x16x128xf32> to vector<16x16x128xf32>
    %12 = vector.shape_cast %11 : vector<16x16x128xf32> to vector<256x128xf32>
    %c0_9 = arith.constant 0 : index
    %c0_10 = arith.constant 0 : index
    %13 = vector.load %arg5[%c0_9, %c0_10] : memref<128x128xf32, #tpu.memory_space<vmem>>, vector<128x128xf32>
    %cst_11 = arith.constant dense<0.000000e+00> : vector<256x128xf32>
    %14 = tpu.matmul %12, %13, %cst_11 {dimension_numbers = #tpu.dot_dimension_numbers<[1], [0], [0], [1], [0, 0, 1, 1], [], []>} : vector<256x128xf32>, vector<128x128xf32>, vector<256x128xf32> -> vector<256x128xf32>
    %c0_12 = arith.constant 0 : index
    %c0_13 = arith.constant 0 : index
    %15 = vector.load %arg6[%c0_12, %c0_13] : memref<1x128xf32, #tpu.memory_space<vmem>>, vector<1x128xf32>
    %16 = vector.broadcast %15 : vector<1x128xf32> to vector<256x128xf32>
    %17 = arith.addf %14, %16 : vector<256x128xf32>
    %18 = arith.addf %9, %17 : vector<256x128xf32>
    %c0_14 = arith.constant 0 : index
    %c0_15 = arith.constant 0 : index
    %c0_16 = arith.constant 0 : index
    %19 = vector.load %arg7[%c0_14, %c0_15, %c0_16] : memref<1x256x128xf32, #tpu.memory_space<vmem>>, vector<1x256x128xf32>
    %20 = vector.shape_cast %19 : vector<1x256x128xf32> to vector<256x128xf32>
    %21 = vector.shape_cast %18 : vector<256x128xf32> to vector<1x256x128xf32>
    tpu.vector_store %arg7[%c0_14, %c0_15, %c0_16], %21 {strides = array<i32>} : memref<1x256x128xf32, #tpu.memory_space<vmem>>, vector<1x256x128xf32>,
    return
  }
  func.func @transform_0(%arg0: i32) -> (i32, i32, i32) {
    %c0_i32 = arith.constant 0 : i32
    %c0_i32_0 = arith.constant 0 : i32
    %c0_i32_1 = arith.constant 0 : i32
    return %arg0, %c0_i32, %c0_i32_0 : i32, i32, i32
  }
  func.func @transform_1(%arg0: i32) -> (i32, i32) {
    %c0_i32 = arith.constant 0 : i32
    %c0_i32_0 = arith.constant 0 : i32
    %c0_i32_1 = arith.constant 0 : i32
    return %c0_i32, %c0_i32_0 : i32, i32
  }
  func.func @transform_2(%arg0: i32) -> (i32, i32) {
    %c0_i32 = arith.constant 0 : i32
    %c0_i32_0 = arith.constant 0 : i32
    %c0_i32_1 = arith.constant 0 : i32
    return %c0_i32, %c0_i32_0 : i32, i32
  }
  func.func @transform_3(%arg0: i32) -> (i32, i32, i32, i32) {
    %c0_i32 = arith.constant 0 : i32
    %c0_i32_0 = arith.constant 0 : i32
    %c0_i32_1 = arith.constant 0 : i32
    %c0_i32_2 = arith.constant 0 : i32
    return %arg0, %c0_i32, %c0_i32_0, %c0_i32_1 : i32, i32, i32, i32
  }
  func.func @transform_4(%arg0: i32) -> (i32, i32) {
    %c0_i32 = arith.constant 0 : i32
    %c0_i32_0 = arith.constant 0 : i32
    %c0_i32_1 = arith.constant 0 : i32
    return %c0_i32, %c0_i32_0 : i32, i32
  }
  func.func @transform_5(%arg0: i32) -> (i32, i32) {
    %c0_i32 = arith.constant 0 : i32
    %c0_i32_0 = arith.constant 0 : i32
    %c0_i32_1 = arith.constant 0 : i32
    return %c0_i32, %c0_i32_0 : i32, i32
  }
  func.func @transform_6(%arg0: i32) -> (i32, i32, i32) {
    %c0_i32 = arith.constant 0 : i32
    %c0_i32_0 = arith.constant 0 : i32
    %c0_i32_1 = arith.constant 0 : i32
    return %arg0, %c0_i32, %c0_i32_0 : i32, i32, i32
  }
}

</mosaic_0001>

<bundles_post_ra>
// kernel: middle_layer_forward.5
= control target key start
LH: loop header
LB: loop body
LE: loop exit
PB: predicated region body
PF: predicated region fallthrough
CT: control target
= control target key end

     0   :  { %s1087_s21 = smov 0   ;;  %s1464_s0 = inlined_call_operand.vmem [shape: f32[2,256,128], index: 0, kind: input, shape index: {}]   ;;  %s1465_s1 = inlined_call_operand.vmem [shape: f32[1,128], index: 1, kind: input, shape index: {}]   ;;  %s1466_s2 = inlined_call_operand.vmem [shape: f32[1,128], index: 2, kind: input, shape index: {}]   ;;  %s1467_s3 = inlined_call_operand.vmem [shape: f32[2,18,18,128], index: 3, kind: input, shape index: {}]   ;;  %s1468_s4 = inlined_call_operand.vmem [shape: f32[128,128], index: 4, kind: input, shape index: {}]   ;;  %s1469_s5 = inlined_call_operand.vmem [shape: f32[1,128], index: 5, kind: input, shape index: {}]   ;;  %s1470_s6 = inlined_call_operand.vmem [shape: f32[2,256,128], index: 6, kind: output, shape index: {}]  }
   0x1 LB: > { %s826_s22 = sadd.s32 4294967295, %s1050_s21   ;;  %p830_p0 = scmp.ge.s32.totalorder %s1050_s21, 1  ;;  %s1050_s21 = sphi %s1087_s21, %s16_s21  }
   0x2   : > { %p222_p1 = scmp.lt.s32.totalorder %s1050_s21, 3 }
   0x4   : > { %p223_p2 = pnand %p830_p0, %p222_p1 }
   0x5   : > { %p257_p3 = scmp.lt.s32.totalorder (!%p223_p2), %s826_s22, 1 }
   0x6   : > { %226 = sbr.rel (%p223_p2) target bundleno = 273 (0x111), region = 44 }
   0xb   : > { %v462_v0 = vld [vmem:[%s1468_s4 + $0x78] sm:$0xff]  ;;  %v461_v1 = vld [vmem:[%s1468_s4 + $0x70] sm:$0xff]  ;;  %v460_v2 = vld [vmem:[%s1468_s4 + $0x68] sm:$0xff]  ;;  %s1472_s22 = smov (!%p257_p3, %s826_s22), 1 }
   0xc   : > { %923 = vmatprep.subr.mxu0 %v462_v0  ;;  %1003 = vmatprep.subr.mxu1 %v462_v0  ;;  %v459_v3 = vld [vmem:[%s1468_s4 + $0x60] sm:$0xff]  ;;  %v458_v4 = vld [vmem:[%s1468_s4 + $0x58] sm:$0xff]  ;;  %v457_v5 = vld [vmem:[%s1468_s4 + $0x50] sm:$0xff]  ;;  %s1035_s27 = smul.u32 432, %s1472_s22  ;;  %s873_s13 = sshll.u32 %s1472_s22, 8 }
   0xd   : > { %924 = vmatpush3.msra.mxu0 %v462_v0  ;;  %1019 = vmatpush3.msra.mxu1 %v462_v0  ;;  %v456_v6 = vld [vmem:[%s1468_s4 + $0x48] sm:$0xff]  ;;  %v455_v7 = vld [vmem:[%s1468_s4 + $0x40] sm:$0xff]  ;;  %v454_v8 = vld [vmem:[%s1468_s4 + $0x38] sm:$0xff]  ;;  %s1193_s16 = scalar_lea.vmem %s1464_s0, %s873_s13 }
   0xe   : > { %925 = vmatprep.subr.mxu0 %v461_v1  ;;  %1004 = vmatprep.subr.mxu1 %v461_v1  ;;  %v453_v9 = vld [vmem:[%s1468_s4 + $0x30] sm:$0xff]  ;;  %v452_v10 = vld [vmem:[%s1468_s4 + $0x28] sm:$0xff]  ;;  %v451_v11 = vld [vmem:[%s1468_s4 + $0x20] sm:$0xff]  ;;  %s1150_s10 = scalar_lea.vmem %s1467_s3, %s1035_s27  ;;  %s1302_s27 = scalar_lea.vmem %s1470_s6, %s873_s13 }
   0xf   : > { %926 = vmatpush3.msra.mxu0 %v461_v1  ;;  %1020 = vmatpush3.msra.mxu1 %v461_v1  ;;  %v450_v12 = vld [vmem:[%s1468_s4 + $0x18] sm:$0xff]  ;;  %v449_v13 = vld [vmem:[%s1468_s4 + $0x10] sm:$0xff]  ;;  %v448_v14 = vld [vmem:[%s1468_s4 + $0x8] sm:$0xff] }
  0x10   : > { %927 = vmatprep.subr.mxu0 %v460_v2  ;;  %1005 = vmatprep.subr.mxu1 %v460_v2  ;;  %v447_v15 = vld [vmem:[%s1468_s4] sm:$0xff]  ;;  %v840_v20 = vld [vmem:[%s1150_s10 + $0x31] sm:$0xff]  ;;  %v842_v24 = vld [vmem:[%s1150_s10 + $0x49] sm:$0xff] }
  0x11   : > { %928 = vmatpush3.msra.mxu0 %v460_v2  ;;  %1021 = vmatpush3.msra.mxu1 %v460_v2  ;;  %v838_v16 = vld [vmem:[%s1150_s10 + $0x19] sm:$0xff]  ;;  %v839_v18 = vld [vmem:[%s1150_s10 + $0x21] sm:$0xff]  ;;  %v856_v21 = vld [vmem:[%s1150_s10 + $0xf1] sm:$0xff] }
  0x12   : > { %929 = vmatprep.subr.mxu0 %v459_v3  ;;  %1006 = vmatprep.subr.mxu1 %v459_v3  ;;  %v854_v17 = vld [vmem:[%s1150_s10 + $0xd9] sm:$0xff]  ;;  %v855_v19 = vld [vmem:[%s1150_s10 + $0xe1] sm:$0xff]  ;;  %v858_v25 = vld [vmem:[%s1150_s10 + $0x109] sm:$0xff] }
  0x13   : > { %930 = vmatpush3.msra.mxu0 %v459_v3  ;;  %1022 = vmatpush3.msra.mxu1 %v459_v3  ;;  %v841_v22 = vld [vmem:[%s1150_s10 + $0x39] sm:$0xff]  ;;  %v843_v26 = vld [vmem:[%s1150_s10 + $0x51] sm:$0xff]  ;;  %v844_v28 = vld [vmem:[%s1150_s10 + $0x61] sm:$0xff] }
  0x14   : > { %931 = vmatprep.subr.mxu0 %v458_v4  ;;  %1007 = vmatprep.subr.mxu1 %v458_v4  ;;  %v857_v23 = vld [vmem:[%s1150_s10 + $0xf9] sm:$0xff]  ;;  %v859_v27 = vld [vmem:[%s1150_s10 + $0x111] sm:$0xff]  ;;  %v860_v29 = vld [vmem:[%s1150_s10 + $0x121] sm:$0xff] }
  0x15   : > { %932 = vmatpush3.msra.mxu0 %v458_v4  ;;  %1023 = vmatpush3.msra.mxu1 %v458_v4  ;;  %v845_v30 = vld [vmem:[%s1150_s10 + $0x69] sm:$0xff]  ;;  %v846_v32 = vld [vmem:[%s1150_s10 + $0x79] sm:$0xff]  ;;  %v847_v34 = vld [vmem:[%s1150_s10 + $0x81] sm:$0xff] }
  0x16   : > { %933 = vmatprep.subr.mxu0 %v457_v5  ;;  %1008 = vmatprep.subr.mxu1 %v457_v5  ;;  %v861_v31 = vld [vmem:[%s1150_s10 + $0x129] sm:$0xff]  ;;  %v862_v33 = vld [vmem:[%s1150_s10 + $0x139] sm:$0xff]  ;;  %v863_v35 = vld [vmem:[%s1150_s10 + $0x141] sm:$0xff] }
  0x17   : > { %934 = vmatpush3.msra.mxu0 %v457_v5  ;;  %1024 = vmatpush3.msra.mxu1 %v457_v5  ;;  %v848_v36 = vld [vmem:[%s1150_s10 + $0x91] sm:$0xff]  ;;  %v849_v38 = vld [vmem:[%s1150_s10 + $0x99] sm:$0xff]  ;;  %v850_v40 = vld [vmem:[%s1150_s10 + $0xa9] sm:$0xff] }
  0x18   : > { %935 = vmatprep.subr.mxu0 %v456_v6  ;;  %1009 = vmatprep.subr.mxu1 %v456_v6  ;;  %v864_v37 = vld [vmem:[%s1150_s10 + $0x151] sm:$0xff]  ;;  %v865_v39 = vld [vmem:[%s1150_s10 + $0x159] sm:$0xff]  ;;  %v866_v41 = vld [vmem:[%s1150_s10 + $0x169] sm:$0xff] }
  0x19   : > { %936 = vmatpush3.msra.mxu0 %v456_v6  ;;  %1025 = vmatpush3.msra.mxu1 %v456_v6  ;;  %v851_v42 = vld [vmem:[%s1150_s10 + $0xb1] sm:$0xff]  ;;  %v852_v44 = vld [vmem:[%s1150_s10 + $0xc1] sm:$0xff]  ;;  %v853_v46 = vld [vmem:[%s1150_s10 + $0xc9] sm:$0xff] }
  0x1a   : > { %937 = vmatprep.subr.mxu0 %v455_v7  ;;  %1010 = vmatprep.subr.mxu1 %v455_v7  ;;  %v867_v43 = vld [vmem:[%s1150_s10 + $0x171] sm:$0xff]  ;;  %v868_v45 = vld [vmem:[%s1150_s10 + $0x181] sm:$0xff]  ;;  %v869_v47 = vld [vmem:[%s1150_s10 + $0x189] sm:$0xff] }
  0x1b   : > { %938 = vmatpush3.msra.mxu0 %v455_v7  ;;  %1026 = vmatpush3.msra.mxu1 %v455_v7  ;;  %v273_v48 = vld [vmem:[%s1193_s16 + $0x8] sm:$0xff]  ;;  %v1199_v49 = vld [vmem:[%s1465_s1] ss:$0 sm:$0xff]  ;;  %v275_v53 = vld [vmem:[%s1193_s16 + $0x18] sm:$0xff] }
  0x1c   : > { %939 = vmatprep.subr.mxu0 %v454_v8  ;;  %1011 = vmatprep.subr.mxu1 %v454_v8  ;;  %v289_v50 = vld [vmem:[%s1193_s16 + $0x88] sm:$0xff]  ;;  %v272_v51 = vld [vmem:[%s1193_s16] sm:$0xff]  ;;  %v312_v54 = vmul.f32 %v1199_v49, %v273_v48  ;;  %v291_v55 = vld [vmem:[%s1193_s16 + $0x98] sm:$0xff]  ;;  %v314_v2 = vmul.f32 %v1199_v49, %v275_v53 }
  0x1d   : > { %940 = vmatpush3.msra.mxu0 %v454_v8  ;;  %1027 = vmatpush3.msra.mxu1 %v454_v8  ;;  %v288_v52 = vld [vmem:[%s1193_s16 + $0x80] sm:$0xff]  ;;  %v274_v56 = vld [vmem:[%s1193_s16 + $0x10] sm:$0xff]  ;;  %v328_v59 = vmul.f32 %v1199_v49, %v289_v50  ;;  %v311_v60 = vmul.f32 %v1199_v49, %v272_v51  ;;  %v277_v61 = vld [vmem:[%s1193_s16 + $0x28] sm:$0xff]  ;;  %v330_v3 = vmul.f32 %v1199_v49, %v291_v55 }
  0x1e   : > { %941 = vmatprep.subr.mxu0 %v453_v9  ;;  %1012 = vmatprep.subr.mxu1 %v453_v9  ;;  %v290_v57 = vld [vmem:[%s1193_s16 + $0x90] sm:$0xff]  ;;  %v1212_v58 = vld [vmem:[%s1466_s2] ss:$0 sm:$0xff]  ;;  %v293_v62 = vld [vmem:[%s1193_s16 + $0xa8] sm:$0xff]  ;;  %v327_v63 = vmul.f32 %v1199_v49, %v288_v52  ;;  %v313_v4 = vmul.f32 %v1199_v49, %v274_v56 }
  0x1f   : > { %942 = vmatpush3.msra.mxu0 %v453_v9  ;;  %1028 = vmatpush3.msra.mxu1 %v453_v9  ;;  %v276_v0 = vld [vmem:[%s1193_s16 + $0x20] sm:$0xff]  ;;  %v329_v5 = vmul.f32 %v1199_v49, %v290_v57  ;;  %v279_v6 = vld [vmem:[%s1193_s16 + $0x38] sm:$0xff]  ;;  %v351_v8 = vadd.f32 %v1212_v58, %v312_v54  ;;  %v316_v9 = vmul.f32 %v1199_v49, %v277_v61 }
  0x20   : > { %943 = vmatprep.subr.mxu0 %v452_v10  ;;  %1013 = vmatprep.subr.mxu1 %v452_v10  ;;  %v292_v1 = vld [vmem:[%s1193_s16 + $0xa0] sm:$0xff]  ;;  %v295_v7 = vld [vmem:[%s1193_s16 + $0xb8] sm:$0xff] }
  0x21   : > { %944 = vmatpush3.msra.mxu0 %v452_v10  ;;  %1029 = vmatpush3.msra.mxu1 %v452_v10  ;;  %v332_v10 = vmul.f32 %v1199_v49, %v293_v62  ;;  %v280_v54 = vld [vmem:[%s1193_s16 + $0x40] sm:$0xff] }
  0x22   : > { %945 = vmatprep.subr.mxu0 %v451_v11  ;;  %1014 = vmatprep.subr.mxu1 %v451_v11  ;;  %v296_v55 = vld [vmem:[%s1193_s16 + $0xc0] sm:$0xff] }
  0x23   : > { %946 = vmatpush3.msra.mxu0 %v451_v11  ;;  %1030 = vmatpush3.msra.mxu1 %v451_v11  ;;  %v367_v11 = vadd.f32 %v1212_v58, %v328_v59 }
  0x24   : > { %947 = vmatprep.subr.mxu0 %v450_v12  ;;  %1015 = vmatprep.subr.mxu1 %v450_v12 }
  0x25   : > { %948 = vmatpush3.msra.mxu0 %v450_v12  ;;  %1031 = vmatpush3.msra.mxu1 %v450_v12  ;;  %v1232_v12 = vadd.f32 %v1212_v58, %v311_v60 }
  0x26   : > { %949 = vmatprep.subr.mxu0 %v449_v13  ;;  %1016 = vmatprep.subr.mxu1 %v449_v13 }
  0x27   : > { %950 = vmatpush3.msra.mxu0 %v449_v13  ;;  %1032 = vmatpush3.msra.mxu1 %v449_v13  ;;  %v315_v13 = vmul.f32 %v1199_v49, %v276_v0 }
  0x28   : > { %951 = vmatprep.subr.mxu0 %v448_v14  ;;  %1017 = vmatprep.subr.mxu1 %v448_v14 }
  0x29   : > { %952 = vmatpush3.msra.mxu0 %v448_v14  ;;  %1033 = vmatpush3.msra.mxu1 %v448_v14  ;;  %v331_v14 = vmul.f32 %v1199_v49, %v292_v1 }
  0x2a   : > { %953 = vmatprep.subr.mxu0 %v447_v15  ;;  %1018 = vmatprep.subr.mxu1 %v447_v15 }
  0x2b   : > { %954 = vmatpush3.msra.mxu0 %v447_v15  ;;  %1034 = vmatpush3.msra.mxu1 %v447_v15  ;;  %v278_v15 = vld [vmem:[%s1193_s16 + $0x30] sm:$0xff] }
  0x2c   : > { %955 = vmatprep.mubr.f32.mxu0 %v838_v16  ;;  %979 = vmatprep.mubr.f32.mxu1 %v854_v17  ;;  %v366_v16 = vadd.f32 %v1212_v58, %v327_v63  ;;  %v318_v17 = vmul.f32 %v1199_v49, %v279_v6 }
  0x2d   : > { %956 = vmatmul.mubr.f32.vlgmr.msra.gmra.mxu0 %v839_v18  ;;  %980 = vmatmul.mubr.f32.vlgmr.msra.gmra.mxu1 %v855_v19  ;;  %v334_v18 = vmul.f32 %v1199_v49, %v295_v7  ;;  %v1241_v19 = vadd.f32 %v1212_v58, %v314_v2 }
  0x2e   : > { %958 = vmatprep.mubr.f32.mxu0 %v840_v20  ;;  %982 = vmatprep.mubr.f32.mxu1 %v856_v21  ;;  %v1244_v20 = vadd.f32 %v1212_v58, %v330_v3  ;;  %v1247_v21 = vadd.f32 %v1212_v58, %v313_v4  ;;  %v283_v3 = vld [vmem:[%s1193_s16 + $0x58] sm:$0xff] }
  0x2f   : > { %v299_v4 = vld [vmem:[%s1193_s16 + $0xd8] sm:$0xff] }
  0x31   : > { %959 = vmatmul.mubr.f32.gmra.mxu0 %v841_v22  ;;  %983 = vmatmul.mubr.f32.gmra.mxu1 %v857_v23  ;;  %v1250_v22 = vadd.f32 %v1212_v58, %v329_v5  ;;  %v294_v23 = vld [vmem:[%s1193_s16 + $0xb0] sm:$0xff] }
  0x32   : > { %961 = vmatprep.mubr.f32.mxu0 %v842_v24  ;;  %985 = vmatprep.mubr.f32.mxu1 %v858_v25  ;;  %v383_v24 = vmax.f32 %v351_v8, 0.0  ;;  %v1254_v25 = vadd.f32 %v1212_v58, %v316_v9  ;;  %v319_v9 = vmul.f32 %v1199_v49, %v280_v54 }
  0x35   : > { %962 = vmatmul.mubr.f32.gmra.mxu0 %v843_v26  ;;  %986 = vmatmul.mubr.f32.gmra.mxu1 %v859_v27  ;;  %v1257_v26 = vadd.f32 %v1212_v58, %v332_v10  ;;  %v317_v27 = vmul.f32 %v1199_v49, %v278_v15  ;;  %v335_v10 = vmul.f32 %v1199_v49, %v296_v55  ;;  %v282_v15 = vld [vmem:[%s1193_s16 + $0x50] sm:$0xff] }
  0x36   : > { %964 = vmatprep.mubr.f32.mxu0 %v844_v28  ;;  %988 = vmatprep.mubr.f32.mxu1 %v860_v29  ;;  %v399_v28 = vmax.f32 %v367_v11, 0.0  ;;  %v382_v29 = vmax.f32 %v1232_v12, 0.0 }
  0x39   : > { %965 = vmatmul.mubr.f32.gmra.mxu0 %v845_v30  ;;  %989 = vmatmul.mubr.f32.gmra.mxu1 %v861_v31  ;;  %v1262_v30 = vadd.f32 %v1212_v58, %v315_v13  ;;  %v1265_v31 = vadd.f32 %v1212_v58, %v331_v14 }
  0x3a   : > { %967 = vmatprep.mubr.f32.mxu0 %v846_v32  ;;  %991 = vmatprep.mubr.f32.mxu1 %v862_v33  ;;  %v281_v32 = vld [vmem:[%s1193_s16 + $0x48] sm:$0xff]  ;;  %v1271_v33 = vld [vmem:[%s1469_s5] ss:$0 sm:$0xff] }
  0x3b   : > { %v320_v48 = vmul.f32 %v1199_v49, %v281_v32  ;;  %v386_v52 = vmax.f32 %v1262_v30, 0.0  ;;  %v402_v53 = vmax.f32 %v1265_v31, 0.0 }
  0x3d   : > { %968 = vmatmul.mubr.f32.gmra.mxu0 %v847_v34  ;;  %992 = vmatmul.mubr.f32.gmra.mxu1 %v863_v35  ;;  %v398_v34 = vmax.f32 %v366_v16, 0.0  ;;  %v1274_v35 = vadd.f32 %v1212_v58, %v318_v17  ;;  %v1316_v8 = vadd.f32 %v1212_v58, %v320_v48 }
  0x3e   : > { %970 = vmatprep.mubr.f32.mxu0 %v848_v36  ;;  %994 = vmatprep.mubr.f32.mxu1 %v864_v37  ;;  %v1277_v36 = vadd.f32 %v1212_v58, %v334_v18  ;;  %v333_v37 = vmul.f32 %v1199_v49, %v294_v23 }
  0x3f   : > { %v389_v59 = vmax.f32 %v1274_v35, 0.0 }
  0x40   : > { %v405_v60 = vmax.f32 %v1277_v36, 0.0  ;;  %v1307_v61 = vadd.f32 %v1212_v58, %v333_v37  ;;  %v1338_v37 = vadd.f32 %v1212_v58, %v319_v9 }
  0x41   : > { %971 = vmatmul.mubr.f32.gmra.mxu0 %v849_v38  ;;  %995 = vmatmul.mubr.f32.gmra.mxu1 %v865_v39  ;;  %v385_v38 = vmax.f32 %v1241_v19, 0.0  ;;  %v401_v39 = vmax.f32 %v1244_v20, 0.0  ;;  %v322_v20 = vmul.f32 %v1199_v49, %v283_v3 }
  0x42   : > { %973 = vmatprep.mubr.f32.mxu0 %v850_v40  ;;  %997 = vmatprep.mubr.f32.mxu1 %v866_v41  ;;  %v384_v40 = vmax.f32 %v1247_v21, 0.0  ;;  %v400_v41 = vmax.f32 %v1250_v22, 0.0  ;;  %v404_v18 = vmax.f32 %v1307_v61, 0.0  ;;  %v338_v21 = vmul.f32 %v1199_v49, %v299_v4 }
  0x43   : > { %v390_v4 = vmax.f32 %v1338_v37, 0.0 }
  0x45   : > { %974 = vmatmul.mubr.f32.gmra.mxu0 %v851_v42  ;;  %998 = vmatmul.mubr.f32.gmra.mxu1 %v867_v43  ;;  %v297_v42 = vld [vmem:[%s1193_s16 + $0xc8] sm:$0xff] }
  0x46   : > { %976 = vmatprep.mubr.f32.mxu0 %v852_v44  ;;  %1000 = vmatprep.mubr.f32.mxu1 %v868_v45  ;;  %v387_v45 = vmax.f32 %v1254_v25, 0.0  ;;  %v336_v62 = vmul.f32 %v1199_v49, %v297_v42  ;;  %v1341_v42 = vadd.f32 %v1212_v58, %v335_v10  ;;  %v284_v10 = vld [vmem:[%s1193_s16 + $0x60] sm:$0xff] }
  0x47   : > { %v323_v35 = vmul.f32 %v1199_v49, %v284_v10 }
  0x48   : > { %v1327_v19 = vadd.f32 %v1212_v58, %v336_v62 }
  0x49   : > { %977 = vmatmul.mubr.f32.gmra.mxu0 %v853_v46  ;;  %1001 = vmatmul.mubr.f32.gmra.mxu1 %v869_v47  ;;  %v403_v46 = vmax.f32 %v1257_v26, 0.0  ;;  %v1288_v47 = vadd.f32 %v1212_v58, %v317_v27 }
  0x4a   : > { %v407_v55 = vmax.f32 %v1327_v19, 0.0  ;;  %v287_v19 = vld [vmem:[%s1193_s16 + $0x78] sm:$0xff] }
  0x4b   : > { %v388_v7 = vmax.f32 %v1288_v47, 0.0  ;;  %v326_v47 = vmul.f32 %v1199_v49, %v287_v19 }
  0xed   : > { %v957_v43 = vpop.f32.mrf.mxu0  ;;  %v981_v44 = vpop.f32.mrf.mxu1 }
  0xee   : > { %v542_v50 = vadd.f32 %v957_v43, %v1271_v33  ;;  %v622_v51 = vadd.f32 %v981_v44, %v1271_v33 }
  0xef   : > { %v536_v56 = vpop.f32.mrf.mxu0  ;;  %v616_v57 = vpop.f32.mrf.mxu1 }
  0xf0   : > { %v696_v63 = vadd.f32 %v542_v50, %v383_v24  ;;  %v712_v0 = vadd.f32 %v622_v51, %v399_v28  ;;  %v537_v1 = vadd.f32 %v1271_v33, %v536_v56  ;;  %v617_v2 = vadd.f32 %v1271_v33, %v616_v57  ;;  %v298_v28 = vld [vmem:[%s1193_s16 + $0xd0] sm:$0xff]  ;;  %v285_v50 = vld [vmem:[%s1193_s16 + $0x68] sm:$0xff] }
  0xf1   : > { %v960_v5 = vpop.f32.mrf.mxu0  ;;  %v984_v6 = vpop.f32.mrf.mxu1  ;;  %v1351_v56 = vadd.f32 %v1212_v58, %v322_v20  ;;  %v1354_v57 = vadd.f32 %v1212_v58, %v338_v21  ;;  %v324_v25 = vmul.f32 %v1199_v49, %v285_v50  ;;  %v303_v20 = vld [vmem:[%s1193_s16 + $0xf8] sm:$0xff] }
  0xf2   : > { %728 = vst [vmem:[%s1302_s27 + $0x8] sm:$0xff] %v696_v63  ;;  %744 = vst [vmem:[%s1302_s27 + $0x88] sm:$0xff] %v712_v0  ;;  %v695_v11 = vadd.f32 %v537_v1, %v382_v29  ;;  %v711_v12 = vadd.f32 %v617_v2, %v398_v34  ;;  %v552_v13 = vadd.f32 %v960_v5, %v1271_v33  ;;  %v391_v34 = vmax.f32 %v1316_v8, 0.0  ;;  %v301_v1 = vld [vmem:[%s1193_s16 + $0xe8] sm:$0xff] }
  0xf3   : > { %v632_v14 = vadd.f32 %v984_v6, %v1271_v33  ;;  %v546_v16 = vpop.f32.mrf.mxu0  ;;  %v626_v17 = vpop.f32.mrf.mxu1  ;;  %v406_v5 = vmax.f32 %v1341_v42, 0.0  ;;  %v340_v31 = vmul.f32 %v1199_v49, %v301_v1  ;;  %v365_v1 = vadd.f32 %v1212_v58, %v326_v47 }
  0xf4   : > { %727 = vst [vmem:[%s1302_s27] sm:$0xff] %v695_v11  ;;  %743 = vst [vmem:[%s1302_s27 + $0x80] sm:$0xff] %v711_v12  ;;  %v698_v22 = vadd.f32 %v552_v13, %v385_v38  ;;  %v547_v24 = vadd.f32 %v1271_v33, %v546_v16  ;;  %v627_v27 = vadd.f32 %v1271_v33, %v626_v17  ;;  %v300_v11 = vld [vmem:[%s1193_s16 + $0xe0] sm:$0xff] }
  0xf5   : > { %v714_v23 = vadd.f32 %v632_v14, %v401_v39  ;;  %v963_v29 = vpop.f32.mrf.mxu0  ;;  %v987_v32 = vpop.f32.mrf.mxu1  ;;  %v321_v38 = vmul.f32 %v1199_v49, %v282_v15  ;;  %v393_v14 = vmax.f32 %v1351_v56, 0.0  ;;  %v409_v15 = vmax.f32 %v1354_v57, 0.0 }
  0xf6   : > { %730 = vst [vmem:[%s1302_s27 + $0x18] sm:$0xff] %v698_v22  ;;  %v697_v39 = vadd.f32 %v547_v24, %v384_v40  ;;  %v713_v43 = vadd.f32 %v627_v27, %v400_v41  ;;  %v562_v44 = vadd.f32 %v963_v29, %v1271_v33  ;;  %v642_v48 = vadd.f32 %v987_v32, %v1271_v33  ;;  %v286_v29 = vld [vmem:[%s1193_s16 + $0x70] sm:$0xff] }
  0xf7   : > { %746 = vst [vmem:[%s1302_s27 + $0x98] sm:$0xff] %v714_v23  ;;  %v556_v51 = vpop.f32.mrf.mxu0  ;;  %v636_v54 = vpop.f32.mrf.mxu1  ;;  %v337_v40 = vmul.f32 %v1199_v49, %v298_v28  ;;  %v1369_v6 = vadd.f32 %v1212_v58, %v321_v38  ;;  %v1400_v24 = vadd.f32 %v1212_v58, %v324_v25  ;;  %v339_v36 = vmul.f32 %v1199_v49, %v300_v11  ;;  %v302_v32 = vld [vmem:[%s1193_s16 + $0xf0] sm:$0xff] }
  0xf8   : > { %729 = vst [vmem:[%s1302_s27 + $0x10] sm:$0xff] %v697_v39  ;;  %745 = vst [vmem:[%s1302_s27 + $0x90] sm:$0xff] %v713_v43  ;;  %v700_v41 = vadd.f32 %v562_v44, %v387_v45  ;;  %v716_v62 = vadd.f32 %v642_v48, %v403_v46  ;;  %v557_v63 = vadd.f32 %v1271_v33, %v556_v51 }
  0xf9   : > { %v637_v0 = vadd.f32 %v1271_v33, %v636_v54  ;;  %v966_v2 = vpop.f32.mrf.mxu0  ;;  %v990_v3 = vpop.f32.mrf.mxu1  ;;  %v1385_v30 = vadd.f32 %v1212_v58, %v337_v40  ;;  %v392_v23 = vmax.f32 %v1369_v6, 0.0  ;;  %v379_v39 = vadd.f32 %v1212_v58, %v340_v31 }
  0xfa   : > { %732 = vst [vmem:[%s1302_s27 + $0x28] sm:$0xff] %v700_v41  ;;  %748 = vst [vmem:[%s1302_s27 + $0xa8] sm:$0xff] %v716_v62  ;;  %v699_v26 = vadd.f32 %v557_v63, %v386_v52  ;;  %v572_v46 = vadd.f32 %v966_v2, %v1271_v33  ;;  %v652_v9 = vadd.f32 %v990_v3, %v1271_v33  ;;  %v395_v63 = vmax.f32 %v1400_v24, 0.0 }
  0xfb   : > { %v715_v45 = vadd.f32 %v637_v0, %v402_v53  ;;  %v566_v12 = vpop.f32.mrf.mxu0  ;;  %v646_v13 = vpop.f32.mrf.mxu1  ;;  %v408_v38 = vmax.f32 %v1385_v30, 0.0  ;;  %v362_v51 = vadd.f32 %v1212_v58, %v323_v35  ;;  %v378_v54 = vadd.f32 %v1212_v58, %v339_v36 }
  0xfc   : > { %731 = vst [vmem:[%s1302_s27 + $0x20] sm:$0xff] %v699_v26  ;;  %v702_v52 = vadd.f32 %v572_v46, %v389_v59  ;;  %v718_v53 = vadd.f32 %v652_v9, %v405_v60  ;;  %v567_v16 = vadd.f32 %v1271_v33, %v566_v12  ;;  %v647_v17 = vadd.f32 %v1271_v33, %v646_v13 }
  0xfd   : > { %747 = vst [vmem:[%s1302_s27 + $0xa0] sm:$0xff] %v715_v45  ;;  %v969_v21 = vpop.f32.mrf.mxu0  ;;  %v993_v22 = vpop.f32.mrf.mxu1  ;;  %v325_v56 = vmul.f32 %v1199_v49, %v286_v29  ;;  %v341_v57 = vmul.f32 %v1199_v49, %v302_v32  ;;  %v411_v0 = vmax.f32 %v379_v39, 0.0  ;;  %v394_v26 = vmax.f32 %v362_v51, 0.0 }
  0xfe   : > { %734 = vst [vmem:[%s1302_s27 + $0x38] sm:$0xff] %v702_v52  ;;  %750 = vst [vmem:[%s1302_s27 + $0xb8] sm:$0xff] %v718_v53  ;;  %v701_v59 = vadd.f32 %v567_v16, %v388_v7  ;;  %v717_v60 = vadd.f32 %v647_v17, %v404_v18  ;;  %v582_v27 = vadd.f32 %v969_v21, %v1271_v33  ;;  %v410_v45 = vmax.f32 %v378_v54, 0.0 }
  0xff   : > { %v662_v28 = vadd.f32 %v993_v22, %v1271_v33  ;;  %v576_v37 = vpop.f32.mrf.mxu0  ;;  %v656_v42 = vpop.f32.mrf.mxu1  ;;  %v342_v7 = vmul.f32 %v1199_v49, %v303_v20  ;;  %v364_v46 = vadd.f32 %v1212_v58, %v325_v56  ;;  %v380_v9 = vadd.f32 %v1212_v58, %v341_v57 }
 0x100   : > { %733 = vst [vmem:[%s1302_s27 + $0x30] sm:$0xff] %v701_v59  ;;  %749 = vst [vmem:[%s1302_s27 + $0xb0] sm:$0xff] %v717_v60  ;;  %v704_v61 = vadd.f32 %v582_v27, %v391_v34  ;;  %v577_v43 = vadd.f32 %v1271_v33, %v576_v37  ;;  %v657_v44 = vadd.f32 %v1271_v33, %v656_v42  ;;  %v397_v30 = vmax.f32 %v365_v1, 0.0 }
 0x101   : > { %v720_v18 = vadd.f32 %v662_v28, %v407_v55  ;;  %v972_v48 = vpop.f32.mrf.mxu0  ;;  %v996_v50 = vpop.f32.mrf.mxu1  ;;  %v381_v2 = vadd.f32 %v1212_v58, %v342_v7  ;;  %v396_v20 = vmax.f32 %v364_v46, 0.0  ;;  %v412_v21 = vmax.f32 %v380_v9, 0.0 }
 0x102   : > { %736 = vst [vmem:[%s1302_s27 + $0x48] sm:$0xff] %v704_v61  ;;  %v703_v8 = vadd.f32 %v577_v43, %v390_v4  ;;  %v719_v34 = vadd.f32 %v657_v44, %v406_v5  ;;  %v592_v55 = vadd.f32 %v972_v48, %v1271_v33  ;;  %v672_v40 = vadd.f32 %v996_v50, %v1271_v33 }
 0x103   : > { %752 = vst [vmem:[%s1302_s27 + $0xc8] sm:$0xff] %v720_v18  ;;  %v586_v41 = vpop.f32.mrf.mxu0  ;;  %v666_v62 = vpop.f32.mrf.mxu1  ;;  %v413_v31 = vmax.f32 %v381_v2, 0.0 }
 0x104   : > { %735 = vst [vmem:[%s1302_s27 + $0x40] sm:$0xff] %v703_v8  ;;  %751 = vst [vmem:[%s1302_s27 + $0xc0] sm:$0xff] %v719_v34  ;;  %v706_v49 = vadd.f32 %v592_v55, %v393_v14  ;;  %v722_v3 = vadd.f32 %v672_v40, %v409_v15  ;;  %v587_v4 = vadd.f32 %v1271_v33, %v586_v41 }
 0x105   : > { %v667_v5 = vadd.f32 %v1271_v33, %v666_v62  ;;  %v975_v6 = vpop.f32.mrf.mxu0  ;;  %v999_v25 = vpop.f32.mrf.mxu1 }
 0x106   : > { %738 = vst [vmem:[%s1302_s27 + $0x58] sm:$0xff] %v706_v49  ;;  %754 = vst [vmem:[%s1302_s27 + $0xd8] sm:$0xff] %v722_v3  ;;  %v705_v10 = vadd.f32 %v587_v4, %v392_v23  ;;  %v602_v12 = vadd.f32 %v975_v6, %v1271_v33  ;;  %v682_v13 = vadd.f32 %v999_v25, %v1271_v33 }
 0x107   : > { %v721_v11 = vadd.f32 %v667_v5, %v408_v38  ;;  %v596_v14 = vpop.f32.mrf.mxu0  ;;  %v676_v15 = vpop.f32.mrf.mxu1 }
 0x108   : > { %737 = vst [vmem:[%s1302_s27 + $0x50] sm:$0xff] %v705_v10  ;;  %v708_v52 = vadd.f32 %v602_v12, %v395_v63  ;;  %v724_v53 = vadd.f32 %v682_v13, %v411_v0  ;;  %v597_v58 = vadd.f32 %v1271_v33, %v596_v14  ;;  %v677_v16 = vadd.f32 %v1271_v33, %v676_v15 }
 0x109   : > { %753 = vst [vmem:[%s1302_s27 + $0xd0] sm:$0xff] %v721_v11  ;;  %v978_v17 = vpop.f32.mrf.mxu0  ;;  %v1002_v19 = vpop.f32.mrf.mxu1 }
 0x10a   : > { %740 = vst [vmem:[%s1302_s27 + $0x68] sm:$0xff] %v708_v52  ;;  %756 = vst [vmem:[%s1302_s27 + $0xe8] sm:$0xff] %v724_v53  ;;  %v707_v22 = vadd.f32 %v597_v58, %v394_v26  ;;  %v723_v23 = vadd.f32 %v677_v16, %v410_v45  ;;  %v612_v24 = vadd.f32 %v978_v17, %v1271_v33 }
 0x10b   : > { %v692_v35 = vadd.f32 %v1002_v19, %v1271_v33  ;;  %v606_v36 = vpop.f32.mrf.mxu0  ;;  %v686_v59 = vpop.f32.mrf.mxu1 }
 0x10c   : > { %739 = vst [vmem:[%s1302_s27 + $0x60] sm:$0xff] %v707_v22  ;;  %755 = vst [vmem:[%s1302_s27 + $0xe0] sm:$0xff] %v723_v23  ;;  %v710_v60 = vadd.f32 %v612_v24, %v397_v30  ;;  %v607_v28 = vadd.f32 %v1271_v33, %v606_v36  ;;  %v687_v29 = vadd.f32 %v1271_v33, %v686_v59 }
 0x10d   : > { %v726_v27 = vadd.f32 %v692_v35, %v413_v31 }
 0x10e   : > { %742 = vst [vmem:[%s1302_s27 + $0x78] sm:$0xff] %v710_v60  ;;  %v709_v32 = vadd.f32 %v607_v28, %v396_v20  ;;  %v725_v37 = vadd.f32 %v687_v29, %v412_v21 }
 0x10f   : > { %758 = vst [vmem:[%s1302_s27 + $0xf8] sm:$0xff] %v726_v27 }
 0x110   : > { %741 = vst [vmem:[%s1302_s27 + $0x70] sm:$0xff] %v709_v32  ;;  %757 = vst [vmem:[%s1302_s27 + $0xf0] sm:$0xff] %v725_v37 }
 0x111 PF: > { %s16_s21 = sadd.s32 1, %s1050_s21  }
 0x112   : > { %p13_p4 = scmp.ge.s32.totalorder %s16_s21, 4  }
 0x114   :  { %15 = sbr.rel (!%p13_p4) target bundleno = 1 (0x1), region = 78 }

// kernel: middle_layer_forward.3
= control target key start
LH: loop header
LB: loop body
LE: loop exit
PB: predicated region body
PF: predicated region fallthrough
CT: control target
= control target key end

     0   :  { %s4727_s15 = smov 0   ;;  %s6308_s0 = inlined_call_operand.vmem [shape: f32[2,18,18,128], index: 0, kind: input, shape index: {}]   ;;  %s6309_s1 = inlined_call_operand.vmem [shape: f32[9,128,128], index: 1, kind: input, shape index: {}]   ;;  %s6310_s2 = inlined_call_operand.vmem [shape: f32[1,128], index: 2, kind: input, shape index: {}]   ;;  %s6311_s3 = inlined_call_operand.vmem [shape: f32[2,256,128], index: 3, kind: output, shape index: {0}]   ;;  %s6312_s4 = inlined_call_operand.vmem [shape: f32[2,8,128], index: 4, kind: output, shape index: {1}]  }
   0x1 LB: > { %s3168_s16 = sadd.s32 4294967295, %s4700_s15   ;;  %p3172_p0 = scmp.ge.s32.totalorder %s4700_s15, 1  ;;  %s4700_s15 = sphi %s4727_s15, %s15_s15  }
   0x2   : > { %p165_p1 = scmp.lt.s32.totalorder %s4700_s15, 3 }
   0x4   : > { %p166_p2 = pnand %p3172_p0, %p165_p1 }
   0x6   : > { %169 = sbr.rel (%p166_p2) target bundleno = 567 (0x237), region = 32 }
   0xb   : > { %v3192_v0 = vld [vmem:[%s6309_s1 + $0xf8] sm:$0xff]  ;;  %v3191_v1 = vld [vmem:[%s6309_s1 + $0xf0] sm:$0xff]  ;;  %v3190_v2 = vld [vmem:[%s6309_s1 + $0xe8] sm:$0xff]  ;;  %p195_p3 = scmp.lt.s32.totalorder %s3168_s16, 1  ;;  %vm3077_vm0 = vcmask 1040384   ;;  %vm3079_vm1 = vcmask 1041408  }
   0xc   : > { %4653 = vmatprep.subr.mxu1 %v3192_v0  ;;  %3933 = vmatprep.subr.mxu0 %v3192_v0  ;;  %v3189_v3 = vld [vmem:[%s6309_s1 + $0xe0] sm:$0xff]  ;;  %v3188_v4 = vld [vmem:[%s6309_s1 + $0xd8] sm:$0xff]  ;;  %v3187_v5 = vld [vmem:[%s6309_s1 + $0xd0] sm:$0xff] }
   0xd   : > { %4669 = vmatpush3.msra.mxu1 %v3192_v0  ;;  %3934 = vmatpush3.msra.mxu0 %v3192_v0  ;;  %v3186_v6 = vld [vmem:[%s6309_s1 + $0xc8] sm:$0xff]  ;;  %v3185_v7 = vld [vmem:[%s6309_s1 + $0xc0] sm:$0xff]  ;;  %v3184_v8 = vld [vmem:[%s6309_s1 + $0xb8] sm:$0xff]  ;;  %s6482_s16 = smov (!%p195_p3, %s3168_s16), 1 }
   0xe   : > { %4654 = vmatprep.subr.mxu1 %v3191_v1  ;;  %3935 = vmatprep.subr.mxu0 %v3191_v1  ;;  %v3183_v9 = vld [vmem:[%s6309_s1 + $0xb0] sm:$0xff]  ;;  %v3182_v10 = vld [vmem:[%s6309_s1 + $0xa8] sm:$0xff]  ;;  %v3181_v11 = vld [vmem:[%s6309_s1 + $0xa0] sm:$0xff]  ;;  %s4685_s19 = smul.u32 432, %s6482_s16  ;;  %s3176_s11 = sshll.u32 %s6482_s16, 3 }
   0xf   : > { %4670 = vmatpush3.msra.mxu1 %v3191_v1  ;;  %3936 = vmatpush3.msra.mxu0 %v3191_v1  ;;  %v3180_v12 = vld [vmem:[%s6309_s1 + $0x98] sm:$0xff]  ;;  %v3179_v13 = vld [vmem:[%s6309_s1 + $0x90] sm:$0xff]  ;;  %v3178_v14 = vld [vmem:[%s6309_s1 + $0x88] sm:$0xff]  ;;  %s208_s14 = scalar_lea.vmem %s6312_s4, %s3176_s11 }
  0x10   : > { %4655 = vmatprep.subr.mxu1 %v3190_v2  ;;  %3937 = vmatprep.subr.mxu0 %v3190_v2  ;;  %s4790_s26 = scalar_lea.vmem %s6308_s0, %s4685_s19  ;;  %v3177_v15 = vld [vmem:[%s6309_s1 + $0x80] sm:$0xff]  ;;  %v256_v19 = vld [vmem:[%s6309_s1 + $0x78] sm:$0xff]  ;;  %v255_v22 = vld [vmem:[%s6309_s1 + $0x70] sm:$0xff] }
  0x11   : > { %4671 = vmatpush3.msra.mxu1 %v3190_v2  ;;  %3938 = vmatpush3.msra.mxu0 %v3190_v2  ;;  %v4796_v16 = vld [vmem:[%s4790_s26 + $0xc1] sm:$0xff]  ;;  %v4800_v18 = vld [vmem:[%s4790_s26 + $0xc9] sm:$0xff]  ;;  %v3208_v21 = vld [vmem:[%s6309_s1 + $0x178] sm:$0xff] }
  0x12   : > { %4656 = vmatprep.subr.mxu1 %v3189_v3  ;;  %3939 = vmatprep.subr.mxu0 %v3189_v3  ;;  %v257_v17 = vld [vmem:[%s4790_s26 + $0x1] sm:$0xff]  ;;  %v258_v20 = vld [vmem:[%s4790_s26 + $0x9] sm:$0xff]  ;;  %v4815_v23 = vld [vmem:[%s4790_s26 + $0xd9] sm:$0xff] }
  0x13   : > { %4672 = vmatpush3.msra.mxu1 %v3189_v3  ;;  %3940 = vmatpush3.msra.mxu0 %v3189_v3  ;;  %v3207_v24 = vld [vmem:[%s6309_s1 + $0x170] sm:$0xff]  ;;  %v4821_v25 = vld [vmem:[%s4790_s26 + $0x19] sm:$0xff]  ;;  %v4824_v26 = vld [vmem:[%s4790_s26 + $0xe1] sm:$0xff] }
  0x14   : > { %4657 = vmatprep.subr.mxu1 %v3188_v4  ;;  %3941 = vmatprep.subr.mxu0 %v3188_v4  ;;  %v254_v27 = vld [vmem:[%s6309_s1 + $0x68] sm:$0xff]  ;;  %v253_v30 = vld [vmem:[%s6309_s1 + $0x60] sm:$0xff]  ;;  %v4842_v31 = vld [vmem:[%s4790_s26 + $0xf1] sm:$0xff] }
  0x15   : > { %4673 = vmatpush3.msra.mxu1 %v3188_v4  ;;  %3942 = vmatpush3.msra.mxu0 %v3188_v4  ;;  %v4831_v28 = vld [vmem:[%s4790_s26 + $0x21] sm:$0xff]  ;;  %v4849_v33 = vld [vmem:[%s4790_s26 + $0x31] sm:$0xff]  ;;  %v4852_v34 = vld [vmem:[%s4790_s26 + $0xf9] sm:$0xff] }
  0x16   : > { %4658 = vmatprep.subr.mxu1 %v3187_v5  ;;  %3943 = vmatprep.subr.mxu0 %v3187_v5  ;;  %v3206_v29 = vld [vmem:[%s6309_s1 + $0x168] sm:$0xff]  ;;  %v3205_v32 = vld [vmem:[%s6309_s1 + $0x160] sm:$0xff]  ;;  %v252_v35 = vld [vmem:[%s6309_s1 + $0x58] sm:$0xff] }
  0x17   : > { %4674 = vmatpush3.msra.mxu1 %v3187_v5  ;;  %3944 = vmatpush3.msra.mxu0 %v3187_v5  ;;  %v4859_v36 = vld [vmem:[%s4790_s26 + $0x39] sm:$0xff]  ;;  %v251_v38 = vld [vmem:[%s6309_s1 + $0x50] sm:$0xff]  ;;  %v250_v43 = vld [vmem:[%s6309_s1 + $0x48] sm:$0xff] }
  0x18   : > { %4659 = vmatprep.subr.mxu1 %v3186_v6  ;;  %3945 = vmatprep.subr.mxu0 %v3186_v6  ;;  %v3204_v37 = vld [vmem:[%s6309_s1 + $0x158] sm:$0xff]  ;;  %v4870_v39 = vld [vmem:[%s4790_s26 + $0x109] sm:$0xff]  ;;  %v249_v46 = vld [vmem:[%s6309_s1 + $0x40] sm:$0xff] }
  0x19   : > { %4675 = vmatpush3.msra.mxu1 %v3186_v6  ;;  %3946 = vmatpush3.msra.mxu0 %v3186_v6  ;;  %v3203_v40 = vld [vmem:[%s6309_s1 + $0x150] sm:$0xff]  ;;  %v3202_v45 = vld [vmem:[%s6309_s1 + $0x148] sm:$0xff]  ;;  %v3201_v48 = vld [vmem:[%s6309_s1 + $0x140] sm:$0xff] }
  0x1a   : > { %4660 = vmatprep.subr.mxu1 %v3185_v7  ;;  %3947 = vmatprep.subr.mxu0 %v3185_v7  ;;  %v4877_v41 = vld [vmem:[%s4790_s26 + $0x49] sm:$0xff]  ;;  %v4880_v42 = vld [vmem:[%s4790_s26 + $0x111] sm:$0xff]  ;;  %v4898_v47 = vld [vmem:[%s4790_s26 + $0x121] sm:$0xff] }
  0x1b   : > { %4676 = vmatpush3.msra.mxu1 %v3185_v7  ;;  %3948 = vmatpush3.msra.mxu0 %v3185_v7  ;;  %v4887_v44 = vld [vmem:[%s4790_s26 + $0x51] sm:$0xff]  ;;  %v4905_v49 = vld [vmem:[%s4790_s26 + $0x61] sm:$0xff]  ;;  %v4908_v50 = vld [vmem:[%s4790_s26 + $0x129] sm:$0xff] }
  0x1c   : > { %4661 = vmatprep.subr.mxu1 %v3184_v8  ;;  %3949 = vmatprep.subr.mxu0 %v3184_v8  ;;  %v248_v51 = vld [vmem:[%s6309_s1 + $0x38] sm:$0xff]  ;;  %v4915_v52 = vld [vmem:[%s4790_s26 + $0x69] sm:$0xff]  ;;  %v4936_v58 = vld [vmem:[%s4790_s26 + $0x141] sm:$0xff] }
  0x1d   : > { %4677 = vmatpush3.msra.mxu1 %v3184_v8  ;;  %3950 = vmatpush3.msra.mxu0 %v3184_v8  ;;  %v3200_v53 = vld [vmem:[%s6309_s1 + $0x138] sm:$0xff]  ;;  %v247_v54 = vld [vmem:[%s6309_s1 + $0x30] sm:$0xff]  ;;  %v246_v59 = vld [vmem:[%s6309_s1 + $0x28] sm:$0xff] }
  0x1e   : > { %4662 = vmatprep.subr.mxu1 %v3183_v9  ;;  %3951 = vmatprep.subr.mxu0 %v3183_v9  ;;  %v4926_v55 = vld [vmem:[%s4790_s26 + $0x139] sm:$0xff]  ;;  %v3199_v56 = vld [vmem:[%s6309_s1 + $0x130] sm:$0xff]  ;;  %v4943_v60 = vld [vmem:[%s4790_s26 + $0x81] sm:$0xff] }
  0x1f   : > { %4678 = vmatpush3.msra.mxu1 %v3183_v9  ;;  %3952 = vmatpush3.msra.mxu0 %v3183_v9  ;;  %v4933_v57 = vld [vmem:[%s4790_s26 + $0x79] sm:$0xff]  ;;  %v3198_v61 = vld [vmem:[%s6309_s1 + $0x128] sm:$0xff]  ;;  %v4954_v63 = vld [vmem:[%s4790_s26 + $0x151] sm:$0xff] }
  0x20   : > { %4663 = vmatprep.subr.mxu1 %v3182_v10  ;;  %3953 = vmatprep.subr.mxu0 %v3182_v10  ;;  %v245_v62 = vld [vmem:[%s6309_s1 + $0x20] sm:$0xff]  ;;  %v4961_v1 = vld [vmem:[%s4790_s26 + $0x91] sm:$0xff]  ;;  %v4982_v7 = vld [vmem:[%s4790_s26 + $0x169] sm:$0xff] }
  0x21   : > { %4679 = vmatpush3.msra.mxu1 %v3182_v10  ;;  %3954 = vmatpush3.msra.mxu0 %v3182_v10  ;;  %v3197_v0 = vld [vmem:[%s6309_s1 + $0x120] sm:$0xff]  ;;  %v244_v3 = vld [vmem:[%s6309_s1 + $0x18] sm:$0xff]  ;;  %v243_v6 = vld [vmem:[%s6309_s1 + $0x10] sm:$0xff]  ;;  %6344 = vst [vmem:[#allocation3_spill] sm:$0xff] %v4982_v7 }
  0x22   : > { %4664 = vmatprep.subr.mxu1 %v3181_v11  ;;  %3955 = vmatprep.subr.mxu0 %v3181_v11  ;;  %v4964_v2 = vld [vmem:[%s4790_s26 + $0x159] sm:$0xff]  ;;  %v3195_v8 = vld [vmem:[%s6309_s1 + $0x110] sm:$0xff] }
  0x23   : > { %4680 = vmatpush3.msra.mxu1 %v3181_v11  ;;  %3956 = vmatpush3.msra.mxu0 %v3181_v11  ;;  %6343 = vst [vmem:[#allocation2_spill] sm:$0xff] %v4964_v2  ;;  %v4971_v4 = vld [vmem:[%s4790_s26 + $0x99] sm:$0xff]  ;;  %v4989_v9 = vld [vmem:[%s4790_s26 + $0xa9] sm:$0xff]  ;;  %v4992_v10 = vld [vmem:[%s4790_s26 + $0x171] sm:$0xff] }
  0x24   : > { %4665 = vmatprep.subr.mxu1 %v3180_v12  ;;  %3957 = vmatprep.subr.mxu0 %v3180_v12  ;;  %v3196_v5 = vld [vmem:[%s6309_s1 + $0x118] sm:$0xff]  ;;  %6345 = vst [vmem:[#allocation4_spill] sm:$0xff] %v4992_v10  ;;  %v242_v11 = vld [vmem:[%s6309_s1 + $0x8] sm:$0xff] }
  0x25   : > { %4681 = vmatpush3.msra.mxu1 %v3180_v12  ;;  %3958 = vmatpush3.msra.mxu0 %v3180_v12  ;;  %v4999_v12 = vld [vmem:[%s4790_s26 + $0xb1] sm:$0xff] }
  0x26   : > { %4666 = vmatprep.subr.mxu1 %v3179_v13  ;;  %3959 = vmatprep.subr.mxu0 %v3179_v13 }
  0x27   : > { %4682 = vmatpush3.msra.mxu1 %v3179_v13  ;;  %3960 = vmatpush3.msra.mxu0 %v3179_v13  ;;  %v3194_v13 = vld [vmem:[%s6309_s1 + $0x108] sm:$0xff] }
  0x28   : > { %4667 = vmatprep.subr.mxu1 %v3178_v14  ;;  %3961 = vmatprep.subr.mxu0 %v3178_v14 }
  0x29   : > { %4683 = vmatpush3.msra.mxu1 %v3178_v14  ;;  %3962 = vmatpush3.msra.mxu0 %v3178_v14  ;;  %v241_v14 = vld [vmem:[%s6309_s1] sm:$0xff] }
  0x2a   : > { %4668 = vmatprep.subr.mxu1 %v3177_v15  ;;  %3963 = vmatprep.subr.mxu0 %v3177_v15 }
  0x2b   : > { %4684 = vmatpush3.msra.mxu1 %v3177_v15  ;;  %3989 = vmatprep.mubr.f32.mxu1 %v4796_v16 }
  0x2c   : > { %3964 = vmatpush3.msra.mxu0 %v3177_v15  ;;  %3965 = vmatprep.mubr.f32.mxu0 %v257_v17  ;;  %v209_v15 = vld [vmem:[%s4790_s26] sm:$0xff] }
  0x2d   : > { %3990 = vmatmul.mubr.f32.vlgmr.msra.gmra.mxu1 %v4800_v18  ;;  %4013 = vmatprep.subr.mxu1 %v256_v19  ;;  %v3193_v17 = vld [vmem:[%s6309_s1 + $0x100] sm:$0xff] }
  0x2e   : > { %3966 = vmatmul.mubr.f32.vlgmr.msra.gmra.mxu0 %v258_v20  ;;  %4014 = vmatpush3.msra.mxu1 %v256_v19  ;;  %v210_v19 = vld [vmem:[%s4790_s26 + $0x8] sm:$0xff] }
  0x2f   : > { %4093 = vmatprep.subr.mxu0 %v3208_v21  ;;  %4015 = vmatprep.subr.mxu1 %v255_v22  ;;  %v756_v20 = vld [vmem:[%s4790_s26 + $0x2] sm:$0xff] }
  0x30   : > { %4094 = vmatpush3.msra.mxu0 %v3208_v21  ;;  %3992 = vmatprep.mubr.f32.mxu1 %v4815_v23  ;;  %v3256_v21 = vld [vmem:[%s6309_s1 + $0x1f8] sm:$0xff] }
  0x31   : > { %4016 = vmatpush3.msra.mxu1 %v255_v22  ;;  %4095 = vmatprep.subr.mxu0 %v3207_v24  ;;  %v757_v22 = vld [vmem:[%s4790_s26 + $0xa] sm:$0xff] }
  0x32   : > { %3968 = vmatprep.mubr.f32.mxu0 %v4821_v25  ;;  %3993 = vmatmul.mubr.f32.gmra.mxu1 %v4824_v26 }
  0x33   : > { %4017 = vmatprep.subr.mxu1 %v254_v27  ;;  %4096 = vmatpush3.msra.mxu0 %v3207_v24  ;;  %v3304_v24 = vld [vmem:[%s6309_s1 + $0x278] sm:$0xff] }
  0x34   : > { %3969 = vmatmul.mubr.f32.gmra.mxu0 %v4831_v28  ;;  %4018 = vmatpush3.msra.mxu1 %v254_v27  ;;  %v5024_v27 = vld [vmem:[%s4790_s26 + $0x18] sm:$0xff] }
  0x35   : > { %4097 = vmatprep.subr.mxu0 %v3206_v29  ;;  %4019 = vmatprep.subr.mxu1 %v253_v30 }
  0x36   : > { %4098 = vmatpush3.msra.mxu0 %v3206_v29  ;;  %3995 = vmatprep.mubr.f32.mxu1 %v4842_v31  ;;  %v5027_v29 = vld [vmem:[%s4790_s26 + $0x20] sm:$0xff] }
  0x37   : > { %4020 = vmatpush3.msra.mxu1 %v253_v30  ;;  %4099 = vmatprep.subr.mxu0 %v3205_v32  ;;  %v5030_v30 = vld [vmem:[%s4790_s26 + $0x1a] sm:$0xff] }
  0x38   : > { %3971 = vmatprep.mubr.f32.mxu0 %v4849_v33  ;;  %3996 = vmatmul.mubr.f32.gmra.mxu1 %v4852_v34  ;;  %6346 = vst [vmem:[#allocation5_spill] sm:$0xff] %v5030_v30 }
  0x39   : > { %4021 = vmatprep.subr.mxu1 %v252_v35  ;;  %4100 = vmatpush3.msra.mxu0 %v3205_v32  ;;  %v3255_v32 = vld [vmem:[%s6309_s1 + $0x1f0] sm:$0xff] }
  0x3a   : > { %3972 = vmatmul.mubr.f32.gmra.mxu0 %v4859_v36  ;;  %4022 = vmatpush3.msra.mxu1 %v252_v35  ;;  %v5037_v35 = vld [vmem:[%s4790_s26 + $0x22] sm:$0xff] }
  0x3b   : > { %4101 = vmatprep.subr.mxu0 %v3204_v37  ;;  %4023 = vmatprep.subr.mxu1 %v251_v38  ;;  %6347 = vst [vmem:[#allocation6_spill] sm:$0xff] %v5037_v35 }
  0x3c   : > { %4102 = vmatpush3.msra.mxu0 %v3204_v37  ;;  %3998 = vmatprep.mubr.f32.mxu1 %v4870_v39  ;;  %v3303_v37 = vld [vmem:[%s6309_s1 + $0x270] sm:$0xff] }
  0x3d   : > { %4024 = vmatpush3.msra.mxu1 %v251_v38  ;;  %4103 = vmatprep.subr.mxu0 %v3203_v40  ;;  %v5044_v38 = vld [vmem:[%s4790_s26 + $0x30] sm:$0xff] }
  0x3e   : > { %3974 = vmatprep.mubr.f32.mxu0 %v4877_v41  ;;  %3999 = vmatmul.mubr.f32.gmra.mxu1 %v4880_v42 }
  0x3f   : > { %4025 = vmatprep.subr.mxu1 %v250_v43  ;;  %4104 = vmatpush3.msra.mxu0 %v3203_v40  ;;  %v5048_v40 = vld [vmem:[%s4790_s26 + $0x38] sm:$0xff] }
  0x40   : > { %3975 = vmatmul.mubr.f32.gmra.mxu0 %v4887_v44  ;;  %4026 = vmatpush3.msra.mxu1 %v250_v43  ;;  %v5052_v43 = vld [vmem:[%s4790_s26 + $0x32] sm:$0xff] }
  0x41   : > { %4105 = vmatprep.subr.mxu0 %v3202_v45  ;;  %4027 = vmatprep.subr.mxu1 %v249_v46  ;;  %6348 = vst [vmem:[#allocation7_spill] sm:$0xff] %v5052_v43 }
  0x42   : > { %4106 = vmatpush3.msra.mxu0 %v3202_v45  ;;  %4001 = vmatprep.mubr.f32.mxu1 %v4898_v47  ;;  %v3254_v45 = vld [vmem:[%s6309_s1 + $0x1e8] sm:$0xff] }
  0x43   : > { %4028 = vmatpush3.msra.mxu1 %v249_v46  ;;  %4107 = vmatprep.subr.mxu0 %v3201_v48  ;;  %v5059_v46 = vld [vmem:[%s4790_s26 + $0x3a] sm:$0xff] }
  0x44   : > { %3977 = vmatprep.mubr.f32.mxu0 %v4905_v49  ;;  %4002 = vmatmul.mubr.f32.gmra.mxu1 %v4908_v50  ;;  %6349 = vst [vmem:[#allocation8_spill] sm:$0xff] %v5059_v46 }
  0x45   : > { %4029 = vmatprep.subr.mxu1 %v248_v51  ;;  %4108 = vmatpush3.msra.mxu0 %v3201_v48  ;;  %v3302_v48 = vld [vmem:[%s6309_s1 + $0x268] sm:$0xff] }
  0x46   : > { %3978 = vmatmul.mubr.f32.gmra.mxu0 %v4915_v52  ;;  %4030 = vmatpush3.msra.mxu1 %v248_v51  ;;  %v5066_v51 = vld [vmem:[%s4790_s26 + $0x48] sm:$0xff] }
  0x47   : > { %4109 = vmatprep.subr.mxu0 %v3200_v53  ;;  %4031 = vmatprep.subr.mxu1 %v247_v54 }
  0x48   : > { %4110 = vmatpush3.msra.mxu0 %v3200_v53  ;;  %4004 = vmatprep.mubr.f32.mxu1 %v4926_v55  ;;  %v5070_v53 = vld [vmem:[%s4790_s26 + $0x50] sm:$0xff] }
  0x49   : > { %4032 = vmatpush3.msra.mxu1 %v247_v54  ;;  %4111 = vmatprep.subr.mxu0 %v3199_v56  ;;  %v5074_v54 = vld [vmem:[%s4790_s26 + $0x4a] sm:$0xff] }
  0x4a   : > { %3980 = vmatprep.mubr.f32.mxu0 %v4933_v57  ;;  %4005 = vmatmul.mubr.f32.gmra.mxu1 %v4936_v58  ;;  %6350 = vst [vmem:[#allocation9_spill] sm:$0xff] %v5074_v54 }
  0x4b   : > { %4033 = vmatprep.subr.mxu1 %v246_v59  ;;  %4112 = vmatpush3.msra.mxu0 %v3199_v56  ;;  %v3253_v56 = vld [vmem:[%s6309_s1 + $0x1e0] sm:$0xff] }
  0x4c   : > { %3981 = vmatmul.mubr.f32.gmra.mxu0 %v4943_v60  ;;  %4034 = vmatpush3.msra.mxu1 %v246_v59  ;;  %v5081_v59 = vld [vmem:[%s4790_s26 + $0x52] sm:$0xff] }
  0x4d   : > { %4113 = vmatprep.subr.mxu0 %v3198_v61  ;;  %4035 = vmatprep.subr.mxu1 %v245_v62  ;;  %6351 = vst [vmem:[#allocation10_spill] sm:$0xff] %v5081_v59 }
  0x4e   : > { %4114 = vmatpush3.msra.mxu0 %v3198_v61  ;;  %4007 = vmatprep.mubr.f32.mxu1 %v4954_v63  ;;  %v3301_v61 = vld [vmem:[%s6309_s1 + $0x260] sm:$0xff] }
  0x4f   : > { %4036 = vmatpush3.msra.mxu1 %v245_v62  ;;  %4115 = vmatprep.subr.mxu0 %v3197_v0  ;;  %v5088_v62 = vld [vmem:[%s4790_s26 + $0x60] sm:$0xff] }
  0x50   : > { %3983 = vmatprep.mubr.f32.mxu0 %v4961_v1  ;;  %4008 = vmatmul.mubr.f32.gmra.mxu1 %v4964_v2  ;;  %v5345_v2 = vld [vmem:[%s4790_s26 + $0x172] sm:$0xff] }
  0x51   : > { %4037 = vmatprep.subr.mxu1 %v244_v3  ;;  %4116 = vmatpush3.msra.mxu0 %v3197_v0  ;;  %v5092_v0 = vld [vmem:[%s4790_s26 + $0x68] sm:$0xff] }
  0x52   : > { %3984 = vmatmul.mubr.f32.gmra.mxu0 %v4971_v4  ;;  %4038 = vmatpush3.msra.mxu1 %v244_v3  ;;  %v5096_v3 = vld [vmem:[%s4790_s26 + $0x62] sm:$0xff] }
  0x53   : > { %4117 = vmatprep.subr.mxu0 %v3196_v5  ;;  %4039 = vmatprep.subr.mxu1 %v243_v6  ;;  %6352 = vst [vmem:[#allocation11_spill] sm:$0xff] %v5096_v3 }
  0x54   : > { %4118 = vmatpush3.msra.mxu0 %v3196_v5  ;;  %4010 = vmatprep.mubr.f32.mxu1 %v4982_v7  ;;  %v3252_v5 = vld [vmem:[%s6309_s1 + $0x1d8] sm:$0xff]  ;;  %v5338_v7 = vld [vmem:[%s4790_s26 + $0x16a] sm:$0xff] }
  0x55   : > { %4040 = vmatpush3.msra.mxu1 %v243_v6  ;;  %4119 = vmatprep.subr.mxu0 %v3195_v8  ;;  %v5103_v6 = vld [vmem:[%s4790_s26 + $0x6a] sm:$0xff] }
  0x56   : > { %3986 = vmatprep.mubr.f32.mxu0 %v4989_v9  ;;  %4011 = vmatmul.mubr.f32.gmra.mxu1 %v4992_v10  ;;  %6353 = vst [vmem:[#allocation12_spill] sm:$0xff] %v5103_v6  ;;  %v5323_v10 = vld [vmem:[%s4790_s26 + $0x15a] sm:$0xff] }
  0x57   : > { %4041 = vmatprep.subr.mxu1 %v242_v11  ;;  %4120 = vmatpush3.msra.mxu0 %v3195_v8  ;;  %v3300_v8 = vld [vmem:[%s6309_s1 + $0x258] sm:$0xff] }
  0x58   : > { %3987 = vmatmul.mubr.f32.gmra.mxu0 %v4999_v12  ;;  %4042 = vmatpush3.msra.mxu1 %v242_v11  ;;  %v5110_v11 = vld [vmem:[%s4790_s26 + $0x78] sm:$0xff] }
  0x59   : > { %4121 = vmatprep.subr.mxu0 %v3194_v13  ;;  %4043 = vmatprep.subr.mxu1 %v241_v14 }
  0x5a   : > { %4122 = vmatpush3.msra.mxu0 %v3194_v13  ;;  %4044 = vmatpush3.msra.mxu1 %v241_v14  ;;  %v5114_v13 = vld [vmem:[%s4790_s26 + $0x80] sm:$0xff] }
  0x5b   : > { %4045 = vmatprep.mubr.f32.mxu1 %v209_v15  ;;  %4123 = vmatprep.subr.mxu0 %v3193_v17  ;;  %v5118_v14 = vld [vmem:[%s4790_s26 + $0x7a] sm:$0xff]  ;;  %v3251_v15 = vld [vmem:[%s6309_s1 + $0x1d0] sm:$0xff] }
  0x5c   : > { %4046 = vmatmul.mubr.f32.vlgmr.msra.gmra.mxu1 %v210_v19  ;;  %4124 = vmatpush3.msra.mxu0 %v3193_v17  ;;  %6354 = vst [vmem:[#allocation13_spill] sm:$0xff] %v5118_v14  ;;  %v5125_v17 = vld [vmem:[%s4790_s26 + $0x82] sm:$0xff]  ;;  %v3299_v19 = vld [vmem:[%s6309_s1 + $0x250] sm:$0xff] }
  0x5d   : > { %4125 = vmatprep.mubr.f32.mxu0 %v756_v20  ;;  %4173 = vmatprep.subr.mxu1 %v3256_v21  ;;  %6355 = vst [vmem:[#allocation14_spill] sm:$0xff] %v5125_v17  ;;  %v5132_v20 = vld [vmem:[%s4790_s26 + $0x90] sm:$0xff] }
  0x5e   : > { %4126 = vmatmul.mubr.f32.vlgmr.msra.gmra.mxu0 %v757_v22  ;;  %4174 = vmatpush3.msra.mxu1 %v3256_v21  ;;  %v5136_v21 = vld [vmem:[%s4790_s26 + $0x98] sm:$0xff] }
  0x5f   : > { %4253 = vmatprep.subr.mxu0 %v3304_v24  ;;  %4048 = vmatprep.mubr.f32.mxu1 %v5024_v27  ;;  %v5140_v22 = vld [vmem:[%s4790_s26 + $0x92] sm:$0xff] }
  0x60   : > { %4254 = vmatpush3.msra.mxu0 %v3304_v24  ;;  %4049 = vmatmul.mubr.f32.gmra.mxu1 %v5027_v29  ;;  %6356 = vst [vmem:[#allocation15_spill] sm:$0xff] %v5140_v22  ;;  %v3250_v24 = vld [vmem:[%s6309_s1 + $0x1c8] sm:$0xff] }
  0x61   : > { %4128 = vmatprep.mubr.f32.mxu0 %v5030_v30  ;;  %4175 = vmatprep.subr.mxu1 %v3255_v32  ;;  %v3242_v30 = vld [vmem:[%s6309_s1 + $0x188] sm:$0xff] }
  0x62   : > { %4129 = vmatmul.mubr.f32.gmra.mxu0 %v5037_v35  ;;  %4176 = vmatpush3.msra.mxu1 %v3255_v32  ;;  %v5147_v32 = vld [vmem:[%s4790_s26 + $0x9a] sm:$0xff]  ;;  %v5301_v35 = vld [vmem:[%s4790_s26 + $0x142] sm:$0xff] }
  0x63   : > { %4255 = vmatprep.subr.mxu0 %v3303_v37  ;;  %4051 = vmatprep.mubr.f32.mxu1 %v5044_v38  ;;  %6357 = vst [vmem:[#allocation16_spill] sm:$0xff] %v5147_v32  ;;  %6371 = vst [vmem:[#allocation30_spill] sm:$0xff] %v5301_v35 }
  0x64   : > { %4256 = vmatpush3.msra.mxu0 %v3303_v37  ;;  %4052 = vmatmul.mubr.f32.gmra.mxu1 %v5048_v40  ;;  %v3298_v37 = vld [vmem:[%s6309_s1 + $0x248] sm:$0xff] }
  0x65   : > { %4131 = vmatprep.mubr.f32.mxu0 %v5052_v43  ;;  %4177 = vmatprep.subr.mxu1 %v3254_v45  ;;  %v3243_v43 = vld [vmem:[%s6309_s1 + $0x190] sm:$0xff] }
  0x66   : > { %4132 = vmatmul.mubr.f32.gmra.mxu0 %v5059_v46  ;;  %4178 = vmatpush3.msra.mxu1 %v3254_v45  ;;  %v5154_v45 = vld [vmem:[%s4790_s26 + $0xa8] sm:$0xff] }
  0x67   : > { %4257 = vmatprep.subr.mxu0 %v3302_v48  ;;  %4054 = vmatprep.mubr.f32.mxu1 %v5066_v51  ;;  %v5279_v46 = vld [vmem:[%s4790_s26 + $0x12a] sm:$0xff] }
  0x68   : > { %4258 = vmatpush3.msra.mxu0 %v3302_v48  ;;  %4055 = vmatmul.mubr.f32.gmra.mxu1 %v5070_v53  ;;  %v5158_v48 = vld [vmem:[%s4790_s26 + $0xb0] sm:$0xff]  ;;  %6369 = vst [vmem:[#allocation28_spill] sm:$0xff] %v5279_v46 }
  0x69   : > { %4134 = vmatprep.mubr.f32.mxu0 %v5074_v54  ;;  %4179 = vmatprep.subr.mxu1 %v3253_v56  ;;  %v3244_v54 = vld [vmem:[%s6309_s1 + $0x198] sm:$0xff] }
  0x6a   : > { %4135 = vmatmul.mubr.f32.gmra.mxu0 %v5081_v59  ;;  %4180 = vmatpush3.msra.mxu1 %v3253_v56  ;;  %v5162_v56 = vld [vmem:[%s4790_s26 + $0xaa] sm:$0xff]  ;;  %v5257_v59 = vld [vmem:[%s4790_s26 + $0x112] sm:$0xff] }
  0x6b   : > { %4259 = vmatprep.subr.mxu0 %v3301_v61  ;;  %4057 = vmatprep.mubr.f32.mxu1 %v5088_v62  ;;  %6358 = vst [vmem:[#allocation17_spill] sm:$0xff] %v5162_v56  ;;  %6367 = vst [vmem:[#allocation26_spill] sm:$0xff] %v5257_v59 }
  0x6c   : > { %4260 = vmatpush3.msra.mxu0 %v3301_v61  ;;  %4058 = vmatmul.mubr.f32.gmra.mxu1 %v5092_v0  ;;  %v3249_v61 = vld [vmem:[%s6309_s1 + $0x1c0] sm:$0xff] }
  0x6d   : > { %4137 = vmatprep.mubr.f32.mxu0 %v5096_v3  ;;  %4181 = vmatprep.subr.mxu1 %v3252_v5  ;;  %v3245_v3 = vld [vmem:[%s6309_s1 + $0x1a0] sm:$0xff] }
  0x6e   : > { %4138 = vmatmul.mubr.f32.gmra.mxu0 %v5103_v6  ;;  %4182 = vmatpush3.msra.mxu1 %v3252_v5  ;;  %v5169_v5 = vld [vmem:[%s4790_s26 + $0xb2] sm:$0xff]  ;;  %v5235_v6 = vld [vmem:[%s4790_s26 + $0xfa] sm:$0xff] }
  0x6f   : > { %4261 = vmatprep.subr.mxu0 %v3300_v8  ;;  %4060 = vmatprep.mubr.f32.mxu1 %v5110_v11  ;;  %6359 = vst [vmem:[#allocation18_spill] sm:$0xff] %v5169_v5  ;;  %6365 = vst [vmem:[#allocation24_spill] sm:$0xff] %v5235_v6 }
  0x70   : > { %4262 = vmatpush3.msra.mxu0 %v3300_v8  ;;  %4061 = vmatmul.mubr.f32.gmra.mxu1 %v5114_v13  ;;  %v3297_v8 = vld [vmem:[%s6309_s1 + $0x240] sm:$0xff] }
  0x71   : > { %4140 = vmatprep.mubr.f32.mxu0 %v5118_v14  ;;  %4183 = vmatprep.subr.mxu1 %v3251_v15  ;;  %v3246_v14 = vld [vmem:[%s6309_s1 + $0x1a8] sm:$0xff] }
  0x72   : > { %4141 = vmatmul.mubr.f32.gmra.mxu0 %v5125_v17  ;;  %4184 = vmatpush3.msra.mxu1 %v3251_v15  ;;  %v5176_v15 = vld [vmem:[%s4790_s26 + $0xc0] sm:$0xff] }
  0x73   : > { %4263 = vmatprep.subr.mxu0 %v3299_v19  ;;  %4063 = vmatprep.mubr.f32.mxu1 %v5132_v20  ;;  %v5213_v17 = vld [vmem:[%s4790_s26 + $0xe2] sm:$0xff] }
  0x74   : > { %4264 = vmatpush3.msra.mxu0 %v3299_v19  ;;  %4064 = vmatmul.mubr.f32.gmra.mxu1 %v5136_v21  ;;  %v5180_v19 = vld [vmem:[%s4790_s26 + $0xc8] sm:$0xff]  ;;  %6363 = vst [vmem:[#allocation22_spill] sm:$0xff] %v5213_v17 }
  0x75   : > { %4143 = vmatprep.mubr.f32.mxu0 %v5140_v22  ;;  %4185 = vmatprep.subr.mxu1 %v3250_v24  ;;  %v3247_v22 = vld [vmem:[%s6309_s1 + $0x1b0] sm:$0xff] }
  0x76   : > { %4144 = vmatmul.mubr.f32.gmra.mxu0 %v5147_v32  ;;  %4186 = vmatpush3.msra.mxu1 %v3250_v24  ;;  %v5184_v24 = vld [vmem:[%s4790_s26 + $0xc2] sm:$0xff]  ;;  %v5191_v32 = vld [vmem:[%s4790_s26 + $0xca] sm:$0xff] }
  0x77   : > { %4265 = vmatprep.subr.mxu0 %v3298_v37  ;;  %4066 = vmatprep.mubr.f32.mxu1 %v5154_v45  ;;  %6360 = vst [vmem:[#allocation19_spill] sm:$0xff] %v5184_v24  ;;  %6361 = vst [vmem:[#allocation20_spill] sm:$0xff] %v5191_v32 }
  0x78   : > { %4266 = vmatpush3.msra.mxu0 %v3298_v37  ;;  %4067 = vmatmul.mubr.f32.gmra.mxu1 %v5158_v48  ;;  %v3248_v37 = vld [vmem:[%s6309_s1 + $0x1b8] sm:$0xff] }
  0x79   : > { %4146 = vmatprep.mubr.f32.mxu0 %v5162_v56  ;;  %4187 = vmatprep.subr.mxu1 %v3249_v61  ;;  %v5202_v56 = vld [vmem:[%s4790_s26 + $0xe0] sm:$0xff] }
  0x7a   : > { %4147 = vmatmul.mubr.f32.gmra.mxu0 %v5169_v5  ;;  %4188 = vmatpush3.msra.mxu1 %v3249_v61  ;;  %v3296_v61 = vld [vmem:[%s6309_s1 + $0x238] sm:$0xff] }
  0x7b   : > { %4267 = vmatprep.subr.mxu0 %v3297_v8  ;;  %4069 = vmatprep.mubr.f32.mxu1 %v5176_v15  ;;  %v5198_v5 = vld [vmem:[%s4790_s26 + $0xd8] sm:$0xff] }
  0x7c   : > { %4268 = vmatpush3.msra.mxu0 %v3297_v8  ;;  %4070 = vmatmul.mubr.f32.gmra.mxu1 %v5180_v19  ;;  %v5206_v8 = vld [vmem:[%s4790_s26 + $0xda] sm:$0xff] }
  0x7d   : > { %4149 = vmatprep.mubr.f32.mxu0 %v5184_v24  ;;  %4189 = vmatprep.subr.mxu1 %v3248_v37  ;;  %6362 = vst [vmem:[#allocation21_spill] sm:$0xff] %v5206_v8  ;;  %v5224_v24 = vld [vmem:[%s4790_s26 + $0xf8] sm:$0xff] }
  0x7e   : > { %4150 = vmatmul.mubr.f32.gmra.mxu0 %v5191_v32  ;;  %4190 = vmatpush3.msra.mxu1 %v3248_v37  ;;  %v3295_v37 = vld [vmem:[%s6309_s1 + $0x230] sm:$0xff] }
  0x7f   : > { %4269 = vmatprep.subr.mxu0 %v3296_v61  ;;  %4072 = vmatprep.mubr.f32.mxu1 %v5198_v5  ;;  %v5220_v32 = vld [vmem:[%s4790_s26 + $0xf0] sm:$0xff] }
  0x80   : > { %4270 = vmatpush3.msra.mxu0 %v3296_v61  ;;  %4073 = vmatmul.mubr.f32.gmra.mxu1 %v5202_v56  ;;  %v5228_v61 = vld [vmem:[%s4790_s26 + $0xf2] sm:$0xff] }
  0x81   : > { %4152 = vmatprep.mubr.f32.mxu0 %v5206_v8  ;;  %4191 = vmatprep.subr.mxu1 %v3247_v22  ;;  %6364 = vst [vmem:[#allocation23_spill] sm:$0xff] %v5228_v61  ;;  %v5246_v8 = vld [vmem:[%s4790_s26 + $0x110] sm:$0xff] }
  0x82   : > { %4153 = vmatmul.mubr.f32.gmra.mxu0 %v5213_v17  ;;  %4192 = vmatpush3.msra.mxu1 %v3247_v22  ;;  %v3294_v22 = vld [vmem:[%s6309_s1 + $0x228] sm:$0xff] }
  0x83   : > { %4271 = vmatprep.subr.mxu0 %v3295_v37  ;;  %4075 = vmatprep.mubr.f32.mxu1 %v5220_v32  ;;  %v5242_v17 = vld [vmem:[%s4790_s26 + $0x108] sm:$0xff] }
  0x84   : > { %4272 = vmatpush3.msra.mxu0 %v3295_v37  ;;  %4076 = vmatmul.mubr.f32.gmra.mxu1 %v5224_v24  ;;  %v5250_v37 = vld [vmem:[%s4790_s26 + $0x10a] sm:$0xff] }
  0x85   : > { %4155 = vmatprep.mubr.f32.mxu0 %v5228_v61  ;;  %4193 = vmatprep.subr.mxu1 %v3246_v14  ;;  %6366 = vst [vmem:[#allocation25_spill] sm:$0xff] %v5250_v37  ;;  %v5268_v61 = vld [vmem:[%s4790_s26 + $0x128] sm:$0xff] }
  0x86   : > { %4156 = vmatmul.mubr.f32.gmra.mxu0 %v5235_v6  ;;  %4194 = vmatpush3.msra.mxu1 %v3246_v14  ;;  %v3293_v14 = vld [vmem:[%s6309_s1 + $0x220] sm:$0xff] }
  0x87   : > { %4273 = vmatprep.subr.mxu0 %v3294_v22  ;;  %4078 = vmatprep.mubr.f32.mxu1 %v5242_v17  ;;  %v5264_v6 = vld [vmem:[%s4790_s26 + $0x120] sm:$0xff] }
  0x88   : > { %4274 = vmatpush3.msra.mxu0 %v3294_v22  ;;  %4079 = vmatmul.mubr.f32.gmra.mxu1 %v5246_v8  ;;  %v5272_v22 = vld [vmem:[%s4790_s26 + $0x122] sm:$0xff] }
  0x89   : > { %4158 = vmatprep.mubr.f32.mxu0 %v5250_v37  ;;  %4195 = vmatprep.subr.mxu1 %v3245_v3  ;;  %6368 = vst [vmem:[#allocation27_spill] sm:$0xff] %v5272_v22  ;;  %v5290_v37 = vld [vmem:[%s4790_s26 + $0x140] sm:$0xff] }
  0x8a   : > { %4159 = vmatmul.mubr.f32.gmra.mxu0 %v5257_v59  ;;  %4196 = vmatpush3.msra.mxu1 %v3245_v3  ;;  %v3292_v3 = vld [vmem:[%s6309_s1 + $0x218] sm:$0xff] }
  0x8b   : > { %4275 = vmatprep.subr.mxu0 %v3293_v14  ;;  %4081 = vmatprep.mubr.f32.mxu1 %v5264_v6  ;;  %v5286_v59 = vld [vmem:[%s4790_s26 + $0x138] sm:$0xff] }
  0x8c   : > { %4276 = vmatpush3.msra.mxu0 %v3293_v14  ;;  %4082 = vmatmul.mubr.f32.gmra.mxu1 %v5268_v61  ;;  %v5294_v14 = vld [vmem:[%s4790_s26 + $0x13a] sm:$0xff] }
  0x8d   : > { %4161 = vmatprep.mubr.f32.mxu0 %v5272_v22  ;;  %4197 = vmatprep.subr.mxu1 %v3244_v54  ;;  %6370 = vst [vmem:[#allocation29_spill] sm:$0xff] %v5294_v14  ;;  %v5312_v22 = vld [vmem:[%s4790_s26 + $0x158] sm:$0xff] }
  0x8e   : > { %4162 = vmatmul.mubr.f32.gmra.mxu0 %v5279_v46  ;;  %4198 = vmatpush3.msra.mxu1 %v3244_v54  ;;  %v3291_v54 = vld [vmem:[%s6309_s1 + $0x210] sm:$0xff] }
  0x8f   : > { %4277 = vmatprep.subr.mxu0 %v3292_v3  ;;  %4084 = vmatprep.mubr.f32.mxu1 %v5286_v59  ;;  %v5308_v46 = vld [vmem:[%s4790_s26 + $0x150] sm:$0xff] }
  0x90   : > { %4278 = vmatpush3.msra.mxu0 %v3292_v3  ;;  %4085 = vmatmul.mubr.f32.gmra.mxu1 %v5290_v37  ;;  %v5316_v3 = vld [vmem:[%s4790_s26 + $0x152] sm:$0xff] }
  0x91   : > { %4164 = vmatprep.mubr.f32.mxu0 %v5294_v14  ;;  %4199 = vmatprep.subr.mxu1 %v3243_v43  ;;  %6372 = vst [vmem:[#allocation31_spill] sm:$0xff] %v5316_v3  ;;  %v5334_v14 = vld [vmem:[%s4790_s26 + $0x170] sm:$0xff] }
  0x92   : > { %4165 = vmatmul.mubr.f32.gmra.mxu0 %v5301_v35  ;;  %4200 = vmatpush3.msra.mxu1 %v3243_v43  ;;  %v3290_v35 = vld [vmem:[%s6309_s1 + $0x208] sm:$0xff] }
  0x93   : > { %4279 = vmatprep.subr.mxu0 %v3291_v54  ;;  %4087 = vmatprep.mubr.f32.mxu1 %v5308_v46  ;;  %v5330_v43 = vld [vmem:[%s4790_s26 + $0x168] sm:$0xff] }
  0x94   : > { %4280 = vmatpush3.msra.mxu0 %v3291_v54  ;;  %4088 = vmatmul.mubr.f32.gmra.mxu1 %v5312_v22  ;;  %v3241_v54 = vld [vmem:[%s6309_s1 + $0x180] sm:$0xff] }
  0x95   : > { %4167 = vmatprep.mubr.f32.mxu0 %v5316_v3  ;;  %4201 = vmatprep.subr.mxu1 %v3242_v30  ;;  %v3289_v3 = vld [vmem:[%s6309_s1 + $0x200] sm:$0xff] }
  0x96   : > { %4168 = vmatmul.mubr.f32.gmra.mxu0 %v5323_v10  ;;  %4202 = vmatpush3.msra.mxu1 %v3242_v30  ;;  %v3352_v30 = vld [vmem:[%s6309_s1 + $0x2f8] sm:$0xff] }
  0x97   : > { %4281 = vmatprep.subr.mxu0 %v3290_v35  ;;  %4090 = vmatprep.mubr.f32.mxu1 %v5330_v43 }
  0x98   : > { %4282 = vmatpush3.msra.mxu0 %v3290_v35  ;;  %4091 = vmatmul.mubr.f32.gmra.mxu1 %v5334_v14  ;;  %v3400_v35 = vld [vmem:[%s6309_s1 + $0x378] sm:$0xff] }
  0x99   : > { %4170 = vmatprep.mubr.f32.mxu0 %v5338_v7  ;;  %4203 = vmatprep.subr.mxu1 %v3241_v54 }
  0x9a   : > { %4171 = vmatmul.mubr.f32.gmra.mxu0 %v5345_v2  ;;  %4204 = vmatpush3.msra.mxu1 %v3241_v54  ;;  %v3351_v54 = vld [vmem:[%s6309_s1 + $0x2f0] sm:$0xff] }
  0x9b   : > { %4283 = vmatprep.subr.mxu0 %v3289_v3  ;;  %4205 = vmatprep.mubr.f32.mxu1 %v5024_v27  ;;  %v3399_v27 = vld [vmem:[%s6309_s1 + $0x370] sm:$0xff] }
  0x9c   : > { %4284 = vmatpush3.msra.mxu0 %v3289_v3  ;;  %4206 = vmatmul.mubr.f32.vlgmr.msra.gmra.mxu1 %v5027_v29  ;;  %v5502_v29 = vld [vmem:[%s4790_s26 + $0x180] sm:$0xff]  ;;  %v6374_v3 = vld [vmem:[#allocation3_spill] sm:$0xff] }
  0x9d   : > { %4285 = vmatprep.mubr.f32.mxu0 %v4821_v25  ;;  %4333 = vmatprep.subr.mxu1 %v3352_v30  ;;  %v3350_v25 = vld [vmem:[%s6309_s1 + $0x2e8] sm:$0xff] }
  0x9e   : > { %4286 = vmatmul.mubr.f32.vlgmr.msra.gmra.mxu0 %v4831_v28  ;;  %4334 = vmatpush3.msra.mxu1 %v3352_v30  ;;  %v3398_v28 = vld [vmem:[%s6309_s1 + $0x368] sm:$0xff] }
  0x9f   : > { %4413 = vmatprep.subr.mxu0 %v3400_v35  ;;  %4208 = vmatprep.mubr.f32.mxu1 %v5044_v38  ;;  %v5506_v30 = vld [vmem:[%s4790_s26 + $0x188] sm:$0xff] }
  0xa0   : > { %4414 = vmatpush3.msra.mxu0 %v3400_v35  ;;  %4209 = vmatmul.mubr.f32.gmra.mxu1 %v5048_v40  ;;  %v6375_v35 = vld [vmem:[#allocation4_spill] sm:$0xff] }
  0xa1   : > { %4288 = vmatprep.mubr.f32.mxu0 %v4849_v33  ;;  %4335 = vmatprep.subr.mxu1 %v3351_v54  ;;  %v3349_v33 = vld [vmem:[%s6309_s1 + $0x2e0] sm:$0xff] }
  0xa2   : > { %4289 = vmatmul.mubr.f32.gmra.mxu0 %v4859_v36  ;;  %4336 = vmatpush3.msra.mxu1 %v3351_v54  ;;  %v3397_v36 = vld [vmem:[%s6309_s1 + $0x360] sm:$0xff] }
  0xa3   : > { %4415 = vmatprep.subr.mxu0 %v3399_v27  ;;  %4211 = vmatprep.mubr.f32.mxu1 %v5066_v51  ;;  %v5510_v54 = vld [vmem:[%s4790_s26 + $0x181] sm:$0xff] }
  0xa4   : > { %4416 = vmatpush3.msra.mxu0 %v3399_v27  ;;  %4212 = vmatmul.mubr.f32.gmra.mxu1 %v5070_v53  ;;  %v3337_v27 = vld [vmem:[%s6309_s1 + $0x280] sm:$0xff] }
  0xa5   : > { %4291 = vmatprep.mubr.f32.mxu0 %v4877_v41  ;;  %4337 = vmatprep.subr.mxu1 %v3350_v25  ;;  %v3348_v41 = vld [vmem:[%s6309_s1 + $0x2d8] sm:$0xff] }
  0xa6   : > { %4292 = vmatmul.mubr.f32.gmra.mxu0 %v4887_v44  ;;  %4338 = vmatpush3.msra.mxu1 %v3350_v25  ;;  %v3396_v44 = vld [vmem:[%s6309_s1 + $0x358] sm:$0xff]  ;;  %v5517_v25 = vld [vmem:[%s4790_s26 + $0x189] sm:$0xff] }
  0xa7   : > { %4417 = vmatprep.subr.mxu0 %v3398_v28  ;;  %4214 = vmatprep.mubr.f32.mxu1 %v5088_v62 }
  0xa8   : > { %4418 = vmatpush3.msra.mxu0 %v3398_v28  ;;  %4215 = vmatmul.mubr.f32.gmra.mxu1 %v5092_v0  ;;  %v3385_v28 = vld [vmem:[%s6309_s1 + $0x300] sm:$0xff] }
  0xa9   : > { %4294 = vmatprep.mubr.f32.mxu0 %v4905_v49  ;;  %4339 = vmatprep.subr.mxu1 %v3349_v33  ;;  %v3347_v49 = vld [vmem:[%s6309_s1 + $0x2d0] sm:$0xff] }
  0xaa   : > { %4295 = vmatmul.mubr.f32.gmra.mxu0 %v4915_v52  ;;  %4340 = vmatpush3.msra.mxu1 %v3349_v33  ;;  %v3395_v52 = vld [vmem:[%s6309_s1 + $0x350] sm:$0xff]  ;;  %v3448_v33 = vld [vmem:[%s6309_s1 + $0x3f8] sm:$0xff] }
  0xab   : > { %4419 = vmatprep.subr.mxu0 %v3397_v36  ;;  %4217 = vmatprep.mubr.f32.mxu1 %v5110_v11 }
  0xac   : > { %4420 = vmatpush3.msra.mxu0 %v3397_v36  ;;  %4218 = vmatmul.mubr.f32.gmra.mxu1 %v5114_v13  ;;  %v6376_v36 = vld [vmem:[#allocation5_spill] sm:$0xff] }
  0xad   : > { %4297 = vmatprep.mubr.f32.mxu0 %v4933_v57  ;;  %4341 = vmatprep.subr.mxu1 %v3348_v41  ;;  %v3346_v57 = vld [vmem:[%s6309_s1 + $0x2c8] sm:$0xff] }
  0xae   : > { %4298 = vmatmul.mubr.f32.gmra.mxu0 %v4943_v60  ;;  %4342 = vmatpush3.msra.mxu1 %v3348_v41  ;;  %v3394_v60 = vld [vmem:[%s6309_s1 + $0x348] sm:$0xff]  ;;  %v6377_v41 = vld [vmem:[#allocation6_spill] sm:$0xff] }
  0xaf   : > { %4421 = vmatprep.subr.mxu0 %v3396_v44  ;;  %4220 = vmatprep.mubr.f32.mxu1 %v5132_v20 }
  0xb0   : > { %4422 = vmatpush3.msra.mxu0 %v3396_v44  ;;  %4221 = vmatmul.mubr.f32.gmra.mxu1 %v5136_v21  ;;  %v3496_v44 = vld [vmem:[%s6309_s1 + $0x478] sm:$0xff] }
  0xb1   : > { %4300 = vmatprep.mubr.f32.mxu0 %v4961_v1  ;;  %4343 = vmatprep.subr.mxu1 %v3347_v49  ;;  %v3345_v1 = vld [vmem:[%s6309_s1 + $0x2c0] sm:$0xff] }
  0xb2   : > { %4301 = vmatmul.mubr.f32.gmra.mxu0 %v4971_v4  ;;  %4344 = vmatpush3.msra.mxu1 %v3347_v49  ;;  %v3393_v4 = vld [vmem:[%s6309_s1 + $0x340] sm:$0xff]  ;;  %v3447_v49 = vld [vmem:[%s6309_s1 + $0x3f0] sm:$0xff] }
  0xb3   : > { %4423 = vmatprep.subr.mxu0 %v3395_v52  ;;  %4223 = vmatprep.mubr.f32.mxu1 %v5154_v45 }
  0xb4   : > { %4424 = vmatpush3.msra.mxu0 %v3395_v52  ;;  %4224 = vmatmul.mubr.f32.gmra.mxu1 %v5158_v48  ;;  %v6378_v52 = vld [vmem:[#allocation7_spill] sm:$0xff] }
  0xb5   : > { %4303 = vmatprep.mubr.f32.mxu0 %v4989_v9  ;;  %4345 = vmatprep.subr.mxu1 %v3346_v57  ;;  %v3344_v9 = vld [vmem:[%s6309_s1 + $0x2b8] sm:$0xff] }
  0xb6   : > { %4304 = vmatmul.mubr.f32.gmra.mxu0 %v4999_v12  ;;  %4346 = vmatpush3.msra.mxu1 %v3346_v57  ;;  %v3392_v12 = vld [vmem:[%s6309_s1 + $0x338] sm:$0xff]  ;;  %v6379_v57 = vld [vmem:[#allocation8_spill] sm:$0xff] }
  0xb7   : > { %4425 = vmatprep.subr.mxu0 %v3394_v60  ;;  %4226 = vmatprep.mubr.f32.mxu1 %v5176_v15 }
  0xb8   : > { %4426 = vmatpush3.msra.mxu0 %v3394_v60  ;;  %4227 = vmatmul.mubr.f32.gmra.mxu1 %v5180_v19  ;;  %v3495_v60 = vld [vmem:[%s6309_s1 + $0x470] sm:$0xff] }
  0xb9   : > { %4306 = vmatprep.mubr.f32.mxu0 %v4796_v16  ;;  %4347 = vmatprep.subr.mxu1 %v3345_v1  ;;  %v3343_v16 = vld [vmem:[%s6309_s1 + $0x2b0] sm:$0xff] }
  0xba   : > { %4307 = vmatmul.mubr.f32.gmra.mxu0 %v4800_v18  ;;  %4348 = vmatpush3.msra.mxu1 %v3345_v1  ;;  %v3391_v18 = vld [vmem:[%s6309_s1 + $0x330] sm:$0xff]  ;;  %v6381_v1 = vld [vmem:[#allocation10_spill] sm:$0xff] }
  0xbb   : > { %4427 = vmatprep.subr.mxu0 %v3393_v4  ;;  %4229 = vmatprep.mubr.f32.mxu1 %v5198_v5 }
  0xbc   : > { %4428 = vmatpush3.msra.mxu0 %v3393_v4  ;;  %4230 = vmatmul.mubr.f32.gmra.mxu1 %v5202_v56  ;;  %v3494_v4 = vld [vmem:[%s6309_s1 + $0x468] sm:$0xff] }
  0xbd   : > { %4309 = vmatprep.mubr.f32.mxu0 %v4815_v23  ;;  %4349 = vmatprep.subr.mxu1 %v3344_v9  ;;  %v3342_v23 = vld [vmem:[%s6309_s1 + $0x2a8] sm:$0xff] }
  0xbe   : > { %4310 = vmatmul.mubr.f32.gmra.mxu0 %v4824_v26  ;;  %4350 = vmatpush3.msra.mxu1 %v3344_v9  ;;  %v3390_v26 = vld [vmem:[%s6309_s1 + $0x328] sm:$0xff]  ;;  %v6383_v9 = vld [vmem:[#allocation12_spill] sm:$0xff] }
  0xbf   : > { %4429 = vmatprep.subr.mxu0 %v3392_v12  ;;  %4232 = vmatprep.mubr.f32.mxu1 %v5220_v32 }
  0xc0   : > { %4430 = vmatpush3.msra.mxu0 %v3392_v12  ;;  %4233 = vmatmul.mubr.f32.gmra.mxu1 %v5224_v24  ;;  %v3493_v12 = vld [vmem:[%s6309_s1 + $0x460] sm:$0xff] }
  0xc1   : > { %4312 = vmatprep.mubr.f32.mxu0 %v4842_v31  ;;  %4351 = vmatprep.subr.mxu1 %v3343_v16  ;;  %v3341_v31 = vld [vmem:[%s6309_s1 + $0x2a0] sm:$0xff] }
  0xc2   : > { %4313 = vmatmul.mubr.f32.gmra.mxu0 %v4852_v34  ;;  %4352 = vmatpush3.msra.mxu1 %v3343_v16  ;;  %v3389_v34 = vld [vmem:[%s6309_s1 + $0x320] sm:$0xff] }
  0xc3   : > { %4431 = vmatprep.subr.mxu0 %v3391_v18  ;;  %4235 = vmatprep.mubr.f32.mxu1 %v5242_v17  ;;  %v6385_v16 = vld [vmem:[#allocation14_spill] sm:$0xff] }
  0xc4   : > { %4432 = vmatpush3.msra.mxu0 %v3391_v18  ;;  %4236 = vmatmul.mubr.f32.gmra.mxu1 %v5246_v8  ;;  %v3492_v18 = vld [vmem:[%s6309_s1 + $0x458] sm:$0xff] }
  0xc5   : > { %4315 = vmatprep.mubr.f32.mxu0 %v4870_v39  ;;  %4353 = vmatprep.subr.mxu1 %v3342_v23  ;;  %v3340_v39 = vld [vmem:[%s6309_s1 + $0x298] sm:$0xff] }
  0xc6   : > { %4316 = vmatmul.mubr.f32.gmra.mxu0 %v4880_v42  ;;  %4354 = vmatpush3.msra.mxu1 %v3342_v23  ;;  %v3388_v42 = vld [vmem:[%s6309_s1 + $0x318] sm:$0xff] }
  0xc7   : > { %4433 = vmatprep.subr.mxu0 %v3390_v26  ;;  %4238 = vmatprep.mubr.f32.mxu1 %v5264_v6 }
  0xc8   : > { %4434 = vmatpush3.msra.mxu0 %v3390_v26  ;;  %4239 = vmatmul.mubr.f32.gmra.mxu1 %v5268_v61  ;;  %v6386_v26 = vld [vmem:[#allocation15_spill] sm:$0xff] }
  0xc9   : > { %4318 = vmatprep.mubr.f32.mxu0 %v4898_v47  ;;  %4355 = vmatprep.subr.mxu1 %v3341_v31  ;;  %v3339_v47 = vld [vmem:[%s6309_s1 + $0x290] sm:$0xff] }
  0xca   : > { %4319 = vmatmul.mubr.f32.gmra.mxu0 %v4908_v50  ;;  %4356 = vmatpush3.msra.mxu1 %v3341_v31  ;;  %v3387_v50 = vld [vmem:[%s6309_s1 + $0x310] sm:$0xff] }
  0xcb   : > { %4435 = vmatprep.subr.mxu0 %v3389_v34  ;;  %4241 = vmatprep.mubr.f32.mxu1 %v5286_v59 }
  0xcc   : > { %4436 = vmatpush3.msra.mxu0 %v3389_v34  ;;  %4242 = vmatmul.mubr.f32.gmra.mxu1 %v5290_v37  ;;  %v6387_v34 = vld [vmem:[#allocation16_spill] sm:$0xff] }
  0xcd   : > { %4321 = vmatprep.mubr.f32.mxu0 %v4926_v55  ;;  %4357 = vmatprep.subr.mxu1 %v3340_v39  ;;  %v6373_v55 = vld [vmem:[#allocation2_spill] sm:$0xff] }
  0xce   : > { %4322 = vmatmul.mubr.f32.gmra.mxu0 %v4936_v58  ;;  %4358 = vmatpush3.msra.mxu1 %v3340_v39  ;;  %v3338_v58 = vld [vmem:[%s6309_s1 + $0x288] sm:$0xff] }
  0xcf   : > { %4437 = vmatprep.subr.mxu0 %v3388_v42  ;;  %4244 = vmatprep.mubr.f32.mxu1 %v5308_v46  ;;  %v3442_v39 = vld [vmem:[%s6309_s1 + $0x3c8] sm:$0xff] }
  0xd0   : > { %4438 = vmatpush3.msra.mxu0 %v3388_v42  ;;  %4245 = vmatmul.mubr.f32.gmra.mxu1 %v5312_v22 }
  0xd1   : > { %4324 = vmatprep.mubr.f32.mxu0 %v4954_v63  ;;  %4359 = vmatprep.subr.mxu1 %v3339_v47  ;;  %v3386_v63 = vld [vmem:[%s6309_s1 + $0x308] sm:$0xff] }
  0xd2   : > { %4325 = vmatmul.mubr.f32.gmra.mxu0 %v6373_v55  ;;  %4360 = vmatpush3.msra.mxu1 %v3339_v47  ;;  %v6388_v47 = vld [vmem:[#allocation17_spill] sm:$0xff] }
  0xd3   : > { %4439 = vmatprep.subr.mxu0 %v3387_v50  ;;  %4247 = vmatprep.mubr.f32.mxu1 %v5330_v43 }
  0xd4   : > { %4440 = vmatpush3.msra.mxu0 %v3387_v50  ;;  %4248 = vmatmul.mubr.f32.gmra.mxu1 %v5334_v14  ;;  %v6389_v50 = vld [vmem:[#allocation18_spill] sm:$0xff] }
  0xd5   : > { %4327 = vmatprep.mubr.f32.mxu0 %v6374_v3  ;;  %4361 = vmatprep.subr.mxu1 %v3338_v58  ;;  %v6390_v3 = vld [vmem:[#allocation19_spill] sm:$0xff] }
  0xd6   : > { %4328 = vmatmul.mubr.f32.gmra.mxu0 %v6375_v35  ;;  %4362 = vmatpush3.msra.mxu1 %v3338_v58  ;;  %v3441_v58 = vld [vmem:[%s6309_s1 + $0x3c0] sm:$0xff]  ;;  %v6391_v35 = vld [vmem:[#allocation20_spill] sm:$0xff] }
  0xd7   : > { %4441 = vmatprep.subr.mxu0 %v3386_v63  ;;  %4250 = vmatprep.mubr.f32.mxu1 %v5502_v29 }
  0xd8   : > { %4442 = vmatpush3.msra.mxu0 %v3386_v63  ;;  %4251 = vmatmul.mubr.f32.gmra.mxu1 %v5506_v30 }
  0xd9   : > { %4330 = vmatprep.mubr.f32.mxu0 %v5510_v54  ;;  %4363 = vmatprep.subr.mxu1 %v3337_v27 }
  0xda   : > { %4331 = vmatmul.mubr.f32.gmra.mxu0 %v5517_v25  ;;  %4364 = vmatpush3.msra.mxu1 %v3337_v27 }
  0xdb   : > { %4443 = vmatprep.subr.mxu0 %v3385_v28  ;;  %4365 = vmatprep.mubr.f32.mxu1 %v6376_v36  ;;  %v6392_v36 = vld [vmem:[#allocation21_spill] sm:$0xff] }
  0xdc   : > { %4444 = vmatpush3.msra.mxu0 %v3385_v28  ;;  %4366 = vmatmul.mubr.f32.vlgmr.msra.gmra.mxu1 %v6377_v41  ;;  %v6393_v41 = vld [vmem:[#allocation22_spill] sm:$0xff] }
  0xdd   : > { %4445 = vmatprep.mubr.f32.mxu0 %v5044_v38  ;;  %4493 = vmatprep.subr.mxu1 %v3448_v33  ;;  %v3446_v38 = vld [vmem:[%s6309_s1 + $0x3e8] sm:$0xff] }
  0xde   : > { %4446 = vmatmul.mubr.f32.vlgmr.msra.gmra.mxu0 %v5048_v40  ;;  %4494 = vmatpush3.msra.mxu1 %v3448_v33  ;;  %v6380_v40 = vld [vmem:[#allocation9_spill] sm:$0xff] }
  0xdf   : > { %4573 = vmatprep.subr.mxu0 %v3496_v44  ;;  %4368 = vmatprep.mubr.f32.mxu1 %v6378_v52  ;;  %v6394_v52 = vld [vmem:[#allocation23_spill] sm:$0xff] }
  0xe0   : > { %4574 = vmatpush3.msra.mxu0 %v3496_v44  ;;  %4369 = vmatmul.mubr.f32.gmra.mxu1 %v6379_v57  ;;  %v3439_v44 = vld [vmem:[%s6309_s1 + $0x3b0] sm:$0xff] }
  0xe1   : > { %4448 = vmatprep.mubr.f32.mxu0 %v5066_v51  ;;  %4495 = vmatprep.subr.mxu1 %v3447_v49  ;;  %v3445_v51 = vld [vmem:[%s6309_s1 + $0x3e0] sm:$0xff]  ;;  %v6395_v57 = vld [vmem:[#allocation24_spill] sm:$0xff] }
  0xe2   : > { %4449 = vmatmul.mubr.f32.gmra.mxu0 %v5070_v53  ;;  %4496 = vmatpush3.msra.mxu1 %v3447_v49  ;;  %v6382_v53 = vld [vmem:[#allocation11_spill] sm:$0xff] }
  0xe3   : > { %4575 = vmatprep.subr.mxu0 %v3495_v60  ;;  %4371 = vmatprep.mubr.f32.mxu1 %v6380_v40 }
  0xe4   : > { %4576 = vmatpush3.msra.mxu0 %v3495_v60  ;;  %4372 = vmatmul.mubr.f32.gmra.mxu1 %v6381_v1  ;;  %v6396_v1 = vld [vmem:[#allocation25_spill] sm:$0xff] }
  0xe5   : > { %4451 = vmatprep.mubr.f32.mxu0 %v5088_v62  ;;  %4497 = vmatprep.subr.mxu1 %v3446_v38  ;;  %v3444_v62 = vld [vmem:[%s6309_s1 + $0x3d8] sm:$0xff] }
  0xe6   : > { %4452 = vmatmul.mubr.f32.gmra.mxu0 %v5092_v0  ;;  %4498 = vmatpush3.msra.mxu1 %v3446_v38  ;;  %v6384_v0 = vld [vmem:[#allocation13_spill] sm:$0xff]  ;;  %v3438_v38 = vld [vmem:[%s6309_s1 + $0x3a8] sm:$0xff] }
  0xe7   : > { %4577 = vmatprep.subr.mxu0 %v3494_v4  ;;  %4374 = vmatprep.mubr.f32.mxu1 %v6382_v53 }
  0xe8   : > { %4578 = vmatpush3.msra.mxu0 %v3494_v4  ;;  %4375 = vmatmul.mubr.f32.gmra.mxu1 %v6383_v9  ;;  %v6397_v4 = vld [vmem:[#allocation26_spill] sm:$0xff] }
  0xe9   : > { %4454 = vmatprep.mubr.f32.mxu0 %v5110_v11  ;;  %4499 = vmatprep.subr.mxu1 %v3445_v51 }
  0xea   : > { %4455 = vmatmul.mubr.f32.gmra.mxu0 %v5114_v13  ;;  %4500 = vmatpush3.msra.mxu1 %v3445_v51  ;;  %v3443_v13 = vld [vmem:[%s6309_s1 + $0x3d0] sm:$0xff] }
  0xeb   : > { %4579 = vmatprep.subr.mxu0 %v3493_v12  ;;  %4377 = vmatprep.mubr.f32.mxu1 %v6384_v0  ;;  %v3436_v0 = vld [vmem:[%s6309_s1 + $0x398] sm:$0xff] }
  0xec   : > { %4580 = vmatpush3.msra.mxu0 %v3493_v12  ;;  %4378 = vmatmul.mubr.f32.gmra.mxu1 %v6385_v16  ;;  %v6398_v12 = vld [vmem:[#allocation27_spill] sm:$0xff] }
  0xed   : > { %4457 = vmatprep.mubr.f32.mxu0 %v5132_v20  ;;  %4501 = vmatprep.subr.mxu1 %v3444_v62  ;;  %v5574_v11 = vpop.f32.mrf.mxu1  ;;  %v3491_v20 = vld [vmem:[%s6309_s1 + $0x450] sm:$0xff] }
  0xee   : > { %4458 = vmatmul.mubr.f32.gmra.mxu0 %v5136_v21  ;;  %4502 = vmatpush3.msra.mxu1 %v3444_v62  ;;  %v5580_v23 = vpop.f32.mrf.mxu0  ;;  %v6399_v62 = vld [vmem:[#allocation28_spill] sm:$0xff] }
  0xef   : > { %4581 = vmatprep.subr.mxu0 %v3492_v18  ;;  %4380 = vmatprep.mubr.f32.mxu1 %v6386_v26  ;;  %v5583_v31 = vpop.f32.mrf.mxu1 }
  0xf0   : > { %4582 = vmatpush3.msra.mxu0 %v3492_v18  ;;  %4381 = vmatmul.mubr.f32.gmra.mxu1 %v6387_v34  ;;  %v5589_v21 = vpop.f32.mrf.mxu0  ;;  %v6400_v18 = vld [vmem:[#allocation29_spill] sm:$0xff]  ;;  %v3435_v34 = vld [vmem:[%s6309_s1 + $0x390] sm:$0xff] }
  0xf1   : > { %4460 = vmatprep.mubr.f32.mxu0 %v5154_v45  ;;  %4503 = vmatprep.subr.mxu1 %v3443_v13  ;;  %v3490_v45 = vld [vmem:[%s6309_s1 + $0x448] sm:$0xff] }
  0xf2   : > { %4461 = vmatmul.mubr.f32.gmra.mxu0 %v5158_v48  ;;  %4504 = vmatpush3.msra.mxu1 %v3443_v13  ;;  %v5596_v42 = vpop.f32.mrf.mxu1  ;;  %v6401_v13 = vld [vmem:[#allocation30_spill] sm:$0xff] }
  0xf3   : > { %4583 = vmatprep.subr.mxu0 %v3491_v20  ;;  %4383 = vmatprep.mubr.f32.mxu1 %v6388_v47 }
  0xf4   : > { %4584 = vmatpush3.msra.mxu0 %v3491_v20  ;;  %4384 = vmatmul.mubr.f32.gmra.mxu1 %v6389_v50  ;;  %v5603_v55 = vpop.f32.mrf.mxu0  ;;  %v5605_v48 = vpop.f32.mrf.mxu1 }
  0xf5   : > { %4463 = vmatprep.mubr.f32.mxu0 %v5176_v15  ;;  %4505 = vmatprep.subr.mxu1 %v3442_v39  ;;  %v3489_v15 = vld [vmem:[%s6309_s1 + $0x440] sm:$0xff] }
  0xf6   : > { %4464 = vmatmul.mubr.f32.gmra.mxu0 %v5180_v19  ;;  %4506 = vmatpush3.msra.mxu1 %v3442_v39  ;;  %v5612_v63 = vpop.f32.mrf.mxu0  ;;  %v3440_v19 = vld [vmem:[%s6309_s1 + $0x3b8] sm:$0xff]  ;;  %v6402_v39 = vld [vmem:[#allocation31_spill] sm:$0xff] }
  0xf7   : > { %4585 = vmatprep.subr.mxu0 %v3490_v45  ;;  %4386 = vmatprep.mubr.f32.mxu1 %v6390_v3  ;;  %v3433_v3 = vld [vmem:[%s6309_s1 + $0x380] sm:$0xff] }
  0xf8   : > { %4586 = vmatpush3.msra.mxu0 %v3490_v45  ;;  %4387 = vmatmul.mubr.f32.gmra.mxu1 %v6391_v35  ;;  %v5619_v27 = vpop.f32.mrf.mxu1  ;;  %v5730_v45 = vld [vmem:[%s4790_s26 + $0x182] sm:$0xff] }
  0xf9   : > { %4466 = vmatprep.mubr.f32.mxu0 %v5198_v5  ;;  %4507 = vmatprep.subr.mxu1 %v3441_v58  ;;  %v3488_v5 = vld [vmem:[%s6309_s1 + $0x438] sm:$0xff] }
  0xfa   : > { %4467 = vmatmul.mubr.f32.gmra.mxu0 %v5202_v56  ;;  %4508 = vmatpush3.msra.mxu1 %v3441_v58  ;;  %v5626_v28 = vpop.f32.mrf.mxu0  ;;  %v5628_v33 = vpop.f32.mrf.mxu1  ;;  %v5734_v58 = vld [vmem:[%s4790_s26 + $0x18a] sm:$0xff] }
  0xfb   : > { %4587 = vmatprep.subr.mxu0 %v3489_v15  ;;  %4389 = vmatprep.mubr.f32.mxu1 %v6392_v36  ;;  %v3402_v36 = vld [vmem:[%s4790_s26 + $0x39] sm:$0xff] }
  0xfc   : > { %4588 = vmatpush3.msra.mxu0 %v3489_v15  ;;  %4390 = vmatmul.mubr.f32.gmra.mxu1 %v6393_v41  ;;  %v5635_v56 = vpop.f32.mrf.mxu0  ;;  %v3481_v15 = vld [vmem:[%s6309_s1 + $0x400] sm:$0xff] }
  0xfd   : > { %4469 = vmatprep.mubr.f32.mxu0 %v5220_v32  ;;  %4509 = vmatprep.subr.mxu1 %v3440_v19  ;;  %v3487_v32 = vld [vmem:[%s6309_s1 + $0x430] sm:$0xff] }
  0xfe   : > { %4470 = vmatmul.mubr.f32.gmra.mxu0 %v5224_v24  ;;  %4510 = vmatpush3.msra.mxu1 %v3440_v19  ;;  %v5642_v49 = vpop.f32.mrf.mxu1  ;;  %v3401_v19 = vld [vmem:[%s4790_s26 + $0x31] sm:$0xff] }
  0xff   : > { %4589 = vmatprep.subr.mxu0 %v3488_v5  ;;  %4392 = vmatprep.mubr.f32.mxu1 %v6394_v52  ;;  %v3450_v52 = vld [vmem:[%s4790_s26 + $0x3a] sm:$0xff] }
 0x100   : > { %4590 = vmatpush3.msra.mxu0 %v3488_v5  ;;  %4393 = vmatmul.mubr.f32.gmra.mxu1 %v6395_v57  ;;  %v5649_v60 = vpop.f32.mrf.mxu0  ;;  %v5651_v24 = vpop.f32.mrf.mxu1  ;;  %v3449_v5 = vld [vmem:[%s4790_s26 + $0x32] sm:$0xff] }
 0x101   : > { %4472 = vmatprep.mubr.f32.mxu0 %v5242_v17  ;;  %4511 = vmatprep.subr.mxu1 %v3439_v44  ;;  %v3486_v17 = vld [vmem:[%s6309_s1 + $0x428] sm:$0xff] }
 0x102   : > { %4473 = vmatmul.mubr.f32.gmra.mxu0 %v5246_v8  ;;  %4512 = vmatpush3.msra.mxu1 %v3439_v44  ;;  %v5658_v40 = vpop.f32.mrf.mxu0  ;;  %v3437_v8 = vld [vmem:[%s6309_s1 + $0x3a0] sm:$0xff]  ;;  %v3403_v44 = vld [vmem:[%s4790_s26 + $0x49] sm:$0xff] }
 0x103   : > { %4591 = vmatprep.subr.mxu0 %v3487_v32  ;;  %4395 = vmatprep.mubr.f32.mxu1 %v6396_v1  ;;  %v3404_v1 = vld [vmem:[%s4790_s26 + $0x51] sm:$0xff] }
 0x104   : > { %4592 = vmatpush3.msra.mxu0 %v3487_v32  ;;  %4396 = vmatmul.mubr.f32.gmra.mxu1 %v6397_v4  ;;  %v5665_v51 = vpop.f32.mrf.mxu1  ;;  %v3451_v32 = vld [vmem:[%s4790_s26 + $0x4a] sm:$0xff] }
 0x105   : > { %4475 = vmatprep.mubr.f32.mxu0 %v5264_v6  ;;  %4513 = vmatprep.subr.mxu1 %v3438_v38  ;;  %v3485_v6 = vld [vmem:[%s6309_s1 + $0x420] sm:$0xff] }
 0x106   : > { %4476 = vmatmul.mubr.f32.gmra.mxu0 %v5268_v61  ;;  %4514 = vmatpush3.msra.mxu1 %v3438_v38  ;;  %v5672_v53 = vpop.f32.mrf.mxu0  ;;  %v5674_v9 = vpop.f32.mrf.mxu1 }
 0x107   : > { %4593 = vmatprep.subr.mxu0 %v3486_v17  ;;  %4398 = vmatprep.mubr.f32.mxu1 %v6398_v12 }
 0x108   : > { %4594 = vmatpush3.msra.mxu0 %v3486_v17  ;;  %4399 = vmatmul.mubr.f32.gmra.mxu1 %v6399_v62  ;;  %v5681_v61 = vpop.f32.mrf.mxu0 }
 0x109   : > { %4478 = vmatprep.mubr.f32.mxu0 %v5286_v59  ;;  %4515 = vmatprep.subr.mxu1 %v3437_v8  ;;  %v3484_v59 = vld [vmem:[%s6309_s1 + $0x418] sm:$0xff] }
 0x10a   : > { %4479 = vmatmul.mubr.f32.gmra.mxu0 %v5290_v37  ;;  %4516 = vmatpush3.msra.mxu1 %v3437_v8  ;;  %v5688_v16 = vpop.f32.mrf.mxu1  ;;  %v3405_v8 = vld [vmem:[%s4790_s26 + $0x61] sm:$0xff] }
 0x10b   : > { %4595 = vmatprep.subr.mxu0 %v3485_v6  ;;  %4401 = vmatprep.mubr.f32.mxu1 %v6400_v18 }
 0x10c   : > { %4596 = vmatpush3.msra.mxu0 %v3485_v6  ;;  %4402 = vmatmul.mubr.f32.gmra.mxu1 %v6401_v13  ;;  %v5695_v26 = vpop.f32.mrf.mxu0  ;;  %v5697_v37 = vpop.f32.mrf.mxu1  ;;  %v3452_v6 = vld [vmem:[%s4790_s26 + $0x52] sm:$0xff] }
 0x10d   : > { %4481 = vmatprep.mubr.f32.mxu0 %v5308_v46  ;;  %4517 = vmatprep.subr.mxu1 %v3436_v0  ;;  %v3483_v46 = vld [vmem:[%s6309_s1 + $0x410] sm:$0xff] }
 0x10e   : > { %4482 = vmatmul.mubr.f32.gmra.mxu0 %v5312_v22  ;;  %4518 = vmatpush3.msra.mxu1 %v3436_v0  ;;  %v5704_v20 = vpop.f32.mrf.mxu0  ;;  %v3434_v22 = vld [vmem:[%s6309_s1 + $0x388] sm:$0xff] }
 0x10f   : > { %4597 = vmatprep.subr.mxu0 %v3484_v59  ;;  %4404 = vmatprep.mubr.f32.mxu1 %v6402_v39 }
 0x110   : > { %4598 = vmatpush3.msra.mxu0 %v3484_v59  ;;  %4405 = vmatmul.mubr.f32.gmra.mxu1 %v5323_v10  ;;  %v5711_v47 = vpop.f32.mrf.mxu1 }
 0x111   : > { %4484 = vmatprep.mubr.f32.mxu0 %v5330_v43  ;;  %4519 = vmatprep.subr.mxu1 %v3435_v34 }
 0x112   : > { %4485 = vmatmul.mubr.f32.gmra.mxu0 %v5334_v14  ;;  %4520 = vmatpush3.msra.mxu1 %v3435_v34  ;;  %v5718_v10 = vpop.f32.mrf.mxu0  ;;  %v5720_v50 = vpop.f32.mrf.mxu1  ;;  %v3482_v14 = vld [vmem:[%s6309_s1 + $0x408] sm:$0xff] }
 0x113   : > { %4599 = vmatprep.subr.mxu0 %v3483_v46  ;;  %4407 = vmatprep.mubr.f32.mxu1 %v5338_v7  ;;  %v3406_v34 = vld [vmem:[%s4790_s26 + $0x69] sm:$0xff] }
 0x114   : > { %4600 = vmatpush3.msra.mxu0 %v3483_v46  ;;  %4408 = vmatmul.mubr.f32.gmra.mxu1 %v5345_v2  ;;  %v5727_v43 = vpop.f32.mrf.mxu0  ;;  %v3383_v2 = vld [vmem:[%s4790_s26 + $0x198] sm:$0xff] }
 0x115   : > { %4487 = vmatprep.mubr.f32.mxu0 %v5502_v29  ;;  %4521 = vmatprep.subr.mxu1 %v3434_v22  ;;  %v3384_v29 = vld [vmem:[%s4790_s26 + $0x1a0] sm:$0xff] }
 0x116   : > { %4488 = vmatmul.mubr.f32.gmra.mxu0 %v5506_v30  ;;  %4522 = vmatpush3.msra.mxu1 %v3434_v22  ;;  %v5737_v7 = vpop.f32.mrf.mxu1  ;;  %v3407_v22 = vld [vmem:[%s4790_s26 + $0x79] sm:$0xff] }
 0x117   : > { %4601 = vmatprep.subr.mxu0 %v3482_v14  ;;  %4410 = vmatprep.mubr.f32.mxu1 %v5730_v45 }
 0x118   : > { %4602 = vmatpush3.msra.mxu0 %v3482_v14  ;;  %4411 = vmatmul.mubr.f32.gmra.mxu1 %v5734_v58  ;;  %v5746_v30 = vpop.f32.mrf.mxu0  ;;  %v5748_v35 = vpop.f32.mrf.mxu1 }
 0x119   : > { %4490 = vmatprep.mubr.f32.mxu0 %v3383_v2  ;;  %4523 = vmatprep.subr.mxu1 %v3433_v3  ;;  %v3454_v2 = vld [vmem:[%s4790_s26 + $0x6a] sm:$0xff] }
 0x11a   : > { %4491 = vmatmul.mubr.f32.gmra.mxu0 %v3384_v29  ;;  %4524 = vmatpush3.msra.mxu1 %v3433_v3  ;;  %v5755_v41 = vpop.f32.mrf.mxu0 }
 0x11b   : > { %4603 = vmatprep.subr.mxu0 %v3481_v15  ;;  %4525 = vmatprep.mubr.f32.mxu1 %v3401_v19 }
 0x11c   : > { %4604 = vmatpush3.msra.mxu0 %v3481_v15  ;;  %v4047_v57 = vpop.f32.mrf.mxu1  ;;  %4526 = vmatmul.mubr.f32.vlgmr.msra.gmra.mxu1 %v3402_v36  ;;  %v3455_v15 = vld [vmem:[%s4790_s26 + $0x7a] sm:$0xff] }
 0x11d   : > { %v603_v38 = vadd.f32 %v4047_v57, %v5580_v23  ;;  %4605 = vmatprep.mubr.f32.mxu0 %v3449_v5  ;;  %4528 = vmatprep.mubr.f32.mxu1 %v3403_v44  ;;  %v3453_v23 = vld [vmem:[%s4790_s26 + $0x62] sm:$0xff] }
 0x11e   : > { %v4127_v4 = vpop.f32.mrf.mxu0  ;;  %4606 = vmatmul.mubr.f32.vlgmr.msra.gmra.mxu0 %v3450_v52  ;;  %v597_v17 = vpop.f32.mrf.mxu1  ;;  %v3408_v36 = vld [vmem:[%s4790_s26 + $0x81] sm:$0xff]  ;;  %v3409_v52 = vld [vmem:[%s4790_s26 + $0x91] sm:$0xff] }
 0x11f   : > { %v5764_v12 = vadd.f32 %v4127_v4, %v603_v38  ;;  %v598_v62 = vadd.f32 %v597_v17, %v5589_v21  ;;  %4608 = vmatprep.mubr.f32.mxu0 %v3451_v32  ;;  %v3456_v32 = vld [vmem:[%s4790_s26 + $0x82] sm:$0xff]  ;;  %v3457_v4 = vld [vmem:[%s4790_s26 + $0x92] sm:$0xff] }
 0x120   : > { %v871_v0 = vpop.f32.mrf.mxu0  ;;  %v4050_v18 = vpop.f32.mrf.mxu1  ;;  %4529 = vmatmul.mubr.f32.gmra.mxu1 %v3404_v1 }
 0x121   : > { %v5769_v13 = vadd.f32 %v871_v0, %v598_v62  ;;  %v613_v59 = vadd.f32 %v4050_v18, %v5603_v55  ;;  %4531 = vmatprep.mubr.f32.mxu1 %v3405_v8  ;;  %v3410_v8 = vld [vmem:[%s4790_s26 + $0x99] sm:$0xff]  ;;  %v3411_v0 = vld [vmem:[%s4790_s26 + $0xa9] sm:$0xff] }
 0x122   : > { %v4130_v39 = vpop.f32.mrf.mxu0  ;;  %4609 = vmatmul.mubr.f32.gmra.mxu0 %v3452_v6  ;;  %v607_v46 = vpop.f32.mrf.mxu1 }
 0x123   : > { %v5774_v21 = vadd.f32 %v4130_v39, %v613_v59  ;;  %v608_v14 = vadd.f32 %v607_v46, %v5612_v63  ;;  %4611 = vmatprep.mubr.f32.mxu0 %v3453_v23  ;;  %v3458_v23 = vld [vmem:[%s4790_s26 + $0x9a] sm:$0xff]  ;;  %v3459_v39 = vld [vmem:[%s4790_s26 + $0xaa] sm:$0xff] }
 0x124   : > { %v881_v3 = vpop.f32.mrf.mxu0  ;;  %v4053_v29 = vpop.f32.mrf.mxu1  ;;  %4532 = vmatmul.mubr.f32.gmra.mxu1 %v3406_v34 }
 0x125   : > { %v5779_v55 = vadd.f32 %v881_v3, %v608_v14  ;;  %v623_v19 = vadd.f32 %v4053_v29, %v5626_v28  ;;  %4534 = vmatprep.mubr.f32.mxu1 %v3407_v22  ;;  %v3412_v22 = vld [vmem:[%s4790_s26 + $0xb1] sm:$0xff]  ;;  %v3413_v3 = vld [vmem:[%s4790_s26 + $0xc1] sm:$0xff] }
 0x126   : > { %v4133_v5 = vpop.f32.mrf.mxu0  ;;  %4612 = vmatmul.mubr.f32.gmra.mxu0 %v3454_v2  ;;  %v617_v44 = vpop.f32.mrf.mxu1 }
 0x127   : > { %v5784_v63 = vadd.f32 %v4133_v5, %v623_v19  ;;  %v618_v57 = vadd.f32 %v617_v44, %v5635_v56  ;;  %4614 = vmatprep.mubr.f32.mxu0 %v3455_v15  ;;  %v3460_v15 = vld [vmem:[%s4790_s26 + $0xb2] sm:$0xff]  ;;  %v3461_v5 = vld [vmem:[%s4790_s26 + $0xc2] sm:$0xff] }
 0x128   : > { %v891_v38 = vpop.f32.mrf.mxu0  ;;  %v4056_v1 = vpop.f32.mrf.mxu1  ;;  %4535 = vmatmul.mubr.f32.gmra.mxu1 %v3408_v36 }
 0x129   : > { %v5789_v28 = vadd.f32 %v891_v38, %v618_v57  ;;  %v633_v17 = vadd.f32 %v4056_v1, %v5649_v60  ;;  %4537 = vmatprep.mubr.f32.mxu1 %v3409_v52  ;;  %v3414_v52 = vld [vmem:[%s4790_s26 + $0xc9] sm:$0xff]  ;;  %v3415_v38 = vld [vmem:[%s4790_s26 + $0xd9] sm:$0xff] }
 0x12a   : > { %v4136_v62 = vpop.f32.mrf.mxu0  ;;  %4615 = vmatmul.mubr.f32.gmra.mxu0 %v3456_v32  ;;  %v627_v6 = vpop.f32.mrf.mxu1 }
 0x12b   : > { %v5794_v56 = vadd.f32 %v4136_v62, %v633_v17  ;;  %v628_v18 = vadd.f32 %v627_v6, %v5658_v40  ;;  %4617 = vmatprep.mubr.f32.mxu0 %v3457_v4  ;;  %v3462_v4 = vld [vmem:[%s4790_s26 + $0xca] sm:$0xff]  ;;  %v3463_v62 = vld [vmem:[%s4790_s26 + $0xda] sm:$0xff] }
 0x12c   : > { %v901_v59 = vpop.f32.mrf.mxu0  ;;  %v4059_v34 = vpop.f32.mrf.mxu1  ;;  %4538 = vmatmul.mubr.f32.gmra.mxu1 %v3410_v8 }
 0x12d   : > { %v5799_v60 = vadd.f32 %v901_v59, %v628_v18  ;;  %v643_v46 = vadd.f32 %v4059_v34, %v5672_v53  ;;  %4540 = vmatprep.mubr.f32.mxu1 %v3411_v0  ;;  %v3416_v0 = vld [vmem:[%s4790_s26 + $0xe1] sm:$0xff]  ;;  %v3417_v59 = vld [vmem:[%s4790_s26 + $0xf1] sm:$0xff] }
 0x12e   : > { %v4139_v14 = vpop.f32.mrf.mxu0  ;;  %4618 = vmatmul.mubr.f32.gmra.mxu0 %v3458_v23  ;;  %v637_v2 = vpop.f32.mrf.mxu1 }
 0x12f   : > { %v5804_v40 = vadd.f32 %v4139_v14, %v643_v46  ;;  %v638_v29 = vadd.f32 %v637_v2, %v5681_v61  ;;  %4620 = vmatprep.mubr.f32.mxu0 %v3459_v39  ;;  %v3464_v39 = vld [vmem:[%s4790_s26 + $0xe2] sm:$0xff]  ;;  %v3465_v14 = vld [vmem:[%s4790_s26 + $0xf2] sm:$0xff] }
 0x130   : > { %v911_v19 = vpop.f32.mrf.mxu0  ;;  %v4062_v36 = vpop.f32.mrf.mxu1  ;;  %4541 = vmatmul.mubr.f32.gmra.mxu1 %v3412_v22 }
 0x131   : > { %v5809_v53 = vadd.f32 %v911_v19, %v638_v29  ;;  %v653_v44 = vadd.f32 %v4062_v36, %v5695_v26  ;;  %4543 = vmatprep.mubr.f32.mxu1 %v3413_v3  ;;  %v3418_v3 = vld [vmem:[%s4790_s26 + $0xf9] sm:$0xff]  ;;  %v3419_v19 = vld [vmem:[%s4790_s26 + $0x109] sm:$0xff] }
 0x132   : > { %v4142_v57 = vpop.f32.mrf.mxu0  ;;  %4621 = vmatmul.mubr.f32.gmra.mxu0 %v3460_v15  ;;  %v647_v32 = vpop.f32.mrf.mxu1 }
 0x133   : > { %v5814_v61 = vadd.f32 %v4142_v57, %v653_v44  ;;  %v648_v1 = vadd.f32 %v647_v32, %v5704_v20  ;;  %4623 = vmatprep.mubr.f32.mxu0 %v3461_v5  ;;  %v3466_v5 = vld [vmem:[%s4790_s26 + $0xfa] sm:$0xff]  ;;  %v3467_v57 = vld [vmem:[%s4790_s26 + $0x10a] sm:$0xff] }
 0x134   : > { %v921_v17 = vpop.f32.mrf.mxu0  ;;  %v4065_v8 = vpop.f32.mrf.mxu1  ;;  %4544 = vmatmul.mubr.f32.gmra.mxu1 %v3414_v52 }
 0x135   : > { %v5819_v26 = vadd.f32 %v921_v17, %v648_v1  ;;  %v663_v6 = vadd.f32 %v4065_v8, %v5718_v10  ;;  %4546 = vmatprep.mubr.f32.mxu1 %v3415_v38  ;;  %v3420_v38 = vld [vmem:[%s4790_s26 + $0x111] sm:$0xff]  ;;  %v3421_v17 = vld [vmem:[%s4790_s26 + $0x121] sm:$0xff] }
 0x136   : > { %v4145_v18 = vpop.f32.mrf.mxu0  ;;  %4624 = vmatmul.mubr.f32.gmra.mxu0 %v3462_v4  ;;  %v657_v23 = vpop.f32.mrf.mxu1 }
 0x137   : > { %v5824_v20 = vadd.f32 %v4145_v18, %v663_v6  ;;  %v658_v34 = vadd.f32 %v657_v23, %v5727_v43  ;;  %4626 = vmatprep.mubr.f32.mxu0 %v3463_v62  ;;  %v3468_v62 = vld [vmem:[%s4790_s26 + $0x112] sm:$0xff]  ;;  %v3469_v18 = vld [vmem:[%s4790_s26 + $0x122] sm:$0xff] }
 0x138   : > { %v931_v46 = vpop.f32.mrf.mxu0  ;;  %v4068_v22 = vpop.f32.mrf.mxu1  ;;  %4547 = vmatmul.mubr.f32.gmra.mxu1 %v3416_v0 }
 0x139   : > { %v5829_v10 = vadd.f32 %v931_v46, %v658_v34  ;;  %v673_v2 = vadd.f32 %v4068_v22, %v5746_v30  ;;  %4549 = vmatprep.mubr.f32.mxu1 %v3417_v59  ;;  %v3422_v59 = vld [vmem:[%s4790_s26 + $0x129] sm:$0xff]  ;;  %v3423_v46 = vld [vmem:[%s4790_s26 + $0x139] sm:$0xff] }
 0x13a   : > { %v4148_v29 = vpop.f32.mrf.mxu0  ;;  %4627 = vmatmul.mubr.f32.gmra.mxu0 %v3464_v39  ;;  %v667_v15 = vpop.f32.mrf.mxu1 }
 0x13b   : > { %v5834_v43 = vadd.f32 %v4148_v29, %v673_v2  ;;  %v668_v36 = vadd.f32 %v667_v15, %v5755_v41  ;;  %4629 = vmatprep.mubr.f32.mxu0 %v3465_v14  ;;  %v3470_v14 = vld [vmem:[%s4790_s26 + $0x12a] sm:$0xff]  ;;  %v3471_v29 = vld [vmem:[%s4790_s26 + $0x13a] sm:$0xff] }
 0x13c   : > { %v941_v44 = vpop.f32.mrf.mxu0  ;;  %v4071_v52 = vpop.f32.mrf.mxu1  ;;  %4550 = vmatmul.mubr.f32.gmra.mxu1 %v3418_v3 }
 0x13d   : > { %v5839_v30 = vadd.f32 %v941_v44, %v668_v36  ;;  %v683_v32 = vadd.f32 %v4071_v52, %v5574_v11  ;;  %4552 = vmatprep.mubr.f32.mxu1 %v3419_v19  ;;  %v3424_v19 = vld [vmem:[%s4790_s26 + $0x141] sm:$0xff]  ;;  %v3425_v44 = vld [vmem:[%s4790_s26 + $0x151] sm:$0xff] }
 0x13e   : > { %v4151_v1 = vpop.f32.mrf.mxu0  ;;  %4630 = vmatmul.mubr.f32.gmra.mxu0 %v3466_v5  ;;  %v677_v4 = vpop.f32.mrf.mxu1 }
 0x13f   : > { %v5844_v41 = vadd.f32 %v4151_v1, %v683_v32  ;;  %v678_v8 = vadd.f32 %v677_v4, %v5583_v31  ;;  %4632 = vmatprep.mubr.f32.mxu0 %v3467_v57  ;;  %v3472_v57 = vld [vmem:[%s4790_s26 + $0x142] sm:$0xff]  ;;  %v3473_v1 = vld [vmem:[%s4790_s26 + $0x152] sm:$0xff] }
 0x140   : > { %v951_v6 = vpop.f32.mrf.mxu0  ;;  %v4074_v0 = vpop.f32.mrf.mxu1  ;;  %4553 = vmatmul.mubr.f32.gmra.mxu1 %v3420_v38 }
 0x141   : > { %v5849_v11 = vadd.f32 %v951_v6, %v678_v8  ;;  %v693_v23 = vadd.f32 %v4074_v0, %v5596_v42  ;;  %4555 = vmatprep.mubr.f32.mxu1 %v3421_v17  ;;  %v3426_v17 = vld [vmem:[%s4790_s26 + $0x159] sm:$0xff]  ;;  %v3427_v6 = vld [vmem:[%s4790_s26 + $0x169] sm:$0xff] }
 0x142   : > { %v4154_v34 = vpop.f32.mrf.mxu0  ;;  %4633 = vmatmul.mubr.f32.gmra.mxu0 %v3468_v62  ;;  %v687_v39 = vpop.f32.mrf.mxu1 }
 0x143   : > { %v5854_v31 = vadd.f32 %v4154_v34, %v693_v23  ;;  %v688_v22 = vadd.f32 %v687_v39, %v5605_v48  ;;  %4635 = vmatprep.mubr.f32.mxu0 %v3469_v18  ;;  %v3474_v18 = vld [vmem:[%s4790_s26 + $0x15a] sm:$0xff]  ;;  %v3475_v34 = vld [vmem:[%s4790_s26 + $0x16a] sm:$0xff] }
 0x144   : > { %v961_v2 = vpop.f32.mrf.mxu0  ;;  %v4077_v3 = vpop.f32.mrf.mxu1  ;;  %4556 = vmatmul.mubr.f32.gmra.mxu1 %v3422_v59 }
 0x145   : > { %v5859_v42 = vadd.f32 %v961_v2, %v688_v22  ;;  %v703_v15 = vadd.f32 %v4077_v3, %v5619_v27  ;;  %4558 = vmatprep.mubr.f32.mxu1 %v3423_v46  ;;  %v3428_v46 = vld [vmem:[%s4790_s26 + $0x171] sm:$0xff] }
 0x146   : > { %v4157_v36 = vpop.f32.mrf.mxu0  ;;  %4636 = vmatmul.mubr.f32.gmra.mxu0 %v3470_v14  ;;  %v697_v5 = vpop.f32.mrf.mxu1  ;;  %v3476_v3 = vld [vmem:[%s4790_s26 + $0x172] sm:$0xff] }
 0x147   : > { %v5864_v48 = vadd.f32 %v4157_v36, %v703_v15  ;;  %v698_v52 = vadd.f32 %v697_v5, %v5628_v33  ;;  %4638 = vmatprep.mubr.f32.mxu0 %v3471_v29 }
 0x148   : > { %v971_v32 = vpop.f32.mrf.mxu0  ;;  %v4080_v38 = vpop.f32.mrf.mxu1  ;;  %4559 = vmatmul.mubr.f32.gmra.mxu1 %v3424_v19 }
 0x149   : > { %v5869_v27 = vadd.f32 %v971_v32, %v698_v52  ;;  %v713_v4 = vadd.f32 %v4080_v38, %v5642_v49  ;;  %4561 = vmatprep.mubr.f32.mxu1 %v3425_v44  ;;  %v3431_v44 = vld [vmem:[%s4790_s26 + $0x199] sm:$0xff] }
 0x14a   : > { %v4160_v8 = vpop.f32.mrf.mxu0  ;;  %4639 = vmatmul.mubr.f32.gmra.mxu0 %v3472_v57  ;;  %v707_v62 = vpop.f32.mrf.mxu1  ;;  %v3479_v38 = vld [vmem:[%s4790_s26 + $0x19a] sm:$0xff] }
 0x14b   : > { %v5874_v33 = vadd.f32 %v4160_v8, %v713_v4  ;;  %v708_v0 = vadd.f32 %v707_v62, %v5651_v24  ;;  %4641 = vmatprep.mubr.f32.mxu0 %v3473_v1  ;;  %v3432_v1 = vld [vmem:[%s4790_s26 + $0x1a1] sm:$0xff] }
 0x14c   : > { %v981_v23 = vpop.f32.mrf.mxu0  ;;  %v4083_v59 = vpop.f32.mrf.mxu1  ;;  %4562 = vmatmul.mubr.f32.gmra.mxu1 %v3426_v17 }
 0x14d   : > { %v5879_v39 = vadd.f32 %v981_v23, %v708_v0  ;;  %v723_v49 = vadd.f32 %v4083_v59, %v5665_v51  ;;  %4564 = vmatprep.mubr.f32.mxu1 %v3427_v6 }
 0x14e   : > { %v4163_v22 = vpop.f32.mrf.mxu0  ;;  %4642 = vmatmul.mubr.f32.gmra.mxu0 %v3474_v18  ;;  %v717_v14 = vpop.f32.mrf.mxu1 }
 0x14f   : > { %v5883_v2 = vadd.f32 %v4163_v22, %v723_v49  ;;  %v718_v24 = vadd.f32 %v717_v14, %v5674_v9  ;;  %4644 = vmatprep.mubr.f32.mxu0 %v3475_v34 }
 0x150   : > { %v991_v29 = vpop.f32.mrf.mxu0  ;;  %v4086_v15 = vpop.f32.mrf.mxu1  ;;  %4565 = vmatmul.mubr.f32.gmra.mxu1 %v3428_v46 }
 0x151   : > { %v5887_v19 = vadd.f32 %v991_v29, %v718_v24  ;;  %v733_v51 = vadd.f32 %v4086_v15, %v5688_v16  ;;  %4567 = vmatprep.mubr.f32.mxu1 %v5510_v54 }
 0x152   : > { %v4166_v36 = vpop.f32.mrf.mxu0  ;;  %4645 = vmatmul.mubr.f32.gmra.mxu0 %v3476_v3  ;;  %v727_v5 = vpop.f32.mrf.mxu1 }
 0x153   : > { %v5892_v52 = vadd.f32 %v4166_v36, %v733_v51  ;;  %v728_v9 = vadd.f32 %v727_v5, %v5697_v37  ;;  %4647 = vmatprep.mubr.f32.mxu0 %v5730_v45  ;;  %v3480_v45 = vld [vmem:[%s4790_s26 + $0x1a2] sm:$0xff]  ;;  %s3500_s26 = sshll.u32 %s6482_s16, 8 }
 0x154   : > { %v1001_v57 = vpop.f32.mrf.mxu0  ;;  %v4089_v32 = vpop.f32.mrf.mxu1  ;;  %4568 = vmatmul.mubr.f32.gmra.mxu1 %v5517_v25  ;;  %s6154_s10 = scalar_lea.vmem %s6311_s3, %s3500_s26 }
 0x155   : > { %v5898_v16 = vadd.f32 %v1001_v57, %v728_v9  ;;  %v743_v54 = vadd.f32 %v4089_v32, %v5711_v47  ;;  %4570 = vmatprep.mubr.f32.mxu1 %v3431_v44 }
 0x156   : > { %v4169_v4 = vpop.f32.mrf.mxu0  ;;  %4648 = vmatmul.mubr.f32.gmra.mxu0 %v5734_v58  ;;  %v737_v17 = vpop.f32.mrf.mxu1 }
 0x157   : > { %v5903_v8 = vadd.f32 %v4169_v4, %v743_v54  ;;  %v738_v37 = vadd.f32 %v737_v17, %v5720_v50  ;;  %4650 = vmatprep.mubr.f32.mxu0 %v3479_v38 }
 0x158   : > { %v1011_v62 = vpop.f32.mrf.mxu0  ;;  %v4092_v6 = vpop.f32.mrf.mxu1  ;;  %4571 = vmatmul.mubr.f32.gmra.mxu1 %v3432_v1 }
 0x159   : > { %v5907_v25 = vadd.f32 %v1011_v62, %v738_v37  ;;  %v753_v0 = vadd.f32 %v4092_v6, %v5737_v7 }
 0x15a   : > { %v4172_v47 = vpop.f32.mrf.mxu0  ;;  %4651 = vmatmul.mubr.f32.gmra.mxu0 %v3480_v45  ;;  %v747_v18 = vpop.f32.mrf.mxu1 }
 0x15b   : > { %v5910_v23 = vadd.f32 %v4172_v47, %v753_v0  ;;  %v748_v58 = vadd.f32 %v747_v18, %v5748_v35 }
 0x15c   : > { %v1021_v59 = vpop.f32.mrf.mxu0  ;;  %v4207_v34 = vpop.f32.mrf.mxu1 }
 0x15d   : > { %v5913_v49 = vadd.f32 %v1021_v59, %v748_v58  ;;  %v1338_v50 = vadd.f32 %v4207_v34, %v5764_v12 }
 0x15e   : > { %v4287_v46 = vpop.f32.mrf.mxu0  ;;  %v1178_v22 = vpop.f32.mrf.mxu1 }
 0x15f   : > { %v5916_v14 = vadd.f32 %v4287_v46, %v1338_v50  ;;  %v1337_v24 = vadd.f32 %v1178_v22, %v5769_v13 }
 0x160   : > { %v1484_v7 = vpop.f32.mrf.mxu0  ;;  %v4210_v3 = vpop.f32.mrf.mxu1 }
 0x161   : > { %v5919_v29 = vadd.f32 %v1484_v7, %v1337_v24  ;;  %v1340_v15 = vadd.f32 %v4210_v3, %v5774_v21 }
 0x162   : > { %v4290_v51 = vpop.f32.mrf.mxu0  ;;  %v1188_v35 = vpop.f32.mrf.mxu1 }
 0x163   : > { %v5922_v36 = vadd.f32 %v4290_v51, %v1340_v15  ;;  %v1339_v5 = vadd.f32 %v1188_v35, %v5779_v55 }
 0x164   : > { %v1494_v44 = vpop.f32.mrf.mxu0  ;;  %v4213_v12 = vpop.f32.mrf.mxu1 }
 0x165   : > { %v5925_v9 = vadd.f32 %v1494_v44, %v1339_v5  ;;  %v1342_v57 = vadd.f32 %v4213_v12, %v5784_v63 }
 0x166   : > { %v4293_v32 = vpop.f32.mrf.mxu0  ;;  %v1198_v13 = vpop.f32.mrf.mxu1 }
 0x167   : > { %v5928_v38 = vadd.f32 %v4293_v32, %v1342_v57  ;;  %v1341_v54 = vadd.f32 %v1198_v13, %v5789_v28 }
 0x168   : > { %v1504_v1 = vpop.f32.mrf.mxu0  ;;  %v4216_v21 = vpop.f32.mrf.mxu1 }
 0x169   : > { %v5931_v4 = vadd.f32 %v1504_v1, %v1341_v54  ;;  %v1344_v17 = vadd.f32 %v4216_v21, %v5794_v56 }
 0x16a   : > { %v4296_v37 = vpop.f32.mrf.mxu0  ;;  %v1208_v55 = vpop.f32.mrf.mxu1 }
 0x16b   : > { %v5934_v45 = vadd.f32 %v4296_v37, %v1344_v17  ;;  %v1343_v62 = vadd.f32 %v1208_v55, %v5799_v60 }
 0x16c   : > { %v1514_v6 = vpop.f32.mrf.mxu0  ;;  %v4219_v63 = vpop.f32.mrf.mxu1 }
 0x16d   : > { %v5937_v0 = vadd.f32 %v1514_v6, %v1343_v62  ;;  %v1346_v47 = vadd.f32 %v4219_v63, %v5804_v40 }
 0x16e   : > { %v4299_v18 = vpop.f32.mrf.mxu0  ;;  %v1218_v28 = vpop.f32.mrf.mxu1 }
 0x16f   : > { %v5940_v58 = vadd.f32 %v4299_v18, %v1346_v47  ;;  %v1345_v59 = vadd.f32 %v1218_v28, %v5809_v53 }
 0x170   : > { %v1524_v34 = vpop.f32.mrf.mxu0  ;;  %v4222_v56 = vpop.f32.mrf.mxu1 }
 0x171   : > { %v5943_v50 = vadd.f32 %v1524_v34, %v1345_v59  ;;  %v1348_v46 = vadd.f32 %v4222_v56, %v5814_v61 }
 0x172   : > { %v4302_v22 = vpop.f32.mrf.mxu0  ;;  %v1228_v60 = vpop.f32.mrf.mxu1 }
 0x173   : > { %v5946_v24 = vadd.f32 %v4302_v22, %v1348_v46  ;;  %v1347_v7 = vadd.f32 %v1228_v60, %v5819_v26 }
 0x174   : > { %v1534_v3 = vpop.f32.mrf.mxu0  ;;  %v4225_v40 = vpop.f32.mrf.mxu1 }
 0x175   : > { %v5949_v15 = vadd.f32 %v1534_v3, %v1347_v7  ;;  %v1350_v51 = vadd.f32 %v4225_v40, %v5824_v20 }
 0x176   : > { %v4305_v35 = vpop.f32.mrf.mxu0  ;;  %v1238_v53 = vpop.f32.mrf.mxu1 }
 0x177   : > { %v5952_v5 = vadd.f32 %v4305_v35, %v1350_v51  ;;  %v1349_v44 = vadd.f32 %v1238_v53, %v5829_v10 }
 0x178   : > { %v1544_v12 = vpop.f32.mrf.mxu0  ;;  %v4228_v61 = vpop.f32.mrf.mxu1 }
 0x179   : > { %v5955_v57 = vadd.f32 %v1544_v12, %v1349_v44  ;;  %v1352_v32 = vadd.f32 %v4228_v61, %v5834_v43 }
 0x17a   : > { %v4308_v13 = vpop.f32.mrf.mxu0  ;;  %v1248_v26 = vpop.f32.mrf.mxu1 }
 0x17b   : > { %v5958_v54 = vadd.f32 %v4308_v13, %v1352_v32  ;;  %v1351_v1 = vadd.f32 %v1248_v26, %v5839_v30 }
 0x17c   : > { %v1554_v21 = vpop.f32.mrf.mxu0  ;;  %v4231_v20 = vpop.f32.mrf.mxu1 }
 0x17d   : > { %v5961_v17 = vadd.f32 %v1554_v21, %v1351_v1  ;;  %v1354_v37 = vadd.f32 %v4231_v20, %v5844_v41 }
 0x17e   : > { %v4311_v55 = vpop.f32.mrf.mxu0  ;;  %v1258_v10 = vpop.f32.mrf.mxu1 }
 0x17f   : > { %v5964_v62 = vadd.f32 %v4311_v55, %v1354_v37  ;;  %v1353_v6 = vadd.f32 %v1258_v10, %v5849_v11 }
 0x180   : > { %v1564_v63 = vpop.f32.mrf.mxu0  ;;  %v4234_v43 = vpop.f32.mrf.mxu1 }
 0x181   : > { %v5967_v47 = vadd.f32 %v1564_v63, %v1353_v6  ;;  %v1356_v18 = vadd.f32 %v4234_v43, %v5854_v31 }
 0x182   : > { %v4314_v28 = vpop.f32.mrf.mxu0  ;;  %v1268_v30 = vpop.f32.mrf.mxu1 }
 0x183   : > { %v5970_v59 = vadd.f32 %v4314_v28, %v1356_v18  ;;  %v1355_v34 = vadd.f32 %v1268_v30, %v5859_v42 }
 0x184   : > { %v1574_v56 = vpop.f32.mrf.mxu0  ;;  %v4237_v41 = vpop.f32.mrf.mxu1 }
 0x185   : > { %6403 = vst [vmem:[#allocation2_spill] sm:$0xff] %v5970_v59  ;;  %v5973_v46 = vadd.f32 %v1574_v56, %v1355_v34  ;;  %v1358_v22 = vadd.f32 %v4237_v41, %v5864_v48 }
 0x186   : > { %v4317_v60 = vpop.f32.mrf.mxu0  ;;  %v1278_v11 = vpop.f32.mrf.mxu1 }
 0x187   : > { %6404 = vst [vmem:[#allocation3_spill] sm:$0xff] %v5973_v46  ;;  %v5976_v7 = vadd.f32 %v4317_v60, %v1358_v22  ;;  %v1357_v3 = vadd.f32 %v1278_v11, %v5869_v27 }
 0x188   : > { %v1584_v40 = vpop.f32.mrf.mxu0  ;;  %v4240_v31 = vpop.f32.mrf.mxu1 }
 0x189   : > { %6405 = vst [vmem:[#allocation4_spill] sm:$0xff] %v5976_v7  ;;  %v5979_v51 = vadd.f32 %v1584_v40, %v1357_v3  ;;  %v1360_v35 = vadd.f32 %v4240_v31, %v5874_v33 }
 0x18a   : > { %v4320_v53 = vpop.f32.mrf.mxu0  ;;  %v1288_v42 = vpop.f32.mrf.mxu1 }
 0x18b   : > { %6406 = vst [vmem:[#allocation5_spill] sm:$0xff] %v5979_v51  ;;  %v5982_v44 = vadd.f32 %v4320_v53, %v1360_v35  ;;  %v1359_v12 = vadd.f32 %v1288_v42, %v5879_v39 }
 0x18c   : > { %v1594_v61 = vpop.f32.mrf.mxu0  ;;  %v4243_v48 = vpop.f32.mrf.mxu1 }
 0x18d   : > { %6407 = vst [vmem:[#allocation6_spill] sm:$0xff] %v5982_v44  ;;  %v5985_v32 = vadd.f32 %v1594_v61, %v1359_v12  ;;  %v1362_v13 = vadd.f32 %v4243_v48, %v5883_v2 }
 0x18e   : > { %v4323_v26 = vpop.f32.mrf.mxu0  ;;  %v1298_v27 = vpop.f32.mrf.mxu1 }
 0x18f   : > { %6408 = vst [vmem:[#allocation7_spill] sm:$0xff] %v5985_v32  ;;  %v5988_v1 = vadd.f32 %v4323_v26, %v1362_v13  ;;  %v1361_v21 = vadd.f32 %v1298_v27, %v5887_v19 }
 0x190   : > { %v1604_v20 = vpop.f32.mrf.mxu0  ;;  %v4246_v33 = vpop.f32.mrf.mxu1 }
 0x191   : > { %6409 = vst [vmem:[#allocation8_spill] sm:$0xff] %v5988_v1  ;;  %v5991_v37 = vadd.f32 %v1604_v20, %v1361_v21  ;;  %v1364_v55 = vadd.f32 %v4246_v33, %v5892_v52 }
 0x192   : > { %v4326_v10 = vpop.f32.mrf.mxu0  ;;  %v1308_v39 = vpop.f32.mrf.mxu1 }
 0x193   : > { %6410 = vst [vmem:[#allocation9_spill] sm:$0xff] %v5991_v37  ;;  %v5994_v6 = vadd.f32 %v4326_v10, %v1364_v55  ;;  %v1363_v63 = vadd.f32 %v1308_v39, %v5898_v16 }
 0x194   : > { %v1614_v43 = vpop.f32.mrf.mxu0  ;;  %v4249_v2 = vpop.f32.mrf.mxu1 }
 0x195   : > { %6411 = vst [vmem:[#allocation10_spill] sm:$0xff] %v5994_v6  ;;  %v5997_v18 = vadd.f32 %v1614_v43, %v1363_v63  ;;  %v1366_v28 = vadd.f32 %v4249_v2, %v5903_v8 }
 0x196   : > { %v4329_v30 = vpop.f32.mrf.mxu0  ;;  %v1318_v19 = vpop.f32.mrf.mxu1 }
 0x197   : > { %6412 = vst [vmem:[#allocation11_spill] sm:$0xff] %v5997_v18  ;;  %v6000_v34 = vadd.f32 %v4329_v30, %v1366_v28  ;;  %v1365_v56 = vadd.f32 %v1318_v19, %v5907_v25 }
 0x198   : > { %v1624_v41 = vpop.f32.mrf.mxu0  ;;  %v4252_v52 = vpop.f32.mrf.mxu1 }
 0x199   : > { %6413 = vst [vmem:[#allocation12_spill] sm:$0xff] %v6000_v34  ;;  %v6003_v22 = vadd.f32 %v1624_v41, %v1365_v56  ;;  %v1368_v60 = vadd.f32 %v4252_v52, %v5910_v23 }
 0x19a   : > { %v4332_v11 = vpop.f32.mrf.mxu0  ;;  %v1328_v16 = vpop.f32.mrf.mxu1 }
 0x19b   : > { %6414 = vst [vmem:[#allocation13_spill] sm:$0xff] %v6003_v22  ;;  %v6006_v3 = vadd.f32 %v4332_v11, %v1368_v60  ;;  %v1367_v40 = vadd.f32 %v1328_v16, %v5913_v49 }
 0x19c   : > { %v1634_v31 = vpop.f32.mrf.mxu0  ;;  %v4367_v8 = vpop.f32.mrf.mxu1 }
 0x19d   : > { %6415 = vst [vmem:[#allocation14_spill] sm:$0xff] %v6006_v3  ;;  %v6009_v35 = vadd.f32 %v1634_v31, %v1367_v40 }
 0x19e   : > { %v6011_v53 = vpop.f32.mrf.mxu0  ;;  %v1790_v42 = vpop.f32.mrf.mxu1 }
 0x19f   : > { %6416 = vst [vmem:[#allocation15_spill] sm:$0xff] %v6009_v35 }
 0x1a0   : > { %v6013_v25 = vpop.f32.mrf.mxu0  ;;  %v4370_v12 = vpop.f32.mrf.mxu1 }
 0x1a2   : > { %v6015_v61 = vpop.f32.mrf.mxu0  ;;  %v6017_v48 = vpop.f32.mrf.mxu1 }
 0x1a4   : > { %v6019_v23 = vpop.f32.mrf.mxu0  ;;  %v6021_v13 = vpop.f32.mrf.mxu1 }
 0x1a6   : > { %v6023_v26 = vpop.f32.mrf.mxu0  ;;  %v6025_v49 = vpop.f32.mrf.mxu1 }
 0x1a8   : > { %v6027_v27 = vpop.f32.mrf.mxu0  ;;  %v6029_v21 = vpop.f32.mrf.mxu1 }
 0x1aa   : > { %v6031_v20 = vpop.f32.mrf.mxu0  ;;  %v6033_v33 = vpop.f32.mrf.mxu1 }
 0x1ac   : > { %v6035_v55 = vpop.f32.mrf.mxu0  ;;  %v6037_v10 = vpop.f32.mrf.mxu1 }
 0x1ae   : > { %v6039_v39 = vpop.f32.mrf.mxu0  ;;  %v6041_v63 = vpop.f32.mrf.mxu1 }
 0x1b0   : > { %v6043_v43 = vpop.f32.mrf.mxu0  ;;  %v6045_v2 = vpop.f32.mrf.mxu1 }
 0x1b2   : > { %v6047_v28 = vpop.f32.mrf.mxu0  ;;  %v6049_v30 = vpop.f32.mrf.mxu1 }
 0x1b4   : > { %v6051_v19 = vpop.f32.mrf.mxu0  ;;  %v6053_v56 = vpop.f32.mrf.mxu1 }
 0x1b6   : > { %v6055_v41 = vpop.f32.mrf.mxu0  ;;  %v6057_v52 = vpop.f32.mrf.mxu1 }
 0x1b8   : > { %v6059_v60 = vpop.f32.mrf.mxu0  ;;  %v6061_v11 = vpop.f32.mrf.mxu1 }
 0x1ba   : > { %v6063_v16 = vpop.f32.mrf.mxu0  ;;  %v6065_v40 = vpop.f32.mrf.mxu1 }
 0x1bc   : > { %v6067_v31 = vpop.f32.mrf.mxu0  ;;  %v6069_v35 = vpop.f32.mrf.mxu1 }
 0x1be   : > { %v6071_v3 = vpop.f32.mrf.mxu0  ;;  %v6073_v22 = vpop.f32.mrf.mxu1 }
 0x1c0   : > { %v6075_v34 = vpop.f32.mrf.mxu0  ;;  %v6077_v18 = vpop.f32.mrf.mxu1 }
 0x1c1   : > { %6417 = vst [vmem:[#allocation16_spill] sm:$0xff] %v6075_v34  ;;  %6418 = vst [vmem:[#allocation17_spill] sm:$0xff] %v6077_v18 }
 0x1c2   : > { %v6079_v6 = vpop.f32.mrf.mxu0  ;;  %v6081_v37 = vpop.f32.mrf.mxu1 }
 0x1c3   : > { %6419 = vst [vmem:[#allocation18_spill] sm:$0xff] %v6079_v6  ;;  %6420 = vst [vmem:[#allocation19_spill] sm:$0xff] %v6081_v37 }
 0x1c4   : > { %v6083_v1 = vpop.f32.mrf.mxu0  ;;  %v6085_v32 = vpop.f32.mrf.mxu1 }
 0x1c5   : > { %6421 = vst [vmem:[#allocation20_spill] sm:$0xff] %v6083_v1  ;;  %6422 = vst [vmem:[#allocation21_spill] sm:$0xff] %v6085_v32 }
 0x1c6   : > { %v6087_v44 = vpop.f32.mrf.mxu0  ;;  %v6089_v51 = vpop.f32.mrf.mxu1 }
 0x1c7   : > { %6423 = vst [vmem:[#allocation22_spill] sm:$0xff] %v6087_v44  ;;  %6424 = vst [vmem:[#allocation23_spill] sm:$0xff] %v6089_v51 }
 0x1c8   : > { %v6091_v7 = vpop.f32.mrf.mxu0  ;;  %v6093_v46 = vpop.f32.mrf.mxu1 }
 0x1c9   : > { %6425 = vst [vmem:[#allocation24_spill] sm:$0xff] %v6091_v7  ;;  %6426 = vst [vmem:[#allocation25_spill] sm:$0xff] %v6093_v46 }
 0x1ca   : > { %v6095_v59 = vpop.f32.mrf.mxu0  ;;  %v6097_v34 = vpop.f32.mrf.mxu1 }
 0x1cb   : > { %6427 = vst [vmem:[#allocation26_spill] sm:$0xff] %v6095_v59  ;;  %6428 = vst [vmem:[#allocation27_spill] sm:$0xff] %v6097_v34 }
 0x1cc   : > { %v6099_v18 = vpop.f32.mrf.mxu0  ;;  %v6101_v6 = vpop.f32.mrf.mxu1 }
 0x1cd   : > { %6429 = vst [vmem:[#allocation28_spill] sm:$0xff] %v6099_v18  ;;  %6430 = vst [vmem:[#allocation29_spill] sm:$0xff] %v6101_v6 }
 0x1ce   : > { %v6103_v37 = vpop.f32.mrf.mxu0  ;;  %v6105_v1 = vpop.f32.mrf.mxu1 }
 0x1cf   : > { %6431 = vst [vmem:[#allocation30_spill] sm:$0xff] %v6103_v37  ;;  %6432 = vst [vmem:[#allocation31_spill] sm:$0xff] %v6105_v1  ;;  %v1950_v37 = vadd.f32 %v4367_v8, %v5916_v14  ;;  %v1951_v14 = vadd.f32 %v6017_v48, %v5925_v9 }
 0x1d0   : > { %v6107_v32 = vpop.f32.mrf.mxu0  ;;  %v6109_v44 = vpop.f32.mrf.mxu1 }
 0x1d1   : > { %6433 = vst [vmem:[#allocation32_spill] sm:$0xff] %v6107_v32  ;;  %6434 = vst [vmem:[#allocation33_spill] sm:$0xff] %v6109_v44  ;;  %v1949_v44 = vadd.f32 %v1790_v42, %v5919_v29  ;;  %v6144_v29 = vld [vmem:[%s6310_s2] ss:$0 sm:$0xff] }
 0x1d2   : > { %v6111_v51 = vpop.f32.mrf.mxu0  ;;  %v6113_v7 = vpop.f32.mrf.mxu1 }
 0x1d3   : > { %6435 = vst [vmem:[#allocation34_spill] sm:$0xff] %v6111_v51  ;;  %6436 = vst [vmem:[#allocation35_spill] sm:$0xff] %v6113_v7 }
 0x1d4   : > { %v6115_v46 = vpop.f32.mrf.mxu0  ;;  %v6117_v59 = vpop.f32.mrf.mxu1 }
 0x1d5   : > { %6437 = vst [vmem:[#allocation36_spill] sm:$0xff] %v6115_v46  ;;  %6438 = vst [vmem:[#allocation37_spill] sm:$0xff] %v6117_v59  ;;  %v2257_v46 = vadd.f32 %v6011_v53, %v1950_v37  ;;  %v1952_v59 = vadd.f32 %v4370_v12, %v5922_v36  ;;  %v1954_v12 = vadd.f32 %v6021_v13, %v5928_v38 }
 0x1d6   : > { %v6119_v18 = vpop.f32.mrf.mxu0  ;;  %v6121_v6 = vpop.f32.mrf.mxu1 }
 0x1d7   : > { %6439 = vst [vmem:[#allocation38_spill] sm:$0xff] %v6119_v18  ;;  %6440 = vst [vmem:[#allocation39_spill] sm:$0xff] %v6121_v6  ;;  %v2256_v6 = vadd.f32 %v6013_v25, %v1949_v44  ;;  %v2259_v37 = vadd.f32 %v6015_v61, %v1952_v59  ;;  %v1953_v44 = vadd.f32 %v6025_v49, %v5931_v4 }
 0x1d8   : > { %v6124_v1 = vpop.f32.mrf.mxu0  ;;  %v6126_v32 = vpop.f32.mrf.mxu1  ;;  %v1956_v4 = vadd.f32 %v6029_v21, %v5934_v45  ;;  %v2261_v49 = vadd.f32 %v6023_v26, %v1954_v12 }
 0x1d9   : > { %6441 = vst [vmem:[#allocation40_spill] sm:$0xff] %v6126_v32 }
 0x1da   : > { %v6129_v51 = vpop.f32.mrf.mxu0  ;;  %v6131_v7 = vpop.f32.mrf.mxu1 }
 0x1dc   : > { %v6135_v34 = vpop.f32.mrf.mxu0  ;;  %v4527_v18 = vpop.f32.mrf.mxu1 }
 0x1dd   : > { %v2563_v8 = vadd.f32 %v4527_v18, %v2257_v46  ;;  %v2258_v18 = vadd.f32 %v6019_v23, %v1951_v14  ;;  %v1955_v23 = vadd.f32 %v6033_v33, %v5937_v0 }
 0x1de   : > { %v4607_v32 = vpop.f32.mrf.mxu0  ;;  %v2403_v42 = vpop.f32.mrf.mxu1 }
 0x1df   : > { %v2869_v36 = vadd.f32 %v4607_v32, %v2563_v8  ;;  %v2562_v53 = vadd.f32 %v2403_v42, %v2256_v6  ;;  %v2260_v8 = vadd.f32 %v6027_v27, %v1953_v44  ;;  %v2263_v44 = vadd.f32 %v6031_v20, %v1956_v4 }
 0x1e0   : > { %v2709_v9 = vpop.f32.mrf.mxu0  ;;  %v4530_v46 = vpop.f32.mrf.mxu1  ;;  %v1960_v4 = vadd.f32 %v6045_v2, %v5946_v24 }
 0x1e1   : > { %v2908_v59 = vadd.f32 %v6144_v29, %v2869_v36  ;;  %v2868_v32 = vadd.f32 %v2709_v9, %v2562_v53  ;;  %v2565_v6 = vadd.f32 %v4530_v46, %v2259_v37  ;;  %v1958_v9 = vadd.f32 %v6037_v10, %v5940_v58 }
 0x1e2   : > { %v4610_v25 = vpop.f32.mrf.mxu0  ;;  %v2413_v38 = vpop.f32.mrf.mxu1 }
 0x1e3   : > { %2940 = vst [vmem:[%s6154_s10 + $0x8] sm:$0xff] %v2908_v59  ;;  %v2907_v61 = vadd.f32 %v6144_v29, %v2868_v32  ;;  %v2871_v48 = vadd.f32 %v4610_v25, %v2565_v6  ;;  %v2564_v13 = vadd.f32 %v2413_v38, %v2258_v18  ;;  %v3009_v14 = vmul.f32 %v2908_v59, %v2908_v59 }
 0x1e4   : > { %v2719_v42 = vpop.f32.mrf.mxu0  ;;  %v4533_v37 = vpop.f32.mrf.mxu1  ;;  %v2262_v18 = vadd.f32 %v6035_v55, %v1955_v23  ;;  %v2265_v20 = vadd.f32 %v6039_v39, %v1958_v9  ;;  %v1962_v39 = vadd.f32 %v6053_v56, %v5952_v5  ;;  %v2267_v9 = vadd.f32 %v6047_v28, %v1960_v4 }
 0x1e5   : > { %2939 = vst [vmem:[%s6154_s10] sm:$0xff] %v2907_v61  ;;  %v2971_v36 = vadd.f32 %v2908_v59, %v2907_v61  ;;  %v3008_v53 = vmul.f32 %v2907_v61, %v2907_v61  ;;  %v2910_v45 = vadd.f32 %v6144_v29, %v2871_v48  ;;  %v2870_v21 = vadd.f32 %v2719_v42, %v2564_v13 }
 0x1e6   : > { %v2567_v26 = vadd.f32 %v4533_v37, %v2261_v49  ;;  %v4613_v12 = vpop.f32.mrf.mxu0  ;;  %v2423_v27 = vpop.f32.mrf.mxu1  ;;  %v1957_v59 = vadd.f32 %v6041_v63, %v5943_v50  ;;  %v1959_v42 = vadd.f32 %v6049_v30, %v5949_v15 }
 0x1e7   : > { %v3040_v46 = vadd.f32 %v3009_v14, %v3008_v53  ;;  %2942 = vst [vmem:[%s6154_s10 + $0x18] sm:$0xff] %v2910_v45  ;;  %v2909_v0 = vadd.f32 %v6144_v29, %v2870_v21  ;;  %v2566_v33 = vadd.f32 %v2423_v27, %v2260_v8  ;;  %v3011_v48 = vmul.f32 %v2910_v45, %v2910_v45 }
 0x1e8   : > { %v2873_v32 = vadd.f32 %v4613_v12, %v2567_v26  ;;  %v2729_v6 = vpop.f32.mrf.mxu0  ;;  %v4536_v25 = vpop.f32.mrf.mxu1  ;;  %v2264_v14 = vadd.f32 %v6043_v43, %v1957_v59  ;;  %v1961_v43 = vadd.f32 %v6057_v52, %v5955_v57  ;;  %v2269_v59 = vadd.f32 %v6055_v41, %v1962_v39 }
 0x1e9   : > { %2941 = vst [vmem:[%s6154_s10 + $0x10] sm:$0xff] %v2909_v0  ;;  %v2972_v58 = vadd.f32 %v2971_v36, %v2909_v0  ;;  %v3010_v10 = vmul.f32 %v2909_v0, %v2909_v0  ;;  %v2872_v38 = vadd.f32 %v2729_v6, %v2566_v33  ;;  %v2569_v61 = vadd.f32 %v4536_v25, %v2263_v44 }
 0x1ea   : > { %v2912_v55 = vadd.f32 %v6144_v29, %v2873_v32  ;;  %v4616_v13 = vpop.f32.mrf.mxu0  ;;  %v2433_v50 = vpop.f32.mrf.mxu1  ;;  %v2268_v6 = vadd.f32 %v6059_v60, %v1961_v43 }
 0x1eb   : > { %v3041_v63 = vadd.f32 %v3040_v46, %v3010_v10  ;;  %v2911_v49 = vadd.f32 %v6144_v29, %v2872_v38  ;;  %v2973_v8 = vadd.f32 %v2972_v58, %v2910_v45  ;;  %v2875_v23 = vadd.f32 %v4616_v13, %v2569_v61 }
 0x1ec   : > { %2944 = vst [vmem:[%s6154_s10 + $0x28] sm:$0xff] %v2912_v55  ;;  %v2568_v24 = vadd.f32 %v2433_v50, %v2262_v18  ;;  %v2739_v2 = vpop.f32.mrf.mxu0  ;;  %v4539_v37 = vpop.f32.mrf.mxu1  ;;  %v3013_v56 = vmul.f32 %v2912_v55, %v2912_v55  ;;  %v2266_v46 = vadd.f32 %v6051_v19, %v1959_v42  ;;  %v1964_v61 = vadd.f32 %v6061_v11, %v5958_v54 }
 0x1ed   : > { %2943 = vst [vmem:[%s6154_s10 + $0x20] sm:$0xff] %v2911_v49  ;;  %v2974_v36 = vadd.f32 %v2973_v8, %v2911_v49  ;;  %v3012_v53 = vmul.f32 %v2911_v49, %v2911_v49  ;;  %v3042_v21 = vadd.f32 %v3041_v63, %v3011_v48  ;;  %v2914_v45 = vadd.f32 %v6144_v29, %v2875_v23 }
 0x1ee   : > { %v2874_v15 = vadd.f32 %v2739_v2, %v2568_v24  ;;  %v2571_v30 = vadd.f32 %v4539_v37, %v2265_v20  ;;  %v4619_v26 = vpop.f32.mrf.mxu0  ;;  %v2443_v5 = vpop.f32.mrf.mxu1  ;;  %v1963_v48 = vadd.f32 %v6065_v40, %v5961_v17  ;;  %v1966_v11 = vadd.f32 %v6069_v35, %v5964_v62 }
 0x1ef   : > { %v3043_v12 = vadd.f32 %v3042_v21, %v3012_v53  ;;  %2946 = vst [vmem:[%s6154_s10 + $0x38] sm:$0xff] %v2914_v45  ;;  %v2975_v27 = vadd.f32 %v2974_v36, %v2912_v55  ;;  %v2570_v44 = vadd.f32 %v2443_v5, %v2264_v14  ;;  %v3015_v55 = vmul.f32 %v2914_v45, %v2914_v45 }
 0x1f0   : > { %v2913_v0 = vadd.f32 %v6144_v29, %v2874_v15  ;;  %v2877_v33 = vadd.f32 %v4619_v26, %v2571_v30  ;;  %v2749_v18 = vpop.f32.mrf.mxu0  ;;  %v4542_v28 = vpop.f32.mrf.mxu1  ;;  %v1965_v14 = vadd.f32 %v6073_v22, %v5967_v47  ;;  %v2271_v24 = vadd.f32 %v6063_v16, %v1964_v61  ;;  %v6442_v30 = vld [vmem:[#allocation16_spill] sm:$0xff] }
 0x1f1   : > { %v3044_v57 = vadd.f32 %v3043_v12, %v3013_v56  ;;  %v2876_v52 = vadd.f32 %v2749_v18, %v2570_v44  ;;  %v2573_v32 = vadd.f32 %v4542_v28, %v2267_v9  ;;  %v2270_v53 = vadd.f32 %v6067_v31, %v1963_v48  ;;  %v6444_v44 = vld [vmem:[#allocation17_spill] sm:$0xff]  ;;  %v6445_v28 = vld [vmem:[#allocation3_spill] sm:$0xff]  ;;  %v6447_v61 = vld [vmem:[#allocation4_spill] sm:$0xff] }
 0x1f2   : > { %2945 = vst [vmem:[%s6154_s10 + $0x30] sm:$0xff] %v2913_v0  ;;  %v2976_v25 = vadd.f32 %v2975_v27, %v2913_v0  ;;  %v3014_v58 = vmul.f32 %v2913_v0, %v2913_v0  ;;  %v2916_v10 = vadd.f32 %v6144_v29, %v2877_v33  ;;  %v4622_v19 = vpop.f32.mrf.mxu0  ;;  %v2453_v38 = vpop.f32.mrf.mxu1  ;;  %v2273_v16 = vadd.f32 %v6071_v3, %v1966_v11  ;;  %v6443_v27 = vld [vmem:[#allocation2_spill] sm:$0xff]  ;;  %v6450_v48 = vld [vmem:[#allocation23_spill] sm:$0xff] }
 0x1f3   : > { %v2915_v20 = vadd.f32 %v6144_v29, %v2876_v52  ;;  %v2879_v41 = vadd.f32 %v4622_v19, %v2573_v32  ;;  %v2572_v4 = vadd.f32 %v2453_v38, %v2266_v46  ;;  %v2272_v26 = vadd.f32 %v6442_v30, %v1965_v14  ;;  %v6452_v14 = vld [vmem:[#allocation20_spill] sm:$0xff]  ;;  %v6455_v30 = vld [vmem:[#allocation6_spill] sm:$0xff] }
 0x1f4   : > { %v3045_v60 = vadd.f32 %v3044_v57, %v3014_v58  ;;  %2948 = vst [vmem:[%s6154_s10 + $0x48] sm:$0xff] %v2916_v10  ;;  %v2977_v13 = vadd.f32 %v2976_v25, %v2914_v45  ;;  %v2759_v50 = vpop.f32.mrf.mxu0  ;;  %v4545_v63 = vpop.f32.mrf.mxu1  ;;  %v3017_v21 = vmul.f32 %v2916_v10, %v2916_v10  ;;  %v1968_v46 = vadd.f32 %v6444_v44, %v6443_v27  ;;  %v6458_v27 = vld [vmem:[#allocation27_spill] sm:$0xff] }
 0x1f5   : > { %2947 = vst [vmem:[%s6154_s10 + $0x40] sm:$0xff] %v2915_v20  ;;  %v3016_v49 = vmul.f32 %v2915_v20, %v2915_v20  ;;  %v2918_v8 = vadd.f32 %v6144_v29, %v2879_v41  ;;  %v2878_v23 = vadd.f32 %v2759_v50, %v2572_v4  ;;  %v2575_v54 = vadd.f32 %v4545_v63, %v2269_v59  ;;  %v6446_v59 = vld [vmem:[#allocation19_spill] sm:$0xff]  ;;  %v6449_v4 = vld [vmem:[#allocation5_spill] sm:$0xff] }
 0x1f6   : > { %v2978_v17 = vadd.f32 %v2977_v13, %v2915_v20  ;;  %v3046_v40 = vadd.f32 %v3045_v60, %v3015_v55  ;;  %v4625_v42 = vpop.f32.mrf.mxu0  ;;  %v2463_v39 = vpop.f32.mrf.mxu1  ;;  %v1967_v57 = vadd.f32 %v6446_v59, %v6445_v28  ;;  %v6448_v20 = vld [vmem:[#allocation21_spill] sm:$0xff]  ;;  %v1969_v55 = vadd.f32 %v6450_v48, %v6449_v4 }
 0x1f7   : > { %2950 = vst [vmem:[%s6154_s10 + $0x58] sm:$0xff] %v2918_v8  ;;  %v2917_v2 = vadd.f32 %v6144_v29, %v2878_v23  ;;  %v2881_v37 = vadd.f32 %v4625_v42, %v2575_v54  ;;  %v2574_v36 = vadd.f32 %v2463_v39, %v2268_v6  ;;  %v3019_v52 = vmul.f32 %v2918_v8, %v2918_v8 }
 0x1f8   : > { %v3047_v45 = vadd.f32 %v3046_v40, %v3016_v49  ;;  %v2979_v62 = vadd.f32 %v2978_v17, %v2916_v10  ;;  %v2769_v35 = vpop.f32.mrf.mxu0  ;;  %v4548_v47 = vpop.f32.mrf.mxu1  ;;  %v1970_v41 = vadd.f32 %v6448_v20, %v6447_v61  ;;  %v6451_v49 = vld [vmem:[#allocation18_spill] sm:$0xff]  ;;  %v2274_v17 = vadd.f32 %v6452_v14, %v1967_v57 }
 0x1f9   : > { %2949 = vst [vmem:[%s6154_s10 + $0x50] sm:$0xff] %v2917_v2  ;;  %v3018_v22 = vmul.f32 %v2917_v2, %v2917_v2  ;;  %v2920_v9 = vadd.f32 %v6144_v29, %v2881_v37  ;;  %v2880_v43 = vadd.f32 %v2769_v35, %v2574_v36  ;;  %v2577_v15 = vadd.f32 %v4548_v47, %v2271_v24  ;;  %v6454_v35 = vld [vmem:[#allocation24_spill] sm:$0xff] }
 0x1fa   : > { %v2980_v5 = vadd.f32 %v2979_v62, %v2917_v2  ;;  %v3048_v56 = vadd.f32 %v3047_v45, %v3017_v21  ;;  %v4628_v31 = vpop.f32.mrf.mxu0  ;;  %v2473_v12 = vpop.f32.mrf.mxu1  ;;  %v6453_v45 = vld [vmem:[#allocation22_spill] sm:$0xff]  ;;  %v2276_v47 = vadd.f32 %v6454_v35, %v1969_v55 }
 0x1fb   : > { %2952 = vst [vmem:[%s6154_s10 + $0x68] sm:$0xff] %v2920_v9  ;;  %v2919_v0 = vadd.f32 %v6144_v29, %v2880_v43  ;;  %v2883_v33 = vadd.f32 %v4628_v31, %v2577_v15  ;;  %v2576_v18 = vadd.f32 %v2473_v12, %v2270_v53  ;;  %v3021_v40 = vmul.f32 %v2920_v9, %v2920_v9  ;;  %v6457_v12 = vld [vmem:[#allocation7_spill] sm:$0xff]  ;;  %v6467_v35 = vld [vmem:[#allocation10_spill] sm:$0xff] }
 0x1fc   : > { %v3049_v3 = vadd.f32 %v3048_v56, %v3018_v22  ;;  %v2981_v32 = vadd.f32 %v2980_v5, %v2918_v8  ;;  %v2779_v6 = vpop.f32.mrf.mxu0  ;;  %v4551_v25 = vpop.f32.mrf.mxu1  ;;  %v2275_v8 = vadd.f32 %v6451_v49, %v1968_v46  ;;  %v2277_v62 = vadd.f32 %v6453_v45, %v1970_v41 }
 0x1fd   : > { %2951 = vst [vmem:[%s6154_s10 + $0x60] sm:$0xff] %v2919_v0  ;;  %v3020_v58 = vmul.f32 %v2919_v0, %v2919_v0  ;;  %v2922_v10 = vadd.f32 %v6144_v29, %v2883_v33  ;;  %v2882_v19 = vadd.f32 %v2779_v6, %v2576_v18  ;;  %v2579_v38 = vadd.f32 %v4551_v25, %v2273_v16  ;;  %v6460_v6 = vld [vmem:[#allocation29_spill] sm:$0xff] }
 0x1fe   : > { %v2982_v60 = vadd.f32 %v2981_v32, %v2919_v0  ;;  %v3050_v13 = vadd.f32 %v3049_v3, %v3019_v52  ;;  %v4631_v50 = vpop.f32.mrf.mxu0  ;;  %v2483_v63 = vpop.f32.mrf.mxu1  ;;  %v1971_v44 = vadd.f32 %v6458_v27, %v6457_v12  ;;  %v6459_v32 = vld [vmem:[#allocation8_spill] sm:$0xff] }
 0x1ff   : > { %2954 = vst [vmem:[%s6154_s10 + $0x78] sm:$0xff] %v2922_v10  ;;  %v2921_v23 = vadd.f32 %v6144_v29, %v2882_v19  ;;  %v2885_v54 = vadd.f32 %v4631_v50, %v2579_v38  ;;  %v2578_v11 = vadd.f32 %v2483_v63, %v2272_v26  ;;  %v6456_v26 = vld [vmem:[#allocation25_spill] sm:$0xff]  ;;  %v3023_v46 = vmul.f32 %v2922_v10, %v2922_v10  ;;  %v6462_v19 = vld [vmem:[#allocation31_spill] sm:$0xff]  ;;  %v6464_v50 = vld [vmem:[#allocation28_spill] sm:$0xff] }
 0x200   : > { %v3051_v42 = vadd.f32 %v3050_v13, %v3020_v58  ;;  %v2983_v39 = vadd.f32 %v2982_v60, %v2920_v9  ;;  %v2789_v24 = vpop.f32.mrf.mxu0  ;;  %v4554_v2 = vpop.f32.mrf.mxu1  ;;  %v1972_v9 = vadd.f32 %v6456_v26, %v6455_v30  ;;  %v1974_v25 = vadd.f32 %v6460_v6, %v6459_v32  ;;  %v6461_v58 = vld [vmem:[#allocation9_spill] sm:$0xff]  ;;  %v6470_v30 = vld [vmem:[#allocation35_spill] sm:$0xff] }
 0x201   : > { %2953 = vst [vmem:[%s6154_s10 + $0x70] sm:$0xff] %v2921_v23  ;;  %v3022_v37 = vmul.f32 %v2921_v23, %v2921_v23  ;;  %v2924_v36 = vadd.f32 %v6144_v29, %v2885_v54  ;;  %v2884_v53 = vadd.f32 %v2789_v24, %v2578_v11  ;;  %v2581_v21 = vadd.f32 %v4554_v2, %v2275_v8  ;;  %v6466_v2 = vld [vmem:[#allocation32_spill] sm:$0xff] }
 0x202   : > { %v2984_v22 = vadd.f32 %v2983_v39, %v2921_v23  ;;  %v3052_v43 = vadd.f32 %v3051_v42, %v3021_v40  ;;  %v4634_v15 = vpop.f32.mrf.mxu0  ;;  %v2493_v16 = vpop.f32.mrf.mxu1  ;;  %v1973_v38 = vadd.f32 %v6462_v19, %v6461_v58  ;;  %v2278_v63 = vadd.f32 %v6464_v50, %v1971_v44  ;;  %v6465_v39 = vld [vmem:[#allocation30_spill] sm:$0xff] }
 0x203   : > { %2956 = vst [vmem:[%s6154_s10 + $0x88] sm:$0xff] %v2924_v36  ;;  %v2923_v5 = vadd.f32 %v6144_v29, %v2884_v53  ;;  %v2887_v56 = vadd.f32 %v4634_v15, %v2581_v21  ;;  %v2580_v31 = vadd.f32 %v2493_v16, %v2274_v17  ;;  %v3025_v49 = vmul.f32 %v2924_v36, %v2924_v36  ;;  %v6469_v16 = vld [vmem:[#allocation11_spill] sm:$0xff] }
 0x204   : > { %v3053_v0 = vadd.f32 %v3052_v43, %v3022_v37  ;;  %v2985_v33 = vadd.f32 %v2984_v22, %v2922_v10  ;;  %v2799_v18 = vpop.f32.mrf.mxu0  ;;  %v4557_v28 = vpop.f32.mrf.mxu1  ;;  %v6463_v10 = vld [vmem:[#allocation26_spill] sm:$0xff]  ;;  %v2281_v24 = vadd.f32 %v6465_v39, %v1974_v25  ;;  %v2280_v37 = vadd.f32 %v6466_v2, %v1973_v38  ;;  %v6479_v2 = vld [vmem:[#allocation40_spill] sm:$0xff] }
 0x205   : > { %2955 = vst [vmem:[%s6154_s10 + $0x80] sm:$0xff] %v2923_v5  ;;  %v3024_v59 = vmul.f32 %v2923_v5, %v2923_v5  ;;  %v2926_v57 = vadd.f32 %v6144_v29, %v2887_v56  ;;  %v2886_v52 = vadd.f32 %v2799_v18, %v2580_v31  ;;  %v2583_v3 = vadd.f32 %v4557_v28, %v2277_v62  ;;  %v6472_v18 = vld [vmem:[#allocation37_spill] sm:$0xff] }
 0x206   : > { %v2986_v61 = vadd.f32 %v2985_v33, %v2923_v5  ;;  %v3054_v20 = vadd.f32 %v3053_v0, %v3023_v46  ;;  %v4637_v41 = vpop.f32.mrf.mxu0  ;;  %v2503_v4 = vpop.f32.mrf.mxu1  ;;  %v2279_v48 = vadd.f32 %v6463_v10, %v1972_v9  ;;  %v1975_v26 = vadd.f32 %v6470_v30, %v6469_v16  ;;  %v6471_v33 = vld [vmem:[#allocation12_spill] sm:$0xff] }
 0x207   : > { %2958 = vst [vmem:[%s6154_s10 + $0x98] sm:$0xff] %v2926_v57  ;;  %v2925_v55 = vadd.f32 %v6144_v29, %v2886_v52  ;;  %v2889_v60 = vadd.f32 %v4637_v41, %v2583_v3  ;;  %v2582_v13 = vadd.f32 %v2503_v4, %v2276_v47  ;;  %v6468_v47 = vld [vmem:[#allocation33_spill] sm:$0xff]  ;;  %v3027_v9 = vmul.f32 %v2926_v57, %v2926_v57  ;;  %v6474_v52 = vld [vmem:[#allocation39_spill] sm:$0xff]  ;;  %v6476_v41 = vld [vmem:[#allocation36_spill] sm:$0xff] }
 0x208   : > { %v3055_v8 = vadd.f32 %v3054_v20, %v3024_v59  ;;  %v2987_v23 = vadd.f32 %v2986_v61, %v2924_v36  ;;  %v2809_v54 = vpop.f32.mrf.mxu0  ;;  %v4560_v11 = vpop.f32.mrf.mxu1  ;;  %v1976_v36 = vadd.f32 %v6468_v47, %v6467_v35  ;;  %v1978_v28 = vadd.f32 %v6472_v18, %v6471_v33  ;;  %v6473_v59 = vld [vmem:[#allocation13_spill] sm:$0xff] }
 0x209   : > { %2957 = vst [vmem:[%s6154_s10 + $0x90] sm:$0xff] %v2925_v55  ;;  %v3026_v14 = vmul.f32 %v2925_v55, %v2925_v55  ;;  %v2928_v17 = vadd.f32 %v6144_v29, %v2889_v60  ;;  %v2888_v40 = vadd.f32 %v2809_v54, %v2582_v13  ;;  %v2585_v42 = vadd.f32 %v4560_v11, %v2279_v48 }
 0x20a   : > { %v2988_v53 = vadd.f32 %v2987_v23, %v2925_v55  ;;  %v3056_v21 = vadd.f32 %v3055_v8, %v3025_v49  ;;  %v4640_v45 = vpop.f32.mrf.mxu0  ;;  %v2513_v62 = vpop.f32.mrf.mxu1  ;;  %v1977_v3 = vadd.f32 %v6474_v52, %v6473_v59  ;;  %v2282_v4 = vadd.f32 %v6476_v41, %v1975_v26  ;;  %v6477_v23 = vld [vmem:[#allocation38_spill] sm:$0xff] }
 0x20b   : > { %2960 = vst [vmem:[%s6154_s10 + $0xa8] sm:$0xff] %v2928_v17  ;;  %v2927_v22 = vadd.f32 %v6144_v29, %v2888_v40  ;;  %v2891_v43 = vadd.f32 %v4640_v45, %v2585_v42  ;;  %v2584_v15 = vadd.f32 %v2513_v62, %v2278_v63  ;;  %v3029_v10 = vmul.f32 %v2928_v17, %v2928_v17  ;;  %v6480_v45 = vld [vmem:[#allocation15_spill] sm:$0xff] }
 0x20c   : > { %v3057_v5 = vadd.f32 %v3056_v21, %v3026_v14  ;;  %v2989_v56 = vadd.f32 %v2988_v53, %v2926_v57  ;;  %v2819_v31 = vpop.f32.mrf.mxu0  ;;  %v4563_v12 = vpop.f32.mrf.mxu1  ;;  %v6475_v57 = vld [vmem:[#allocation34_spill] sm:$0xff]  ;;  %v2285_v54 = vadd.f32 %v6477_v23, %v1978_v28  ;;  %v2284_v11 = vadd.f32 %v6124_v1, %v1977_v3 }
 0x20d   : > { %2959 = vst [vmem:[%s6154_s10 + $0xa0] sm:$0xff] %v2927_v22  ;;  %v3028_v27 = vmul.f32 %v2927_v22, %v2927_v22  ;;  %v2930_v44 = vadd.f32 %v6144_v29, %v2891_v43  ;;  %v2890_v46 = vadd.f32 %v2819_v31, %v2584_v15  ;;  %v2587_v0 = vadd.f32 %v4563_v12, %v2281_v24  ;;  %v6478_v24 = vld [vmem:[#allocation14_spill] sm:$0xff] }
 0x20e   : > { %v2990_v32 = vadd.f32 %v2989_v56, %v2927_v22  ;;  %v3058_v6 = vadd.f32 %v3057_v5, %v3027_v9  ;;  %v4643_v25 = vpop.f32.mrf.mxu0  ;;  %v2523_v58 = vpop.f32.mrf.mxu1  ;;  %v2283_v19 = vadd.f32 %v6475_v57, %v1976_v36  ;;  %v1979_v62 = vadd.f32 %v6131_v7, %v6480_v45 }
 0x20f   : > { %2962 = vst [vmem:[%s6154_s10 + $0xb8] sm:$0xff] %v2930_v44  ;;  %v2929_v38 = vadd.f32 %v6144_v29, %v2890_v46  ;;  %v2893_v61 = vadd.f32 %v4643_v25, %v2587_v0  ;;  %v2586_v20 = vadd.f32 %v2523_v58, %v2280_v37  ;;  %v3031_v35 = vmul.f32 %v2930_v44, %v2930_v44 }
 0x210   : > { %v3059_v48 = vadd.f32 %v3058_v6, %v3028_v27  ;;  %v2991_v55 = vadd.f32 %v2990_v32, %v2928_v17  ;;  %v2829_v60 = vpop.f32.mrf.mxu0  ;;  %v4566_v13 = vpop.f32.mrf.mxu1  ;;  %v1980_v17 = vadd.f32 %v6479_v2, %v6478_v24 }
 0x211   : > { %2961 = vst [vmem:[%s6154_s10 + $0xb0] sm:$0xff] %v2929_v38  ;;  %v3030_v50 = vmul.f32 %v2929_v38, %v2929_v38  ;;  %v2932_v63 = vadd.f32 %v6144_v29, %v2893_v61  ;;  %v2892_v49 = vadd.f32 %v2829_v60, %v2586_v20  ;;  %v2589_v8 = vadd.f32 %v4566_v13, %v2283_v19 }
 0x212   : > { %v2992_v14 = vadd.f32 %v2991_v55, %v2929_v38  ;;  %v3060_v40 = vadd.f32 %v3059_v48, %v3029_v10  ;;  %v4646_v42 = vpop.f32.mrf.mxu0  ;;  %v2533_v39 = vpop.f32.mrf.mxu1  ;;  %v2287_v31 = vadd.f32 %v6129_v51, %v1980_v17 }
 0x213   : > { %2964 = vst [vmem:[%s6154_s10 + $0xc8] sm:$0xff] %v2932_v63  ;;  %v2931_v37 = vadd.f32 %v6144_v29, %v2892_v49  ;;  %v2895_v53 = vadd.f32 %v4646_v42, %v2589_v8  ;;  %v2588_v21 = vadd.f32 %v2533_v39, %v2282_v4  ;;  %v3033_v46 = vmul.f32 %v2932_v63, %v2932_v63 }
 0x214   : > { %v3061_v47 = vadd.f32 %v3060_v40, %v3030_v50  ;;  %v2993_v1 = vadd.f32 %v2992_v14, %v2930_v44  ;;  %v2839_v36 = vpop.f32.mrf.mxu0  ;;  %v4569_v22 = vpop.f32.mrf.mxu1  ;;  %v2286_v44 = vadd.f32 %v6135_v34, %v1979_v62 }
 0x215   : > { %2963 = vst [vmem:[%s6154_s10 + $0xc0] sm:$0xff] %v2931_v37  ;;  %v3032_v43 = vmul.f32 %v2931_v37, %v2931_v37  ;;  %v2934_v15 = vadd.f32 %v6144_v29, %v2895_v53  ;;  %v2894_v16 = vadd.f32 %v2839_v36, %v2588_v21  ;;  %v2591_v30 = vadd.f32 %v4569_v22, %v2285_v54 }
 0x216   : > { %v2994_v26 = vadd.f32 %v2993_v1, %v2931_v37  ;;  %v3062_v9 = vadd.f32 %v3061_v47, %v3031_v35  ;;  %v4649_v5 = vpop.f32.mrf.mxu0  ;;  %v2543_v56 = vpop.f32.mrf.mxu1 }
 0x217   : > { %2966 = vst [vmem:[%s6154_s10 + $0xd8] sm:$0xff] %v2934_v15  ;;  %v2933_v7 = vadd.f32 %v6144_v29, %v2894_v16  ;;  %v2897_v12 = vadd.f32 %v4649_v5, %v2591_v30  ;;  %v2590_v27 = vadd.f32 %v2543_v56, %v2284_v11  ;;  %v3035_v38 = vmul.f32 %v2934_v15, %v2934_v15 }
 0x218   : > { %v3063_v0 = vadd.f32 %v3062_v9, %v3032_v43  ;;  %v2995_v33 = vadd.f32 %v2994_v26, %v2932_v63  ;;  %v2849_v18 = vpop.f32.mrf.mxu0  ;;  %v4572_v28 = vpop.f32.mrf.mxu1 }
 0x219   : > { %2965 = vst [vmem:[%s6154_s10 + $0xd0] sm:$0xff] %v2933_v7  ;;  %v3034_v59 = vmul.f32 %v2933_v7, %v2933_v7  ;;  %v2936_v52 = vadd.f32 %v6144_v29, %v2897_v12  ;;  %v2896_v3 = vadd.f32 %v2849_v18, %v2590_v27  ;;  %v2593_v51 = vadd.f32 %v4572_v28, %v2287_v31 }
 0x21a   : > { %v2996_v32 = vadd.f32 %v2995_v33, %v2933_v7  ;;  %v3064_v6 = vadd.f32 %v3063_v0, %v3033_v46  ;;  %v4652_v25 = vpop.f32.mrf.mxu0  ;;  %v2553_v58 = vpop.f32.mrf.mxu1 }
 0x21b   : > { %2968 = vst [vmem:[%s6154_s10 + $0xe8] sm:$0xff] %v2936_v52  ;;  %v2935_v34 = vadd.f32 %v6144_v29, %v2896_v3  ;;  %v2899_v57 = vadd.f32 %v4652_v25, %v2593_v51  ;;  %v2592_v19 = vadd.f32 %v2553_v58, %v2286_v44  ;;  %v3037_v50 = vmul.f32 %v2936_v52, %v2936_v52 }
 0x21c   : > { %v3065_v61 = vadd.f32 %v3064_v6, %v3034_v59  ;;  %v2997_v20 = vadd.f32 %v2996_v32, %v2934_v15  ;;  %v2859_v41 = vpop.f32.mrf.mxu0 }
 0x21d   : > { %2967 = vst [vmem:[%s6154_s10 + $0xe0] sm:$0xff] %v2935_v34  ;;  %v3036_v4 = vmul.f32 %v2935_v34, %v2935_v34  ;;  %v2938_v10 = vadd.f32 %v6144_v29, %v2899_v57  ;;  %v2898_v48 = vadd.f32 %v2859_v41, %v2592_v19 }
 0x21e   : > { %v2998_v55 = vadd.f32 %v2997_v20, %v2935_v34  ;;  %v3066_v60 = vadd.f32 %v3065_v61, %v3035_v38 }
 0x21f   : > { %2970 = vst [vmem:[%s6154_s10 + $0xf8] sm:$0xff] %v2938_v10  ;;  %v2937_v13 = vadd.f32 %v6144_v29, %v2898_v48  ;;  %v3039_v11 = vmul.f32 %v2938_v10, %v2938_v10 }
 0x220   : > { %v3067_v63 = vadd.f32 %v3066_v60, %v3036_v4  ;;  %v2999_v49 = vadd.f32 %v2998_v55, %v2936_v52 }
 0x221   : > { %2969 = vst [vmem:[%s6154_s10 + $0xf0] sm:$0xff] %v2937_v13  ;;  %v3038_v8 = vmul.f32 %v2937_v13, %v2937_v13 }
 0x222   : > { %v3000_v23 = vadd.f32 %v2999_v49, %v2937_v13  ;;  %v3068_v54 = vadd.f32 %v3067_v63, %v3037_v50 }
 0x224   : > { %v3001_v14 = vadd.f32 %v3000_v23, %v2938_v10  ;;  %v3069_v40 = vadd.f32 %v3068_v54, %v3038_v8 }
 0x226   : > { %v3002_v42 = vrot.slane %v3001_v14, 4  ;;  %v3070_v39 = vadd.f32 %v3069_v40, %v3039_v11 }
 0x228   : > { %v3003_v24 = vadd.f32 %v3002_v42, %v3001_v14  ;;  %v3071_v2 = vrot.slane %v3070_v39, 4 }
 0x22a   : > { %v3004_v17 = vrot.slane %v3003_v24, 2  ;;  %v3072_v37 = vadd.f32 %v3071_v2, %v3070_v39 }
 0x22c   : > { %v3005_v53 = vadd.f32 %v3004_v17, %v3003_v24  ;;  %v3073_v21 = vrot.slane %v3072_v37, 2 }
 0x22e   : > { %v3006_v29 = vrot.slane %v3005_v53, 1  ;;  %v3074_v45 = vadd.f32 %v3073_v21, %v3072_v37 }
 0x230   : > { %v3075_v62 = vrot.slane %v3074_v45, 1  ;;  %v3007_v35 = vadd.f32 %v3006_v29, %v3005_v53 }
 0x232   : > { %v3076_v47 = vadd.f32 %v3075_v62, %v3074_v45 }
 0x234   : > { %v3078_v1 = vsel %vm3077_vm0, %v3007_v35, %v3076_v47 }
 0x235   : > { %v3080_v36 = vsel %vm3079_vm1, %v3078_v1, 0.0 }
 0x236   : > { %3081 = vst [vmem:[%s208_s14] sm:$0xff] %v3080_v36 }
 0x237 PF: > { %s15_s15 = sadd.s32 1, %s4700_s15  }
 0x238   : > { %p12_p4 = scmp.ge.s32.totalorder %s15_s15, 4  }
 0x23a   :  { %14 = sbr.rel (!%p12_p4) target bundleno = 1 (0x1), region = 84 }

// kernel: middle_layer_forward.4
= control target key start
LH: loop header
LB: loop body
LE: loop exit
PB: predicated region body
PF: predicated region fallthrough
CT: control target
= control target key end

     0   :  { %s4845_s21 = smov 0   ;;  %s6476_s0 = inlined_call_operand.vmem [shape: f32[2,256,128], index: 0, kind: input, shape index: {}]   ;;  %s6477_s1 = inlined_call_operand.vmem [shape: f32[1,128], index: 1, kind: input, shape index: {}]   ;;  %s6478_s2 = inlined_call_operand.vmem [shape: f32[1,128], index: 2, kind: input, shape index: {}]   ;;  %s6479_s3 = inlined_call_operand.vmem [shape: f32[9,128,128], index: 3, kind: input, shape index: {}]   ;;  %s6480_s4 = inlined_call_operand.vmem [shape: f32[1,128], index: 4, kind: input, shape index: {}]   ;;  %s6481_s5 = inlined_call_operand.vmem [shape: f32[2,256,128], index: 5, kind: output, shape index: {0}]   ;;  %s6482_s6 = inlined_call_operand.vmem [shape: f32[2,8,128], index: 6, kind: output, shape index: {1}]  }
   0x1 LB: > { %s3454_s22 = sadd.s32 4294967295, %s4807_s21   ;;  %p3458_p0 = scmp.ge.s32.totalorder %s4807_s21, 1  ;;  %s4807_s21 = sphi %s4845_s21, %s17_s21  }
   0x2   : > { %p215_p1 = scmp.lt.s32.totalorder %s4807_s21, 3 }
   0x4   : > { %p216_p2 = pnand %p3458_p0, %p215_p1 }
   0x6   : > { %219 = sbr.rel (%p216_p2) target bundleno = 603 (0x25b), region = 40 }
   0xb   : > { %p249_p3 = scmp.lt.s32.totalorder %s3454_s22, 1  ;;  %p3464_p4 = scmp.ne.s32.totalorder %s3454_s22, 0 }
   0xd   : > { %s250_s23 = scalar_select %p249_p3, %s3454_s22, 1 }
   0xe   : > { %266 = sbr.rel (%p3464_p4) target bundleno = 47 (0x2f), region = 44 }
   0xf   : > { %s3598_s24 = sshll.u32 %s250_s23, 8  ;;  %s3463_s25 = sshll.u32 %s250_s23, 3 }
  0x10   : > { %s4856_s28 = scalar_lea.vmem %s6476_s0, %s3598_s24  ;;  %s4861_s7 = scalar_lea.vmem %s6481_s5, %s3598_s24 }
  0x11   : > { %s4866_s10 = scalar_lea.vmem %s6482_s6, %s3463_s25 }
  0x13   : > { %v4809_v0 = vmov 0.0  }
  0x14   : > { %267 = vst [vmem:[#allocation2] sm:$0xff] %v4809_v0  ;;  %268 = vst [vmem:[#allocation2 + $0x8] sm:$0xff] %v4809_v0 }
  0x15   : > { %269 = vst [vmem:[#allocation2 + $0x10] sm:$0x3] %v4809_v0  ;;  %270 = vst [vmem:[#allocation2 + $0x18] sm:$0xff] %v4809_v0 }
  0x16   : > { %271 = vst [vmem:[#allocation2 + $0x20] sm:$0xff] %v4809_v0  ;;  %272 = vst [vmem:[#allocation2 + $0x28] sm:$0x3] %v4809_v0 }
  0x17   : > { %273 = vst [vmem:[#allocation2 + $0x30] sm:$0xff] %v4809_v0  ;;  %274 = vst [vmem:[#allocation2 + $0x38] sm:$0xff] %v4809_v0 }
  0x18   : > { %275 = vst [vmem:[#allocation2 + $0x40] sm:$0x3] %v4809_v0  ;;  %276 = vst [vmem:[#allocation2 + $0x48] sm:$0xff] %v4809_v0 }
  0x19   : > { %277 = vst [vmem:[#allocation2 + $0x50] sm:$0xff] %v4809_v0  ;;  %278 = vst [vmem:[#allocation2 + $0x58] sm:$0x3] %v4809_v0 }
  0x1a   : > { %279 = vst [vmem:[#allocation2 + $0x60] sm:$0xff] %v4809_v0  ;;  %280 = vst [vmem:[#allocation2 + $0x68] sm:$0xff] %v4809_v0 }
  0x1b   : > { %281 = vst [vmem:[#allocation2 + $0x70] sm:$0x3] %v4809_v0  ;;  %282 = vst [vmem:[#allocation2 + $0x78] sm:$0xff] %v4809_v0 }
  0x1c   : > { %283 = vst [vmem:[#allocation2 + $0x80] sm:$0xff] %v4809_v0  ;;  %284 = vst [vmem:[#allocation2 + $0x88] sm:$0x3] %v4809_v0 }
  0x1d   : > { %285 = vst [vmem:[#allocation2 + $0x90] sm:$0xff] %v4809_v0  ;;  %286 = vst [vmem:[#allocation2 + $0x98] sm:$0xff] %v4809_v0 }
  0x1e   : > { %287 = vst [vmem:[#allocation2 + $0xa0] sm:$0x3] %v4809_v0  ;;  %288 = vst [vmem:[#allocation2 + $0xa8] sm:$0xff] %v4809_v0 }
  0x1f   : > { %289 = vst [vmem:[#allocation2 + $0xb0] sm:$0xff] %v4809_v0  ;;  %290 = vst [vmem:[#allocation2 + $0xb8] sm:$0x3] %v4809_v0 }
  0x20   : > { %291 = vst [vmem:[#allocation2 + $0xc0] sm:$0xff] %v4809_v0  ;;  %292 = vst [vmem:[#allocation2 + $0xc8] sm:$0xff] %v4809_v0 }
  0x21   : > { %293 = vst [vmem:[#allocation2 + $0xd0] sm:$0x3] %v4809_v0  ;;  %294 = vst [vmem:[#allocation2 + $0xd8] sm:$0xff] %v4809_v0 }
  0x22   : > { %295 = vst [vmem:[#allocation2 + $0xe0] sm:$0xff] %v4809_v0  ;;  %296 = vst [vmem:[#allocation2 + $0xe8] sm:$0x3] %v4809_v0 }
  0x23   : > { %297 = vst [vmem:[#allocation2 + $0xf0] sm:$0xff] %v4809_v0  ;;  %298 = vst [vmem:[#allocation2 + $0xf8] sm:$0xff] %v4809_v0 }
  0x24   : > { %299 = vst [vmem:[#allocation2 + $0x100] sm:$0x3] %v4809_v0  ;;  %300 = vst [vmem:[#allocation2 + $0x108] sm:$0xff] %v4809_v0 }
  0x25   : > { %301 = vst [vmem:[#allocation2 + $0x110] sm:$0xff] %v4809_v0  ;;  %302 = vst [vmem:[#allocation2 + $0x118] sm:$0x3] %v4809_v0 }
  0x26   : > { %303 = vst [vmem:[#allocation2 + $0x120] sm:$0xff] %v4809_v0  ;;  %304 = vst [vmem:[#allocation2 + $0x128] sm:$0xff] %v4809_v0 }
  0x27   : > { %305 = vst [vmem:[#allocation2 + $0x130] sm:$0x3] %v4809_v0  ;;  %306 = vst [vmem:[#allocation2 + $0x138] sm:$0xff] %v4809_v0 }
  0x28   : > { %307 = vst [vmem:[#allocation2 + $0x140] sm:$0xff] %v4809_v0  ;;  %308 = vst [vmem:[#allocation2 + $0x148] sm:$0x3] %v4809_v0 }
  0x29   : > { %309 = vst [vmem:[#allocation2 + $0x150] sm:$0xff] %v4809_v0  ;;  %310 = vst [vmem:[#allocation2 + $0x158] sm:$0xff] %v4809_v0 }
  0x2a   : > { %311 = vst [vmem:[#allocation2 + $0x160] sm:$0x3] %v4809_v0  ;;  %312 = vst [vmem:[#allocation2 + $0x168] sm:$0xff] %v4809_v0 }
  0x2b   : > { %313 = vst [vmem:[#allocation2 + $0x170] sm:$0xff] %v4809_v0  ;;  %314 = vst [vmem:[#allocation2 + $0x178] sm:$0x3] %v4809_v0 }
  0x2c   : > { %315 = vst [vmem:[#allocation2 + $0x180] sm:$0xff] %v4809_v0  ;;  %316 = vst [vmem:[#allocation2 + $0x188] sm:$0xff] %v4809_v0 }
  0x2d   : > { %317 = vst [vmem:[#allocation2 + $0x190] sm:$0x3] %v4809_v0  ;;  %318 = vst [vmem:[#allocation2 + $0x198] sm:$0xff] %v4809_v0 }
  0x2e   : > { %319 = vst [vmem:[#allocation2 + $0x1a0] sm:$0xff] %v4809_v0  ;;  %320 = vst [vmem:[#allocation2 + $0x1a8] sm:$0x3] %v4809_v0 }
  0x2f PF: > { %v3482_v1 = vld [vmem:[%s6479_s3 + $0xf8] sm:$0xff]  ;;  %v3481_v2 = vld [vmem:[%s6479_s3 + $0xf0] sm:$0xff]  ;;  %v3480_v3 = vld [vmem:[%s6479_s3 + $0xe8] sm:$0xff]  ;;  %vm3363_vm0 = vcmask 1040384   ;;  %vm3365_vm1 = vcmask 1041408  }
  0x30   : > { %4752 = vmatprep.subr.mxu1 %v3482_v1  ;;  %4032 = vmatprep.subr.mxu0 %v3482_v1  ;;  %v3479_v4 = vld [vmem:[%s6479_s3 + $0xe0] sm:$0xff]  ;;  %v335_v5 = vld [vmem:[%s4856_s28 + $0x70] sm:$0xff]  ;;  %v3478_v7 = vld [vmem:[%s6479_s3 + $0xd8] sm:$0xff] }
  0x31   : > { %4768 = vmatpush3.msra.mxu1 %v3482_v1  ;;  %4033 = vmatpush3.msra.mxu0 %v3482_v1  ;;  %v4884_v6 = vld [vmem:[%s6477_s1] ss:$0 sm:$0xff]  ;;  %v336_v10 = vld [vmem:[%s4856_s28 + $0x78] sm:$0xff]  ;;  %v3477_v12 = vld [vmem:[%s6479_s3 + $0xd0] sm:$0xff] }
  0x32   : > { %4753 = vmatprep.subr.mxu1 %v3481_v2  ;;  %4034 = vmatprep.subr.mxu0 %v3481_v2  ;;  %v374_v8 = vmul.f32 %v4884_v6, %v335_v5  ;;  %v4893_v9 = vld [vmem:[%s6478_s2] ss:$0 sm:$0xff]  ;;  %v375_v11 = vmul.f32 %v4884_v6, %v336_v10  ;;  %v338_v18 = vld [vmem:[%s4856_s28 + $0x88] sm:$0xff]  ;;  %v339_v27 = vld [vmem:[%s4856_s28 + $0x90] sm:$0xff] }
  0x33   : > { %4769 = vmatpush3.msra.mxu1 %v3481_v2  ;;  %4035 = vmatpush3.msra.mxu0 %v3481_v2  ;;  %v337_v14 = vld [vmem:[%s4856_s28 + $0x80] sm:$0xff]  ;;  %v3476_v19 = vld [vmem:[%s6479_s3 + $0xc8] sm:$0xff]  ;;  %v377_v22 = vmul.f32 %v4884_v6, %v338_v18  ;;  %v323_v28 = vld [vmem:[%s4856_s28 + $0x10] sm:$0xff]  ;;  %v378_v32 = vmul.f32 %v4884_v6, %v339_v27 }
  0x34   : > { %4754 = vmatprep.subr.mxu1 %v3480_v3  ;;  %4036 = vmatprep.subr.mxu0 %v3480_v3  ;;  %v4901_v13 = vadd.f32 %v4893_v9, %v374_v8  ;;  %v4905_v15 = vadd.f32 %v4893_v9, %v375_v11  ;;  %v376_v16 = vmul.f32 %v4884_v6, %v337_v14  ;;  %v321_v17 = vld [vmem:[%s4856_s28] sm:$0xff]  ;;  %v322_v23 = vld [vmem:[%s4856_s28 + $0x8] sm:$0xff]  ;;  %v340_v33 = vld [vmem:[%s4856_s28 + $0x98] sm:$0xff] }
  0x35   : > { %4770 = vmatpush3.msra.mxu1 %v3480_v3  ;;  %4037 = vmatpush3.msra.mxu0 %v3480_v3  ;;  %v360_v21 = vmul.f32 %v4884_v6, %v321_v17  ;;  %v361_v26 = vmul.f32 %v4884_v6, %v322_v23  ;;  %v3475_v29 = vld [vmem:[%s6479_s3 + $0xc0] sm:$0xff]  ;;  %v4933_v31 = vadd.f32 %v4893_v9, %v377_v22  ;;  %v324_v34 = vld [vmem:[%s4856_s28 + $0x18] sm:$0xff]  ;;  %v342_v46 = vld [vmem:[%s4856_s28 + $0xa8] sm:$0xff] }
  0x36   : > { %4755 = vmatprep.subr.mxu1 %v3479_v4  ;;  %4038 = vmatprep.subr.mxu0 %v3479_v4  ;;  %v445_v20 = vmax.f32 %v4901_v13, 0.0  ;;  %v446_v24 = vmax.f32 %v4905_v15, 0.0  ;;  %v4919_v25 = vadd.f32 %v4893_v9, %v376_v16  ;;  %v362_v37 = vmul.f32 %v4884_v6, %v323_v28  ;;  %v341_v39 = vld [vmem:[%s4856_s28 + $0xa0] sm:$0xff]  ;;  %v3474_v40 = vld [vmem:[%s6479_s3 + $0xb8] sm:$0xff]  ;;  %v326_v51 = vld [vmem:[%s4856_s28 + $0x28] sm:$0xff] }
  0x37   : > { %4771 = vmatpush3.msra.mxu1 %v3479_v4  ;;  %4039 = vmatpush3.msra.mxu0 %v3479_v4  ;;  %v4930_v30 = vadd.f32 %v4893_v9, %v360_v21  ;;  %v400_v36 = vadd.f32 %v4893_v9, %v361_v26  ;;  %v379_v38 = vmul.f32 %v4884_v6, %v340_v33  ;;  %v448_v42 = vmax.f32 %v4933_v31, 0.0  ;;  %v325_v45 = vld [vmem:[%s4856_s28 + $0x20] sm:$0xff]  ;;  %v3473_v52 = vld [vmem:[%s6479_s3 + $0xb0] sm:$0xff]  ;;  %v344_v63 = vld [vmem:[%s4856_s28 + $0xb8] sm:$0xff] }
  0x38   : > { %4756 = vmatprep.subr.mxu1 %v3478_v7  ;;  %4040 = vmatprep.subr.mxu0 %v3478_v7  ;;  %478 = vst [vmem:[#allocation2 + $0xc1] sm:$0xff] %v445_v20  ;;  %479 = vst [vmem:[#allocation2 + $0xc9] sm:$0xff] %v446_v24  ;;  %v447_v35 = vmax.f32 %v4919_v25, 0.0  ;;  %v4951_v43 = vadd.f32 %v4893_v9, %v378_v32  ;;  %v363_v44 = vmul.f32 %v4884_v6, %v324_v34  ;;  %v343_v57 = vld [vmem:[%s4856_s28 + $0xb0] sm:$0xff]  ;;  %v3472_v0 = vld [vmem:[%s6479_s3 + $0xa8] sm:$0xff] }
  0x39   : > { %4772 = vmatpush3.msra.mxu1 %v3478_v7  ;;  %4041 = vmatpush3.msra.mxu0 %v3478_v7  ;;  %v431_v41 = vmax.f32 %v4930_v30, 0.0  ;;  %v4958_v47 = vmax.f32 %v400_v36, 0.0  ;;  %v401_v48 = vadd.f32 %v4893_v9, %v362_v37  ;;  %v4962_v49 = vadd.f32 %v4893_v9, %v379_v38  ;;  %481 = vst [vmem:[#allocation2 + $0xe1] sm:$0xff] %v448_v42  ;;  %v327_v62 = vld [vmem:[%s4856_s28 + $0x30] sm:$0xff]  ;;  %v328_v5 = vld [vmem:[%s4856_s28 + $0x38] sm:$0xff]  ;;  %v329_v14 = vld [vmem:[%s4856_s28 + $0x40] sm:$0xff] }
  0x3a   : > { %4757 = vmatprep.subr.mxu1 %v3477_v12  ;;  %4042 = vmatprep.subr.mxu0 %v3477_v12  ;;  %480 = vst [vmem:[#allocation2 + $0xd9] sm:$0xff] %v447_v35  ;;  %v380_v50 = vmul.f32 %v4884_v6, %v341_v39  ;;  %v449_v53 = vmax.f32 %v4951_v43, 0.0  ;;  %v402_v54 = vadd.f32 %v4893_v9, %v363_v44  ;;  %v3471_v16 = vld [vmem:[%s6479_s3 + $0xa0] sm:$0xff]  ;;  %v346_v22 = vld [vmem:[%s4856_s28 + $0xc8] sm:$0xff]  ;;  %v347_v32 = vld [vmem:[%s4856_s28 + $0xd0] sm:$0xff] }
  0x3b   : > { %4773 = vmatpush3.msra.mxu1 %v3477_v12  ;;  %4043 = vmatpush3.msra.mxu0 %v3477_v12  ;;  %464 = vst [vmem:[#allocation2 + $0x19] sm:$0xff] %v431_v41  ;;  %v364_v55 = vmul.f32 %v4884_v6, %v325_v45  ;;  %v381_v56 = vmul.f32 %v4884_v6, %v342_v46  ;;  %465 = vst [vmem:[#allocation2 + $0x21] sm:$0xff] %v4958_v47  ;;  %v4979_v58 = vmax.f32 %v401_v48, 0.0  ;;  %v345_v12 = vld [vmem:[%s4856_s28 + $0xc0] sm:$0xff]  ;;  %v330_v23 = vld [vmem:[%s4856_s28 + $0x48] sm:$0xff] }
  0x3c   : > { %4758 = vmatprep.subr.mxu1 %v3476_v19  ;;  %4044 = vmatprep.subr.mxu0 %v3476_v19  ;;  %v450_v59 = vmax.f32 %v4962_v49, 0.0  ;;  %v4983_v60 = vadd.f32 %v4893_v9, %v380_v50  ;;  %v365_v61 = vmul.f32 %v4884_v6, %v326_v51  ;;  %482 = vst [vmem:[#allocation2 + $0xf1] sm:$0xff] %v449_v53  ;;  %v4993_v1 = vmax.f32 %v402_v54, 0.0  ;;  %v3470_v33 = vld [vmem:[%s6479_s3 + $0x98] sm:$0xff]  ;;  %v331_v39 = vld [vmem:[%s4856_s28 + $0x50] sm:$0xff]  ;;  %v541_v15 = vld [vmem:[%s6479_s3 + $0x68] sm:$0xff] }
  0x3d   : > { %4774 = vmatpush3.msra.mxu1 %v3476_v19  ;;  %4045 = vmatpush3.msra.mxu0 %v3476_v19  ;;  %v403_v2 = vadd.f32 %v4893_v9, %v364_v55  ;;  %v4997_v3 = vadd.f32 %v4893_v9, %v381_v56  ;;  %v382_v4 = vmul.f32 %v4884_v6, %v343_v57  ;;  %v332_v50 = vld [vmem:[%s4856_s28 + $0x58] sm:$0xff]  ;;  %v3469_v51 = vld [vmem:[%s6479_s3 + $0x90] sm:$0xff]  ;;  %v349_v57 = vld [vmem:[%s4856_s28 + $0xe0] sm:$0xff] }
  0x3e   : > { %4759 = vmatprep.subr.mxu1 %v3475_v29  ;;  %4046 = vmatprep.subr.mxu0 %v3475_v29  ;;  %466 = vst [vmem:[#allocation2 + $0x31] sm:$0xff] %v4979_v58  ;;  %483 = vst [vmem:[#allocation2 + $0xf9] sm:$0xff] %v450_v59  ;;  %v451_v7 = vmax.f32 %v4983_v60, 0.0  ;;  %v404_v8 = vadd.f32 %v4893_v9, %v365_v61  ;;  %v366_v10 = vmul.f32 %v4884_v6, %v327_v62  ;;  %v540_v25 = vld [vmem:[%s6479_s3 + $0x60] sm:$0xff]  ;;  %v539_v31 = vld [vmem:[%s6479_s3 + $0x58] sm:$0xff] }
  0x3f   : > { %4775 = vmatpush3.msra.mxu1 %v3475_v29  ;;  %4047 = vmatpush3.msra.mxu0 %v3475_v29  ;;  %v383_v11 = vmul.f32 %v4884_v6, %v344_v63  ;;  %467 = vst [vmem:[#allocation2 + $0x39] sm:$0xff] %v4993_v1  ;;  %v5014_v17 = vmax.f32 %v403_v2, 0.0  ;;  %v452_v18 = vmax.f32 %v4997_v3, 0.0  ;;  %v5018_v19 = vadd.f32 %v4893_v9, %v382_v4  ;;  %v333_v2 = vld [vmem:[%s4856_s28 + $0x60] sm:$0xff]  ;;  %v350_v4 = vld [vmem:[%s4856_s28 + $0xe8] sm:$0xff]  ;;  %v535_v60 = vld [vmem:[%s6479_s3 + $0x38] sm:$0xff] }
  0x40   : > { %4760 = vmatprep.subr.mxu1 %v3474_v40  ;;  %4048 = vmatprep.subr.mxu0 %v3474_v40  ;;  %v367_v21 = vmul.f32 %v4884_v6, %v328_v5  ;;  %484 = vst [vmem:[#allocation2 + $0x109] sm:$0xff] %v451_v7  ;;  %v5025_v26 = vmax.f32 %v404_v8, 0.0  ;;  %v405_v27 = vadd.f32 %v4893_v9, %v366_v10  ;;  %v3468_v5 = vld [vmem:[%s6479_s3 + $0x88] sm:$0xff]  ;;  %v3495_v30 = vld [vmem:[%s6479_s3 + $0x160] sm:$0xff]  ;;  %v3490_v3 = vld [vmem:[%s6479_s3 + $0x138] sm:$0xff] }
  0x41   : > { %4776 = vmatpush3.msra.mxu1 %v3474_v40  ;;  %4049 = vmatpush3.msra.mxu0 %v3474_v40  ;;  %v5029_v28 = vadd.f32 %v4893_v9, %v383_v11  ;;  %v384_v29 = vmul.f32 %v4884_v6, %v345_v12  ;;  %468 = vst [vmem:[#allocation2 + $0x49] sm:$0xff] %v5014_v17  ;;  %485 = vst [vmem:[#allocation2 + $0x111] sm:$0xff] %v452_v18  ;;  %v453_v34 = vmax.f32 %v5018_v19, 0.0  ;;  %v348_v40 = vld [vmem:[%s4856_s28 + $0xd8] sm:$0xff]  ;;  %v537_v43 = vld [vmem:[%s6479_s3 + $0x48] sm:$0xff] }
  0x42   : > { %4761 = vmatprep.subr.mxu1 %v3473_v52  ;;  %4050 = vmatprep.subr.mxu0 %v3473_v52  ;;  %v406_v36 = vadd.f32 %v4893_v9, %v367_v21  ;;  %v368_v37 = vmul.f32 %v4884_v6, %v329_v14  ;;  %v385_v38 = vmul.f32 %v4884_v6, %v346_v22  ;;  %v5046_v44 = vmax.f32 %v405_v27, 0.0  ;;  %v334_v14 = vld [vmem:[%s4856_s28 + $0x68] sm:$0xff]  ;;  %v3467_v27 = vld [vmem:[%s6479_s3 + $0x80] sm:$0xff] }
  0x43   : > { %4777 = vmatpush3.msra.mxu1 %v3473_v52  ;;  %4051 = vmatpush3.msra.mxu0 %v3473_v52  ;;  %469 = vst [vmem:[#allocation2 + $0x51] sm:$0xff] %v5025_v26  ;;  %v454_v45 = vmax.f32 %v5029_v28, 0.0  ;;  %v5050_v46 = vadd.f32 %v4893_v9, %v384_v29  ;;  %v369_v48 = vmul.f32 %v4884_v6, %v330_v23  ;;  %486 = vst [vmem:[#allocation2 + $0x121] sm:$0xff] %v453_v34  ;;  %v3492_v49 = vld [vmem:[%s6479_s3 + $0x148] sm:$0xff] }
  0x44   : > { %4762 = vmatprep.subr.mxu1 %v3472_v0  ;;  %4052 = vmatprep.subr.mxu0 %v3472_v0  ;;  %v5059_v52 = vmax.f32 %v406_v36, 0.0  ;;  %v407_v54 = vadd.f32 %v4893_v9, %v368_v37  ;;  %v5063_v55 = vadd.f32 %v4893_v9, %v385_v38  ;;  %v386_v56 = vmul.f32 %v4884_v6, %v347_v32  ;;  %v533_v19 = vld [vmem:[%s6479_s3 + $0x28] sm:$0xff] }
  0x45   : > { %4778 = vmatpush3.msra.mxu1 %v3472_v0  ;;  %4053 = vmatpush3.msra.mxu0 %v3472_v0  ;;  %470 = vst [vmem:[#allocation2 + $0x61] sm:$0xff] %v5046_v44  ;;  %487 = vst [vmem:[#allocation2 + $0x129] sm:$0xff] %v454_v45  ;;  %v455_v61 = vmax.f32 %v5050_v46, 0.0  ;;  %v408_v62 = vadd.f32 %v4893_v9, %v369_v48  ;;  %v370_v63 = vmul.f32 %v4884_v6, %v331_v39  ;;  %v544_v48 = vld [vmem:[#allocation2 + $0x1] sm:$0xff]  ;;  %v531_v46 = vld [vmem:[%s6479_s3 + $0x18] sm:$0xff] }
  0x46   : > { %4763 = vmatprep.subr.mxu1 %v3471_v16  ;;  %4054 = vmatprep.subr.mxu0 %v3471_v16  ;;  %v387_v0 = vmul.f32 %v4884_v6, %v348_v40  ;;  %471 = vst [vmem:[#allocation2 + $0x69] sm:$0xff] %v5059_v52  ;;  %v5080_v8 = vmax.f32 %v407_v54, 0.0  ;;  %v456_v10 = vmax.f32 %v5063_v55, 0.0  ;;  %v5084_v11 = vadd.f32 %v4893_v9, %v386_v56  ;;  %v543_v56 = vld [vmem:[%s6479_s3 + $0x78] sm:$0xff]  ;;  %v3488_v28 = vld [vmem:[%s6479_s3 + $0x128] sm:$0xff] }
  0x47   : > { %4779 = vmatpush3.msra.mxu1 %v3471_v16  ;;  %4055 = vmatpush3.msra.mxu0 %v3471_v16  ;;  %v371_v12 = vmul.f32 %v4884_v6, %v332_v50  ;;  %488 = vst [vmem:[#allocation2 + $0x139] sm:$0xff] %v455_v61  ;;  %v5090_v16 = vmax.f32 %v408_v62, 0.0  ;;  %v409_v21 = vadd.f32 %v4893_v9, %v370_v63  ;;  %v545_v63 = vld [vmem:[#allocation2 + $0x9] sm:$0xff]  ;;  %v3486_v55 = vld [vmem:[%s6479_s3 + $0x118] sm:$0xff] }
  0x48   : > { %4764 = vmatprep.subr.mxu1 %v3470_v33  ;;  %4056 = vmatprep.subr.mxu0 %v3470_v33  ;;  %v5094_v22 = vadd.f32 %v4893_v9, %v387_v0  ;;  %v388_v23 = vmul.f32 %v4884_v6, %v349_v57  ;;  %472 = vst [vmem:[#allocation2 + $0x79] sm:$0xff] %v5080_v8  ;;  %489 = vst [vmem:[#allocation2 + $0x141] sm:$0xff] %v456_v10  ;;  %v457_v29 = vmax.f32 %v5084_v11, 0.0  ;;  %v351_v11 = vld [vmem:[%s4856_s28 + $0xf0] sm:$0xff] }
  0x49   : > { %4780 = vmatpush3.msra.mxu1 %v3470_v33  ;;  %4057 = vmatpush3.msra.mxu0 %v3470_v33  ;;  %v410_v32 = vadd.f32 %v4893_v9, %v371_v12  ;;  %v372_v33 = vmul.f32 %v4884_v6, %v333_v2  ;;  %v389_v36 = vmul.f32 %v4884_v6, %v350_v4  ;;  %v5108_v37 = vmax.f32 %v409_v21, 0.0  ;;  %v3498_v4 = vld [vmem:[%s6479_s3 + $0x178] sm:$0xff] }
  0x4a   : > { %4765 = vmatprep.subr.mxu1 %v3469_v51  ;;  %4058 = vmatprep.subr.mxu0 %v3469_v51  ;;  %473 = vst [vmem:[#allocation2 + $0x81] sm:$0xff] %v5090_v16  ;;  %v458_v38 = vmax.f32 %v5094_v22, 0.0  ;;  %v5112_v39 = vadd.f32 %v4893_v9, %v388_v23  ;;  %v373_v40 = vmul.f32 %v4884_v6, %v334_v14  ;;  %490 = vst [vmem:[#allocation2 + $0x151] sm:$0xff] %v457_v29  ;;  %v352_v12 = vld [vmem:[%s4856_s28 + $0xf8] sm:$0xff]  ;;  %v529_v14 = vld [vmem:[%s6479_s3 + $0x8] sm:$0xff] }
  0x4b   : > { %4781 = vmatpush3.msra.mxu1 %v3469_v51  ;;  %4059 = vmatpush3.msra.mxu0 %v3469_v51  ;;  %v5117_v50 = vmax.f32 %v410_v32, 0.0  ;;  %v411_v51 = vadd.f32 %v4893_v9, %v372_v33  ;;  %v5121_v54 = vadd.f32 %v4893_v9, %v389_v36  ;;  %474 = vst [vmem:[#allocation2 + $0x91] sm:$0xff] %v5108_v37  ;;  %v3484_v23 = vld [vmem:[%s6479_s3 + $0x108] sm:$0xff]  ;;  %v496_v32 = vld [vmem:[#allocation2] sm:$0xff] }
  0x4c   : > { %4766 = vmatprep.subr.mxu1 %v3468_v5  ;;  %4060 = vmatprep.subr.mxu0 %v3468_v5  ;;  %491 = vst [vmem:[#allocation2 + $0x159] sm:$0xff] %v458_v38  ;;  %v459_v57 = vmax.f32 %v5112_v39, 0.0  ;;  %v412_v62 = vadd.f32 %v4893_v9, %v373_v40  ;;  %v390_v21 = vmul.f32 %v4884_v6, %v351_v11  ;;  %v3483_v33 = vld [vmem:[%s6479_s3 + $0x100] sm:$0xff]  ;;  %v497_v39 = vld [vmem:[#allocation2 + $0x8] sm:$0xff]  ;;  %v3514_v40 = vld [vmem:[%s6479_s3 + $0x1f8] sm:$0xff] }
  0x4d   : > { %4782 = vmatpush3.msra.mxu1 %v3468_v5  ;;  %4061 = vmatpush3.msra.mxu0 %v3468_v5  ;;  %475 = vst [vmem:[#allocation2 + $0x99] sm:$0xff] %v5117_v50  ;;  %v5134_v0 = vmax.f32 %v411_v51, 0.0  ;;  %v460_v2 = vmax.f32 %v5121_v54, 0.0  ;;  %v542_v5 = vld [vmem:[%s6479_s3 + $0x70] sm:$0xff]  ;;  %v391_v22 = vmul.f32 %v4884_v6, %v352_v12  ;;  %v3530_v51 = vld [vmem:[%s6479_s3 + $0x278] sm:$0xff]  ;;  %v3508_v11 = vld [vmem:[%s6479_s3 + $0x1c8] sm:$0xff] }
  0x4e   : > { %4767 = vmatprep.subr.mxu1 %v3467_v27  ;;  %4062 = vmatprep.subr.mxu0 %v3467_v27  ;;  %492 = vst [vmem:[#allocation2 + $0x169] sm:$0xff] %v459_v57  ;;  %v5145_v13 = vmax.f32 %v412_v62, 0.0  ;;  %v5305_v54 = vld [vmem:[#allocation2 + $0x18] sm:$0xff]  ;;  %v3513_v62 = vld [vmem:[%s6479_s3 + $0x1f0] sm:$0xff] }
  0x4f   : > { %4783 = vmatpush3.msra.mxu1 %v3467_v27  ;;  %4088 = vmatprep.mubr.f32.mxu1 %v445_v20  ;;  %476 = vst [vmem:[#allocation2 + $0xa9] sm:$0xff] %v5134_v0  ;;  %493 = vst [vmem:[#allocation2 + $0x171] sm:$0xff] %v460_v2  ;;  %v3497_v20 = vld [vmem:[%s6479_s3 + $0x170] sm:$0xff]  ;;  %v5287_v6 = vadd.f32 %v4893_v9, %v391_v22 }
  0x50   : > { %4063 = vmatpush3.msra.mxu0 %v3467_v27  ;;  %4064 = vmatprep.mubr.f32.mxu0 %v544_v48  ;;  %477 = vst [vmem:[#allocation2 + $0xb1] sm:$0xff] %v5145_v13  ;;  %v528_v27 = vld [vmem:[%s6479_s3] sm:$0xff]  ;;  %v1044_v48 = vld [vmem:[#allocation2 + $0xa] sm:$0xff] }
  0x51   : > { %4089 = vmatmul.mubr.f32.vlgmr.msra.gmra.mxu1 %v446_v24  ;;  %4112 = vmatprep.subr.mxu1 %v543_v56  ;;  %v3496_v24 = vld [vmem:[%s6479_s3 + $0x168] sm:$0xff] }
  0x52   : > { %4065 = vmatmul.mubr.f32.vlgmr.msra.gmra.mxu0 %v545_v63  ;;  %4113 = vmatpush3.msra.mxu1 %v543_v56  ;;  %v5307_v56 = vld [vmem:[#allocation2 + $0x20] sm:$0xff] }
  0x53   : > { %4192 = vmatprep.subr.mxu0 %v3498_v4  ;;  %4114 = vmatprep.subr.mxu1 %v542_v5  ;;  %v5315_v63 = vld [vmem:[#allocation2 + $0x22] sm:$0xff] }
  0x54   : > { %4193 = vmatpush3.msra.mxu0 %v3498_v4  ;;  %4091 = vmatprep.mubr.f32.mxu1 %v447_v35  ;;  %v3494_v35 = vld [vmem:[%s6479_s3 + $0x158] sm:$0xff]  ;;  %v5321_v4 = vld [vmem:[#allocation2 + $0x30] sm:$0xff] }
  0x55   : > { %4115 = vmatpush3.msra.mxu1 %v542_v5  ;;  %4194 = vmatprep.subr.mxu0 %v3497_v20  ;;  %v5324_v5 = vld [vmem:[#allocation2 + $0x38] sm:$0xff] }
  0x56   : > { %4067 = vmatprep.mubr.f32.mxu0 %v431_v41  ;;  %4092 = vmatmul.mubr.f32.gmra.mxu1 %v448_v42  ;;  %v538_v41 = vld [vmem:[%s6479_s3 + $0x50] sm:$0xff]  ;;  %v5405_v12 = vld [vmem:[#allocation2 + $0x9a] sm:$0xff] }
  0x57   : > { %4116 = vmatprep.subr.mxu1 %v541_v15  ;;  %4195 = vmatpush3.msra.mxu0 %v3497_v20  ;;  %v3493_v42 = vld [vmem:[%s6479_s3 + $0x150] sm:$0xff] }
  0x58   : > { %4068 = vmatmul.mubr.f32.gmra.mxu0 %v4958_v47  ;;  %4117 = vmatpush3.msra.mxu1 %v541_v15  ;;  %v5327_v20 = vld [vmem:[#allocation2 + $0x32] sm:$0xff]  ;;  %v3512_v15 = vld [vmem:[%s6479_s3 + $0x1e8] sm:$0xff] }
  0x59   : > { %4196 = vmatprep.subr.mxu0 %v3496_v24  ;;  %4118 = vmatprep.subr.mxu1 %v540_v25  ;;  %v5414_v22 = vld [vmem:[#allocation2 + $0xb0] sm:$0xff] }
  0x5a   : > { %4197 = vmatpush3.msra.mxu0 %v3496_v24  ;;  %4094 = vmatprep.mubr.f32.mxu1 %v449_v53  ;;  %v536_v53 = vld [vmem:[%s6479_s3 + $0x40] sm:$0xff] }
  0x5b   : > { %4119 = vmatpush3.msra.mxu1 %v540_v25  ;;  %4198 = vmatprep.subr.mxu0 %v3495_v30  ;;  %v5333_v24 = vld [vmem:[#allocation2 + $0x3a] sm:$0xff]  ;;  %v3528_v25 = vld [vmem:[%s6479_s3 + $0x268] sm:$0xff] }
  0x5c   : > { %4070 = vmatprep.mubr.f32.mxu0 %v4979_v58  ;;  %4095 = vmatmul.mubr.f32.gmra.mxu1 %v450_v59  ;;  %v3491_v59 = vld [vmem:[%s6479_s3 + $0x140] sm:$0xff] }
  0x5d   : > { %4120 = vmatprep.subr.mxu1 %v539_v31  ;;  %4199 = vmatpush3.msra.mxu0 %v3495_v30  ;;  %v5339_v30 = vld [vmem:[#allocation2 + $0x48] sm:$0xff] }
  0x5e   : > { %4071 = vmatmul.mubr.f32.gmra.mxu0 %v4993_v1  ;;  %4121 = vmatpush3.msra.mxu1 %v539_v31  ;;  %v5342_v31 = vld [vmem:[#allocation2 + $0x50] sm:$0xff] }
  0x5f   : > { %4200 = vmatprep.subr.mxu0 %v3494_v35  ;;  %4122 = vmatprep.subr.mxu1 %v538_v41 }
  0x60   : > { %4201 = vmatpush3.msra.mxu0 %v3494_v35  ;;  %4097 = vmatprep.mubr.f32.mxu1 %v451_v7  ;;  %v534_v7 = vld [vmem:[%s6479_s3 + $0x30] sm:$0xff] }
  0x61   : > { %4123 = vmatpush3.msra.mxu1 %v538_v41  ;;  %4202 = vmatprep.subr.mxu0 %v3493_v42  ;;  %v5345_v35 = vld [vmem:[#allocation2 + $0x4a] sm:$0xff]  ;;  %v3511_v41 = vld [vmem:[%s6479_s3 + $0x1e0] sm:$0xff] }
  0x62   : > { %4073 = vmatprep.mubr.f32.mxu0 %v5014_v17  ;;  %4098 = vmatmul.mubr.f32.gmra.mxu1 %v452_v18  ;;  %v3489_v18 = vld [vmem:[%s6479_s3 + $0x130] sm:$0xff] }
  0x63   : > { %4124 = vmatprep.subr.mxu1 %v537_v43  ;;  %4203 = vmatpush3.msra.mxu0 %v3493_v42  ;;  %v5351_v42 = vld [vmem:[#allocation2 + $0x52] sm:$0xff] }
  0x64   : > { %4074 = vmatmul.mubr.f32.gmra.mxu0 %v5025_v26  ;;  %4125 = vmatpush3.msra.mxu1 %v537_v43  ;;  %v3527_v43 = vld [vmem:[%s6479_s3 + $0x260] sm:$0xff] }
  0x65   : > { %4204 = vmatprep.subr.mxu0 %v3492_v49  ;;  %4126 = vmatprep.subr.mxu1 %v536_v53 }
  0x66   : > { %4205 = vmatpush3.msra.mxu0 %v3492_v49  ;;  %4100 = vmatprep.mubr.f32.mxu1 %v453_v34  ;;  %v532_v34 = vld [vmem:[%s6479_s3 + $0x20] sm:$0xff] }
  0x67   : > { %4127 = vmatpush3.msra.mxu1 %v536_v53  ;;  %4206 = vmatprep.subr.mxu0 %v3491_v59  ;;  %v5357_v49 = vld [vmem:[#allocation2 + $0x60] sm:$0xff]  ;;  %v5360_v53 = vld [vmem:[#allocation2 + $0x68] sm:$0xff] }
  0x68   : > { %4076 = vmatprep.mubr.f32.mxu0 %v5046_v44  ;;  %4101 = vmatmul.mubr.f32.gmra.mxu1 %v454_v45  ;;  %v3487_v45 = vld [vmem:[%s6479_s3 + $0x120] sm:$0xff] }
  0x69   : > { %4128 = vmatprep.subr.mxu1 %v535_v60  ;;  %4207 = vmatpush3.msra.mxu0 %v3491_v59  ;;  %v5363_v59 = vld [vmem:[#allocation2 + $0x62] sm:$0xff] }
  0x6a   : > { %4077 = vmatmul.mubr.f32.gmra.mxu0 %v5059_v52  ;;  %4129 = vmatpush3.msra.mxu1 %v535_v60  ;;  %v3510_v60 = vld [vmem:[%s6479_s3 + $0x1d8] sm:$0xff] }
  0x6b   : > { %4208 = vmatprep.subr.mxu0 %v3490_v3  ;;  %4130 = vmatprep.subr.mxu1 %v534_v7 }
  0x6c   : > { %4209 = vmatpush3.msra.mxu0 %v3490_v3  ;;  %4103 = vmatprep.mubr.f32.mxu1 %v455_v61  ;;  %v530_v61 = vld [vmem:[%s6479_s3 + $0x10] sm:$0xff] }
  0x6d   : > { %4131 = vmatpush3.msra.mxu1 %v534_v7  ;;  %4210 = vmatprep.subr.mxu0 %v3489_v18  ;;  %v5369_v3 = vld [vmem:[#allocation2 + $0x6a] sm:$0xff]  ;;  %v3526_v7 = vld [vmem:[%s6479_s3 + $0x258] sm:$0xff] }
  0x6e   : > { %4079 = vmatprep.mubr.f32.mxu0 %v5080_v8  ;;  %4104 = vmatmul.mubr.f32.gmra.mxu1 %v456_v10  ;;  %v3485_v10 = vld [vmem:[%s6479_s3 + $0x110] sm:$0xff] }
  0x6f   : > { %4132 = vmatprep.subr.mxu1 %v533_v19  ;;  %4211 = vmatpush3.msra.mxu0 %v3489_v18  ;;  %v5375_v18 = vld [vmem:[#allocation2 + $0x78] sm:$0xff] }
  0x70   : > { %4080 = vmatmul.mubr.f32.gmra.mxu0 %v5090_v16  ;;  %4133 = vmatpush3.msra.mxu1 %v533_v19  ;;  %v5378_v19 = vld [vmem:[#allocation2 + $0x80] sm:$0xff] }
  0x71   : > { %4212 = vmatprep.subr.mxu0 %v3488_v28  ;;  %4134 = vmatprep.subr.mxu1 %v532_v34 }
  0x72   : > { %4213 = vmatpush3.msra.mxu0 %v3488_v28  ;;  %4106 = vmatprep.mubr.f32.mxu1 %v457_v29  ;;  %v5284_v29 = vadd.f32 %v4893_v9, %v390_v21  ;;  %v1043_v9 = vld [vmem:[#allocation2 + $0x2] sm:$0xff]  ;;  %v5381_v28 = vld [vmem:[#allocation2 + $0x7a] sm:$0xff] }
  0x73   : > { %4135 = vmatpush3.msra.mxu1 %v532_v34  ;;  %4214 = vmatprep.subr.mxu0 %v3487_v45  ;;  %v3509_v34 = vld [vmem:[%s6479_s3 + $0x1d0] sm:$0xff]  ;;  %v5411_v21 = vld [vmem:[#allocation2 + $0xa8] sm:$0xff] }
  0x74   : > { %4082 = vmatprep.mubr.f32.mxu0 %v5108_v37  ;;  %4107 = vmatmul.mubr.f32.gmra.mxu1 %v458_v38  ;;  %v6484_v36 = vmax.f32 %v5284_v29, 0.0  ;;  %v6483_v38 = vmax.f32 %v5287_v6, 0.0 }
  0x75   : > { %4136 = vmatprep.subr.mxu1 %v531_v46  ;;  %4215 = vmatpush3.msra.mxu0 %v3487_v45  ;;  %v5387_v45 = vld [vmem:[#allocation2 + $0x82] sm:$0xff] }
  0x76   : > { %4083 = vmatmul.mubr.f32.gmra.mxu0 %v5117_v50  ;;  %4137 = vmatpush3.msra.mxu1 %v531_v46  ;;  %494 = vst [vmem:[#allocation2 + $0x181] sm:$0xff] %v6484_v36  ;;  %495 = vst [vmem:[#allocation2 + $0x189] sm:$0xff] %v6483_v38  ;;  %v3525_v46 = vld [vmem:[%s6479_s3 + $0x250] sm:$0xff]  ;;  %v3519_v38 = vld [vmem:[%s6479_s3 + $0x220] sm:$0xff] }
  0x77   : > { %4216 = vmatprep.subr.mxu0 %v3486_v55  ;;  %4138 = vmatprep.subr.mxu1 %v530_v61  ;;  %v5501_v36 = vld [vmem:[#allocation2 + $0x120] sm:$0xff] }
  0x78   : > { %4217 = vmatpush3.msra.mxu0 %v3486_v55  ;;  %4109 = vmatprep.mubr.f32.mxu1 %v459_v57  ;;  %v5309_v57 = vld [vmem:[#allocation2 + $0x1a] sm:$0xff]  ;;  %v5393_v55 = vld [vmem:[#allocation2 + $0x90] sm:$0xff] }
  0x79   : > { %4139 = vmatpush3.msra.mxu1 %v530_v61  ;;  %4218 = vmatprep.subr.mxu0 %v3485_v10  ;;  %v5396_v61 = vld [vmem:[#allocation2 + $0x98] sm:$0xff] }
  0x7a   : > { %4085 = vmatprep.mubr.f32.mxu0 %v5134_v0  ;;  %4110 = vmatmul.mubr.f32.gmra.mxu1 %v460_v2  ;;  %v3529_v2 = vld [vmem:[%s6479_s3 + $0x270] sm:$0xff] }
  0x7b   : > { %4140 = vmatprep.subr.mxu1 %v529_v14  ;;  %4219 = vmatpush3.msra.mxu0 %v3485_v10  ;;  %v5399_v10 = vld [vmem:[#allocation2 + $0x92] sm:$0xff] }
  0x7c   : > { %4086 = vmatmul.mubr.f32.gmra.mxu0 %v5145_v13  ;;  %4141 = vmatpush3.msra.mxu1 %v529_v14  ;;  %v3524_v14 = vld [vmem:[%s6479_s3 + $0x248] sm:$0xff] }
  0x7d   : > { %4220 = vmatprep.subr.mxu0 %v3484_v23  ;;  %4142 = vmatprep.subr.mxu1 %v528_v27 }
  0x7e   : > { %4221 = vmatpush3.msra.mxu0 %v3484_v23  ;;  %4143 = vmatpush3.msra.mxu1 %v528_v27  ;;  %v5417_v23 = vld [vmem:[#allocation2 + $0xaa] sm:$0xff]  ;;  %v3507_v27 = vld [vmem:[%s6479_s3 + $0x1c0] sm:$0xff] }
  0x7f   : > { %4144 = vmatprep.mubr.f32.mxu1 %v496_v32  ;;  %4222 = vmatprep.subr.mxu0 %v3483_v33  ;;  %6501 = vst [vmem:[#allocation3_spill] sm:$0xff] %v5417_v23  ;;  %v5423_v32 = vld [vmem:[#allocation2 + $0xb2] sm:$0xff] }
  0x80   : > { %4145 = vmatmul.mubr.f32.vlgmr.msra.gmra.mxu1 %v497_v39  ;;  %4223 = vmatpush3.msra.mxu0 %v3483_v33  ;;  %6502 = vst [vmem:[#allocation4_spill] sm:$0xff] %v5423_v32  ;;  %v3523_v33 = vld [vmem:[%s6479_s3 + $0x240] sm:$0xff] }
  0x81   : > { %4224 = vmatprep.mubr.f32.mxu0 %v1043_v9  ;;  %4272 = vmatprep.subr.mxu1 %v3514_v40  ;;  %v5429_v39 = vld [vmem:[#allocation2 + $0xc0] sm:$0xff]  ;;  %v5432_v9 = vld [vmem:[#allocation2 + $0xc8] sm:$0xff] }
  0x82   : > { %4225 = vmatmul.mubr.f32.vlgmr.msra.gmra.mxu0 %v1044_v48  ;;  %4273 = vmatpush3.msra.mxu1 %v3514_v40  ;;  %v5435_v40 = vld [vmem:[#allocation2 + $0xc2] sm:$0xff]  ;;  %v3506_v48 = vld [vmem:[%s6479_s3 + $0x1b8] sm:$0xff] }
  0x83   : > { %4352 = vmatprep.subr.mxu0 %v3530_v51  ;;  %4147 = vmatprep.mubr.f32.mxu1 %v5305_v54  ;;  %6503 = vst [vmem:[#allocation5_spill] sm:$0xff] %v5435_v40 }
  0x84   : > { %4353 = vmatpush3.msra.mxu0 %v3530_v51  ;;  %4148 = vmatmul.mubr.f32.gmra.mxu1 %v5307_v56  ;;  %v5441_v51 = vld [vmem:[#allocation2 + $0xca] sm:$0xff] }
  0x85   : > { %4227 = vmatprep.mubr.f32.mxu0 %v5309_v57  ;;  %4274 = vmatprep.subr.mxu1 %v3513_v62  ;;  %6504 = vst [vmem:[#allocation6_spill] sm:$0xff] %v5441_v51 }
  0x86   : > { %4228 = vmatmul.mubr.f32.gmra.mxu0 %v5315_v63  ;;  %4275 = vmatpush3.msra.mxu1 %v3513_v62  ;;  %v3522_v62 = vld [vmem:[%s6479_s3 + $0x238] sm:$0xff] }
  0x87   : > { %4354 = vmatprep.subr.mxu0 %v3529_v2  ;;  %4150 = vmatprep.mubr.f32.mxu1 %v5321_v4 }
  0x88   : > { %4355 = vmatpush3.msra.mxu0 %v3529_v2  ;;  %4151 = vmatmul.mubr.f32.gmra.mxu1 %v5324_v5  ;;  %v5447_v2 = vld [vmem:[#allocation2 + $0xd8] sm:$0xff] }
  0x89   : > { %4230 = vmatprep.mubr.f32.mxu0 %v5327_v20  ;;  %4276 = vmatprep.subr.mxu1 %v3512_v15 }
  0x8a   : > { %4231 = vmatmul.mubr.f32.gmra.mxu0 %v5333_v24  ;;  %4277 = vmatpush3.msra.mxu1 %v3512_v15  ;;  %v5450_v15 = vld [vmem:[#allocation2 + $0xe0] sm:$0xff] }
  0x8b   : > { %4356 = vmatprep.subr.mxu0 %v3528_v25  ;;  %4153 = vmatprep.mubr.f32.mxu1 %v5339_v30 }
  0x8c   : > { %4357 = vmatpush3.msra.mxu0 %v3528_v25  ;;  %4154 = vmatmul.mubr.f32.gmra.mxu1 %v5342_v31  ;;  %v5453_v25 = vld [vmem:[#allocation2 + $0xda] sm:$0xff] }
  0x8d   : > { %4233 = vmatprep.mubr.f32.mxu0 %v5345_v35  ;;  %4278 = vmatprep.subr.mxu1 %v3511_v41  ;;  %6505 = vst [vmem:[#allocation7_spill] sm:$0xff] %v5453_v25 }
  0x8e   : > { %4234 = vmatmul.mubr.f32.gmra.mxu0 %v5351_v42  ;;  %4279 = vmatpush3.msra.mxu1 %v3511_v41  ;;  %v3505_v41 = vld [vmem:[%s6479_s3 + $0x1b0] sm:$0xff] }
  0x8f   : > { %4358 = vmatprep.subr.mxu0 %v3527_v43  ;;  %4156 = vmatprep.mubr.f32.mxu1 %v5357_v49 }
  0x90   : > { %4359 = vmatpush3.msra.mxu0 %v3527_v43  ;;  %4157 = vmatmul.mubr.f32.gmra.mxu1 %v5360_v53  ;;  %v5459_v43 = vld [vmem:[#allocation2 + $0xe2] sm:$0xff] }
  0x91   : > { %4236 = vmatprep.mubr.f32.mxu0 %v5363_v59  ;;  %4280 = vmatprep.subr.mxu1 %v3510_v60  ;;  %6506 = vst [vmem:[#allocation8_spill] sm:$0xff] %v5459_v43 }
  0x92   : > { %4237 = vmatmul.mubr.f32.gmra.mxu0 %v5369_v3  ;;  %4281 = vmatpush3.msra.mxu1 %v3510_v60  ;;  %v3521_v60 = vld [vmem:[%s6479_s3 + $0x230] sm:$0xff] }
  0x93   : > { %4360 = vmatprep.subr.mxu0 %v3526_v7  ;;  %4159 = vmatprep.mubr.f32.mxu1 %v5375_v18 }
  0x94   : > { %4361 = vmatpush3.msra.mxu0 %v3526_v7  ;;  %4160 = vmatmul.mubr.f32.gmra.mxu1 %v5378_v19  ;;  %v5465_v7 = vld [vmem:[#allocation2 + $0xf0] sm:$0xff] }
  0x95   : > { %4239 = vmatprep.mubr.f32.mxu0 %v5381_v28  ;;  %4282 = vmatprep.subr.mxu1 %v3509_v34 }
  0x96   : > { %4240 = vmatmul.mubr.f32.gmra.mxu0 %v5387_v45  ;;  %4283 = vmatpush3.msra.mxu1 %v3509_v34  ;;  %v5468_v34 = vld [vmem:[#allocation2 + $0xf8] sm:$0xff] }
  0x97   : > { %4362 = vmatprep.subr.mxu0 %v3525_v46  ;;  %4162 = vmatprep.mubr.f32.mxu1 %v5393_v55 }
  0x98   : > { %4363 = vmatpush3.msra.mxu0 %v3525_v46  ;;  %4163 = vmatmul.mubr.f32.gmra.mxu1 %v5396_v61  ;;  %v5471_v46 = vld [vmem:[#allocation2 + $0xf2] sm:$0xff] }
  0x99   : > { %4242 = vmatprep.mubr.f32.mxu0 %v5399_v10  ;;  %4284 = vmatprep.subr.mxu1 %v3508_v11  ;;  %6507 = vst [vmem:[#allocation9_spill] sm:$0xff] %v5471_v46 }
  0x9a   : > { %4243 = vmatmul.mubr.f32.gmra.mxu0 %v5405_v12  ;;  %4285 = vmatpush3.msra.mxu1 %v3508_v11  ;;  %v3504_v11 = vld [vmem:[%s6479_s3 + $0x1a8] sm:$0xff] }
  0x9b   : > { %4364 = vmatprep.subr.mxu0 %v3524_v14  ;;  %4165 = vmatprep.mubr.f32.mxu1 %v5411_v21 }
  0x9c   : > { %4365 = vmatpush3.msra.mxu0 %v3524_v14  ;;  %4166 = vmatmul.mubr.f32.gmra.mxu1 %v5414_v22  ;;  %v5477_v14 = vld [vmem:[#allocation2 + $0xfa] sm:$0xff] }
  0x9d   : > { %4245 = vmatprep.mubr.f32.mxu0 %v5417_v23  ;;  %4286 = vmatprep.subr.mxu1 %v3507_v27  ;;  %6508 = vst [vmem:[#allocation10_spill] sm:$0xff] %v5477_v14  ;;  %v5567_v23 = vld [vmem:[#allocation2 + $0x172] sm:$0xff] }
  0x9e   : > { %4246 = vmatmul.mubr.f32.gmra.mxu0 %v5423_v32  ;;  %4287 = vmatpush3.msra.mxu1 %v3507_v27  ;;  %v3520_v27 = vld [vmem:[%s6479_s3 + $0x228] sm:$0xff] }
  0x9f   : > { %4366 = vmatprep.subr.mxu0 %v3523_v33  ;;  %4168 = vmatprep.mubr.f32.mxu1 %v5429_v39  ;;  %v5561_v32 = vld [vmem:[#allocation2 + $0x16a] sm:$0xff] }
  0xa0   : > { %4367 = vmatpush3.msra.mxu0 %v3523_v33  ;;  %4169 = vmatmul.mubr.f32.gmra.mxu1 %v5432_v9  ;;  %v5483_v33 = vld [vmem:[#allocation2 + $0x108] sm:$0xff] }
  0xa1   : > { %4248 = vmatprep.mubr.f32.mxu0 %v5435_v40  ;;  %4288 = vmatprep.subr.mxu1 %v3506_v48  ;;  %v5549_v40 = vld [vmem:[#allocation2 + $0x15a] sm:$0xff] }
  0xa2   : > { %4249 = vmatmul.mubr.f32.gmra.mxu0 %v5441_v51  ;;  %4289 = vmatpush3.msra.mxu1 %v3506_v48  ;;  %v5486_v48 = vld [vmem:[#allocation2 + $0x110] sm:$0xff]  ;;  %6516 = vst [vmem:[#allocation18_spill] sm:$0xff] %v5549_v40 }
  0xa3   : > { %4368 = vmatprep.subr.mxu0 %v3522_v62  ;;  %4171 = vmatprep.mubr.f32.mxu1 %v5447_v2  ;;  %v5543_v51 = vld [vmem:[#allocation2 + $0x152] sm:$0xff] }
  0xa4   : > { %4369 = vmatpush3.msra.mxu0 %v3522_v62  ;;  %4172 = vmatmul.mubr.f32.gmra.mxu1 %v5450_v15  ;;  %v5489_v62 = vld [vmem:[#allocation2 + $0x10a] sm:$0xff]  ;;  %6515 = vst [vmem:[#allocation17_spill] sm:$0xff] %v5543_v51 }
  0xa5   : > { %4251 = vmatprep.mubr.f32.mxu0 %v5453_v25  ;;  %4290 = vmatprep.subr.mxu1 %v3505_v41  ;;  %6509 = vst [vmem:[#allocation11_spill] sm:$0xff] %v5489_v62  ;;  %v5531_v25 = vld [vmem:[#allocation2 + $0x142] sm:$0xff] }
  0xa6   : > { %4252 = vmatmul.mubr.f32.gmra.mxu0 %v5459_v43  ;;  %4291 = vmatpush3.msra.mxu1 %v3505_v41  ;;  %v3503_v41 = vld [vmem:[%s6479_s3 + $0x1a0] sm:$0xff]  ;;  %6514 = vst [vmem:[#allocation16_spill] sm:$0xff] %v5531_v25 }
  0xa7   : > { %4370 = vmatprep.subr.mxu0 %v3521_v60  ;;  %4174 = vmatprep.mubr.f32.mxu1 %v5465_v7  ;;  %v5525_v43 = vld [vmem:[#allocation2 + $0x13a] sm:$0xff] }
  0xa8   : > { %4371 = vmatpush3.msra.mxu0 %v3521_v60  ;;  %4175 = vmatmul.mubr.f32.gmra.mxu1 %v5468_v34  ;;  %v5495_v60 = vld [vmem:[#allocation2 + $0x112] sm:$0xff]  ;;  %6513 = vst [vmem:[#allocation15_spill] sm:$0xff] %v5525_v43 }
  0xa9   : > { %4254 = vmatprep.mubr.f32.mxu0 %v5471_v46  ;;  %4292 = vmatprep.subr.mxu1 %v3504_v11  ;;  %6510 = vst [vmem:[#allocation12_spill] sm:$0xff] %v5495_v60  ;;  %v5513_v46 = vld [vmem:[#allocation2 + $0x12a] sm:$0xff] }
  0xaa   : > { %4255 = vmatmul.mubr.f32.gmra.mxu0 %v5477_v14  ;;  %4293 = vmatpush3.msra.mxu1 %v3504_v11  ;;  %v5504_v11 = vld [vmem:[#allocation2 + $0x128] sm:$0xff]  ;;  %6512 = vst [vmem:[#allocation14_spill] sm:$0xff] %v5513_v46 }
  0xab   : > { %4372 = vmatprep.subr.mxu0 %v3520_v27  ;;  %4177 = vmatprep.mubr.f32.mxu1 %v5483_v33  ;;  %v5507_v14 = vld [vmem:[#allocation2 + $0x122] sm:$0xff] }
  0xac   : > { %4373 = vmatpush3.msra.mxu0 %v3520_v27  ;;  %4178 = vmatmul.mubr.f32.gmra.mxu1 %v5486_v48  ;;  %6511 = vst [vmem:[#allocation13_spill] sm:$0xff] %v5507_v14  ;;  %v3502_v27 = vld [vmem:[%s6479_s3 + $0x198] sm:$0xff] }
  0xad   : > { %4257 = vmatprep.mubr.f32.mxu0 %v5489_v62  ;;  %4294 = vmatprep.subr.mxu1 %v3503_v41  ;;  %v3518_v62 = vld [vmem:[%s6479_s3 + $0x218] sm:$0xff] }
  0xae   : > { %4258 = vmatmul.mubr.f32.gmra.mxu0 %v5495_v60  ;;  %4295 = vmatpush3.msra.mxu1 %v3503_v41  ;;  %v5519_v60 = vld [vmem:[#allocation2 + $0x138] sm:$0xff]  ;;  %v5522_v41 = vld [vmem:[#allocation2 + $0x140] sm:$0xff] }
  0xaf   : > { %4374 = vmatprep.subr.mxu0 %v3519_v38  ;;  %4180 = vmatprep.mubr.f32.mxu1 %v5501_v36 }
  0xb0   : > { %4375 = vmatpush3.msra.mxu0 %v3519_v38  ;;  %4181 = vmatmul.mubr.f32.gmra.mxu1 %v5504_v11  ;;  %v3501_v38 = vld [vmem:[%s6479_s3 + $0x190] sm:$0xff] }
  0xb1   : > { %4260 = vmatprep.mubr.f32.mxu0 %v5507_v14  ;;  %4296 = vmatprep.subr.mxu1 %v3502_v27  ;;  %v3517_v14 = vld [vmem:[%s6479_s3 + $0x210] sm:$0xff] }
  0xb2   : > { %4261 = vmatmul.mubr.f32.gmra.mxu0 %v5513_v46  ;;  %4297 = vmatpush3.msra.mxu1 %v3502_v27  ;;  %v5537_v46 = vld [vmem:[#allocation2 + $0x150] sm:$0xff]  ;;  %v5540_v27 = vld [vmem:[#allocation2 + $0x158] sm:$0xff] }
  0xb3   : > { %4376 = vmatprep.subr.mxu0 %v3518_v62  ;;  %4183 = vmatprep.mubr.f32.mxu1 %v5519_v60 }
  0xb4   : > { %4377 = vmatpush3.msra.mxu0 %v3518_v62  ;;  %4184 = vmatmul.mubr.f32.gmra.mxu1 %v5522_v41  ;;  %v3500_v62 = vld [vmem:[%s6479_s3 + $0x188] sm:$0xff] }
  0xb5   : > { %4263 = vmatprep.mubr.f32.mxu0 %v5525_v43  ;;  %4298 = vmatprep.subr.mxu1 %v3501_v38  ;;  %v3516_v43 = vld [vmem:[%s6479_s3 + $0x208] sm:$0xff] }
  0xb6   : > { %4264 = vmatmul.mubr.f32.gmra.mxu0 %v5531_v25  ;;  %4299 = vmatpush3.msra.mxu1 %v3501_v38  ;;  %v5555_v25 = vld [vmem:[#allocation2 + $0x168] sm:$0xff]  ;;  %v5558_v38 = vld [vmem:[#allocation2 + $0x170] sm:$0xff] }
  0xb7   : > { %4378 = vmatprep.subr.mxu0 %v3517_v14  ;;  %4186 = vmatprep.mubr.f32.mxu1 %v5537_v46 }
  0xb8   : > { %4379 = vmatpush3.msra.mxu0 %v3517_v14  ;;  %4187 = vmatmul.mubr.f32.gmra.mxu1 %v5540_v27  ;;  %v3499_v14 = vld [vmem:[%s6479_s3 + $0x180] sm:$0xff] }
  0xb9   : > { %4266 = vmatprep.mubr.f32.mxu0 %v5543_v51  ;;  %4300 = vmatprep.subr.mxu1 %v3500_v62  ;;  %v3515_v51 = vld [vmem:[%s6479_s3 + $0x200] sm:$0xff] }
  0xba   : > { %4267 = vmatmul.mubr.f32.gmra.mxu0 %v5549_v40  ;;  %4301 = vmatpush3.msra.mxu1 %v3500_v62  ;;  %v3546_v62 = vld [vmem:[%s6479_s3 + $0x2f8] sm:$0xff] }
  0xbb   : > { %4380 = vmatprep.subr.mxu0 %v3516_v43  ;;  %4189 = vmatprep.mubr.f32.mxu1 %v5555_v25  ;;  %v4793_v40 = vld [vmem:[#allocation2 + $0x19] sm:$0xff] }
  0xbc   : > { %4381 = vmatpush3.msra.mxu0 %v3516_v43  ;;  %4190 = vmatmul.mubr.f32.gmra.mxu1 %v5558_v38  ;;  %v3562_v43 = vld [vmem:[%s6479_s3 + $0x378] sm:$0xff] }
  0xbd   : > { %4269 = vmatprep.mubr.f32.mxu0 %v5561_v32  ;;  %4302 = vmatprep.subr.mxu1 %v3499_v14 }
  0xbe   : > { %4270 = vmatmul.mubr.f32.gmra.mxu0 %v5567_v23  ;;  %4303 = vmatpush3.msra.mxu1 %v3499_v14  ;;  %v3545_v14 = vld [vmem:[%s6479_s3 + $0x2f0] sm:$0xff] }
  0xbf   : > { %4382 = vmatprep.subr.mxu0 %v3515_v51  ;;  %4304 = vmatprep.mubr.f32.mxu1 %v5305_v54  ;;  %v3561_v54 = vld [vmem:[%s6479_s3 + $0x370] sm:$0xff] }
  0xc0   : > { %4383 = vmatpush3.msra.mxu0 %v3515_v51  ;;  %4305 = vmatmul.mubr.f32.vlgmr.msra.gmra.mxu1 %v5307_v56  ;;  %v3560_v56 = vld [vmem:[%s6479_s3 + $0x368] sm:$0xff]  ;;  %v3538_v51 = vld [vmem:[%s6479_s3 + $0x2b8] sm:$0xff] }
  0xc1   : > { %4384 = vmatprep.mubr.f32.mxu0 %v4793_v40  ;;  %4432 = vmatprep.subr.mxu1 %v3546_v62  ;;  %v5650_v40 = vld [vmem:[#allocation2 + $0xc9] sm:$0xff] }
  0xc2   : > { %4385 = vmatmul.mubr.f32.vlgmr.msra.gmra.mxu0 %v4958_v47  ;;  %4433 = vmatpush3.msra.mxu1 %v3546_v62  ;;  %v3544_v47 = vld [vmem:[%s6479_s3 + $0x2e8] sm:$0xff] }
  0xc3   : > { %4512 = vmatprep.subr.mxu0 %v3562_v43  ;;  %4307 = vmatprep.mubr.f32.mxu1 %v5321_v4  ;;  %v5664_v62 = vld [vmem:[#allocation2 + $0xe1] sm:$0xff] }
  0xc4   : > { %4513 = vmatpush3.msra.mxu0 %v3562_v43  ;;  %4308 = vmatmul.mubr.f32.gmra.mxu1 %v5324_v5  ;;  %v3554_v43 = vld [vmem:[%s6479_s3 + $0x338] sm:$0xff] }
  0xc5   : > { %4387 = vmatprep.mubr.f32.mxu0 %v4979_v58  ;;  %4434 = vmatprep.subr.mxu1 %v3545_v14  ;;  %v3543_v58 = vld [vmem:[%s6479_s3 + $0x2e0] sm:$0xff] }
  0xc6   : > { %4388 = vmatmul.mubr.f32.gmra.mxu0 %v4993_v1  ;;  %4435 = vmatpush3.msra.mxu1 %v3545_v14  ;;  %v3559_v1 = vld [vmem:[%s6479_s3 + $0x360] sm:$0xff]  ;;  %v5672_v14 = vld [vmem:[#allocation2 + $0xf1] sm:$0xff] }
  0xc7   : > { %4514 = vmatprep.subr.mxu0 %v3561_v54  ;;  %4310 = vmatprep.mubr.f32.mxu1 %v5339_v30 }
  0xc8   : > { %4515 = vmatpush3.msra.mxu0 %v3561_v54  ;;  %4311 = vmatmul.mubr.f32.gmra.mxu1 %v5342_v31  ;;  %v3537_v54 = vld [vmem:[%s6479_s3 + $0x2b0] sm:$0xff] }
  0xc9   : > { %4390 = vmatprep.mubr.f32.mxu0 %v5014_v17  ;;  %4436 = vmatprep.subr.mxu1 %v3544_v47  ;;  %v3542_v17 = vld [vmem:[%s6479_s3 + $0x2d8] sm:$0xff] }
  0xca   : > { %4391 = vmatmul.mubr.f32.gmra.mxu0 %v5025_v26  ;;  %4437 = vmatpush3.msra.mxu1 %v3544_v47  ;;  %v3558_v26 = vld [vmem:[%s6479_s3 + $0x358] sm:$0xff] }
  0xcb   : > { %4516 = vmatprep.subr.mxu0 %v3560_v56  ;;  %4313 = vmatprep.mubr.f32.mxu1 %v5357_v49  ;;  %v5678_v47 = vld [vmem:[#allocation2 + $0xf9] sm:$0xff] }
  0xcc   : > { %4517 = vmatpush3.msra.mxu0 %v3560_v56  ;;  %4314 = vmatmul.mubr.f32.gmra.mxu1 %v5360_v53  ;;  %v3553_v56 = vld [vmem:[%s6479_s3 + $0x330] sm:$0xff] }
  0xcd   : > { %4393 = vmatprep.mubr.f32.mxu0 %v5046_v44  ;;  %4438 = vmatprep.subr.mxu1 %v3543_v58  ;;  %v3541_v44 = vld [vmem:[%s6479_s3 + $0x2d0] sm:$0xff] }
  0xce   : > { %4394 = vmatmul.mubr.f32.gmra.mxu0 %v5059_v52  ;;  %4439 = vmatpush3.msra.mxu1 %v3543_v58  ;;  %v3557_v52 = vld [vmem:[%s6479_s3 + $0x350] sm:$0xff] }
  0xcf   : > { %4518 = vmatprep.subr.mxu0 %v3559_v1  ;;  %4316 = vmatprep.mubr.f32.mxu1 %v5375_v18  ;;  %v5686_v58 = vld [vmem:[#allocation2 + $0x109] sm:$0xff] }
  0xd0   : > { %4519 = vmatpush3.msra.mxu0 %v3559_v1  ;;  %4317 = vmatmul.mubr.f32.gmra.mxu1 %v5378_v19  ;;  %v3536_v1 = vld [vmem:[%s6479_s3 + $0x2a8] sm:$0xff] }
  0xd1   : > { %4396 = vmatprep.mubr.f32.mxu0 %v5080_v8  ;;  %4440 = vmatprep.subr.mxu1 %v3542_v17  ;;  %v3540_v8 = vld [vmem:[%s6479_s3 + $0x2c8] sm:$0xff] }
  0xd2   : > { %4397 = vmatmul.mubr.f32.gmra.mxu0 %v5090_v16  ;;  %4441 = vmatpush3.msra.mxu1 %v3542_v17  ;;  %v3556_v16 = vld [vmem:[%s6479_s3 + $0x348] sm:$0xff]  ;;  %v5692_v17 = vld [vmem:[#allocation2 + $0x111] sm:$0xff] }
  0xd3   : > { %4520 = vmatprep.subr.mxu0 %v3558_v26  ;;  %4319 = vmatprep.mubr.f32.mxu1 %v5393_v55 }
  0xd4   : > { %4521 = vmatpush3.msra.mxu0 %v3558_v26  ;;  %4320 = vmatmul.mubr.f32.gmra.mxu1 %v5396_v61  ;;  %v3552_v26 = vld [vmem:[%s6479_s3 + $0x328] sm:$0xff] }
  0xd5   : > { %4399 = vmatprep.mubr.f32.mxu0 %v5108_v37  ;;  %4442 = vmatprep.subr.mxu1 %v3541_v44  ;;  %v5644_v37 = vld [vmem:[#allocation2 + $0xc1] sm:$0xff] }
  0xd6   : > { %4400 = vmatmul.mubr.f32.gmra.mxu0 %v5117_v50  ;;  %4443 = vmatpush3.msra.mxu1 %v3541_v44  ;;  %v3539_v50 = vld [vmem:[%s6479_s3 + $0x2c0] sm:$0xff] }
  0xd7   : > { %4522 = vmatprep.subr.mxu0 %v3557_v52  ;;  %4322 = vmatprep.mubr.f32.mxu1 %v5411_v21  ;;  %v5700_v44 = vld [vmem:[#allocation2 + $0x121] sm:$0xff] }
  0xd8   : > { %4523 = vmatpush3.msra.mxu0 %v3557_v52  ;;  %4323 = vmatmul.mubr.f32.gmra.mxu1 %v5414_v22  ;;  %v3535_v52 = vld [vmem:[%s6479_s3 + $0x2a0] sm:$0xff] }
  0xd9   : > { %4402 = vmatprep.mubr.f32.mxu0 %v5134_v0  ;;  %4444 = vmatprep.subr.mxu1 %v3540_v8  ;;  %v3555_v0 = vld [vmem:[%s6479_s3 + $0x340] sm:$0xff] }
  0xda   : > { %4403 = vmatmul.mubr.f32.gmra.mxu0 %v5145_v13  ;;  %4445 = vmatpush3.msra.mxu1 %v3540_v8  ;;  %v5658_v13 = vld [vmem:[#allocation2 + $0xd9] sm:$0xff]  ;;  %v5706_v8 = vld [vmem:[#allocation2 + $0x129] sm:$0xff] }
  0xdb   : > { %4524 = vmatprep.subr.mxu0 %v3556_v16  ;;  %4325 = vmatprep.mubr.f32.mxu1 %v5429_v39 }
  0xdc   : > { %4525 = vmatpush3.msra.mxu0 %v3556_v16  ;;  %4326 = vmatmul.mubr.f32.gmra.mxu1 %v5432_v9  ;;  %v3551_v16 = vld [vmem:[%s6479_s3 + $0x320] sm:$0xff] }
  0xdd   : > { %4405 = vmatprep.mubr.f32.mxu0 %v5644_v37  ;;  %4446 = vmatprep.subr.mxu1 %v3539_v50 }
  0xde   : > { %4406 = vmatmul.mubr.f32.gmra.mxu0 %v5650_v40  ;;  %4447 = vmatpush3.msra.mxu1 %v3539_v50  ;;  %v5714_v50 = vld [vmem:[#allocation2 + $0x139] sm:$0xff] }
  0xdf   : > { %4526 = vmatprep.subr.mxu0 %v3555_v0  ;;  %4328 = vmatprep.mubr.f32.mxu1 %v5447_v2 }
  0xe0   : > { %4527 = vmatpush3.msra.mxu0 %v3555_v0  ;;  %4329 = vmatmul.mubr.f32.gmra.mxu1 %v5450_v15  ;;  %v3534_v0 = vld [vmem:[%s6479_s3 + $0x298] sm:$0xff] }
  0xe1   : > { %4408 = vmatprep.mubr.f32.mxu0 %v5658_v13  ;;  %4448 = vmatprep.subr.mxu1 %v3538_v51 }
  0xe2   : > { %4409 = vmatmul.mubr.f32.gmra.mxu0 %v5664_v62  ;;  %4449 = vmatpush3.msra.mxu1 %v3538_v51  ;;  %v3550_v51 = vld [vmem:[%s6479_s3 + $0x318] sm:$0xff] }
  0xe3   : > { %4528 = vmatprep.subr.mxu0 %v3554_v43  ;;  %4331 = vmatprep.mubr.f32.mxu1 %v5465_v7 }
  0xe4   : > { %4529 = vmatpush3.msra.mxu0 %v3554_v43  ;;  %4332 = vmatmul.mubr.f32.gmra.mxu1 %v5468_v34  ;;  %v4794_v43 = vld [vmem:[#allocation2 + $0x141] sm:$0xff] }
  0xe5   : > { %4411 = vmatprep.mubr.f32.mxu0 %v5672_v14  ;;  %4450 = vmatprep.subr.mxu1 %v3537_v54 }
  0xe6   : > { %4412 = vmatmul.mubr.f32.gmra.mxu0 %v5678_v47  ;;  %4451 = vmatpush3.msra.mxu1 %v3537_v54  ;;  %v3533_v54 = vld [vmem:[%s6479_s3 + $0x290] sm:$0xff] }
  0xe7   : > { %4530 = vmatprep.subr.mxu0 %v3553_v56  ;;  %4334 = vmatprep.mubr.f32.mxu1 %v5483_v33 }
  0xe8   : > { %4531 = vmatpush3.msra.mxu0 %v3553_v56  ;;  %4335 = vmatmul.mubr.f32.gmra.mxu1 %v5486_v48  ;;  %v3549_v56 = vld [vmem:[%s6479_s3 + $0x310] sm:$0xff] }
  0xe9   : > { %4414 = vmatprep.mubr.f32.mxu0 %v5686_v58  ;;  %4452 = vmatprep.subr.mxu1 %v3536_v1 }
  0xea   : > { %4415 = vmatmul.mubr.f32.gmra.mxu0 %v5692_v17  ;;  %4453 = vmatpush3.msra.mxu1 %v3536_v1  ;;  %v4795_v1 = vld [vmem:[#allocation2 + $0x151] sm:$0xff] }
  0xeb   : > { %4532 = vmatprep.subr.mxu0 %v3552_v26  ;;  %4337 = vmatprep.mubr.f32.mxu1 %v5501_v36 }
  0xec   : > { %4533 = vmatpush3.msra.mxu0 %v3552_v26  ;;  %4338 = vmatmul.mubr.f32.gmra.mxu1 %v5504_v11  ;;  %v4796_v26 = vld [vmem:[#allocation2 + $0x159] sm:$0xff] }
  0xed   : > { %4417 = vmatprep.mubr.f32.mxu0 %v5700_v44  ;;  %4454 = vmatprep.subr.mxu1 %v3535_v52 }
  0xee   : > { %4418 = vmatmul.mubr.f32.gmra.mxu0 %v5706_v8  ;;  %4455 = vmatpush3.msra.mxu1 %v3535_v52  ;;  %v3532_v52 = vld [vmem:[%s6479_s3 + $0x288] sm:$0xff] }
  0xef   : > { %4534 = vmatprep.subr.mxu0 %v3551_v16  ;;  %4340 = vmatprep.mubr.f32.mxu1 %v5519_v60 }
  0xf0   : > { %4535 = vmatpush3.msra.mxu0 %v3551_v16  ;;  %4341 = vmatmul.mubr.f32.gmra.mxu1 %v5522_v41  ;;  %v3548_v16 = vld [vmem:[%s6479_s3 + $0x308] sm:$0xff] }
  0xf1   : > { %4420 = vmatprep.mubr.f32.mxu0 %v5714_v50  ;;  %4456 = vmatprep.subr.mxu1 %v3534_v0 }
  0xf2   : > { %4421 = vmatmul.mubr.f32.gmra.mxu0 %v4794_v43  ;;  %4457 = vmatpush3.msra.mxu1 %v3534_v0  ;;  %v5741_v0 = vld [vmem:[#allocation2 + $0x180] sm:$0xff]  ;;  %v5743_v43 = vld [vmem:[#allocation2 + $0x188] sm:$0xff] }
  0xf3   : > { %4536 = vmatprep.subr.mxu0 %v3550_v51  ;;  %4343 = vmatprep.mubr.f32.mxu1 %v5537_v46 }
  0xf4   : > { %4537 = vmatpush3.msra.mxu0 %v3550_v51  ;;  %4344 = vmatmul.mubr.f32.gmra.mxu1 %v5540_v27  ;;  %v4797_v51 = vld [vmem:[#allocation2 + $0x169] sm:$0xff] }
  0xf5   : > { %4423 = vmatprep.mubr.f32.mxu0 %v4795_v1  ;;  %4458 = vmatprep.subr.mxu1 %v3533_v54  ;;  %v3547_v1 = vld [vmem:[%s6479_s3 + $0x300] sm:$0xff] }
  0xf6   : > { %4424 = vmatmul.mubr.f32.gmra.mxu0 %v4796_v26  ;;  %4459 = vmatpush3.msra.mxu1 %v3533_v54  ;;  %v4798_v54 = vld [vmem:[#allocation2 + $0x171] sm:$0xff]  ;;  %v6517_v26 = vmax.f32 %v5284_v29, 0.0 }
  0xf7   : > { %4538 = vmatprep.subr.mxu0 %v3549_v56  ;;  %4346 = vmatprep.mubr.f32.mxu1 %v5555_v25  ;;  %v3594_v29 = vld [vmem:[%s6479_s3 + $0x478] sm:$0xff] }
  0xf8   : > { %4539 = vmatpush3.msra.mxu0 %v3549_v56  ;;  %4347 = vmatmul.mubr.f32.gmra.mxu1 %v5558_v38  ;;  %v3531_v56 = vld [vmem:[%s6479_s3 + $0x280] sm:$0xff] }
  0xf9   : > { %4426 = vmatprep.mubr.f32.mxu0 %v4797_v51  ;;  %4460 = vmatprep.subr.mxu1 %v3532_v52  ;;  %v3578_v51 = vld [vmem:[%s6479_s3 + $0x3f8] sm:$0xff] }
  0xfa   : > { %4427 = vmatmul.mubr.f32.gmra.mxu0 %v4798_v54  ;;  %4461 = vmatpush3.msra.mxu1 %v3532_v52  ;;  %v6518_v52 = vmax.f32 %v5287_v6, 0.0  ;;  %v3577_v6 = vld [vmem:[%s6479_s3 + $0x3f0] sm:$0xff] }
  0xfb   : > { %4540 = vmatprep.subr.mxu0 %v3548_v16  ;;  %4349 = vmatprep.mubr.f32.mxu1 %v5741_v0 }
  0xfc   : > { %4541 = vmatpush3.msra.mxu0 %v3548_v16  ;;  %4350 = vmatmul.mubr.f32.gmra.mxu1 %v5743_v43 }
  0xfd   : > { %4429 = vmatprep.mubr.f32.mxu0 %v6517_v26  ;;  %4462 = vmatprep.subr.mxu1 %v3531_v56  ;;  %v6524_v26 = vld [vmem:[#allocation8_spill] sm:$0xff] }
  0xfe   : > { %4430 = vmatmul.mubr.f32.gmra.mxu0 %v6518_v52  ;;  %4463 = vmatpush3.msra.mxu1 %v3531_v56  ;;  %v3569_v52 = vld [vmem:[%s6479_s3 + $0x3b0] sm:$0xff] }
  0xff   : > { %4542 = vmatprep.subr.mxu0 %v3547_v1  ;;  %4464 = vmatprep.mubr.f32.mxu1 %v5309_v57  ;;  %v3593_v57 = vld [vmem:[%s6479_s3 + $0x470] sm:$0xff] }
 0x100   : > { %4543 = vmatpush3.msra.mxu0 %v3547_v1  ;;  %4465 = vmatmul.mubr.f32.vlgmr.msra.gmra.mxu1 %v5315_v63  ;;  %v3576_v63 = vld [vmem:[%s6479_s3 + $0x3e8] sm:$0xff]  ;;  %v6523_v1 = vld [vmem:[#allocation7_spill] sm:$0xff] }
 0x101   : > { %4544 = vmatprep.mubr.f32.mxu0 %v5321_v4  ;;  %4592 = vmatprep.subr.mxu1 %v3578_v51  ;;  %v3592_v4 = vld [vmem:[%s6479_s3 + $0x468] sm:$0xff] }
 0x102   : > { %4545 = vmatmul.mubr.f32.vlgmr.msra.gmra.mxu0 %v5324_v5  ;;  %4593 = vmatpush3.msra.mxu1 %v3578_v51  ;;  %v3575_v5 = vld [vmem:[%s6479_s3 + $0x3e0] sm:$0xff] }
 0x103   : > { %4672 = vmatprep.subr.mxu0 %v3594_v29  ;;  %4467 = vmatprep.mubr.f32.mxu1 %v5327_v20  ;;  %v3591_v20 = vld [vmem:[%s6479_s3 + $0x460] sm:$0xff] }
 0x104   : > { %4673 = vmatpush3.msra.mxu0 %v3594_v29  ;;  %4468 = vmatmul.mubr.f32.gmra.mxu1 %v5333_v24  ;;  %v3574_v24 = vld [vmem:[%s6479_s3 + $0x3d8] sm:$0xff]  ;;  %v6525_v29 = vld [vmem:[#allocation9_spill] sm:$0xff] }
 0x105   : > { %4547 = vmatprep.mubr.f32.mxu0 %v5339_v30  ;;  %4594 = vmatprep.subr.mxu1 %v3577_v6  ;;  %v3590_v30 = vld [vmem:[%s6479_s3 + $0x458] sm:$0xff] }
 0x106   : > { %4548 = vmatmul.mubr.f32.gmra.mxu0 %v5342_v31  ;;  %4595 = vmatpush3.msra.mxu1 %v3577_v6  ;;  %v6526_v6 = vld [vmem:[#allocation10_spill] sm:$0xff] }
 0x107   : > { %4674 = vmatprep.subr.mxu0 %v3593_v57  ;;  %4470 = vmatprep.mubr.f32.mxu1 %v5345_v35  ;;  %v3573_v35 = vld [vmem:[%s6479_s3 + $0x3d0] sm:$0xff] }
 0x108   : > { %4675 = vmatpush3.msra.mxu0 %v3593_v57  ;;  %4471 = vmatmul.mubr.f32.gmra.mxu1 %v5351_v42 }
 0x109   : > { %4550 = vmatprep.mubr.f32.mxu0 %v5357_v49  ;;  %4596 = vmatprep.subr.mxu1 %v3576_v63 }
 0x10a   : > { %4551 = vmatmul.mubr.f32.gmra.mxu0 %v5360_v53  ;;  %4597 = vmatpush3.msra.mxu1 %v3576_v63  ;;  %v3589_v53 = vld [vmem:[%s6479_s3 + $0x450] sm:$0xff]  ;;  %v3568_v63 = vld [vmem:[%s6479_s3 + $0x3a8] sm:$0xff] }
 0x10b   : > { %4676 = vmatprep.subr.mxu0 %v3592_v4  ;;  %4473 = vmatprep.mubr.f32.mxu1 %v5363_v59 }
 0x10c   : > { %4677 = vmatpush3.msra.mxu0 %v3592_v4  ;;  %4474 = vmatmul.mubr.f32.gmra.mxu1 %v5369_v3  ;;  %v3572_v3 = vld [vmem:[%s6479_s3 + $0x3c8] sm:$0xff] }
 0x10d   : > { %4553 = vmatprep.mubr.f32.mxu0 %v5375_v18  ;;  %4598 = vmatprep.subr.mxu1 %v3575_v5 }
 0x10e   : > { %4554 = vmatmul.mubr.f32.gmra.mxu0 %v5378_v19  ;;  %4599 = vmatpush3.msra.mxu1 %v3575_v5  ;;  %v6519_v19 = vld [vmem:[#allocation3_spill] sm:$0xff] }
 0x10f   : > { %4678 = vmatprep.subr.mxu0 %v3591_v20  ;;  %4476 = vmatprep.mubr.f32.mxu1 %v5381_v28  ;;  %v6520_v28 = vld [vmem:[#allocation4_spill] sm:$0xff]  ;;  %v6527_v5 = vld [vmem:[#allocation11_spill] sm:$0xff] }
 0x110   : > { %4679 = vmatpush3.msra.mxu0 %v3591_v20  ;;  %4477 = vmatmul.mubr.f32.gmra.mxu1 %v5387_v45  ;;  %v3588_v45 = vld [vmem:[%s6479_s3 + $0x448] sm:$0xff]  ;;  %v6528_v20 = vld [vmem:[#allocation12_spill] sm:$0xff] }
 0x111   : > { %4556 = vmatprep.mubr.f32.mxu0 %v5393_v55  ;;  %4600 = vmatprep.subr.mxu1 %v3574_v24  ;;  %v5806_v31 = vpop.f32.mrf.mxu1 }
 0x112   : > { %4557 = vmatmul.mubr.f32.gmra.mxu0 %v5396_v61  ;;  %4601 = vmatpush3.msra.mxu1 %v3574_v24  ;;  %v5812_v42 = vpop.f32.mrf.mxu0 }
 0x113   : > { %4680 = vmatprep.subr.mxu0 %v3590_v30  ;;  %4479 = vmatprep.mubr.f32.mxu1 %v5399_v10  ;;  %v5815_v49 = vpop.f32.mrf.mxu1  ;;  %v3571_v10 = vld [vmem:[%s6479_s3 + $0x3c0] sm:$0xff] }
 0x114   : > { %4681 = vmatpush3.msra.mxu0 %v3590_v30  ;;  %4480 = vmatmul.mubr.f32.gmra.mxu1 %v5405_v12  ;;  %v5821_v59 = vpop.f32.mrf.mxu0 }
 0x115   : > { %4559 = vmatprep.mubr.f32.mxu0 %v5411_v21  ;;  %4602 = vmatprep.subr.mxu1 %v3573_v35  ;;  %v6521_v21 = vld [vmem:[#allocation5_spill] sm:$0xff] }
 0x116   : > { %4560 = vmatmul.mubr.f32.gmra.mxu0 %v5414_v22  ;;  %4603 = vmatpush3.msra.mxu1 %v3573_v35  ;;  %v5828_v18 = vpop.f32.mrf.mxu1  ;;  %v6522_v22 = vld [vmem:[#allocation6_spill] sm:$0xff] }
 0x117   : > { %4682 = vmatprep.subr.mxu0 %v3589_v53  ;;  %4482 = vmatprep.mubr.f32.mxu1 %v6519_v19  ;;  %v3566_v19 = vld [vmem:[%s6479_s3 + $0x398] sm:$0xff] }
 0x118   : > { %4683 = vmatpush3.msra.mxu0 %v3589_v53  ;;  %4483 = vmatmul.mubr.f32.gmra.mxu1 %v6520_v28  ;;  %v5835_v55 = vpop.f32.mrf.mxu0  ;;  %v5837_v61 = vpop.f32.mrf.mxu1  ;;  %v6529_v53 = vld [vmem:[#allocation13_spill] sm:$0xff] }
 0x119   : > { %4562 = vmatprep.mubr.f32.mxu0 %v5429_v39  ;;  %4604 = vmatprep.subr.mxu1 %v3572_v3  ;;  %v3587_v39 = vld [vmem:[%s6479_s3 + $0x440] sm:$0xff] }
 0x11a   : > { %4563 = vmatmul.mubr.f32.gmra.mxu0 %v5432_v9  ;;  %4605 = vmatpush3.msra.mxu1 %v3572_v3  ;;  %v5844_v12 = vpop.f32.mrf.mxu0  ;;  %v3570_v9 = vld [vmem:[%s6479_s3 + $0x3b8] sm:$0xff]  ;;  %v6530_v3 = vld [vmem:[#allocation14_spill] sm:$0xff] }
 0x11b   : > { %4684 = vmatprep.subr.mxu0 %v3588_v45  ;;  %4485 = vmatprep.mubr.f32.mxu1 %v6521_v21 }
 0x11c   : > { %4685 = vmatpush3.msra.mxu0 %v3588_v45  ;;  %4486 = vmatmul.mubr.f32.gmra.mxu1 %v6522_v22  ;;  %v5851_v16 = vpop.f32.mrf.mxu1  ;;  %v6531_v45 = vld [vmem:[#allocation15_spill] sm:$0xff] }
 0x11d   : > { %4565 = vmatprep.mubr.f32.mxu0 %v5447_v2  ;;  %4606 = vmatprep.subr.mxu1 %v3571_v10  ;;  %v3586_v2 = vld [vmem:[%s6479_s3 + $0x438] sm:$0xff]  ;;  %v3565_v22 = vld [vmem:[%s6479_s3 + $0x390] sm:$0xff] }
 0x11e   : > { %4566 = vmatmul.mubr.f32.gmra.mxu0 %v5450_v15  ;;  %4607 = vmatpush3.msra.mxu1 %v3571_v10  ;;  %v5858_v54 = vpop.f32.mrf.mxu0  ;;  %v5860_v56 = vpop.f32.mrf.mxu1  ;;  %v6532_v10 = vld [vmem:[#allocation16_spill] sm:$0xff] }
 0x11f   : > { %4686 = vmatprep.subr.mxu0 %v3587_v39  ;;  %4488 = vmatprep.mubr.f32.mxu1 %v6523_v1  ;;  %v6534_v1 = vld [vmem:[#allocation18_spill] sm:$0xff] }
 0x120   : > { %4687 = vmatpush3.msra.mxu0 %v3587_v39  ;;  %4489 = vmatmul.mubr.f32.gmra.mxu1 %v6524_v26  ;;  %v5867_v15 = vpop.f32.mrf.mxu0 }
 0x121   : > { %4568 = vmatprep.mubr.f32.mxu0 %v5465_v7  ;;  %4608 = vmatprep.subr.mxu1 %v3570_v9  ;;  %v3585_v7 = vld [vmem:[%s6479_s3 + $0x430] sm:$0xff] }
 0x122   : > { %4569 = vmatmul.mubr.f32.gmra.mxu0 %v5468_v34  ;;  %4609 = vmatpush3.msra.mxu1 %v3570_v9  ;;  %v5874_v51 = vpop.f32.mrf.mxu1  ;;  %v6533_v9 = vld [vmem:[#allocation17_spill] sm:$0xff] }
 0x123   : > { %4688 = vmatprep.subr.mxu0 %v3586_v2  ;;  %4491 = vmatprep.mubr.f32.mxu1 %v6525_v29  ;;  %v5961_v29 = vld [vmem:[#allocation2 + $0x182] sm:$0xff] }
 0x124   : > { %4689 = vmatpush3.msra.mxu0 %v3586_v2  ;;  %4492 = vmatmul.mubr.f32.gmra.mxu1 %v6526_v6  ;;  %v5881_v57 = vpop.f32.mrf.mxu0  ;;  %v5883_v34 = vpop.f32.mrf.mxu1  ;;  %v5964_v6 = vld [vmem:[#allocation2 + $0x18a] sm:$0xff] }
 0x125   : > { %4571 = vmatprep.mubr.f32.mxu0 %v5483_v33  ;;  %4610 = vmatprep.subr.mxu1 %v3569_v52  ;;  %v3584_v33 = vld [vmem:[%s6479_s3 + $0x428] sm:$0xff] }
 0x126   : > { %4572 = vmatmul.mubr.f32.gmra.mxu0 %v5486_v48  ;;  %4611 = vmatpush3.msra.mxu1 %v3569_v52  ;;  %v5890_v4 = vpop.f32.mrf.mxu0  ;;  %v3567_v48 = vld [vmem:[%s6479_s3 + $0x3a0] sm:$0xff] }
 0x127   : > { %4690 = vmatprep.subr.mxu0 %v3585_v7  ;;  %4494 = vmatprep.mubr.f32.mxu1 %v6527_v5 }
 0x128   : > { %4691 = vmatpush3.msra.mxu0 %v3585_v7  ;;  %4495 = vmatmul.mubr.f32.gmra.mxu1 %v6528_v20  ;;  %v5897_v24 = vpop.f32.mrf.mxu1  ;;  %v2298_v7 = vld [vmem:[#allocation2 + $0x198] sm:$0xff] }
 0x129   : > { %4574 = vmatprep.mubr.f32.mxu0 %v5501_v36  ;;  %4612 = vmatprep.subr.mxu1 %v3568_v63  ;;  %v3583_v36 = vld [vmem:[%s6479_s3 + $0x420] sm:$0xff]  ;;  %v2574_v20 = vld [vmem:[#allocation2 + $0x31] sm:$0xff] }
 0x12a   : > { %4575 = vmatmul.mubr.f32.gmra.mxu0 %v5504_v11  ;;  %4613 = vmatpush3.msra.mxu1 %v3568_v63  ;;  %v5904_v30 = vpop.f32.mrf.mxu0  ;;  %v5906_v35 = vpop.f32.mrf.mxu1  ;;  %v2299_v63 = vld [vmem:[#allocation2 + $0x1a0] sm:$0xff] }
 0x12b   : > { %4692 = vmatprep.subr.mxu0 %v3584_v33  ;;  %4497 = vmatprep.mubr.f32.mxu1 %v6529_v53  ;;  %v2880_v53 = vld [vmem:[#allocation2 + $0x32] sm:$0xff] }
 0x12c   : > { %4693 = vmatpush3.msra.mxu0 %v3584_v33  ;;  %4498 = vmatmul.mubr.f32.gmra.mxu1 %v6530_v3  ;;  %v5913_v11 = vpop.f32.mrf.mxu0  ;;  %v2575_v33 = vld [vmem:[#allocation2 + $0x39] sm:$0xff]  ;;  %v2576_v3 = vld [vmem:[#allocation2 + $0x49] sm:$0xff] }
 0x12d   : > { %4577 = vmatprep.mubr.f32.mxu0 %v5519_v60  ;;  %4614 = vmatprep.subr.mxu1 %v3567_v48  ;;  %v3582_v60 = vld [vmem:[%s6479_s3 + $0x418] sm:$0xff] }
 0x12e   : > { %4578 = vmatmul.mubr.f32.gmra.mxu0 %v5522_v41  ;;  %4615 = vmatpush3.msra.mxu1 %v3567_v48  ;;  %v5920_v28 = vpop.f32.mrf.mxu1 }
 0x12f   : > { %4694 = vmatprep.subr.mxu0 %v3583_v36  ;;  %4500 = vmatprep.mubr.f32.mxu1 %v6531_v45  ;;  %v2882_v45 = vld [vmem:[#allocation2 + $0x4a] sm:$0xff] }
 0x130   : > { %4695 = vmatpush3.msra.mxu0 %v3583_v36  ;;  %4501 = vmatmul.mubr.f32.gmra.mxu1 %v6532_v10  ;;  %v5927_v21 = vpop.f32.mrf.mxu0  ;;  %v5929_v41 = vpop.f32.mrf.mxu1  ;;  %v2881_v36 = vld [vmem:[#allocation2 + $0x3a] sm:$0xff] }
 0x131   : > { %4580 = vmatprep.mubr.f32.mxu0 %v5537_v46  ;;  %4616 = vmatprep.subr.mxu1 %v3566_v19  ;;  %v3581_v46 = vld [vmem:[%s6479_s3 + $0x410] sm:$0xff] }
 0x132   : > { %4581 = vmatmul.mubr.f32.gmra.mxu0 %v5540_v27  ;;  %4617 = vmatpush3.msra.mxu1 %v3566_v19  ;;  %v5936_v39 = vpop.f32.mrf.mxu0  ;;  %v3564_v27 = vld [vmem:[%s6479_s3 + $0x388] sm:$0xff] }
 0x133   : > { %4696 = vmatprep.subr.mxu0 %v3582_v60  ;;  %4503 = vmatprep.mubr.f32.mxu1 %v6533_v9 }
 0x134   : > { %4697 = vmatpush3.msra.mxu0 %v3582_v60  ;;  %4504 = vmatmul.mubr.f32.gmra.mxu1 %v6534_v1  ;;  %v5943_v26 = vpop.f32.mrf.mxu1  ;;  %v2577_v60 = vld [vmem:[#allocation2 + $0x51] sm:$0xff]  ;;  %v2578_v1 = vld [vmem:[#allocation2 + $0x61] sm:$0xff] }
 0x135   : > { %4583 = vmatprep.mubr.f32.mxu0 %v5555_v25  ;;  %4618 = vmatprep.subr.mxu1 %v3565_v22  ;;  %v3580_v25 = vld [vmem:[%s6479_s3 + $0x408] sm:$0xff] }
 0x136   : > { %4584 = vmatmul.mubr.f32.gmra.mxu0 %v5558_v38  ;;  %4619 = vmatpush3.msra.mxu1 %v3565_v22  ;;  %v5950_v2 = vpop.f32.mrf.mxu0  ;;  %v5952_v52 = vpop.f32.mrf.mxu1 }
 0x137   : > { %4698 = vmatprep.subr.mxu0 %v3581_v46  ;;  %4506 = vmatprep.mubr.f32.mxu1 %v5561_v32 }
 0x138   : > { %4699 = vmatpush3.msra.mxu0 %v3581_v46  ;;  %4507 = vmatmul.mubr.f32.gmra.mxu1 %v5567_v23  ;;  %v5959_v38 = vpop.f32.mrf.mxu0  ;;  %v3563_v23 = vld [vmem:[%s6479_s3 + $0x380] sm:$0xff] }
 0x139   : > { %4586 = vmatprep.mubr.f32.mxu0 %v5741_v0  ;;  %4620 = vmatprep.subr.mxu1 %v3564_v27 }
 0x13a   : > { %4587 = vmatmul.mubr.f32.gmra.mxu0 %v5743_v43  ;;  %4621 = vmatpush3.msra.mxu1 %v3564_v27  ;;  %v5967_v32 = vpop.f32.mrf.mxu1  ;;  %v3579_v43 = vld [vmem:[%s6479_s3 + $0x400] sm:$0xff] }
 0x13b   : > { %4700 = vmatprep.subr.mxu0 %v3580_v25  ;;  %4509 = vmatprep.mubr.f32.mxu1 %v5961_v29 }
 0x13c   : > { %4701 = vmatpush3.msra.mxu0 %v3580_v25  ;;  %4510 = vmatmul.mubr.f32.gmra.mxu1 %v5964_v6  ;;  %v5974_v0 = vpop.f32.mrf.mxu0  ;;  %v5976_v5 = vpop.f32.mrf.mxu1  ;;  %v2883_v25 = vld [vmem:[#allocation2 + $0x52] sm:$0xff] }
 0x13d   : > { %4589 = vmatprep.mubr.f32.mxu0 %v2298_v7  ;;  %4622 = vmatprep.subr.mxu1 %v3563_v23 }
 0x13e   : > { %4590 = vmatmul.mubr.f32.gmra.mxu0 %v2299_v63  ;;  %4623 = vmatpush3.msra.mxu1 %v3563_v23  ;;  %v5981_v48 = vpop.f32.mrf.mxu0  ;;  %v2884_v63 = vld [vmem:[#allocation2 + $0x62] sm:$0xff] }
 0x13f   : > { %4702 = vmatprep.subr.mxu0 %v3579_v43  ;;  %4624 = vmatprep.mubr.f32.mxu1 %v2574_v20  ;;  %v2579_v20 = vld [vmem:[#allocation2 + $0x69] sm:$0xff] }
 0x140   : > { %4703 = vmatpush3.msra.mxu0 %v3579_v43  ;;  %v4146_v19 = vpop.f32.mrf.mxu1  ;;  %4625 = vmatmul.mubr.f32.vlgmr.msra.gmra.mxu1 %v2575_v33 }
 0x141   : > { %v890_v10 = vadd.f32 %v4146_v19, %v5812_v42  ;;  %4704 = vmatprep.mubr.f32.mxu0 %v2880_v53  ;;  %4627 = vmatprep.mubr.f32.mxu1 %v2576_v3  ;;  %v2580_v3 = vld [vmem:[#allocation2 + $0x79] sm:$0xff]  ;;  %v2885_v19 = vld [vmem:[#allocation2 + $0x6a] sm:$0xff] }
 0x142   : > { %v4226_v22 = vpop.f32.mrf.mxu0  ;;  %4705 = vmatmul.mubr.f32.vlgmr.msra.gmra.mxu0 %v2881_v36  ;;  %v884_v9 = vpop.f32.mrf.mxu1 }
 0x143   : > { %v5984_v46 = vadd.f32 %v4226_v22, %v890_v10  ;;  %v885_v27 = vadd.f32 %v884_v9, %v5821_v59  ;;  %4707 = vmatprep.mubr.f32.mxu0 %v2882_v45  ;;  %v2581_v9 = vld [vmem:[#allocation2 + $0x81] sm:$0xff] }
 0x144   : > { %v1158_v7 = vpop.f32.mrf.mxu0  ;;  %v4149_v23 = vpop.f32.mrf.mxu1  ;;  %4628 = vmatmul.mubr.f32.gmra.mxu1 %v2577_v60  ;;  %v2886_v60 = vld [vmem:[#allocation2 + $0x7a] sm:$0xff] }
 0x145   : > { %v5987_v43 = vadd.f32 %v1158_v7, %v885_v27  ;;  %v900_v42 = vadd.f32 %v4149_v23, %v5835_v55  ;;  %4630 = vmatprep.mubr.f32.mxu1 %v2578_v1  ;;  %v2887_v23 = vld [vmem:[#allocation2 + $0x82] sm:$0xff] }
 0x146   : > { %v4229_v33 = vpop.f32.mrf.mxu0  ;;  %4708 = vmatmul.mubr.f32.gmra.mxu0 %v2883_v25  ;;  %v894_v53 = vpop.f32.mrf.mxu1  ;;  %v2582_v25 = vld [vmem:[#allocation2 + $0x91] sm:$0xff] }
 0x147   : > { %v5990_v36 = vadd.f32 %v4229_v33, %v900_v42  ;;  %v895_v59 = vadd.f32 %v894_v53, %v5844_v12  ;;  %4710 = vmatprep.mubr.f32.mxu0 %v2884_v63  ;;  %v2583_v53 = vld [vmem:[#allocation2 + $0x99] sm:$0xff] }
 0x148   : > { %v1168_v45 = vpop.f32.mrf.mxu0  ;;  %v4152_v10 = vpop.f32.mrf.mxu1  ;;  %4631 = vmatmul.mubr.f32.gmra.mxu1 %v2579_v20  ;;  %v2888_v20 = vld [vmem:[#allocation2 + $0x92] sm:$0xff] }
 0x149   : > { %v5993_v22 = vadd.f32 %v1168_v45, %v895_v59  ;;  %v910_v55 = vadd.f32 %v4152_v10, %v5858_v54  ;;  %4633 = vmatprep.mubr.f32.mxu1 %v2580_v3  ;;  %v2889_v10 = vld [vmem:[#allocation2 + $0x9a] sm:$0xff] }
 0x14a   : > { %v4232_v1 = vpop.f32.mrf.mxu0  ;;  %4711 = vmatmul.mubr.f32.gmra.mxu0 %v2885_v19  ;;  %v904_v27 = vpop.f32.mrf.mxu1  ;;  %v2584_v19 = vld [vmem:[#allocation2 + $0xa9] sm:$0xff] }
 0x14b   : > { %v5996_v7 = vadd.f32 %v4232_v1, %v910_v55  ;;  %v905_v12 = vadd.f32 %v904_v27, %v5867_v15  ;;  %4713 = vmatprep.mubr.f32.mxu0 %v2886_v60  ;;  %v2585_v27 = vld [vmem:[#allocation2 + $0xb1] sm:$0xff] }
 0x14c   : > { %v1178_v63 = vpop.f32.mrf.mxu0  ;;  %v4155_v42 = vpop.f32.mrf.mxu1  ;;  %4634 = vmatmul.mubr.f32.gmra.mxu1 %v2581_v9  ;;  %v2890_v9 = vld [vmem:[#allocation2 + $0xaa] sm:$0xff] }
 0x14d   : > { %v5999_v33 = vadd.f32 %v1178_v63, %v905_v12  ;;  %v920_v54 = vadd.f32 %v4155_v42, %v5881_v57  ;;  %4636 = vmatprep.mubr.f32.mxu1 %v2582_v25 }
 0x14e   : > { %v4235_v3 = vpop.f32.mrf.mxu0  ;;  %4714 = vmatmul.mubr.f32.gmra.mxu0 %v2887_v23  ;;  %v914_v59 = vpop.f32.mrf.mxu1 }
 0x14f   : > { %v6002_v45 = vadd.f32 %v4235_v3, %v920_v54  ;;  %v915_v15 = vadd.f32 %v914_v59, %v5890_v4  ;;  %4716 = vmatprep.mubr.f32.mxu0 %v2888_v20  ;;  %v2891_v4 = vld [vmem:[#allocation2 + $0xb2] sm:$0xff]  ;;  %v2892_v54 = vld [vmem:[#allocation2 + $0xc2] sm:$0xff] }
 0x150   : > { %v1188_v60 = vpop.f32.mrf.mxu0  ;;  %v4158_v55 = vpop.f32.mrf.mxu1  ;;  %4637 = vmatmul.mubr.f32.gmra.mxu1 %v2583_v53 }
 0x151   : > { %v6005_v1 = vadd.f32 %v1188_v60, %v915_v15  ;;  %v930_v57 = vadd.f32 %v4158_v55, %v5904_v30  ;;  %4639 = vmatprep.mubr.f32.mxu1 %v2584_v19  ;;  %v2894_v55 = vld [vmem:[#allocation2 + $0xda] sm:$0xff] }
 0x152   : > { %v4238_v25 = vpop.f32.mrf.mxu0  ;;  %4717 = vmatmul.mubr.f32.gmra.mxu0 %v2889_v10  ;;  %v924_v12 = vpop.f32.mrf.mxu1 }
 0x153   : > { %v6008_v23 = vadd.f32 %v4238_v25, %v930_v57  ;;  %v925_v63 = vadd.f32 %v924_v12, %v5913_v11  ;;  %4719 = vmatprep.mubr.f32.mxu0 %v2890_v9  ;;  %v2893_v11 = vld [vmem:[#allocation2 + $0xca] sm:$0xff]  ;;  %v2895_v25 = vld [vmem:[#allocation2 + $0xe2] sm:$0xff] }
 0x154   : > { %v1198_v42 = vpop.f32.mrf.mxu0  ;;  %v4161_v20 = vpop.f32.mrf.mxu1  ;;  %4640 = vmatmul.mubr.f32.gmra.mxu1 %v2585_v27 }
 0x155   : > { %v6011_v53 = vadd.f32 %v1198_v42, %v925_v63  ;;  %v940_v3 = vadd.f32 %v4161_v20, %v5927_v21  ;;  %4642 = vmatprep.mubr.f32.mxu1 %v5644_v37 }
 0x156   : > { %v4241_v30 = vpop.f32.mrf.mxu0  ;;  %4720 = vmatmul.mubr.f32.gmra.mxu0 %v2891_v4  ;;  %v934_v59 = vpop.f32.mrf.mxu1 }
 0x157   : > { %v6015_v19 = vadd.f32 %v4241_v30, %v940_v3  ;;  %v935_v15 = vadd.f32 %v934_v59, %v5936_v39  ;;  %4722 = vmatprep.mubr.f32.mxu0 %v2892_v54  ;;  %v2897_v54 = vld [vmem:[#allocation2 + $0xfa] sm:$0xff] }
 0x158   : > { %v1208_v10 = vpop.f32.mrf.mxu0  ;;  %v4164_v60 = vpop.f32.mrf.mxu1  ;;  %4643 = vmatmul.mubr.f32.gmra.mxu1 %v5650_v40  ;;  %v2896_v40 = vld [vmem:[#allocation2 + $0xf2] sm:$0xff] }
 0x159   : > { %v6019_v9 = vadd.f32 %v1208_v10, %v935_v15  ;;  %v950_v21 = vadd.f32 %v4164_v60, %v5950_v2  ;;  %4645 = vmatprep.mubr.f32.mxu1 %v5658_v13  ;;  %v2899_v10 = vld [vmem:[#allocation2 + $0x112] sm:$0xff] }
 0x15a   : > { %v4244_v37 = vpop.f32.mrf.mxu0  ;;  %4723 = vmatmul.mubr.f32.gmra.mxu0 %v2893_v11  ;;  %v944_v57 = vpop.f32.mrf.mxu1 }
 0x15b   : > { %v6023_v27 = vadd.f32 %v4244_v37, %v950_v21  ;;  %v945_v39 = vadd.f32 %v944_v57, %v5959_v38  ;;  %4725 = vmatprep.mubr.f32.mxu0 %v2894_v55 }
 0x15c   : > { %v1218_v12 = vpop.f32.mrf.mxu0  ;;  %v4167_v63 = vpop.f32.mrf.mxu1  ;;  %4646 = vmatmul.mubr.f32.gmra.mxu1 %v5664_v62  ;;  %v2898_v62 = vld [vmem:[#allocation2 + $0x10a] sm:$0xff] }
 0x15d   : > { %v6027_v4 = vadd.f32 %v1218_v12, %v945_v39  ;;  %v960_v2 = vadd.f32 %v4167_v63, %v5974_v0  ;;  %4648 = vmatprep.mubr.f32.mxu1 %v5672_v14  ;;  %v2901_v39 = vld [vmem:[#allocation2 + $0x12a] sm:$0xff] }
 0x15e   : > { %v4247_v13 = vpop.f32.mrf.mxu0  ;;  %4726 = vmatmul.mubr.f32.gmra.mxu0 %v2895_v25  ;;  %v954_v42 = vpop.f32.mrf.mxu1 }
 0x15f   : > { %v6031_v20 = vadd.f32 %v4247_v13, %v960_v2  ;;  %v955_v38 = vadd.f32 %v954_v42, %v5981_v48  ;;  %4728 = vmatprep.mubr.f32.mxu0 %v2896_v40  ;;  %v2598_v13 = vld [vmem:[#allocation2 + $0x151] sm:$0xff] }
 0x160   : > { %v1228_v3 = vpop.f32.mrf.mxu0  ;;  %v4170_v30 = vpop.f32.mrf.mxu1  ;;  %4649 = vmatmul.mubr.f32.gmra.mxu1 %v5678_v47  ;;  %v2900_v47 = vld [vmem:[#allocation2 + $0x122] sm:$0xff] }
 0x161   : > { %v6035_v59 = vadd.f32 %v1228_v3, %v955_v38  ;;  %v970_v0 = vadd.f32 %v4170_v30, %v5806_v31  ;;  %4651 = vmatprep.mubr.f32.mxu1 %v5686_v58  ;;  %v2903_v38 = vld [vmem:[#allocation2 + $0x142] sm:$0xff]  ;;  %v2904_v3 = vld [vmem:[#allocation2 + $0x152] sm:$0xff] }
 0x162   : > { %v4250_v14 = vpop.f32.mrf.mxu0  ;;  %4729 = vmatmul.mubr.f32.gmra.mxu0 %v2897_v54  ;;  %v964_v15 = vpop.f32.mrf.mxu1 }
 0x163   : > { %v6039_v11 = vadd.f32 %v4250_v14, %v970_v0  ;;  %v965_v48 = vadd.f32 %v964_v15, %v5815_v49  ;;  %4731 = vmatprep.mubr.f32.mxu0 %v2898_v62  ;;  %v2600_v14 = vld [vmem:[#allocation2 + $0x169] sm:$0xff] }
 0x164   : > { %v1238_v60 = vpop.f32.mrf.mxu0  ;;  %v4173_v55 = vpop.f32.mrf.mxu1  ;;  %4652 = vmatmul.mubr.f32.gmra.mxu1 %v5692_v17  ;;  %v2902_v17 = vld [vmem:[#allocation2 + $0x13a] sm:$0xff] }
 0x165   : > { %v6043_v21 = vadd.f32 %v1238_v60, %v965_v48  ;;  %v980_v31 = vadd.f32 %v4173_v55, %v5828_v18  ;;  %4654 = vmatprep.mubr.f32.mxu1 %v5700_v44  ;;  %v2597_v44 = vld [vmem:[#allocation2 + $0x141] sm:$0xff]  ;;  %v2906_v55 = vld [vmem:[#allocation2 + $0x16a] sm:$0xff] }
 0x166   : > { %v4253_v58 = vpop.f32.mrf.mxu0  ;;  %4732 = vmatmul.mubr.f32.gmra.mxu0 %v2899_v10  ;;  %v974_v37 = vpop.f32.mrf.mxu1  ;;  %v2905_v48 = vld [vmem:[#allocation2 + $0x15a] sm:$0xff] }
 0x167   : > { %v6047_v57 = vadd.f32 %v4253_v58, %v980_v31  ;;  %v975_v49 = vadd.f32 %v974_v37, %v5837_v61  ;;  %4734 = vmatprep.mubr.f32.mxu0 %v2900_v47  ;;  %v2601_v31 = vld [vmem:[#allocation2 + $0x171] sm:$0xff] }
 0x168   : > { %v1248_v25 = vpop.f32.mrf.mxu0  ;;  %v4176_v12 = vpop.f32.mrf.mxu1  ;;  %4655 = vmatmul.mubr.f32.gmra.mxu1 %v5706_v8 }
 0x169   : > { %v6051_v63 = vadd.f32 %v1248_v25, %v975_v49  ;;  %v990_v18 = vadd.f32 %v4176_v12, %v5851_v16  ;;  %4657 = vmatprep.mubr.f32.mxu1 %v5714_v50  ;;  %v2599_v50 = vld [vmem:[#allocation2 + $0x159] sm:$0xff] }
 0x16a   : > { %v4256_v40 = vpop.f32.mrf.mxu0  ;;  %4735 = vmatmul.mubr.f32.gmra.mxu0 %v2901_v39  ;;  %v984_v2 = vpop.f32.mrf.mxu1 }
 0x16b   : > { %v6055_v42 = vadd.f32 %v4256_v40, %v990_v18  ;;  %v985_v61 = vadd.f32 %v984_v2, %v5860_v56  ;;  %4737 = vmatprep.mubr.f32.mxu0 %v2902_v17  ;;  %v2604_v2 = vld [vmem:[#allocation2 + $0x199] sm:$0xff] }
 0x16c   : > { %v1258_v54 = vpop.f32.mrf.mxu0  ;;  %v4179_v8 = vpop.f32.mrf.mxu1  ;;  %4658 = vmatmul.mubr.f32.gmra.mxu1 %v2597_v44  ;;  %v4799_v44 = vld [vmem:[#allocation2 + $0x181] sm:$0xff] }
 0x16d   : > { %v6058_v30 = vadd.f32 %v1258_v54, %v985_v61  ;;  %v1000_v16 = vadd.f32 %v4179_v8, %v5874_v51  ;;  %4660 = vmatprep.mubr.f32.mxu1 %v2598_v13  ;;  %v4800_v54 = vld [vmem:[#allocation2 + $0x189] sm:$0xff]  ;;  %v2910_v8 = vld [vmem:[#allocation2 + $0x19a] sm:$0xff] }
 0x16e   : > { %v4259_v62 = vpop.f32.mrf.mxu0  ;;  %4738 = vmatmul.mubr.f32.gmra.mxu0 %v2903_v38  ;;  %v994_v0 = vpop.f32.mrf.mxu1 }
 0x16f   : > { %v6061_v15 = vadd.f32 %v4259_v62, %v1000_v16  ;;  %v995_v56 = vadd.f32 %v994_v0, %v5883_v34  ;;  %4740 = vmatprep.mubr.f32.mxu0 %v2904_v3  ;;  %v2907_v34 = vld [vmem:[#allocation2 + $0x172] sm:$0xff]  ;;  %v2605_v16 = vld [vmem:[#allocation2 + $0x1a1] sm:$0xff] }
 0x170   : > { %v1268_v10 = vpop.f32.mrf.mxu0  ;;  %v4182_v60 = vpop.f32.mrf.mxu1  ;;  %4661 = vmatmul.mubr.f32.gmra.mxu1 %v2599_v50 }
 0x171   : > { %v6064_v47 = vadd.f32 %v1268_v10, %v995_v56  ;;  %v1010_v51 = vadd.f32 %v4182_v60, %v5897_v24  ;;  %4663 = vmatprep.mubr.f32.mxu1 %v2600_v14 }
 0x172   : > { %v4262_v58 = vpop.f32.mrf.mxu0  ;;  %4741 = vmatmul.mubr.f32.gmra.mxu0 %v2905_v48  ;;  %v1004_v37 = vpop.f32.mrf.mxu1 }
 0x173   : > { %v6067_v49 = vadd.f32 %v4262_v58, %v1010_v51  ;;  %v1005_v39 = vadd.f32 %v1004_v37, %v5906_v35  ;;  %4743 = vmatprep.mubr.f32.mxu0 %v2906_v55 }
 0x174   : > { %v1278_v25 = vpop.f32.mrf.mxu0  ;;  %v4185_v12 = vpop.f32.mrf.mxu1  ;;  %4664 = vmatmul.mubr.f32.gmra.mxu1 %v2601_v31 }
 0x175   : > { %v6070_v17 = vadd.f32 %v1278_v25, %v1005_v39  ;;  %v1020_v18 = vadd.f32 %v4185_v12, %v5920_v28  ;;  %4666 = vmatprep.mubr.f32.mxu1 %v4799_v44 }
 0x176   : > { %v4265_v24 = vpop.f32.mrf.mxu0  ;;  %4744 = vmatmul.mubr.f32.gmra.mxu0 %v2907_v34  ;;  %v1014_v40 = vpop.f32.mrf.mxu1 }
 0x177   : > { %v6073_v13 = vadd.f32 %v4265_v24, %v1020_v18  ;;  %v1015_v61 = vadd.f32 %v1014_v40, %v5929_v41  ;;  %4746 = vmatprep.mubr.f32.mxu0 %v5961_v29  ;;  %v2911_v29 = vld [vmem:[#allocation2 + $0x1a2] sm:$0xff] }
 0x178   : > { %v1288_v35 = vpop.f32.mrf.mxu0  ;;  %v4188_v38 = vpop.f32.mrf.mxu1  ;;  %4667 = vmatmul.mubr.f32.gmra.mxu1 %v4800_v54 }
 0x179   : > { %v6077_v3 = vadd.f32 %v1288_v35, %v1015_v61  ;;  %v1030_v28 = vadd.f32 %v4188_v38, %v5943_v26  ;;  %4669 = vmatprep.mubr.f32.mxu1 %v2604_v2 }
 0x17a   : > { %v4268_v50 = vpop.f32.mrf.mxu0  ;;  %4747 = vmatmul.mubr.f32.gmra.mxu0 %v5964_v6  ;;  %v1024_v62 = vpop.f32.mrf.mxu1 }
 0x17b   : > { %v6081_v0 = vadd.f32 %v4268_v50, %v1030_v28  ;;  %v1025_v41 = vadd.f32 %v1024_v62, %v5952_v52  ;;  %4749 = vmatprep.mubr.f32.mxu0 %v2910_v8 }
 0x17c   : > { %v1298_v14 = vpop.f32.mrf.mxu0  ;;  %v4191_v56 = vpop.f32.mrf.mxu1  ;;  %4670 = vmatmul.mubr.f32.gmra.mxu1 %v2605_v16 }
 0x17d   : > { %v6084_v48 = vadd.f32 %v1298_v14, %v1025_v41  ;;  %v1040_v10 = vadd.f32 %v4191_v56, %v5967_v32 }
 0x17e   : > { %v4271_v26 = vpop.f32.mrf.mxu0  ;;  %4750 = vmatmul.mubr.f32.gmra.mxu0 %v2911_v29  ;;  %v1034_v60 = vpop.f32.mrf.mxu1 }
 0x17f   : > { %v6087_v55 = vadd.f32 %v4271_v26, %v1040_v10  ;;  %v1035_v6 = vadd.f32 %v1034_v60, %v5976_v5 }
 0x180   : > { %v1308_v51 = vpop.f32.mrf.mxu0  ;;  %v4306_v31 = vpop.f32.mrf.mxu1 }
 0x181   : > { %v6090_v58 = vadd.f32 %v1308_v51, %v1035_v6  ;;  %v1624_v52 = vadd.f32 %v4306_v31, %v5984_v46 }
 0x182   : > { %v4386_v37 = vpop.f32.mrf.mxu0  ;;  %v1464_v39 = vpop.f32.mrf.mxu1 }
 0x183   : > { %v6093_v34 = vadd.f32 %v4386_v37, %v1624_v52  ;;  %v1623_v25 = vadd.f32 %v1464_v39, %v5987_v43 }
 0x184   : > { %v1770_v32 = vpop.f32.mrf.mxu0  ;;  %v4309_v12 = vpop.f32.mrf.mxu1 }
 0x185   : > { %v6096_v18 = vadd.f32 %v1770_v32, %v1623_v25  ;;  %v1626_v44 = vadd.f32 %v4309_v12, %v5990_v36 }
 0x186   : > { %v4389_v24 = vpop.f32.mrf.mxu0  ;;  %v1474_v5 = vpop.f32.mrf.mxu1 }
 0x187   : > { %v6099_v40 = vadd.f32 %v4389_v24, %v1626_v44  ;;  %v1625_v2 = vadd.f32 %v1474_v5, %v5993_v22 }
 0x188   : > { %v1780_v61 = vpop.f32.mrf.mxu0  ;;  %v4312_v46 = vpop.f32.mrf.mxu1 }
 0x189   : > { %v6102_v35 = vadd.f32 %v1780_v61, %v1625_v2  ;;  %v1628_v38 = vadd.f32 %v4312_v46, %v5996_v7 }
 0x18a   : > { %v4392_v54 = vpop.f32.mrf.mxu0  ;;  %v1484_v43 = vpop.f32.mrf.mxu1 }
 0x18b   : > { %v6105_v8 = vadd.f32 %v4392_v54, %v1628_v38  ;;  %v1627_v28 = vadd.f32 %v1484_v43, %v5999_v33 }
 0x18c   : > { %v1790_v16 = vpop.f32.mrf.mxu0  ;;  %v4315_v36 = vpop.f32.mrf.mxu1 }
 0x18d   : > { %v6108_v50 = vadd.f32 %v1790_v16, %v1627_v28  ;;  %v1630_v62 = vadd.f32 %v4315_v36, %v6002_v45 }
 0x18e   : > { %v4395_v41 = vpop.f32.mrf.mxu0  ;;  %v1494_v22 = vpop.f32.mrf.mxu1 }
 0x18f   : > { %v6111_v29 = vadd.f32 %v4395_v41, %v1630_v62  ;;  %v1629_v14 = vadd.f32 %v1494_v22, %v6005_v1 }
 0x190   : > { %v1800_v56 = vpop.f32.mrf.mxu0  ;;  %v4318_v7 = vpop.f32.mrf.mxu1 }
 0x191   : > { %v6114_v10 = vadd.f32 %v1800_v56, %v1629_v14  ;;  %v1632_v26 = vadd.f32 %v4318_v7, %v6008_v23 }
 0x192   : > { %v4398_v60 = vpop.f32.mrf.mxu0  ;;  %v1504_v33 = vpop.f32.mrf.mxu1 }
 0x193   : > { %v6117_v6 = vadd.f32 %v4398_v60, %v1632_v26  ;;  %v1631_v51 = vadd.f32 %v1504_v33, %v6011_v53 }
 0x194   : > { %v1810_v31 = vpop.f32.mrf.mxu0  ;;  %v4321_v45 = vpop.f32.mrf.mxu1 }
 0x195   : > { %v6120_v52 = vadd.f32 %v1810_v31, %v1631_v51  ;;  %v1634_v37 = vadd.f32 %v4321_v45, %v6015_v19 }
 0x196   : > { %v4401_v39 = vpop.f32.mrf.mxu0  ;;  %v1514_v1 = vpop.f32.mrf.mxu1 }
 0x197   : > { %v6123_v25 = vadd.f32 %v4401_v39, %v1634_v37  ;;  %v1633_v32 = vadd.f32 %v1514_v1, %v6019_v9 }
 0x198   : > { %v1820_v12 = vpop.f32.mrf.mxu0  ;;  %v4324_v23 = vpop.f32.mrf.mxu1 }
 0x199   : > { %v6126_v44 = vadd.f32 %v1820_v12, %v1633_v32  ;;  %v1636_v24 = vadd.f32 %v4324_v23, %v6023_v27 }
 0x19a   : > { %v4404_v5 = vpop.f32.mrf.mxu0  ;;  %v1524_v53 = vpop.f32.mrf.mxu1 }
 0x19b   : > { %v6129_v2 = vadd.f32 %v4404_v5, %v1636_v24  ;;  %v1635_v61 = vadd.f32 %v1524_v53, %v6027_v4 }
 0x19c   : > { %v1830_v46 = vpop.f32.mrf.mxu0  ;;  %v4327_v19 = vpop.f32.mrf.mxu1 }
 0x19d   : > { %v6132_v38 = vadd.f32 %v1830_v46, %v1635_v61  ;;  %v1638_v54 = vadd.f32 %v4327_v19, %v6031_v20 }
 0x19e   : > { %v4407_v43 = vpop.f32.mrf.mxu0  ;;  %v1534_v9 = vpop.f32.mrf.mxu1 }
 0x19f   : > { %v6135_v28 = vadd.f32 %v4407_v43, %v1638_v54  ;;  %v1637_v16 = vadd.f32 %v1534_v9, %v6035_v59 }
 0x1a0   : > { %v1840_v36 = vpop.f32.mrf.mxu0  ;;  %v4330_v27 = vpop.f32.mrf.mxu1 }
 0x1a1   : > { %v6138_v62 = vadd.f32 %v1840_v36, %v1637_v16  ;;  %v1640_v41 = vadd.f32 %v4330_v27, %v6039_v11 }
 0x1a2   : > { %v4410_v22 = vpop.f32.mrf.mxu0  ;;  %v1544_v4 = vpop.f32.mrf.mxu1 }
 0x1a3   : > { %v6141_v14 = vadd.f32 %v4410_v22, %v1640_v41  ;;  %v1639_v56 = vadd.f32 %v1544_v4, %v6043_v21 }
 0x1a4   : > { %v1850_v7 = vpop.f32.mrf.mxu0  ;;  %v4333_v20 = vpop.f32.mrf.mxu1 }
 0x1a5   : > { %v6144_v26 = vadd.f32 %v1850_v7, %v1639_v56  ;;  %v1642_v60 = vadd.f32 %v4333_v20, %v6047_v57 }
 0x1a6   : > { %v4413_v33 = vpop.f32.mrf.mxu0  ;;  %v1554_v59 = vpop.f32.mrf.mxu1 }
 0x1a7   : > { %v6147_v51 = vadd.f32 %v4413_v33, %v1642_v60  ;;  %v1641_v31 = vadd.f32 %v1554_v59, %v6051_v63 }
 0x1a8   : > { %v1860_v45 = vpop.f32.mrf.mxu0  ;;  %v4336_v11 = vpop.f32.mrf.mxu1 }
 0x1a9   : > { %6535 = vst [vmem:[#allocation3_spill] sm:$0xff] %v6147_v51  ;;  %v6150_v37 = vadd.f32 %v1860_v45, %v1641_v31  ;;  %v1644_v39 = vadd.f32 %v4336_v11, %v6055_v42 }
 0x1aa   : > { %v4416_v1 = vpop.f32.mrf.mxu0  ;;  %v1564_v21 = vpop.f32.mrf.mxu1 }
 0x1ab   : > { %6536 = vst [vmem:[#allocation4_spill] sm:$0xff] %v6150_v37  ;;  %v6153_v32 = vadd.f32 %v4416_v1, %v1644_v39  ;;  %v1643_v12 = vadd.f32 %v1564_v21, %v6058_v30 }
 0x1ac   : > { %v1870_v23 = vpop.f32.mrf.mxu0  ;;  %v4339_v57 = vpop.f32.mrf.mxu1 }
 0x1ad   : > { %6537 = vst [vmem:[#allocation5_spill] sm:$0xff] %v6153_v32  ;;  %v6156_v24 = vadd.f32 %v1870_v23, %v1643_v12  ;;  %v1646_v5 = vadd.f32 %v4339_v57, %v6061_v15 }
 0x1ae   : > { %v4419_v53 = vpop.f32.mrf.mxu0  ;;  %v1574_v63 = vpop.f32.mrf.mxu1 }
 0x1af   : > { %6538 = vst [vmem:[#allocation6_spill] sm:$0xff] %v6156_v24  ;;  %v6159_v61 = vadd.f32 %v4419_v53, %v1646_v5  ;;  %v1645_v46 = vadd.f32 %v1574_v63, %v6064_v47 }
 0x1b0   : > { %v1880_v19 = vpop.f32.mrf.mxu0  ;;  %v4342_v42 = vpop.f32.mrf.mxu1 }
 0x1b1   : > { %6539 = vst [vmem:[#allocation7_spill] sm:$0xff] %v6159_v61  ;;  %v6162_v54 = vadd.f32 %v1880_v19, %v1645_v46  ;;  %v1648_v43 = vadd.f32 %v4342_v42, %v6067_v49 }
 0x1b2   : > { %v4422_v9 = vpop.f32.mrf.mxu0  ;;  %v1584_v30 = vpop.f32.mrf.mxu1 }
 0x1b3   : > { %6540 = vst [vmem:[#allocation8_spill] sm:$0xff] %v6162_v54  ;;  %v6165_v16 = vadd.f32 %v4422_v9, %v1648_v43  ;;  %v1647_v36 = vadd.f32 %v1584_v30, %v6070_v17 }
 0x1b4   : > { %v1890_v27 = vpop.f32.mrf.mxu0  ;;  %v4345_v15 = vpop.f32.mrf.mxu1 }
 0x1b5   : > { %6541 = vst [vmem:[#allocation9_spill] sm:$0xff] %v6165_v16  ;;  %v6168_v41 = vadd.f32 %v1890_v27, %v1647_v36  ;;  %v1650_v22 = vadd.f32 %v4345_v15, %v6073_v13 }
 0x1b6   : > { %v4425_v4 = vpop.f32.mrf.mxu0  ;;  %v1594_v47 = vpop.f32.mrf.mxu1 }
 0x1b7   : > { %6542 = vst [vmem:[#allocation10_spill] sm:$0xff] %v6168_v41  ;;  %v6171_v56 = vadd.f32 %v4425_v4, %v1650_v22  ;;  %v1649_v7 = vadd.f32 %v1594_v47, %v6077_v3 }
 0x1b8   : > { %v1900_v20 = vpop.f32.mrf.mxu0  ;;  %v4348_v49 = vpop.f32.mrf.mxu1 }
 0x1b9   : > { %6543 = vst [vmem:[#allocation11_spill] sm:$0xff] %v6171_v56  ;;  %v6174_v60 = vadd.f32 %v1900_v20, %v1649_v7  ;;  %v1652_v33 = vadd.f32 %v4348_v49, %v6081_v0 }
 0x1ba   : > { %v4428_v59 = vpop.f32.mrf.mxu0  ;;  %v1604_v17 = vpop.f32.mrf.mxu1 }
 0x1bb   : > { %6544 = vst [vmem:[#allocation12_spill] sm:$0xff] %v6174_v60  ;;  %v6177_v31 = vadd.f32 %v4428_v59, %v1652_v33  ;;  %v1651_v45 = vadd.f32 %v1604_v17, %v6084_v48 }
 0x1bc   : > { %v1910_v11 = vpop.f32.mrf.mxu0  ;;  %v4351_v13 = vpop.f32.mrf.mxu1 }
 0x1bd   : > { %6545 = vst [vmem:[#allocation13_spill] sm:$0xff] %v6177_v31  ;;  %v6180_v39 = vadd.f32 %v1910_v11, %v1651_v45  ;;  %v1654_v1 = vadd.f32 %v4351_v13, %v6087_v55 }
 0x1be   : > { %v4431_v21 = vpop.f32.mrf.mxu0  ;;  %v1614_v3 = vpop.f32.mrf.mxu1 }
 0x1bf   : > { %6546 = vst [vmem:[#allocation14_spill] sm:$0xff] %v6180_v39  ;;  %v6183_v12 = vadd.f32 %v4431_v21, %v1654_v1  ;;  %v1653_v23 = vadd.f32 %v1614_v3, %v6090_v58 }
 0x1c0   : > { %v1920_v57 = vpop.f32.mrf.mxu0  ;;  %v4466_v0 = vpop.f32.mrf.mxu1 }
 0x1c1   : > { %6547 = vst [vmem:[#allocation15_spill] sm:$0xff] %v6183_v12  ;;  %v6186_v5 = vadd.f32 %v1920_v57, %v1653_v23 }
 0x1c2   : > { %v6188_v53 = vpop.f32.mrf.mxu0  ;;  %v2076_v63 = vpop.f32.mrf.mxu1 }
 0x1c3   : > { %6548 = vst [vmem:[#allocation16_spill] sm:$0xff] %v6186_v5 }
 0x1c4   : > { %v6190_v48 = vpop.f32.mrf.mxu0  ;;  %v4469_v46 = vpop.f32.mrf.mxu1 }
 0x1c6   : > { %v6192_v19 = vpop.f32.mrf.mxu0  ;;  %v6194_v42 = vpop.f32.mrf.mxu1 }
 0x1c8   : > { %v6196_v55 = vpop.f32.mrf.mxu0  ;;  %v6198_v43 = vpop.f32.mrf.mxu1 }
 0x1ca   : > { %v6200_v9 = vpop.f32.mrf.mxu0  ;;  %v6202_v58 = vpop.f32.mrf.mxu1 }
 0x1cc   : > { %v6204_v30 = vpop.f32.mrf.mxu0  ;;  %v6206_v36 = vpop.f32.mrf.mxu1 }
 0x1ce   : > { %v6208_v27 = vpop.f32.mrf.mxu0  ;;  %v6210_v15 = vpop.f32.mrf.mxu1 }
 0x1d0   : > { %v6212_v22 = vpop.f32.mrf.mxu0  ;;  %v6214_v4 = vpop.f32.mrf.mxu1 }
 0x1d2   : > { %v6216_v47 = vpop.f32.mrf.mxu0  ;;  %v6218_v7 = vpop.f32.mrf.mxu1 }
 0x1d4   : > { %v6220_v20 = vpop.f32.mrf.mxu0  ;;  %v6222_v49 = vpop.f32.mrf.mxu1 }
 0x1d6   : > { %v6224_v33 = vpop.f32.mrf.mxu0  ;;  %v6226_v59 = vpop.f32.mrf.mxu1 }
 0x1d8   : > { %v6228_v17 = vpop.f32.mrf.mxu0  ;;  %v6230_v45 = vpop.f32.mrf.mxu1 }
 0x1da   : > { %v6232_v11 = vpop.f32.mrf.mxu0  ;;  %v6234_v13 = vpop.f32.mrf.mxu1 }
 0x1dc   : > { %v6236_v1 = vpop.f32.mrf.mxu0  ;;  %v6238_v21 = vpop.f32.mrf.mxu1 }
 0x1de   : > { %v6240_v3 = vpop.f32.mrf.mxu0  ;;  %v6242_v23 = vpop.f32.mrf.mxu1 }
 0x1e0   : > { %v6244_v57 = vpop.f32.mrf.mxu0  ;;  %v6246_v5 = vpop.f32.mrf.mxu1 }
 0x1e2   : > { %v6248_v12 = vpop.f32.mrf.mxu0  ;;  %v6250_v39 = vpop.f32.mrf.mxu1 }
 0x1e4   : > { %v6252_v31 = vpop.f32.mrf.mxu0  ;;  %v6254_v60 = vpop.f32.mrf.mxu1 }
 0x1e5   : > { %6549 = vst [vmem:[#allocation17_spill] sm:$0xff] %v6252_v31  ;;  %6550 = vst [vmem:[#allocation18_spill] sm:$0xff] %v6254_v60 }
 0x1e6   : > { %v6256_v56 = vpop.f32.mrf.mxu0  ;;  %v6258_v41 = vpop.f32.mrf.mxu1 }
 0x1e7   : > { %6551 = vst [vmem:[#allocation19_spill] sm:$0xff] %v6256_v56  ;;  %6552 = vst [vmem:[#allocation20_spill] sm:$0xff] %v6258_v41 }
 0x1e8   : > { %v6260_v16 = vpop.f32.mrf.mxu0  ;;  %v6262_v54 = vpop.f32.mrf.mxu1 }
 0x1e9   : > { %6553 = vst [vmem:[#allocation21_spill] sm:$0xff] %v6260_v16  ;;  %6554 = vst [vmem:[#allocation22_spill] sm:$0xff] %v6262_v54 }
 0x1ea   : > { %v6264_v61 = vpop.f32.mrf.mxu0  ;;  %v6266_v24 = vpop.f32.mrf.mxu1 }
 0x1eb   : > { %6555 = vst [vmem:[#allocation23_spill] sm:$0xff] %v6264_v61  ;;  %6556 = vst [vmem:[#allocation24_spill] sm:$0xff] %v6266_v24 }
 0x1ec   : > { %v6268_v32 = vpop.f32.mrf.mxu0  ;;  %v6270_v37 = vpop.f32.mrf.mxu1 }
 0x1ed   : > { %6557 = vst [vmem:[#allocation25_spill] sm:$0xff] %v6268_v32  ;;  %6558 = vst [vmem:[#allocation26_spill] sm:$0xff] %v6270_v37 }
 0x1ee   : > { %v6272_v51 = vpop.f32.mrf.mxu0  ;;  %v6274_v31 = vpop.f32.mrf.mxu1 }
 0x1ef   : > { %6559 = vst [vmem:[#allocation27_spill] sm:$0xff] %v6272_v51  ;;  %6560 = vst [vmem:[#allocation28_spill] sm:$0xff] %v6274_v31 }
 0x1f0   : > { %v6276_v60 = vpop.f32.mrf.mxu0  ;;  %v6278_v56 = vpop.f32.mrf.mxu1 }
 0x1f1   : > { %6561 = vst [vmem:[#allocation29_spill] sm:$0xff] %v6276_v60  ;;  %6562 = vst [vmem:[#allocation30_spill] sm:$0xff] %v6278_v56 }
 0x1f2   : > { %v6280_v41 = vpop.f32.mrf.mxu0  ;;  %v6282_v16 = vpop.f32.mrf.mxu1 }
 0x1f3   : > { %6563 = vst [vmem:[#allocation31_spill] sm:$0xff] %v6280_v41  ;;  %6564 = vst [vmem:[#allocation32_spill] sm:$0xff] %v6282_v16  ;;  %v2236_v41 = vadd.f32 %v4466_v0, %v6093_v34  ;;  %v2237_v34 = vadd.f32 %v6194_v42, %v6102_v35 }
 0x1f4   : > { %v6284_v54 = vpop.f32.mrf.mxu0  ;;  %v6286_v61 = vpop.f32.mrf.mxu1 }
 0x1f5   : > { %6565 = vst [vmem:[#allocation33_spill] sm:$0xff] %v6284_v54  ;;  %6566 = vst [vmem:[#allocation34_spill] sm:$0xff] %v6286_v61  ;;  %v2235_v61 = vadd.f32 %v2076_v63, %v6096_v18  ;;  %v6320_v18 = vld [vmem:[%s6480_s4] ss:$0 sm:$0xff] }
 0x1f6   : > { %v6288_v24 = vpop.f32.mrf.mxu0  ;;  %v6290_v32 = vpop.f32.mrf.mxu1 }
 0x1f7   : > { %6567 = vst [vmem:[#allocation35_spill] sm:$0xff] %v6288_v24  ;;  %6568 = vst [vmem:[#allocation36_spill] sm:$0xff] %v6290_v32 }
 0x1f8   : > { %v6292_v37 = vpop.f32.mrf.mxu0  ;;  %v6294_v51 = vpop.f32.mrf.mxu1 }
 0x1f9   : > { %6569 = vst [vmem:[#allocation37_spill] sm:$0xff] %v6292_v37  ;;  %6570 = vst [vmem:[#allocation38_spill] sm:$0xff] %v6294_v51  ;;  %v2543_v37 = vadd.f32 %v6188_v53, %v2236_v41  ;;  %v2238_v51 = vadd.f32 %v4469_v46, %v6099_v40  ;;  %v2240_v46 = vadd.f32 %v6198_v43, %v6105_v8 }
 0x1fa   : > { %v6296_v31 = vpop.f32.mrf.mxu0  ;;  %v6298_v60 = vpop.f32.mrf.mxu1 }
 0x1fb   : > { %6571 = vst [vmem:[#allocation39_spill] sm:$0xff] %v6296_v31  ;;  %6572 = vst [vmem:[#allocation40_spill] sm:$0xff] %v6298_v60  ;;  %v2542_v60 = vadd.f32 %v6190_v48, %v2235_v61  ;;  %v2545_v41 = vadd.f32 %v6192_v19, %v2238_v51  ;;  %v2239_v61 = vadd.f32 %v6202_v58, %v6108_v50 }
 0x1fc   : > { %v6301_v56 = vpop.f32.mrf.mxu0  ;;  %v6303_v16 = vpop.f32.mrf.mxu1  ;;  %v2242_v51 = vadd.f32 %v6206_v36, %v6111_v29  ;;  %v2547_v50 = vadd.f32 %v6200_v9, %v2240_v46 }
 0x1fd   : > { %6573 = vst [vmem:[#allocation41_spill] sm:$0xff] %v6303_v16  ;;  %v2546_v19 = vadd.f32 %v6204_v30, %v2239_v61 }
 0x1fe   : > { %v6306_v54 = vpop.f32.mrf.mxu0  ;;  %v6308_v24 = vpop.f32.mrf.mxu1  ;;  %v2549_v30 = vadd.f32 %v6208_v27, %v2242_v51 }
 0x1ff   : > { %6574 = vst [vmem:[#allocation42_spill] sm:$0xff] %v6306_v54  ;;  %6575 = vst [vmem:[#allocation43_spill] sm:$0xff] %v6308_v24 }
 0x200   : > { %v6312_v32 = vpop.f32.mrf.mxu0  ;;  %v4626_v31 = vpop.f32.mrf.mxu1 }
 0x201   : > { %6576 = vst [vmem:[#allocation44_spill] sm:$0xff] %v6312_v32  ;;  %v2849_v0 = vadd.f32 %v4626_v31, %v2543_v37  ;;  %v2544_v31 = vadd.f32 %v6196_v55, %v2237_v34  ;;  %v2241_v55 = vadd.f32 %v6210_v15, %v6114_v10 }
 0x202   : > { %v4706_v16 = vpop.f32.mrf.mxu0  ;;  %v2689_v63 = vpop.f32.mrf.mxu1 }
 0x203   : > { %v3155_v40 = vadd.f32 %v4706_v16, %v2849_v0  ;;  %v2848_v53 = vadd.f32 %v2689_v63, %v2542_v60 }
 0x204   : > { %v2995_v35 = vpop.f32.mrf.mxu0  ;;  %v4629_v37 = vpop.f32.mrf.mxu1 }
 0x205   : > { %v3194_v48 = vadd.f32 %v6320_v18, %v3155_v40  ;;  %v3154_v42 = vadd.f32 %v2995_v35, %v2848_v53  ;;  %v2851_v32 = vadd.f32 %v4629_v37, %v2545_v41  ;;  %v2548_v40 = vadd.f32 %v6212_v22, %v2241_v55 }
 0x206   : > { %v4709_v54 = vpop.f32.mrf.mxu0  ;;  %v2699_v24 = vpop.f32.mrf.mxu1  ;;  %v2243_v53 = vadd.f32 %v6218_v7, %v6120_v52 }
 0x207   : > { %3226 = vst [vmem:[%s4861_s7 + $0x8] sm:$0xff] %v3194_v48  ;;  %v3193_v8 = vadd.f32 %v6320_v18, %v3154_v42  ;;  %v3157_v16 = vadd.f32 %v4709_v54, %v2851_v32  ;;  %v2850_v60 = vadd.f32 %v2699_v24, %v2544_v31  ;;  %v3295_v43 = vmul.f32 %v3194_v48, %v3194_v48 }
 0x208   : > { %v3005_v58 = vpop.f32.mrf.mxu0  ;;  %v4632_v34 = vpop.f32.mrf.mxu1  ;;  %v2244_v32 = vadd.f32 %v6214_v4, %v6117_v6 }
 0x209   : > { %3225 = vst [vmem:[%s4861_s7] sm:$0xff] %v3193_v8  ;;  %v3257_v0 = vadd.f32 %v3194_v48, %v3193_v8  ;;  %v3294_v63 = vmul.f32 %v3193_v8, %v3193_v8  ;;  %v3196_v29 = vadd.f32 %v6320_v18, %v3157_v16  ;;  %v3156_v36 = vadd.f32 %v3005_v58, %v2850_v60 }
 0x20a   : > { %v2853_v24 = vadd.f32 %v4632_v34, %v2547_v50  ;;  %v4712_v54 = vpop.f32.mrf.mxu0  ;;  %v2709_v9 = vpop.f32.mrf.mxu1  ;;  %v2551_v27 = vadd.f32 %v6216_v47, %v2244_v32  ;;  %v2246_v48 = vadd.f32 %v6222_v49, %v6123_v25  ;;  %v2550_v50 = vadd.f32 %v6220_v20, %v2243_v53 }
 0x20b   : > { %v3326_v41 = vadd.f32 %v3295_v43, %v3294_v63  ;;  %3228 = vst [vmem:[%s4861_s7 + $0x18] sm:$0xff] %v3196_v29  ;;  %v3195_v10 = vadd.f32 %v6320_v18, %v3156_v36  ;;  %v2852_v15 = vadd.f32 %v2709_v9, %v2546_v19  ;;  %v3297_v42 = vmul.f32 %v3196_v29, %v3196_v29 }
 0x20c   : > { %v3159_v46 = vadd.f32 %v4712_v54, %v2853_v24  ;;  %v3015_v61 = vpop.f32.mrf.mxu0  ;;  %v4635_v35 = vpop.f32.mrf.mxu1  ;;  %v2245_v19 = vadd.f32 %v6226_v59, %v6126_v44  ;;  %v2248_v47 = vadd.f32 %v6230_v45, %v6129_v2  ;;  %v2553_v63 = vadd.f32 %v6224_v33, %v2246_v48 }
 0x20d   : > { %3227 = vst [vmem:[%s4861_s7 + $0x10] sm:$0xff] %v3195_v10  ;;  %v3258_v6 = vadd.f32 %v3257_v0, %v3195_v10  ;;  %v3296_v4 = vmul.f32 %v3195_v10, %v3195_v10  ;;  %v3158_v37 = vadd.f32 %v3015_v61, %v2852_v15  ;;  %v2855_v31 = vadd.f32 %v4635_v35, %v2549_v30 }
 0x20e   : > { %v3198_v22 = vadd.f32 %v6320_v18, %v3159_v46  ;;  %v4715_v51 = vpop.f32.mrf.mxu0  ;;  %v2719_v52 = vpop.f32.mrf.mxu1  ;;  %v2247_v20 = vadd.f32 %v6234_v13, %v6132_v38  ;;  %v2552_v54 = vadd.f32 %v6228_v17, %v2245_v19  ;;  %v2555_v10 = vadd.f32 %v6232_v11, %v2248_v47 }
 0x20f   : > { %v3327_v7 = vadd.f32 %v3326_v41, %v3296_v4  ;;  %v3197_v8 = vadd.f32 %v6320_v18, %v3158_v37  ;;  %v3259_v16 = vadd.f32 %v3258_v6, %v3196_v29  ;;  %v3161_v60 = vadd.f32 %v4715_v51, %v2855_v31 }
 0x210   : > { %3230 = vst [vmem:[%s4861_s7 + $0x28] sm:$0xff] %v3198_v22  ;;  %v2854_v25 = vadd.f32 %v2719_v52, %v2548_v40  ;;  %v3025_v49 = vpop.f32.mrf.mxu0  ;;  %v4638_v55 = vpop.f32.mrf.mxu1  ;;  %v3299_v45 = vmul.f32 %v3198_v22, %v3198_v22  ;;  %v2554_v40 = vadd.f32 %v6236_v1, %v2247_v20  ;;  %v2250_v6 = vadd.f32 %v6238_v21, %v6135_v28 }
 0x211   : > { %3229 = vst [vmem:[%s4861_s7 + $0x20] sm:$0xff] %v3197_v8  ;;  %v3260_v43 = vadd.f32 %v3259_v16, %v3197_v8  ;;  %v3298_v58 = vmul.f32 %v3197_v8, %v3197_v8  ;;  %v3328_v34 = vadd.f32 %v3327_v7, %v3297_v42  ;;  %v3200_v0 = vadd.f32 %v6320_v18, %v3161_v60 }
 0x212   : > { %v3160_v44 = vadd.f32 %v3025_v49, %v2854_v25  ;;  %v2857_v59 = vadd.f32 %v4638_v55, %v2551_v27  ;;  %v4718_v29 = vpop.f32.mrf.mxu0  ;;  %v2729_v2 = vpop.f32.mrf.mxu1  ;;  %v2249_v31 = vadd.f32 %v6242_v23, %v6138_v62  ;;  %v2252_v21 = vadd.f32 %v6246_v5, %v6141_v14 }
 0x213   : > { %v3329_v36 = vadd.f32 %v3328_v34, %v3298_v58  ;;  %3232 = vst [vmem:[%s4861_s7 + $0x38] sm:$0xff] %v3200_v0  ;;  %v3261_v32 = vadd.f32 %v3260_v43, %v3198_v22  ;;  %v2856_v24 = vadd.f32 %v2729_v2, %v2550_v50  ;;  %v3301_v27 = vmul.f32 %v3200_v0, %v3200_v0  ;;  %v6578_v2 = vld [vmem:[#allocation3_spill] sm:$0xff] }
 0x214   : > { %v3199_v9 = vadd.f32 %v6320_v18, %v3160_v44  ;;  %v3163_v30 = vadd.f32 %v4718_v29, %v2857_v59  ;;  %v3035_v41 = vpop.f32.mrf.mxu0  ;;  %v4641_v33 = vpop.f32.mrf.mxu1  ;;  %v2251_v8 = vadd.f32 %v6250_v39, %v6144_v26  ;;  %v2557_v50 = vadd.f32 %v6240_v3, %v2250_v6  ;;  %v6584_v6 = vld [vmem:[#allocation6_spill] sm:$0xff] }
 0x215   : > { %v3330_v38 = vadd.f32 %v3329_v36, %v3299_v45  ;;  %v3162_v13 = vadd.f32 %v3035_v41, %v2856_v24  ;;  %v2859_v15 = vadd.f32 %v4641_v33, %v2553_v63  ;;  %v2556_v49 = vadd.f32 %v6244_v57, %v2249_v31  ;;  %v6577_v63 = vld [vmem:[#allocation17_spill] sm:$0xff]  ;;  %v6579_v45 = vld [vmem:[#allocation18_spill] sm:$0xff] }
 0x216   : > { %3231 = vst [vmem:[%s4861_s7 + $0x30] sm:$0xff] %v3199_v9  ;;  %v3262_v53 = vadd.f32 %v3261_v32, %v3199_v9  ;;  %v3300_v46 = vmul.f32 %v3199_v9, %v3199_v9  ;;  %v3202_v61 = vadd.f32 %v6320_v18, %v3163_v30  ;;  %v4721_v17 = vpop.f32.mrf.mxu0  ;;  %v2739_v35 = vpop.f32.mrf.mxu1  ;;  %v2559_v3 = vadd.f32 %v6248_v12, %v2252_v21  ;;  %v6580_v9 = vld [vmem:[#allocation4_spill] sm:$0xff] }
 0x217   : > { %v3201_v4 = vadd.f32 %v6320_v18, %v3162_v13  ;;  %v3165_v11 = vadd.f32 %v4721_v17, %v2859_v15  ;;  %v2858_v37 = vadd.f32 %v2739_v35, %v2552_v54  ;;  %v2558_v20 = vadd.f32 %v6577_v63, %v2251_v8  ;;  %v6581_v30 = vld [vmem:[#allocation20_spill] sm:$0xff]  ;;  %v6583_v17 = vld [vmem:[#allocation22_spill] sm:$0xff] }
 0x218   : > { %v3331_v1 = vadd.f32 %v3330_v38, %v3300_v46  ;;  %3234 = vst [vmem:[%s4861_s7 + $0x48] sm:$0xff] %v3202_v61  ;;  %v3263_v48 = vadd.f32 %v3262_v53, %v3200_v0  ;;  %v3045_v42 = vpop.f32.mrf.mxu0  ;;  %v4644_v22 = vpop.f32.mrf.mxu1  ;;  %v3303_v55 = vmul.f32 %v3202_v61, %v3202_v61  ;;  %v2254_v36 = vadd.f32 %v6579_v45, %v6578_v2 }
 0x219   : > { %3233 = vst [vmem:[%s4861_s7 + $0x40] sm:$0xff] %v3201_v4  ;;  %v3302_v51 = vmul.f32 %v3201_v4, %v3201_v4  ;;  %v3204_v52 = vadd.f32 %v6320_v18, %v3165_v11  ;;  %v3164_v7 = vadd.f32 %v3045_v42, %v2858_v37  ;;  %v2861_v28 = vadd.f32 %v4644_v22, %v2555_v10 }
 0x21a   : > { %v3264_v62 = vadd.f32 %v3263_v48, %v3201_v4  ;;  %v3332_v23 = vadd.f32 %v3331_v1, %v3301_v27  ;;  %v4724_v16 = vpop.f32.mrf.mxu0  ;;  %v2749_v60 = vpop.f32.mrf.mxu1  ;;  %v2253_v41 = vadd.f32 %v6581_v30, %v6580_v9  ;;  %v6585_v4 = vld [vmem:[#allocation24_spill] sm:$0xff]  ;;  %v6586_v48 = vld [vmem:[#allocation19_spill] sm:$0xff] }
 0x21b   : > { %3236 = vst [vmem:[%s4861_s7 + $0x58] sm:$0xff] %v3204_v52  ;;  %v3203_v19 = vadd.f32 %v6320_v18, %v3164_v7  ;;  %v3167_v47 = vadd.f32 %v4724_v16, %v2861_v28  ;;  %v2860_v25 = vadd.f32 %v2749_v60, %v2554_v40  ;;  %v3305_v33 = vmul.f32 %v3204_v52, %v3204_v52  ;;  %v6587_v7 = vld [vmem:[#allocation21_spill] sm:$0xff] }
 0x21c   : > { %v3333_v43 = vadd.f32 %v3332_v23, %v3302_v51  ;;  %v3265_v14 = vadd.f32 %v3264_v62, %v3202_v61  ;;  %v3055_v5 = vpop.f32.mrf.mxu0  ;;  %v4647_v26 = vpop.f32.mrf.mxu1  ;;  %v6582_v61 = vld [vmem:[#allocation5_spill] sm:$0xff]  ;;  %v2255_v11 = vadd.f32 %v6585_v4, %v6584_v6  ;;  %v2561_v42 = vadd.f32 %v6586_v48, %v2254_v36 }
 0x21d   : > { %3235 = vst [vmem:[%s4861_s7 + $0x50] sm:$0xff] %v3203_v19  ;;  %v3304_v39 = vmul.f32 %v3203_v19, %v3203_v19  ;;  %v3206_v58 = vadd.f32 %v6320_v18, %v3167_v47  ;;  %v3166_v34 = vadd.f32 %v3055_v5, %v2860_v25  ;;  %v2863_v0 = vadd.f32 %v4647_v26, %v2557_v50  ;;  %v6588_v25 = vld [vmem:[#allocation23_spill] sm:$0xff] }
 0x21e   : > { %v3266_v44 = vadd.f32 %v3265_v14, %v3203_v19  ;;  %v3334_v59 = vadd.f32 %v3333_v43, %v3303_v55  ;;  %v4727_v57 = vpop.f32.mrf.mxu0  ;;  %v2759_v29 = vpop.f32.mrf.mxu1  ;;  %v2256_v35 = vadd.f32 %v6583_v17, %v6582_v61  ;;  %v2560_v28 = vadd.f32 %v6587_v7, %v2253_v41  ;;  %v6589_v55 = vld [vmem:[#allocation25_spill] sm:$0xff] }
 0x21f   : > { %3238 = vst [vmem:[%s4861_s7 + $0x68] sm:$0xff] %v3206_v58  ;;  %v3205_v32 = vadd.f32 %v6320_v18, %v3166_v34  ;;  %v3169_v24 = vadd.f32 %v4727_v57, %v2863_v0  ;;  %v2862_v54 = vadd.f32 %v2759_v29, %v2556_v49  ;;  %v3307_v21 = vmul.f32 %v3206_v58, %v3206_v58  ;;  %v6590_v34 = vld [vmem:[#allocation7_spill] sm:$0xff]  ;;  %v6591_v0 = vld [vmem:[#allocation26_spill] sm:$0xff]  ;;  %v6594_v41 = vld [vmem:[#allocation9_spill] sm:$0xff] }
 0x220   : > { %v3335_v12 = vadd.f32 %v3334_v59, %v3304_v39  ;;  %v3267_v10 = vadd.f32 %v3266_v44, %v3204_v52  ;;  %v3065_v38 = vpop.f32.mrf.mxu0  ;;  %v4650_v13 = vpop.f32.mrf.mxu1  ;;  %v2563_v49 = vadd.f32 %v6588_v25, %v2256_v35  ;;  %v2562_v43 = vadd.f32 %v6589_v55, %v2255_v11  ;;  %v6592_v44 = vld [vmem:[#allocation8_spill] sm:$0xff]  ;;  %v6599_v11 = vld [vmem:[#allocation29_spill] sm:$0xff]  ;;  %v6603_v25 = vld [vmem:[#allocation34_spill] sm:$0xff] }
 0x221   : > { %3237 = vst [vmem:[%s4861_s7 + $0x60] sm:$0xff] %v3205_v32  ;;  %v3306_v15 = vmul.f32 %v3205_v32, %v3205_v32  ;;  %v3208_v40 = vadd.f32 %v6320_v18, %v3169_v24  ;;  %v3168_v53 = vadd.f32 %v3065_v38, %v2862_v54  ;;  %v2865_v46 = vadd.f32 %v4650_v13, %v2559_v3  ;;  %v6593_v59 = vld [vmem:[#allocation28_spill] sm:$0xff] }
 0x222   : > { %v3268_v37 = vadd.f32 %v3267_v10, %v3205_v32  ;;  %v3336_v31 = vadd.f32 %v3335_v12, %v3305_v33  ;;  %v4730_v27 = vpop.f32.mrf.mxu0  ;;  %v2769_v1 = vpop.f32.mrf.mxu1  ;;  %v2257_v57 = vadd.f32 %v6593_v59, %v6592_v44  ;;  %v6595_v33 = vld [vmem:[#allocation30_spill] sm:$0xff]  ;;  %v6597_v38 = vld [vmem:[#allocation32_spill] sm:$0xff] }
 0x223   : > { %3240 = vst [vmem:[%s4861_s7 + $0x78] sm:$0xff] %v3208_v40  ;;  %v3207_v22 = vadd.f32 %v6320_v18, %v3168_v53  ;;  %v3171_v51 = vadd.f32 %v4730_v27, %v2865_v46  ;;  %v2864_v52 = vadd.f32 %v2769_v1, %v2558_v20  ;;  %v3309_v29 = vmul.f32 %v3208_v40, %v3208_v40  ;;  %v6596_v10 = vld [vmem:[#allocation10_spill] sm:$0xff] }
 0x224   : > { %v3337_v8 = vadd.f32 %v3336_v31, %v3306_v15  ;;  %v3269_v62 = vadd.f32 %v3268_v37, %v3206_v58  ;;  %v3075_v23 = vpop.f32.mrf.mxu0  ;;  %v4653_v16 = vpop.f32.mrf.mxu1  ;;  %v2258_v58 = vadd.f32 %v6591_v0, %v6590_v34  ;;  %v2260_v12 = vadd.f32 %v6595_v33, %v6594_v41 }
 0x225   : > { %3239 = vst [vmem:[%s4861_s7 + $0x70] sm:$0xff] %v3207_v22  ;;  %v3308_v60 = vmul.f32 %v3207_v22, %v3207_v22  ;;  %v3210_v50 = vadd.f32 %v6320_v18, %v3171_v51  ;;  %v3170_v19 = vadd.f32 %v3075_v23, %v2864_v52  ;;  %v2867_v47 = vadd.f32 %v4653_v16, %v2561_v42 }
 0x226   : > { %v3270_v14 = vadd.f32 %v3269_v62, %v3207_v22  ;;  %v3338_v5 = vadd.f32 %v3337_v8, %v3307_v21  ;;  %v4733_v26 = vpop.f32.mrf.mxu0  ;;  %v2779_v39 = vpop.f32.mrf.mxu1  ;;  %v2259_v13 = vadd.f32 %v6597_v38, %v6596_v10  ;;  %v2564_v37 = vadd.f32 %v6599_v11, %v2257_v57  ;;  %v6601_v8 = vld [vmem:[#allocation33_spill] sm:$0xff] }
 0x227   : > { %3242 = vst [vmem:[%s4861_s7 + $0x88] sm:$0xff] %v3210_v50  ;;  %v3209_v3 = vadd.f32 %v6320_v18, %v3170_v19  ;;  %v3173_v63 = vadd.f32 %v4733_v26, %v2867_v47  ;;  %v2866_v20 = vadd.f32 %v2779_v39, %v2560_v28  ;;  %v3311_v31 = vmul.f32 %v3210_v50, %v3210_v50  ;;  %v6600_v28 = vld [vmem:[#allocation31_spill] sm:$0xff]  ;;  %v6606_v57 = vld [vmem:[#allocation13_spill] sm:$0xff] }
 0x228   : > { %v3339_v2 = vadd.f32 %v3338_v5, %v3308_v60  ;;  %v3271_v45 = vadd.f32 %v3270_v14, %v3208_v40  ;;  %v3085_v36 = vpop.f32.mrf.mxu0  ;;  %v4656_v32 = vpop.f32.mrf.mxu1  ;;  %v6598_v40 = vld [vmem:[#allocation27_spill] sm:$0xff]  ;;  %v2567_v21 = vadd.f32 %v6600_v28, %v2260_v12  ;;  %v2566_v62 = vadd.f32 %v6601_v8, %v2259_v13  ;;  %v6604_v14 = vld [vmem:[#allocation12_spill] sm:$0xff]  ;;  %v6611_v13 = vld [vmem:[#allocation37_spill] sm:$0xff] }
 0x229   : > { %3241 = vst [vmem:[%s4861_s7 + $0x80] sm:$0xff] %v3209_v3  ;;  %v3310_v24 = vmul.f32 %v3209_v3, %v3209_v3  ;;  %v3212_v54 = vadd.f32 %v6320_v18, %v3173_v63  ;;  %v3172_v9 = vadd.f32 %v3085_v36, %v2866_v20  ;;  %v2869_v30 = vadd.f32 %v4656_v32, %v2563_v49  ;;  %v6602_v47 = vld [vmem:[#allocation11_spill] sm:$0xff]  ;;  %v6605_v5 = vld [vmem:[#allocation36_spill] sm:$0xff] }
 0x22a   : > { %v3272_v15 = vadd.f32 %v3271_v45, %v3209_v3  ;;  %v3340_v53 = vadd.f32 %v3339_v2, %v3309_v29  ;;  %v4736_v46 = vpop.f32.mrf.mxu0  ;;  %v2789_v61 = vpop.f32.mrf.mxu1  ;;  %v2565_v17 = vadd.f32 %v6598_v40, %v2258_v58  ;;  %v2261_v26 = vadd.f32 %v6605_v5, %v6604_v14  ;;  %v6607_v29 = vld [vmem:[#allocation38_spill] sm:$0xff]  ;;  %v6609_v36 = vld [vmem:[#allocation40_spill] sm:$0xff] }
 0x22b   : > { %3244 = vst [vmem:[%s4861_s7 + $0x98] sm:$0xff] %v3212_v54  ;;  %v3211_v35 = vadd.f32 %v6320_v18, %v3172_v9  ;;  %v3175_v6 = vadd.f32 %v4736_v46, %v2869_v30  ;;  %v2868_v4 = vadd.f32 %v2789_v61, %v2562_v43  ;;  %v3313_v39 = vmul.f32 %v3212_v54, %v3212_v54  ;;  %v6608_v45 = vld [vmem:[#allocation14_spill] sm:$0xff] }
 0x22c   : > { %v3341_v27 = vadd.f32 %v3340_v53, %v3310_v24  ;;  %v3273_v1 = vadd.f32 %v3272_v15, %v3210_v50  ;;  %v3095_v48 = vpop.f32.mrf.mxu0  ;;  %v4659_v42 = vpop.f32.mrf.mxu1  ;;  %v2262_v50 = vadd.f32 %v6603_v25, %v6602_v47  ;;  %v2264_v2 = vadd.f32 %v6607_v29, %v6606_v57 }
 0x22d   : > { %3243 = vst [vmem:[%s4861_s7 + $0x90] sm:$0xff] %v3211_v35  ;;  %v3312_v22 = vmul.f32 %v3211_v35, %v3211_v35  ;;  %v3214_v51 = vadd.f32 %v6320_v18, %v3175_v6  ;;  %v3174_v52 = vadd.f32 %v3095_v48, %v2868_v4  ;;  %v2871_v7 = vadd.f32 %v4659_v42, %v2565_v17 }
 0x22e   : > { %v3274_v23 = vadd.f32 %v3273_v1, %v3211_v35  ;;  %v3342_v16 = vadd.f32 %v3341_v27, %v3311_v31  ;;  %v4739_v60 = vpop.f32.mrf.mxu0  ;;  %v2799_v19 = vpop.f32.mrf.mxu1  ;;  %v2263_v32 = vadd.f32 %v6609_v36, %v6608_v45  ;;  %v2568_v15 = vadd.f32 %v6611_v13, %v2261_v26 }
 0x22f   : > { %3246 = vst [vmem:[%s4861_s7 + $0xa8] sm:$0xff] %v3214_v51  ;;  %v3213_v49 = vadd.f32 %v6320_v18, %v3174_v52  ;;  %v3177_v55 = vadd.f32 %v4739_v60, %v2871_v7  ;;  %v2870_v43 = vadd.f32 %v2799_v19, %v2564_v37  ;;  %v3315_v53 = vmul.f32 %v3214_v51, %v3214_v51  ;;  %v6612_v37 = vld [vmem:[#allocation39_spill] sm:$0xff]  ;;  %v6614_v7 = vld [vmem:[#allocation41_spill] sm:$0xff] }
 0x230   : > { %v3343_v34 = vadd.f32 %v3342_v16, %v3312_v22  ;;  %v3275_v0 = vadd.f32 %v3274_v23, %v3212_v54  ;;  %v3105_v58 = vpop.f32.mrf.mxu0  ;;  %v4662_v3 = vpop.f32.mrf.mxu1  ;;  %v6610_v54 = vld [vmem:[#allocation35_spill] sm:$0xff]  ;;  %v2571_v31 = vadd.f32 %v6612_v37, %v2264_v2  ;;  %v2570_v27 = vadd.f32 %v6301_v56, %v2263_v32 }
 0x231   : > { %3245 = vst [vmem:[%s4861_s7 + $0xa0] sm:$0xff] %v3213_v49  ;;  %v3314_v63 = vmul.f32 %v3213_v49, %v3213_v49  ;;  %v3216_v20 = vadd.f32 %v6320_v18, %v3177_v55  ;;  %v3176_v44 = vadd.f32 %v3105_v58, %v2870_v43  ;;  %v2873_v59 = vadd.f32 %v4662_v3, %v2567_v21  ;;  %v6613_v52 = vld [vmem:[#allocation15_spill] sm:$0xff] }
 0x232   : > { %v3276_v24 = vadd.f32 %v3275_v0, %v3213_v49  ;;  %v3344_v9 = vadd.f32 %v3343_v34, %v3313_v39  ;;  %v4742_v30 = vpop.f32.mrf.mxu0  ;;  %v2809_v41 = vpop.f32.mrf.mxu1  ;;  %v2569_v33 = vadd.f32 %v6610_v54, %v2262_v50  ;;  %v6616_v23 = vld [vmem:[#allocation43_spill] sm:$0xff]  ;;  %v6617_v34 = vld [vmem:[#allocation42_spill] sm:$0xff] }
 0x233   : > { %3248 = vst [vmem:[%s4861_s7 + $0xb8] sm:$0xff] %v3216_v20  ;;  %v3215_v12 = vadd.f32 %v6320_v18, %v3176_v44  ;;  %v3179_v10 = vadd.f32 %v4742_v30, %v2873_v59  ;;  %v2872_v38 = vadd.f32 %v2809_v41, %v2566_v62  ;;  %v6615_v62 = vld [vmem:[#allocation16_spill] sm:$0xff]  ;;  %v3317_v60 = vmul.f32 %v3216_v20, %v3216_v20 }
 0x234   : > { %v3345_v46 = vadd.f32 %v3344_v9, %v3314_v63  ;;  %v3277_v61 = vadd.f32 %v3276_v24, %v3214_v51  ;;  %v3115_v40 = vpop.f32.mrf.mxu0  ;;  %v4665_v17 = vpop.f32.mrf.mxu1  ;;  %v2266_v51 = vadd.f32 %v6614_v7, %v6613_v52  ;;  %v2265_v16 = vadd.f32 %v6616_v23, %v6615_v62 }
 0x235   : > { %3247 = vst [vmem:[%s4861_s7 + $0xb0] sm:$0xff] %v3215_v12  ;;  %v3316_v35 = vmul.f32 %v3215_v12, %v3215_v12  ;;  %v3218_v6 = vadd.f32 %v6320_v18, %v3179_v10  ;;  %v3178_v4 = vadd.f32 %v3115_v40, %v2872_v38  ;;  %v2875_v11 = vadd.f32 %v4665_v17, %v2569_v33 }
 0x236   : > { %v3278_v1 = vadd.f32 %v3277_v61, %v3215_v12  ;;  %v3346_v48 = vadd.f32 %v3345_v46, %v3315_v53  ;;  %v4745_v42 = vpop.f32.mrf.mxu0  ;;  %v2819_v22 = vpop.f32.mrf.mxu1  ;;  %v2573_v0 = vadd.f32 %v6617_v34, %v2266_v51 }
 0x237   : > { %3250 = vst [vmem:[%s4861_s7 + $0xc8] sm:$0xff] %v3218_v6  ;;  %v3217_v28 = vadd.f32 %v6320_v18, %v3178_v4  ;;  %v3181_v21 = vadd.f32 %v4745_v42, %v2875_v11  ;;  %v2874_v8 = vadd.f32 %v2819_v22, %v2568_v15  ;;  %v3319_v59 = vmul.f32 %v3218_v6, %v3218_v6 }
 0x238   : > { %v3347_v19 = vadd.f32 %v3346_v48, %v3316_v35  ;;  %v3279_v56 = vadd.f32 %v3278_v1, %v3216_v20  ;;  %v3125_v47 = vpop.f32.mrf.mxu0  ;;  %v4668_v25 = vpop.f32.mrf.mxu1  ;;  %v6618_v20 = vld [vmem:[#allocation44_spill] sm:$0xff] }
 0x239   : > { %3249 = vst [vmem:[%s4861_s7 + $0xc0] sm:$0xff] %v3217_v28  ;;  %v3318_v50 = vmul.f32 %v3217_v28, %v3217_v28  ;;  %v3220_v49 = vadd.f32 %v6320_v18, %v3181_v21  ;;  %v3180_v55 = vadd.f32 %v3125_v47, %v2874_v8  ;;  %v2877_v43 = vadd.f32 %v4668_v25, %v2571_v31 }
 0x23a   : > { %v3280_v14 = vadd.f32 %v3279_v56, %v3217_v28  ;;  %v3348_v5 = vadd.f32 %v3347_v19, %v3317_v60  ;;  %v4748_v26 = vpop.f32.mrf.mxu0  ;;  %v2829_v39 = vpop.f32.mrf.mxu1  ;;  %v2572_v44 = vadd.f32 %v6618_v20, %v2265_v16 }
 0x23b   : > { %3252 = vst [vmem:[%s4861_s7 + $0xd8] sm:$0xff] %v3220_v49  ;;  %v3219_v58 = vadd.f32 %v6320_v18, %v3180_v55  ;;  %v3183_v3 = vadd.f32 %v4748_v26, %v2877_v43  ;;  %v2876_v63 = vadd.f32 %v2829_v39, %v2570_v27  ;;  %v3321_v13 = vmul.f32 %v3220_v49, %v3220_v49 }
 0x23c   : > { %v3349_v57 = vadd.f32 %v3348_v5, %v3318_v50  ;;  %v3281_v29 = vadd.f32 %v3280_v14, %v3218_v6  ;;  %v3135_v2 = vpop.f32.mrf.mxu0  ;;  %v4671_v45 = vpop.f32.mrf.mxu1 }
 0x23d   : > { %3251 = vst [vmem:[%s4861_s7 + $0xd0] sm:$0xff] %v3219_v58  ;;  %v3320_v36 = vmul.f32 %v3219_v58, %v3219_v58  ;;  %v3222_v32 = vadd.f32 %v6320_v18, %v3183_v3  ;;  %v3182_v24 = vadd.f32 %v3135_v2, %v2876_v63  ;;  %v2879_v9 = vadd.f32 %v4671_v45, %v2573_v0 }
 0x23e   : > { %v3282_v30 = vadd.f32 %v3281_v29, %v3219_v58  ;;  %v3350_v41 = vadd.f32 %v3349_v57, %v3319_v59  ;;  %v4751_v54 = vpop.f32.mrf.mxu0  ;;  %v2839_v33 = vpop.f32.mrf.mxu1 }
 0x23f   : > { %3254 = vst [vmem:[%s4861_s7 + $0xe8] sm:$0xff] %v3222_v32  ;;  %v3221_v12 = vadd.f32 %v6320_v18, %v3182_v24  ;;  %v3185_v10 = vadd.f32 %v4751_v54, %v2879_v9  ;;  %v2878_v38 = vadd.f32 %v2839_v33, %v2572_v44  ;;  %v3323_v11 = vmul.f32 %v3222_v32, %v3222_v32 }
 0x240   : > { %v3351_v15 = vadd.f32 %v3350_v41, %v3320_v36  ;;  %v3283_v53 = vadd.f32 %v3282_v30, %v3220_v49  ;;  %v3145_v46 = vpop.f32.mrf.mxu0 }
 0x241   : > { %3253 = vst [vmem:[%s4861_s7 + $0xe0] sm:$0xff] %v3221_v12  ;;  %v3322_v61 = vmul.f32 %v3221_v12, %v3221_v12  ;;  %v3224_v40 = vadd.f32 %v6320_v18, %v3185_v10  ;;  %v3184_v17 = vadd.f32 %v3145_v46, %v2878_v38 }
 0x242   : > { %v3284_v35 = vadd.f32 %v3283_v53, %v3221_v12  ;;  %v3352_v6 = vadd.f32 %v3351_v15, %v3321_v13 }
 0x243   : > { %3256 = vst [vmem:[%s4861_s7 + $0xf8] sm:$0xff] %v3224_v40  ;;  %v3223_v4 = vadd.f32 %v6320_v18, %v3184_v17  ;;  %v3325_v42 = vmul.f32 %v3224_v40, %v3224_v40 }
 0x244   : > { %v3353_v37 = vadd.f32 %v3352_v6, %v3322_v61  ;;  %v3285_v31 = vadd.f32 %v3284_v35, %v3222_v32 }
 0x245   : > { %3255 = vst [vmem:[%s4861_s7 + $0xf0] sm:$0xff] %v3223_v4  ;;  %v3324_v27 = vmul.f32 %v3223_v4, %v3223_v4 }
 0x246   : > { %v3286_v1 = vadd.f32 %v3285_v31, %v3223_v4  ;;  %v3354_v48 = vadd.f32 %v3353_v37, %v3323_v11 }
 0x248   : > { %v3287_v22 = vadd.f32 %v3286_v1, %v3224_v40  ;;  %v3355_v52 = vadd.f32 %v3354_v48, %v3324_v27 }
 0x24a   : > { %v3288_v7 = vrot.slane %v3287_v22, 4  ;;  %v3356_v51 = vadd.f32 %v3355_v52, %v3325_v42 }
 0x24c   : > { %v3289_v28 = vadd.f32 %v3288_v7, %v3287_v22  ;;  %v3357_v21 = vrot.slane %v3356_v51, 4 }
 0x24e   : > { %v3290_v8 = vrot.slane %v3289_v28, 2  ;;  %v3358_v62 = vadd.f32 %v3357_v21, %v3356_v51 }
 0x250   : > { %v3291_v23 = vadd.f32 %v3290_v8, %v3289_v28  ;;  %v3359_v16 = vrot.slane %v3358_v62, 2 }
 0x252   : > { %v3292_v18 = vrot.slane %v3291_v23, 1  ;;  %v3360_v60 = vadd.f32 %v3359_v16, %v3358_v62 }
 0x254   : > { %v3361_v19 = vrot.slane %v3360_v60, 1  ;;  %v3293_v56 = vadd.f32 %v3292_v18, %v3291_v23 }
 0x256   : > { %v3362_v47 = vadd.f32 %v3361_v19, %v3360_v60 }
 0x258   : > { %v3364_v25 = vsel %vm3363_vm0, %v3293_v56, %v3362_v47 }
 0x259   : > { %v3366_v50 = vsel %vm3365_vm1, %v3364_v25, 0.0 }
 0x25a   : > { %3367 = vst [vmem:[%s4866_s10] sm:$0xff] %v3366_v50 }
 0x25b PF: > { %s17_s21 = sadd.s32 1, %s4807_s21  }
 0x25c   : > { %p14_p5 = scmp.ge.s32.totalorder %s17_s21, 4  }
 0x25e   :  { %16 = sbr.rel (!%p14_p5) target bundleno = 1 (0x1), region = 96 }

</bundles_post_ra>
